<compile_context>
chip_gen: v5e
topology: v5e:2x2
jax: 0.10.0
libtpu: 0.0.40
codegen_flags: <defaults>
</compile_context>

<pallas_src>
import jax
import jax.numpy as jnp
from jax.experimental import pallas as pl
from jax.experimental.pallas import tpu as pltpu

NFEATURE = 32
H1, H2, H3, NOUT = 500, 1000, 300, 2

# Lane-aligned padded dims (multiples of 128).
NF_P, H1_P, H2_P, H3_P, NOUT_P = 128, 512, 1024, 384, 128
TM = 128            # batch rows per grid step
BATCH = 8
BN_EPS = 1e-5


def _net_kernel(x_ref,
                w1_ref, b1_ref,
                w2_ref, b2_ref,
                w3_ref, b3_ref,
                w4_ref, b4_ref,
                out_ref):
    # BN1/BN2 already folded into (w1,b1)/(w4,b4); dropout is identity in eval.
    h = jnp.dot(x_ref[...], w1_ref[...], preferred_element_type=jnp.float32)
    h = jnp.maximum(h + b1_ref[...], 0.0)

    h = jnp.dot(h.astype(jnp.bfloat16), w2_ref[...],
                preferred_element_type=jnp.float32)
    h = jnp.maximum(h + b2_ref[...], 0.0)

    h = jnp.dot(h.astype(jnp.bfloat16), w3_ref[...],
                preferred_element_type=jnp.float32)
    h = jnp.maximum(h + b3_ref[...], 0.0)

    h = jnp.dot(h.astype(jnp.bfloat16), w4_ref[...],
                preferred_element_type=jnp.float32)
    h = h + b4_ref[...]

    # sigmoid: exp + approximate reciprocal (EUP slots, free next to VPU work)
    out_ref[...] = pl.reciprocal(1.0 + jnp.exp(-h), approx=True)


def net_forward(x, kp):
    """x: [B, NFEATURE] f32.  kp: folded / padded / bf16 kernel params."""
    B = x.shape[0]
    n_tiles = pl.cdiv(B, TM)
    B_pad = n_tiles * TM

    # Pad batch to a multiple of TM and features to NF_P; cast to bf16.
    xp = jnp.zeros((B_pad, NF_P), jnp.bfloat16)
    xp = xp.at[:B, :NFEATURE].set(x.astype(jnp.bfloat16))

    def wspec(shape):
        # Weights/biases: same block every grid step -> stay VMEM-resident.
        return pl.BlockSpec(shape, lambda i: (0, 0))

    weight_elems = NF_P * H1_P + H1_P * H2_P + H2_P * H3_P + H3_P * NOUT_P
    flops = 2 * B_pad * weight_elems
    bytes_accessed = (xp.size * 2                       # bf16 activations in
                      + B_pad * NOUT_P * 4              # f32 out
                      + weight_elems * 2                # bf16 weights
                      + (H1_P + H2_P + H3_P + NOUT_P) * 4)  # f32 biases

    out = pl.pallas_call(
        _net_kernel,
        out_shape=jax.ShapeDtypeStruct((B_pad, NOUT_P), jnp.float32),
        grid=(n_tiles,),
        in_specs=[
            pl.BlockSpec((TM, NF_P), lambda i: (i, 0)),
            wspec((NF_P, H1_P)), wspec((1, H1_P)),
            wspec((H1_P, H2_P)), wspec((1, H2_P)),
            wspec((H2_P, H3_P)), wspec((1, H3_P)),
            wspec((H3_P, NOUT_P)), wspec((1, NOUT_P)),
        ],
        out_specs=pl.BlockSpec((TM, NOUT_P), lambda i: (i, 0)),
        compiler_params=pltpu.CompilerParams(
            dimension_semantics=("parallel",),
            vmem_limit_bytes=16 << 20),
        cost_estimate=pl.CostEstimate(
            flops=flops,
            transcendentals=B_pad * NOUT_P,
            bytes_accessed=bytes_accessed),
    )(xp,
      kp["w1"], kp["b1"], kp["w2"], kp["b2"],
      kp["w3"], kp["b3"], kp["w4"], kp["b4"])

    return out[:B, :NOUT]


# ----------------------------------------------------------------------------
# Parameter construction (PyTorch-Linear-style init, weights stored [in, out])
# ----------------------------------------------------------------------------
def init_raw_params(key):
    ks = jax.random.split(key, 16)

    def lin(kw, kb, fan_in, fan_out):
        bound = 1.0 / jnp.sqrt(jnp.float32(fan_in))
        w = jax.random.uniform(kw, (fan_in, fan_out), jnp.float32, -bound, bound)
        b = jax.random.uniform(kb, (fan_out,), jnp.float32, -bound, bound)
        return w, b

    w1, b1 = lin(ks[0], ks[1], NFEATURE, H1)
    w2, b2 = lin(ks[2], ks[3], H1, H2)
    w3, b3 = lin(ks[4], ks[5], H2, H3)
    w4, b4 = lin(ks[6], ks[7], H3, NOUT)

    def bn(kg, kb, km, kv, n):
        return dict(
            gamma=jax.random.uniform(kg, (n,), jnp.float32, 0.5, 1.5),
            beta=jax.random.uniform(kb, (n,), jnp.float32, -0.5, 0.5),
            mean=jax.random.uniform(km, (n,), jnp.float32, -0.5, 0.5),
            var=jax.random.uniform(kv, (n,), jnp.float32, 0.5, 1.5))

    return dict(w1=w1, b1=b1, w2=w2, b2=b2, w3=w3, b3=b3, w4=w4, b4=b4,
                bn1=bn(ks[8], ks[9], ks[10], ks[11], NFEATURE),
                bn2=bn(ks[12], ks[13], ks[14], ks[15], H3))


def fold_and_pack(raw):
    """Fold eval-mode BN into adjacent Linears, pad to lane-aligned dims, bf16 weights."""
    def fold(bn, w, b):
        scale = bn["gamma"] / jnp.sqrt(bn["var"] + BN_EPS)
        shift = bn["beta"] - bn["mean"] * scale
        return w * scale[:, None], b + shift @ w

    w1f, b1f = fold(raw["bn1"], raw["w1"], raw["b1"])
    w4f, b4f = fold(raw["bn2"], raw["w4"], raw["b4"])

    def pad_w(w, in_p, out_p):
        wp = jnp.zeros((in_p, out_p), jnp.float32)
        wp = wp.at[:w.shape[0], :w.shape[1]].set(w)
        return wp.astype(jnp.bfloat16)

    def pad_b(b, out_p):
        bp = jnp.zeros((1, out_p), jnp.float32)
        return bp.at[0, :b.shape[0]].set(b)

    return dict(
        w1=pad_w(w1f, NF_P, H1_P), b1=pad_b(b1f, H1_P),
        w2=pad_w(raw["w2"], H1_P, H2_P), b2=pad_b(raw["b2"], H2_P),
        w3=pad_w(raw["w3"], H2_P, H3_P), b3=pad_b(raw["b3"], H3_P),
        w4=pad_w(w4f, H3_P, NOUT_P), b4=pad_b(b4f, NOUT_P),
    )


def net_forward_ref(x, raw):
    """Pure-JAX f32 reference of the PyTorch eval-mode forward."""
    s1 = raw["bn1"]["gamma"] / jnp.sqrt(raw["bn1"]["var"] + BN_EPS)
    h = (x - raw["bn1"]["mean"]) * s1 + raw["bn1"]["beta"]
    h = jnp.maximum(h @ raw["w1"] + raw["b1"], 0.0)
    h = jnp.maximum(h @ raw["w2"] + raw["b2"], 0.0)
    h = jnp.maximum(h @ raw["w3"] + raw["b3"], 0.0)
    s2 = raw["bn2"]["gamma"] / jnp.sqrt(raw["bn2"]["var"] + BN_EPS)
    h = (h - raw["bn2"]["mean"]) * s2 + raw["bn2"]["beta"]
    h = h @ raw["w4"] + raw["b4"]
    return jax.nn.sigmoid(h)


if __name__ == "__main__":
    key = jax.random.PRNGKey(0)
    kx, kparam = jax.random.split(key)
    x = jax.random.normal(kx, (BATCH, NFEATURE), jnp.float32)

    raw = init_raw_params(kparam)
    kparams = fold_and_pack(raw)

    out = jax.block_until_ready(net_forward(x, kparams))
    ref = net_forward_ref(x, raw)

    assert out.shape == (BATCH, NOUT), out.shape
    max_err = float(jnp.max(jnp.abs(out - ref)))
    # bf16 weights/activations vs f32 reference: expect ~1e-2 on post-sigmoid outputs.
    assert max_err < 5e-2, f"mismatch vs JAX reference (max abs err {max_err})"
    print("KERNEL_OK")
</pallas_src>

<mosaic_0001>
module attributes {stable_mosaic.version = 11 : i64} {
  func.func @_net_kernel(%arg0: i32, %arg1: memref<128x128xbf16, #tpu.memory_space<vmem>>, %arg2: memref<128x512xbf16, #tpu.memory_space<vmem>>, %arg3: memref<1x512xf32, #tpu.memory_space<vmem>>, %arg4: memref<512x1024xbf16, #tpu.memory_space<vmem>>, %arg5: memref<1x1024xf32, #tpu.memory_space<vmem>>, %arg6: memref<1024x384xbf16, #tpu.memory_space<vmem>>, %arg7: memref<1x384xf32, #tpu.memory_space<vmem>>, %arg8: memref<384x128xbf16, #tpu.memory_space<vmem>>, %arg9: memref<1x128xf32, #tpu.memory_space<vmem>>, %arg10: memref<128x128xf32, #tpu.memory_space<vmem>>) attributes {dimension_semantics = [#tpu.dimension_semantics<parallel>], iteration_bounds = array<i64: 1>, scalar_prefetch = 0 : i64, scratch_operands = 0 : i64, tpu.core_type = #tpu.core_type<tc>, window_params = [{transform_indices = @transform_0, window_bounds = array<i64: 128, 128>}, {pipeline_mode = #tpu.pipeline_mode<synchronous>, transform_indices = @transform_1, window_bounds = array<i64: 128, 512>}, {pipeline_mode = #tpu.pipeline_mode<synchronous>, transform_indices = @transform_2, window_bounds = array<i64: 1, 512>}, {pipeline_mode = #tpu.pipeline_mode<synchronous>, transform_indices = @transform_3, window_bounds = array<i64: 512, 1024>}, {pipeline_mode = #tpu.pipeline_mode<synchronous>, transform_indices = @transform_4, window_bounds = array<i64: 1, 1024>}, {pipeline_mode = #tpu.pipeline_mode<synchronous>, transform_indices = @transform_5, window_bounds = array<i64: 1024, 384>}, {pipeline_mode = #tpu.pipeline_mode<synchronous>, transform_indices = @transform_6, window_bounds = array<i64: 1, 384>}, {pipeline_mode = #tpu.pipeline_mode<synchronous>, transform_indices = @transform_7, window_bounds = array<i64: 384, 128>}, {pipeline_mode = #tpu.pipeline_mode<synchronous>, transform_indices = @transform_8, window_bounds = array<i64: 1, 128>}, {transform_indices = @transform_9, window_bounds = array<i64: 128, 128>}]} {
    %c0 = arith.constant 0 : index
    %c0_0 = arith.constant 0 : index
    %0 = vector.load %arg1[%c0, %c0_0] : memref<128x128xbf16, #tpu.memory_space<vmem>>, vector<128x128xbf16>
    %c0_1 = arith.constant 0 : index
    %c0_2 = arith.constant 0 : index
    %1 = vector.load %arg2[%c0_1, %c0_2] : memref<128x512xbf16, #tpu.memory_space<vmem>>, vector<128x512xbf16>
    %cst = arith.constant dense<0.000000e+00> : vector<128x512xf32>
    %2 = tpu.matmul %0, %1, %cst {dimension_numbers = #tpu.dot_dimension_numbers<[1], [0], [0], [1], [0, 0, 1, 1], [], []>} : vector<128x128xbf16>, vector<128x512xbf16>, vector<128x512xf32> -> vector<128x512xf32>
    %c0_3 = arith.constant 0 : index
    %c0_4 = arith.constant 0 : index
    %3 = vector.load %arg3[%c0_3, %c0_4] : memref<1x512xf32, #tpu.memory_space<vmem>>, vector<1x512xf32>
    %4 = vector.broadcast %3 : vector<1x512xf32> to vector<128x512xf32>
    %5 = arith.addf %2, %4 : vector<128x512xf32>
    %cst_5 = arith.constant 0.000000e+00 : f32
    %6 = vector.broadcast %cst_5 : f32 to vector<128x512xf32>
    %7 = arith.maximumf %5, %6 : vector<128x512xf32>
    %8 = arith.truncf %7 : vector<128x512xf32> to vector<128x512xbf16>
    %c0_6 = arith.constant 0 : index
    %c0_7 = arith.constant 0 : index
    %9 = vector.load %arg4[%c0_6, %c0_7] : memref<512x1024xbf16, #tpu.memory_space<vmem>>, vector<512x1024xbf16>
    %cst_8 = arith.constant dense<0.000000e+00> : vector<128x1024xf32>
    %10 = tpu.matmul %8, %9, %cst_8 {dimension_numbers = #tpu.dot_dimension_numbers<[1], [0], [0], [1], [0, 0, 1, 1], [], []>} : vector<128x512xbf16>, vector<512x1024xbf16>, vector<128x1024xf32> -> vector<128x1024xf32>
    %c0_9 = arith.constant 0 : index
    %c0_10 = arith.constant 0 : index
    %11 = vector.load %arg5[%c0_9, %c0_10] : memref<1x1024xf32, #tpu.memory_space<vmem>>, vector<1x1024xf32>
    %12 = vector.broadcast %11 : vector<1x1024xf32> to vector<128x1024xf32>
    %13 = arith.addf %10, %12 : vector<128x1024xf32>
    %cst_11 = arith.constant 0.000000e+00 : f32
    %14 = vector.broadcast %cst_11 : f32 to vector<128x1024xf32>
    %15 = arith.maximumf %13, %14 : vector<128x1024xf32>
    %16 = arith.truncf %15 : vector<128x1024xf32> to vector<128x1024xbf16>
    %c0_12 = arith.constant 0 : index
    %c0_13 = arith.constant 0 : index
    %17 = vector.load %arg6[%c0_12, %c0_13] : memref<1024x384xbf16, #tpu.memory_space<vmem>>, vector<1024x384xbf16>
    %cst_14 = arith.constant dense<0.000000e+00> : vector<128x384xf32>
    %18 = tpu.matmul %16, %17, %cst_14 {dimension_numbers = #tpu.dot_dimension_numbers<[1], [0], [0], [1], [0, 0, 1, 1], [], []>} : vector<128x1024xbf16>, vector<1024x384xbf16>, vector<128x384xf32> -> vector<128x384xf32>
    %c0_15 = arith.constant 0 : index
    %c0_16 = arith.constant 0 : index
    %19 = vector.load %arg7[%c0_15, %c0_16] : memref<1x384xf32, #tpu.memory_space<vmem>>, vector<1x384xf32>
    %20 = vector.broadcast %19 : vector<1x384xf32> to vector<128x384xf32>
    %21 = arith.addf %18, %20 : vector<128x384xf32>
    %cst_17 = arith.constant 0.000000e+00 : f32
    %22 = vector.broadcast %cst_17 : f32 to vector<128x384xf32>
    %23 = arith.maximumf %21, %22 : vector<128x384xf32>
    %24 = arith.truncf %23 : vector<128x384xf32> to vector<128x384xbf16>
    %c0_18 = arith.constant 0 : index
    %c0_19 = arith.constant 0 : index
    %25 = vector.load %arg8[%c0_18, %c0_19] : memref<384x128xbf16, #tpu.memory_space<vmem>>, vector<384x128xbf16>
    %cst_20 = arith.constant dense<0.000000e+00> : vector<128x128xf32>
    %26 = tpu.matmul %24, %25, %cst_20 {dimension_numbers = #tpu.dot_dimension_numbers<[1], [0], [0], [1], [0, 0, 1, 1], [], []>} : vector<128x384xbf16>, vector<384x128xbf16>, vector<128x128xf32> -> vector<128x128xf32>
    %c0_21 = arith.constant 0 : index
    %c0_22 = arith.constant 0 : index
    %27 = vector.load %arg9[%c0_21, %c0_22] : memref<1x128xf32, #tpu.memory_space<vmem>>, vector<1x128xf32>
    %28 = vector.broadcast %27 : vector<1x128xf32> to vector<128x128xf32>
    %29 = arith.addf %26, %28 : vector<128x128xf32>
    %cst_23 = arith.constant 0.000000e+00 : f32
    %30 = vector.broadcast %cst_23 : f32 to vector<128x128xf32>
    %31 = arith.subf %30, %29 : vector<128x128xf32>
    %32 = math.exp %31 : vector<128x128xf32>
    %cst_24 = arith.constant 1.000000e+00 : f32
    %33 = vector.broadcast %cst_24 : f32 to vector<128x128xf32>
    %34 = arith.addf %33, %32 : vector<128x128xf32>
    %35 = tpu.reciprocal %34 {approx = true} : vector<128x128xf32> -> vector<128x128xf32>
    %c0_25 = arith.constant 0 : index
    %c0_26 = arith.constant 0 : index
    %36 = vector.load %arg10[%c0_25, %c0_26] : memref<128x128xf32, #tpu.memory_space<vmem>>, vector<128x128xf32>
    tpu.vector_store %arg10[%c0_25, %c0_26], %35 {strides = array<i32>} : memref<128x128xf32, #tpu.memory_space<vmem>>, vector<128x128xf32>,
    return
  }
  func.func @transform_0(%arg0: i32) -> (i32, i32) {
    %c0_i32 = arith.constant 0 : i32
    %c0_i32_0 = arith.constant 0 : i32
    return %arg0, %c0_i32 : i32, i32
  }
  func.func @transform_1(%arg0: i32) -> (i32, i32) {
    %c0_i32 = arith.constant 0 : i32
    %c0_i32_0 = arith.constant 0 : i32
    %c0_i32_1 = arith.constant 0 : i32
    return %c0_i32, %c0_i32_0 : i32, i32
  }
  func.func @transform_2(%arg0: i32) -> (i32, i32) {
    %c0_i32 = arith.constant 0 : i32
    %c0_i32_0 = arith.constant 0 : i32
    %c0_i32_1 = arith.constant 0 : i32
    return %c0_i32, %c0_i32_0 : i32, i32
  }
  func.func @transform_3(%arg0: i32) -> (i32, i32) {
    %c0_i32 = arith.constant 0 : i32
    %c0_i32_0 = arith.constant 0 : i32
    %c0_i32_1 = arith.constant 0 : i32
    return %c0_i32, %c0_i32_0 : i32, i32
  }
  func.func @transform_4(%arg0: i32) -> (i32, i32) {
    %c0_i32 = arith.constant 0 : i32
    %c0_i32_0 = arith.constant 0 : i32
    %c0_i32_1 = arith.constant 0 : i32
    return %c0_i32, %c0_i32_0 : i32, i32
  }
  func.func @transform_5(%arg0: i32) -> (i32, i32) {
    %c0_i32 = arith.constant 0 : i32
    %c0_i32_0 = arith.constant 0 : i32
    %c0_i32_1 = arith.constant 0 : i32
    return %c0_i32, %c0_i32_0 : i32, i32
  }
  func.func @transform_6(%arg0: i32) -> (i32, i32) {
    %c0_i32 = arith.constant 0 : i32
    %c0_i32_0 = arith.constant 0 : i32
    %c0_i32_1 = arith.constant 0 : i32
    return %c0_i32, %c0_i32_0 : i32, i32
  }
  func.func @transform_7(%arg0: i32) -> (i32, i32) {
    %c0_i32 = arith.constant 0 : i32
    %c0_i32_0 = arith.constant 0 : i32
    %c0_i32_1 = arith.constant 0 : i32
    return %c0_i32, %c0_i32_0 : i32, i32
  }
  func.func @transform_8(%arg0: i32) -> (i32, i32) {
    %c0_i32 = arith.constant 0 : i32
    %c0_i32_0 = arith.constant 0 : i32
    %c0_i32_1 = arith.constant 0 : i32
    return %c0_i32, %c0_i32_0 : i32, i32
  }
  func.func @transform_9(%arg0: i32) -> (i32, i32) {
    %c0_i32 = arith.constant 0 : i32
    %c0_i32_0 = arith.constant 0 : i32
    return %arg0, %c0_i32 : i32, i32
  }
}

</mosaic_0001>

<bundles_post_ra>
// kernel: tpu_custom_call.1
= control target key start
LH: loop header
LB: loop body
LE: loop exit
PB: predicated region body
PF: predicated region fallthrough
CT: control target
= control target key end

     0   :  { %14 = vsyncpa [#allocation3], 0  ;;  %s12802_s0 = inlined_call_operand.hbm [shape: bf16[128,128], index: 0, kind: input, shape index: {}]   ;;  %s12803_s1 = inlined_call_operand.hbm [shape: bf16[128,512], index: 1, kind: input, shape index: {}]   ;;  %s12804_s2 = inlined_call_operand.hbm [shape: f32[1,512], index: 2, kind: input, shape index: {}]   ;;  %s12805_s3 = inlined_call_operand.hbm [shape: bf16[512,1024], index: 3, kind: input, shape index: {}]   ;;  %s12806_s4 = inlined_call_operand.hbm [shape: f32[1,1024], index: 4, kind: input, shape index: {}]   ;;  %s12807_s5 = inlined_call_operand.hbm [shape: bf16[1024,384], index: 5, kind: input, shape index: {}]   ;;  %s12808_s6 = inlined_call_operand.vmem [shape: f32[1,384], index: 6, kind: input, shape index: {}]   ;;  %s12809_s7 = inlined_call_operand.hbm [shape: bf16[384,128], index: 7, kind: input, shape index: {}]   ;;  %s12810_s8 = inlined_call_operand.vmem [shape: f32[1,128], index: 8, kind: input, shape index: {}]   ;;  %s12811_s9 = inlined_call_operand.hbm [shape: f32[128,128], index: 9, kind: output, shape index: {}]  }
   0x1   :  { %15 = vsyncpa [#allocation6], 0 }
   0x2   :  { %16 = vsyncpa [#allocation9], 0 }
   0x3   :  { %17 = vsyncpa [#allocation12], 0  ;;  %s36_s11 = sshll.u32 %s12803_s1, 4  ;;  %s37_s11 = int_to_ptr.hbm [resolvable:$true] %s36_s11 }
   0x4   :  { %18 = vsyncpa [#allocation4], 0  ;;  %s9881_s12 = smov [#allocation5]   ;;  %s60_s16 = sshll.u32 %s12805_s3, 4  ;;  %s61_s16 = int_to_ptr.hbm [resolvable:$true] %s60_s16 }
   0x5   :  { %s38_s13 = sshll.u32 %s9881_s12, 4  ;;  %s9882_s17 = smov 256   ;;  %s39_s13 = int_to_ptr.vmem [resolvable:$true] %s38_s13 }
   0x6   :  { %s9883_s18 = smov 16   ;;  %s9884_s19 = smov [#allocation8]  }
   0x7   :  { %44 = dma.hbm_to_vmem [thread:$0]  %s37_s11, 4096, %s39_s13, [#allocation6], %s9882_s17, %s9882_s17, %s9883_s18  }
   0x8   :  { %s62_s20 = sshll.u32 %s9884_s19, 4  ;;  %s9885_s21 = smov 512   ;;  %s63_s20 = int_to_ptr.vmem [resolvable:$true] %s62_s20 }
   0x9   :  { %s9886_s22 = smov 32   ;;  %s84_s24 = sshll.u32 %s12807_s5, 4  ;;  %s85_s24 = int_to_ptr.hbm [resolvable:$true] %s84_s24 }
   0xa   :  { %68 = dma.hbm_to_vmem [thread:$0]  %s61_s16, 32768, %s63_s20, [#allocation9], %s9885_s21, %s9885_s21, %s9886_s22  }
   0xb   :  { %s9887_s25 = smov [#allocation11]   ;;  %s23_s28 = sshll.u32 %s12802_s0, 4  ;;  %s24_s28 = int_to_ptr.hbm [resolvable:$true] %s23_s28 }
   0xc   :  { %s86_s26 = sshll.u32 %s9887_s25, 4  ;;  %s9888_s29 = smov 192   ;;  %s87_s26 = int_to_ptr.vmem [resolvable:$true] %s86_s26 }
   0xd   :  { %s9889_s30 = smov 12   ;;  %s9890_s10 = smov [#allocation2]  }
   0xe   :  { %92 = dma.hbm_to_vmem [thread:$0]  %s85_s24, 24576, %s87_s26, [#allocation12], %s9888_s29, %s9888_s29, %s9889_s30  }
   0xf   :  { %s25_s11 = sshll.u32 %s9890_s10, 4  ;;  %s9891_s12 = smov 64   ;;  %s26_s11 = int_to_ptr.vmem [resolvable:$true] %s25_s11 }
  0x10   :  { %s9892_s13 = smov 4   ;;  %s50_s15 = sshll.u32 %s12804_s2, 4  ;;  %s51_s15 = int_to_ptr.hbm [resolvable:$true] %s50_s15 }
  0x11   :  { %31 = dma.hbm_to_vmem [thread:$0]  %s24_s28, 1024, %s26_s11, [#allocation3], %s9891_s12, %s9891_s12, %s9892_s13  }
  0x12   :  { %s9893_s16 = smov [#allocation7]   ;;  %s74_s19 = sshll.u32 %s12806_s4, 4  ;;  %s75_s19 = int_to_ptr.hbm [resolvable:$true] %s74_s19 }
  0x13   :  { %s52_s17 = sshll.u32 %s9893_s16, 4  ;;  %s9894_s20 = smov [#allocation10]   ;;  %s53_s17 = int_to_ptr.vmem [resolvable:$true] %s52_s17 }
  0x14   :  { %55 = dma.hbm_to_vmem [thread:$0]  %s51_s15, 64, %s53_s17, [#allocation6]  }
  0x15   :  { %s76_s21 = sshll.u32 %s9894_s20, 4  ;;  %s99_s23 = sshll.u32 %s12809_s7, 4  ;;  %s77_s21 = int_to_ptr.vmem [resolvable:$true] %s76_s21  ;;  %s100_s23 = int_to_ptr.hbm [resolvable:$true] %s99_s23 }
  0x16   :  { %79 = dma.hbm_to_vmem [thread:$0]  %s75_s19, 128, %s77_s21, [#allocation9]  }
  0x17   :  { %s9895_s2 = smov [#allocation13]  }
  0x18   :  { %s101_s24 = sshll.u32 %s9895_s2, 4  ;;  %s102_s24 = int_to_ptr.vmem [resolvable:$true] %s101_s24 }
  0x19   :  { %107 = dma.hbm_to_vmem [thread:$0]  %s100_s23, 3072, %s102_s24, [#allocation12], %s9891_s12, %s9891_s12, %s9892_s13  }
  0x1a   :  { %9871 = dma.done.wait [#allocation3], 1024  }
  0x1b   :  { %9872 = vsyncadd [#allocation3], 4294966272 }
  0x1c   :  { %9873 = dma.done.wait [#allocation6], 4160  }
  0x1d   :  { %9874 = vsyncadd [#allocation6], 4294963136 }
  0x1e   :  { %9875 = dma.done.wait [#allocation9], 32896  }
  0x1f   :  { %9876 = vsyncadd [#allocation9], 4294934400 }
  0x20   :  { %9877 = dma.done.wait [#allocation12], 27648  }
  0x21   :  { %9878 = vsyncadd [#allocation12], 4294939648  ;;  %v7153_v0 = vld [vmem:[#allocation5 + $0xe0] sm:$0xf]  ;;  %v9093_v1 = vld [vmem:[#allocation5 + $0xec] sm:$0xf0] }
  0x22   :  { %v7137_v2 = vld [vmem:[#allocation5 + $0xc0] sm:$0xf]  ;;  %v7154_v3 = vor.u32 %v9093_v1, %v7153_v0  ;;  %v9089_v4 = vld [vmem:[#allocation5 + $0xcc] sm:$0xf0]  ;;  %v9091_v8 = vld [vmem:[#allocation5 + $0xe4] sm:$0xf] }
  0x23   :  { %v7138_v5 = vor.u32 %v9089_v4, %v7137_v2  ;;  %v7121_v6 = vld [vmem:[#allocation5 + $0xa0] sm:$0xf]  ;;  %v9085_v7 = vld [vmem:[#allocation5 + $0xac] sm:$0xf0]  ;;  %v7155_v10 = vld [vmem:[#allocation5 + $0xf0] sm:$0xf0] }
  0x24   :  { %404 = vmatpush.bf16.msra.mxu0 %v7154_v3  ;;  %9567 = vmatpush.bf16.msra.mxu3 %v7154_v3  ;;  %v7122_v9 = vor.u32 %v9085_v7, %v7121_v6  ;;  %v7105_v11 = vld [vmem:[#allocation5 + $0x80] sm:$0xf]  ;;  %v9081_v12 = vld [vmem:[#allocation5 + $0x8c] sm:$0xf0]  ;;  %v7158_v13 = vor.u32 %v9091_v8, %v7155_v10  ;;  %v9087_v14 = vld [vmem:[#allocation5 + $0xc4] sm:$0xf] }
  0x25   :  { %v7139_v15 = vld [vmem:[#allocation5 + $0xd0] sm:$0xf0]  ;;  %v7106_v16 = vor.u32 %v9081_v12, %v7105_v11  ;;  %v7089_v17 = vld [vmem:[#allocation5 + $0x60] sm:$0xf]  ;;  %v9077_v18 = vld [vmem:[#allocation5 + $0x6c] sm:$0xf0] }
  0x26   :  { %9575 = vmatpush.bf16.msra.mxu1 %v7158_v13  ;;  %v9970_v19 = vor.u32 %v9087_v14, %v7139_v15  ;;  %v9083_v20 = vld [vmem:[#allocation5 + $0xa4] sm:$0xf]  ;;  %v7123_v21 = vld [vmem:[#allocation5 + $0xb0] sm:$0xf0]  ;;  %v7090_v22 = vor.u32 %v9077_v18, %v7089_v17  ;;  %v7073_v23 = vld [vmem:[#allocation5 + $0x40] sm:$0xf] }
  0x27   :  { %v9073_v24 = vld [vmem:[#allocation5 + $0x4c] sm:$0xf0]  ;;  %v9973_v25 = vor.u32 %v9083_v20, %v7123_v21  ;;  %v9079_v26 = vld [vmem:[#allocation5 + $0x84] sm:$0xf]  ;;  %v7107_v27 = vld [vmem:[#allocation5 + $0x90] sm:$0xf0] }
  0x28   :  { %405 = vmatpush.bf16.msra.mxu0 %v7138_v5  ;;  %9568 = vmatpush.bf16.msra.mxu3 %v7138_v5  ;;  %v7074_v28 = vor.u32 %v9073_v24, %v7073_v23  ;;  %v7057_v29 = vld [vmem:[#allocation5 + $0x20] sm:$0xf]  ;;  %v9069_v30 = vld [vmem:[#allocation5 + $0x2c] sm:$0xf0]  ;;  %v9976_v31 = vor.u32 %v9079_v26, %v7107_v27  ;;  %v9075_v32 = vld [vmem:[#allocation5 + $0x64] sm:$0xf] }
  0x29   :  { %v7091_v33 = vld [vmem:[#allocation5 + $0x70] sm:$0xf0]  ;;  %v7058_v34 = vor.u32 %v9069_v30, %v7057_v29  ;;  %v7041_v35 = vld [vmem:[#allocation5] sm:$0xf]  ;;  %v9065_v36 = vld [vmem:[#allocation5 + $0xc] sm:$0xf0] }
  0x2a   :  { %9576 = vmatpush.bf16.msra.mxu1 %v9970_v19  ;;  %v9092_v37 = vld [vmem:[#allocation5 + $0xec] sm:$0xf]  ;;  %v7094_v38 = vor.u32 %v9075_v32, %v7091_v33  ;;  %v7163_v39 = vld [vmem:[#allocation5 + $0xf8] sm:$0xf0]  ;;  %v9071_v40 = vld [vmem:[#allocation5 + $0x44] sm:$0xf]  ;;  %v7042_v42 = vor.u32 %v9065_v36, %v7041_v35 }
  0x2b   :  { %v7075_v41 = vld [vmem:[#allocation5 + $0x50] sm:$0xf0]  ;;  %v7166_v43 = vor.u32 %v9092_v37, %v7163_v39  ;;  %v9981_v45 = vld [vmem:[#allocation2] sm:$0xff]  ;;  %v9088_v46 = vld [vmem:[#allocation5 + $0xcc] sm:$0xf]  ;;  %s6991_s11 = sshll.u32 %s12811_s9, 4  ;;  %s6992_s11 = int_to_ptr.hbm [resolvable:$true] %s6991_s11 }
  0x2c   :  { %406 = vmatpush.bf16.msra.mxu0 %v7122_v9  ;;  %9569 = vmatpush.bf16.msra.mxu3 %v7122_v9  ;;  %v9979_v44 = vor.u32 %v9071_v40, %v7075_v41  ;;  %v7147_v47 = vld [vmem:[#allocation5 + $0xd8] sm:$0xf0]  ;;  %v9983_v48 = vld [vmem:[#allocation2 + $0x10] sm:$0xff]  ;;  %v9067_v49 = vld [vmem:[#allocation5 + $0x24] sm:$0xf]  ;;  %s9897_s12 = smov 128  }
  0x2d   :  { %v7059_v50 = vld [vmem:[#allocation5 + $0x30] sm:$0xf0]  ;;  %v7150_v51 = vor.u32 %v9088_v46, %v7147_v47  ;;  %v7161_v52 = vld [vmem:[#allocation5 + $0xe8] sm:$0xf]  ;;  %v9094_v53 = vld [vmem:[#allocation5 + $0xf4] sm:$0xf0] }
  0x2e   :  { %9577 = vmatpush.bf16.msra.mxu1 %v9973_v25  ;;  %v9084_v54 = vld [vmem:[#allocation5 + $0xac] sm:$0xf]  ;;  %v7131_v55 = vld [vmem:[#allocation5 + $0xb8] sm:$0xf0]  ;;  %v7062_v56 = vor.u32 %v9067_v49, %v7059_v50  ;;  %v7162_v57 = vor.u32 %v9094_v53, %v7161_v52  ;;  %v9063_v58 = vld [vmem:[#allocation5 + $0x4] sm:$0xf] }
  0x2f   :  { %v7043_v59 = vld [vmem:[#allocation5 + $0x10] sm:$0xf0]  ;;  %v7145_v60 = vld [vmem:[#allocation5 + $0xc8] sm:$0xf]  ;;  %v9090_v61 = vld [vmem:[#allocation5 + $0xd4] sm:$0xf0]  ;;  %v7134_v62 = vor.u32 %v9084_v54, %v7131_v55 }
  0x30   :  { %407 = vmatpush.bf16.msra.mxu0 %v7106_v16  ;;  %9570 = vmatpush.bf16.msra.mxu3 %v7106_v16  ;;  %v7046_v63 = vor.u32 %v9063_v58, %v7043_v59  ;;  %v9080_v0 = vld [vmem:[#allocation5 + $0x8c] sm:$0xf]  ;;  %v7115_v1 = vld [vmem:[#allocation5 + $0x98] sm:$0xf0]  ;;  %v7146_v2 = vor.u32 %v9090_v61, %v7145_v60  ;;  %v7129_v3 = vld [vmem:[#allocation5 + $0xa8] sm:$0xf] }
  0x31   :  { %9583 = vmatpush.bf16.msra.mxu2 %v7162_v57  ;;  %v9086_v4 = vld [vmem:[#allocation5 + $0xb4] sm:$0xf0]  ;;  %v7118_v5 = vor.u32 %v9080_v0, %v7115_v1  ;;  %v7113_v7 = vld [vmem:[#allocation5 + $0x88] sm:$0xf]  ;;  %v9076_v15 = vld [vmem:[#allocation5 + $0x6c] sm:$0xf] }
  0x32   :  { %9578 = vmatpush.bf16.msra.mxu1 %v9976_v31  ;;  %v7130_v6 = vor.u32 %v9086_v4, %v7129_v3  ;;  %v9082_v8 = vld [vmem:[#allocation5 + $0x94] sm:$0xf0]  ;;  %v9992_v10 = vld [vmem:[#allocation2 + $0x8] sm:$0xff]  ;;  %v7099_v16 = vld [vmem:[#allocation5 + $0x78] sm:$0xf0]  ;;  %s9898_s13 = smov 8  }
  0x33   :  { %v7114_v9 = vor.u32 %v9082_v8, %v7113_v7  ;;  %v9994_v11 = vld [vmem:[#allocation2 + $0x18] sm:$0xff]  ;;  %v7097_v12 = vld [vmem:[#allocation5 + $0x68] sm:$0xf]  ;;  %v7102_v18 = vor.u32 %v9076_v15, %v7099_v16  ;;  %v9072_v21 = vld [vmem:[#allocation5 + $0x4c] sm:$0xf] }
  0x34   :  { %408 = vmatpush.bf16.msra.mxu0 %v7090_v22  ;;  %9571 = vmatpush.bf16.msra.mxu3 %v7090_v22  ;;  %v7081_v17 = vld [vmem:[#allocation5 + $0x48] sm:$0xf]  ;;  %v7083_v22 = vld [vmem:[#allocation5 + $0x58] sm:$0xf0]  ;;  %v9070_v24 = vld [vmem:[#allocation5 + $0x34] sm:$0xf0] }
  0x35   :  { %9584 = vmatpush.bf16.msra.mxu2 %v7146_v2  ;;  %v7065_v23 = vld [vmem:[#allocation5 + $0x28] sm:$0xf]  ;;  %v10000_v30 = vld [vmem:[#allocation2 + $0x20] sm:$0xff]  ;;  %v7067_v32 = vld [vmem:[#allocation5 + $0x38] sm:$0xf0] }
  0x36   :  { %9579 = vmatpush.bf16.msra.mxu1 %v7094_v38  ;;  %v7066_v26 = vor.u32 %v9070_v24, %v7065_v23  ;;  %v7049_v27 = vld [vmem:[#allocation5 + $0x8] sm:$0xf]  ;;  %v9064_v35 = vld [vmem:[#allocation5 + $0xc] sm:$0xf]  ;;  %v7051_v36 = vld [vmem:[#allocation5 + $0x18] sm:$0xf0] }
  0x37   :  { %v7054_v37 = vor.u32 %v9064_v35, %v7051_v36  ;;  %v7393_v39 = vld [vmem:[#allocation8 + $0x1c0] sm:$0xf] }
  0x38   :  { %409 = vmatpush.bf16.msra.mxu0 %v7074_v28  ;;  %9572 = vmatpush.bf16.msra.mxu3 %v7074_v28  ;;  %v9066_v28 = vld [vmem:[#allocation5 + $0x14] sm:$0xf0]  ;;  %v9155_v40 = vld [vmem:[#allocation8 + $0x1dc] sm:$0xf0] }
  0x39   :  { %9585 = vmatpush.bf16.msra.mxu2 %v7130_v6  ;;  %v7050_v29 = vor.u32 %v9066_v28, %v7049_v27  ;;  %v7394_v41 = vor.u32 %v9155_v40, %v7393_v39  ;;  %v8161_v47 = vld [vmem:[#allocation8 + $0x7c0] sm:$0xf] }
  0x3a   :  { %9580 = vmatpush.bf16.msra.mxu1 %v9979_v44  ;;  %v9347_v49 = vld [vmem:[#allocation8 + $0x7dc] sm:$0xf0] }
  0x3b   :  { %v7329_v50 = vld [vmem:[#allocation8 + $0x140] sm:$0xf] }
  0x3c   :  { %410 = vmatpush.bf16.msra.mxu0 %v7058_v34  ;;  %9573 = vmatpush.bf16.msra.mxu3 %v7058_v34  ;;  %v10006_v34 = vld [vmem:[#allocation2 + $0x28] sm:$0xff]  ;;  %v9139_v52 = vld [vmem:[#allocation8 + $0x15c] sm:$0xf0] }
  0x3d   :  { %9586 = vmatpush.bf16.msra.mxu2 %v7114_v9  ;;  %v7330_v53 = vor.u32 %v9139_v52, %v7329_v50  ;;  %v7297_v54 = vld [vmem:[#allocation8 + $0x100] sm:$0xf] }
  0x3e   :  { %9581 = vmatpush.bf16.msra.mxu1 %v7062_v56  ;;  %v9131_v55 = vld [vmem:[#allocation8 + $0x11c] sm:$0xf0] }
  0x3f   :  { %v9123_v58 = vld [vmem:[#allocation8 + $0xdc] sm:$0xf0] }
  0x40   :  { %411 = vmatpush.bf16.msra.mxu0 %v7042_v42  ;;  %9574 = vmatpush.bf16.msra.mxu3 %v7042_v42  ;;  %v10018_v42 = vld [vmem:[#allocation2 + $0x38] sm:$0xff]  ;;  %v7233_v60 = vld [vmem:[#allocation8 + $0x80] sm:$0xf] }
  0x41   :  { %v9115_v61 = vld [vmem:[#allocation8 + $0x9c] sm:$0xf0] }
  0x42   :  { %9582 = vmatpush.bf16.msra.mxu1 %v7046_v63  ;;  %v9339_v0 = vld [vmem:[#allocation8 + $0x79c] sm:$0xf0] }
  0x43   :  { %412 = vmatmul.bf16.vlgmr.msra.gmra.mxu0 %v9981_v45  ;;  %422 = vmatmul.bf16.vlgmr.msra.gmra.mxu3 %v9983_v48  ;;  %v9107_v3 = vld [vmem:[#allocation8 + $0x5c] sm:$0xf0] }
  0x44   :  { %551 = vmatpush.bf16.msrb.mxu3 %v7166_v43  ;;  %453 = vmatpush.bf16.msrb.mxu0 %v7158_v13  ;;  %v9078_v13 = vld [vmem:[#allocation5 + $0x74] sm:$0xf0]  ;;  %v7361_v43 = vld [vmem:[#allocation8 + $0x180] sm:$0xf] }
  0x45   :  { %471 = vmatmul.bf16.vlgmr.msra.gmra.mxu1 %v9983_v48  ;;  %v7098_v14 = vor.u32 %v9078_v13, %v7097_v12  ;;  %v7649_v8 = vld [vmem:[#allocation8 + $0x3c0] sm:$0xf] }
  0x46   :  { %v9211_v13 = vld [vmem:[#allocation8 + $0x39c] sm:$0xf0] }
  0x47   :  { %9587 = vmatpush.bf16.msra.mxu2 %v7098_v14  ;;  %v7905_v15 = vld [vmem:[#allocation8 + $0x5c0] sm:$0xf] }
  0x48   :  { %454 = vmatpush.bf16.msrb.mxu0 %v9970_v19  ;;  %552 = vmatpush.bf16.msrb.mxu3 %v7150_v51  ;;  %v9074_v19 = vld [vmem:[#allocation5 + $0x54] sm:$0xf0]  ;;  %v8162_v51 = vor.u32 %v9347_v49, %v8161_v47  ;;  %v9283_v16 = vld [vmem:[#allocation8 + $0x5dc] sm:$0xf0] }
  0x49   :  { %v7082_v20 = vor.u32 %v9074_v19, %v7081_v17  ;;  %v8097_v17 = vld [vmem:[#allocation8 + $0x740] sm:$0xf] }
  0x4a   :  { %v9331_v19 = vld [vmem:[#allocation8 + $0x75c] sm:$0xf0] }
  0x4b   :  { %9588 = vmatpush.bf16.msra.mxu2 %v7082_v20  ;;  %v7553_v24 = vld [vmem:[#allocation8 + $0x300] sm:$0xf] }
  0x4c   :  { %455 = vmatpush.bf16.msrb.mxu0 %v9973_v25  ;;  %553 = vmatpush.bf16.msrb.mxu3 %v7134_v62  ;;  %v7086_v25 = vor.u32 %v9072_v21, %v7083_v22  ;;  %v7234_v62 = vor.u32 %v9115_v61, %v7233_v60  ;;  %v7585_v21 = vld [vmem:[#allocation8 + $0x340] sm:$0xf] }
  0x4d   :  { %v9203_v22 = vld [vmem:[#allocation8 + $0x35c] sm:$0xf0] }
  0x4e   :  { %v7586_v23 = vor.u32 %v9203_v22, %v7585_v21  ;;  %v9187_v27 = vld [vmem:[#allocation8 + $0x2dc] sm:$0xf0] }
  0x4f   :  { %9589 = vmatpush.bf16.msra.mxu2 %v7066_v26  ;;  %v9275_v39 = vld [vmem:[#allocation8 + $0x59c] sm:$0xf0] }
  0x50   :  { %456 = vmatpush.bf16.msrb.mxu0 %v9976_v31  ;;  %554 = vmatpush.bf16.msrb.mxu3 %v7118_v5  ;;  %v9068_v31 = vld [vmem:[#allocation5 + $0x2c] sm:$0xf]  ;;  %v7169_v5 = vld [vmem:[#allocation8] sm:$0xf] }
  0x51   :  { %v7070_v33 = vor.u32 %v9068_v31, %v7067_v32  ;;  %v7489_v32 = vld [vmem:[#allocation8 + $0x280] sm:$0xf] }
  0x52   :  { %v7457_v47 = vld [vmem:[#allocation8 + $0x240] sm:$0xf] }
  0x53   :  { %417 = vmatmul.bf16.gmra.mxu0 %v9992_v10  ;;  %427 = vmatmul.bf16.gmra.mxu3 %v9994_v11  ;;  %v9171_v49 = vld [vmem:[#allocation8 + $0x25c] sm:$0xf0] }
  0x54   :  { %457 = vmatpush.bf16.msrb.mxu0 %v7094_v38  ;;  %555 = vmatpush.bf16.msrb.mxu3 %v7102_v18  ;;  %v10012_v38 = vld [vmem:[#allocation2 + $0x30] sm:$0xff]  ;;  %v7906_v18 = vor.u32 %v9283_v16, %v7905_v15  ;;  %v9267_v60 = vld [vmem:[#allocation8 + $0x55c] sm:$0xf0] }
  0x55   :  { %476 = vmatmul.bf16.gmra.mxu1 %v9994_v11  ;;  %9590 = vmatpush.bf16.msra.mxu2 %v7050_v29 }
  0x58   :  { %458 = vmatpush.bf16.msrb.mxu0 %v9979_v44  ;;  %556 = vmatpush.bf16.msrb.mxu3 %v7086_v25  ;;  %v9147_v44 = vld [vmem:[#allocation8 + $0x19c] sm:$0xf0] }
  0x59   :  { %520 = vmatmul.bf16.vlgmr.msra.gmra.mxu2 %v9983_v48  ;;  %v7362_v46 = vor.u32 %v9147_v44, %v7361_v43  ;;  %v9195_v25 = vld [vmem:[#allocation8 + $0x31c] sm:$0xf0] }
  0x5a   :  { %2348 = vmatpush.bf16.msrb.mxu2 %v7906_v18  ;;  %v9323_v43 = vld [vmem:[#allocation8 + $0x71c] sm:$0xf0] }
  0x5c   :  { %459 = vmatpush.bf16.msrb.mxu0 %v7062_v56  ;;  %557 = vmatpush.bf16.msrb.mxu3 %v7070_v33  ;;  %v7298_v56 = vor.u32 %v9131_v55, %v7297_v54  ;;  %v9179_v33 = vld [vmem:[#allocation8 + $0x29c] sm:$0xf0] }
  0x5d   :  { %v7490_v35 = vor.u32 %v9179_v33, %v7489_v32  ;;  %v7425_v54 = vld [vmem:[#allocation8 + $0x200] sm:$0xf] }
  0x5e   :  { %v9163_v55 = vld [vmem:[#allocation8 + $0x21c] sm:$0xf0] }
  0x60   :  { %460 = vmatpush.bf16.msrb.mxu0 %v7046_v63  ;;  %558 = vmatpush.bf16.msrb.mxu3 %v7054_v37  ;;  %v8129_v63 = vld [vmem:[#allocation8 + $0x780] sm:$0xf] }
  0x61   :  { %v8130_v1 = vor.u32 %v9339_v0, %v8129_v63  ;;  %v7873_v37 = vld [vmem:[#allocation8 + $0x580] sm:$0xf] }
  0x62   :  { %v7874_v40 = vor.u32 %v9275_v39, %v7873_v37  ;;  %v8033_v0 = vld [vmem:[#allocation8 + $0x6c0] sm:$0xf] }
  0x63   :  { %432 = vmatmul.bf16.gmra.mxu3 %v10000_v30  ;;  %461 = vmatmul.bf16.vlgmr.msrb.gmra.mxu0 %v9981_v45 }
  0x64   :  { %502 = vmatpush.bf16.msra.mxu0 %v7162_v57  ;;  %2397 = vmatpush.bf16.msra.mxu3 %v8162_v51  ;;  %v7265_v57 = vld [vmem:[#allocation8 + $0xc0] sm:$0xf]  ;;  %v7458_v51 = vor.u32 %v9171_v49, %v7457_v47 }
  0x65   :  { %481 = vmatmul.bf16.gmra.mxu1 %v10000_v30  ;;  %v7266_v59 = vor.u32 %v9123_v58, %v7265_v57  ;;  %2349 = vmatpush.bf16.msrb.mxu2 %v7874_v40  ;;  %v7681_v40 = vld [vmem:[#allocation8 + $0x400] sm:$0xf] }
  0x68   :  { %503 = vmatpush.bf16.msra.mxu0 %v7146_v2  ;;  %v7201_v2 = vld [vmem:[#allocation8 + $0x40] sm:$0xf]  ;;  %2398 = vmatpush.bf16.msra.mxu3 %v8130_v1 }
  0x69   :  { %525 = vmatmul.bf16.gmra.mxu2 %v9994_v11  ;;  %v7202_v4 = vor.u32 %v9107_v3, %v7201_v2  ;;  %v9315_v1 = vld [vmem:[#allocation8 + $0x6dc] sm:$0xf0] }
  0x6a   :  { %v8034_v2 = vor.u32 %v9315_v1, %v8033_v0 }
  0x6c   :  { %504 = vmatpush.bf16.msra.mxu0 %v7130_v6  ;;  %v9099_v6 = vld [vmem:[#allocation8 + $0x1c] sm:$0xf0] }
  0x6d   :  { %v7170_v7 = vor.u32 %v9099_v6, %v7169_v5 }
  0x70   :  { %505 = vmatpush.bf16.msra.mxu0 %v7114_v9  ;;  %v9219_v9 = vld [vmem:[#allocation8 + $0x3dc] sm:$0xf0] }
  0x71   :  { %v7650_v12 = vor.u32 %v9219_v9, %v7649_v8  ;;  %v7809_v8 = vld [vmem:[#allocation8 + $0x500] sm:$0xf] }
  0x72   :  { %v9259_v9 = vld [vmem:[#allocation8 + $0x51c] sm:$0xf0] }
  0x73   :  { %437 = vmatmul.bf16.gmra.mxu3 %v10006_v34  ;;  %466 = vmatmul.bf16.gmra.mxu0 %v9992_v10 }
  0x74   :  { %506 = vmatpush.bf16.msra.mxu0 %v7098_v14  ;;  %2299 = vmatpush.bf16.msrb.mxu1 %v7650_v12  ;;  %v7810_v12 = vor.u32 %v9259_v9, %v7809_v8 }
  0x75   :  { %486 = vmatmul.bf16.gmra.mxu1 %v10006_v34 }
  0x78   :  { %507 = vmatpush.bf16.msra.mxu0 %v7082_v20  ;;  %v8098_v20 = vor.u32 %v9331_v19, %v8097_v17  ;;  %v7745_v19 = vld [vmem:[#allocation8 + $0x480] sm:$0xf] }
  0x79   :  { %530 = vmatmul.bf16.gmra.mxu2 %v10000_v30 }
  0x7a   :  { %2399 = vmatpush.bf16.msra.mxu3 %v8098_v20  ;;  %v9243_v20 = vld [vmem:[#allocation8 + $0x49c] sm:$0xf0] }
  0x7b   :  { %v7746_v22 = vor.u32 %v9243_v20, %v7745_v19 }
  0x7c   :  { %508 = vmatpush.bf16.msra.mxu0 %v7066_v26  ;;  %v7554_v26 = vor.u32 %v9195_v25, %v7553_v24  ;;  %v9307_v24 = vld [vmem:[#allocation8 + $0x69c] sm:$0xf0] }
  0x80   :  { %509 = vmatpush.bf16.msra.mxu0 %v7050_v29  ;;  %v10028_v29 = vld [vmem:[#allocation7] sm:$0xf] }
  0x81   :  { %v10031_v36 = vperm.slane %v10028_v29, 0  ;;  %v10048_v18 = vperm.slane %v10028_v29, 1 }
  0x83   :  { %442 = vmatmul.bf16.gmra.mxu3 %v10012_v38  ;;  %510 = vmatmul.bf16.vlgmr.msra.gmra.mxu0 %v9981_v45 }
  0x84   :  { %2250 = vmatpush.bf16.msrb.mxu0 %v7394_v41  ;;  %v8065_v41 = vld [vmem:[#allocation8 + $0x700] sm:$0xf] }
  0x85   :  { %491 = vmatmul.bf16.gmra.mxu1 %v10012_v38 }
  0x88   :  { %2251 = vmatpush.bf16.msrb.mxu0 %v7362_v46  ;;  %v8066_v46 = vor.u32 %v9323_v43, %v8065_v41  ;;  %v9227_v41 = vld [vmem:[#allocation8 + $0x41c] sm:$0xf0] }
  0x89   :  { %535 = vmatmul.bf16.gmra.mxu2 %v10006_v34  ;;  %v7682_v43 = vor.u32 %v9227_v41, %v7681_v40  ;;  %v9143_v40 = vld [vmem:[#allocation8 + $0x184] sm:$0xf] }
  0x8a   :  { %2400 = vmatpush.bf16.msra.mxu3 %v8066_v46  ;;  %v7363_v41 = vld [vmem:[#allocation8 + $0x1a0] sm:$0xf0] }
  0x8c   :  { %2252 = vmatpush.bf16.msrb.mxu0 %v7330_v53 }
  0x8e   :  { %2401 = vmatpush.bf16.msra.mxu3 %v8034_v2 }
  0x90   :  { %2253 = vmatpush.bf16.msrb.mxu0 %v7298_v56  ;;  %v7426_v56 = vor.u32 %v9163_v55, %v7425_v54 }
  0x93   :  { %447 = vmatmul.bf16.gmra.mxu3 %v10018_v42  ;;  %515 = vmatmul.bf16.gmra.mxu0 %v9992_v10 }
  0x94   :  { %2254 = vmatpush.bf16.msrb.mxu0 %v7266_v59  ;;  %v7841_v59 = vld [vmem:[#allocation8 + $0x540] sm:$0xf] }
  0x95   :  { %496 = vmatmul.bf16.gmra.mxu1 %v10018_v42 }
  0x98   :  { %2255 = vmatpush.bf16.msrb.mxu0 %v7234_v62  ;;  %v7842_v62 = vor.u32 %v9267_v60, %v7841_v59 }
  0x99   :  { %540 = vmatmul.bf16.gmra.mxu2 %v10012_v38 }
  0x9a   :  { %2350 = vmatpush.bf16.msrb.mxu2 %v7842_v62 }
  0x9c   :  { %2256 = vmatpush.bf16.msrb.mxu0 %v7202_v4 }
  0x9e   :  { %2351 = vmatpush.bf16.msrb.mxu2 %v7810_v12 }
  0xa0   :  { %2257 = vmatpush.bf16.msrb.mxu0 %v7170_v7 }
  0xa3   :  { %559 = vmatmul.bf16.vlgmr.msrb.gmra.mxu3 %v9981_v45  ;;  %v7617_v45 = vld [vmem:[#allocation8 + $0x380] sm:$0xf] }
  0xa4   :  { %v7618_v14 = vor.u32 %v9211_v13, %v7617_v45 }
  0xa6   :  { %2300 = vmatpush.bf16.msrb.mxu1 %v7618_v14  ;;  %v9251_v14 = vld [vmem:[#allocation8 + $0x4dc] sm:$0xf0] }
  0xa9   :  { %545 = vmatmul.bf16.gmra.mxu2 %v10018_v42 }
  0xaa   :  { %2301 = vmatpush.bf16.msrb.mxu1 %v7586_v23  ;;  %v8001_v23 = vld [vmem:[#allocation8 + $0x680] sm:$0xf] }
  0xab   :  { %v8002_v25 = vor.u32 %v9307_v24, %v8001_v23 }
  0xad   :  { %2402 = vmatpush.bf16.msra.mxu3 %v8002_v25 }
  0xae   :  { %2302 = vmatpush.bf16.msrb.mxu1 %v7554_v26 }
  0xb3   :  { %564 = vmatmul.bf16.gmra.mxu3 %v9992_v10  ;;  %v7521_v10 = vld [vmem:[#allocation8 + $0x2c0] sm:$0xf] }
  0xb4   :  { %v7522_v28 = vor.u32 %v9187_v27, %v7521_v10  ;;  %v7713_v27 = vld [vmem:[#allocation8 + $0x440] sm:$0xf] }
  0xb6   :  { %2303 = vmatpush.bf16.msrb.mxu1 %v7522_v28  ;;  %v9235_v28 = vld [vmem:[#allocation8 + $0x45c] sm:$0xf0] }
  0xb7   :  { %v7714_v32 = vor.u32 %v9235_v28, %v7713_v27 }
  0xba   :  { %2304 = vmatpush.bf16.msrb.mxu1 %v7490_v35 }
  0xbe   :  { %2305 = vmatpush.bf16.msrb.mxu1 %v7458_v51 }
  0xc0   :  { %v413_v31 = vpop.f32.mrf.mxu0 }
  0xc1   :  { %v414_v44 = vadd.f32 %v413_v31, %v10031_v36 }
  0xc2   :  { %2306 = vmatpush.bf16.msrb.mxu1 %v7426_v56  ;;  %v472_v21 = vpop.f32.mrf.mxu1 }
  0xc3   :  { %569 = vmatmul.bf16.gmra.mxu3 %v9983_v48  ;;  %v600_v53 = vmax.f32 %v414_v44, 0.0  ;;  %v473_v8 = vadd.f32 %v472_v21, %v10048_v18 }
  0xc5   :  { %v617_v20 = vmax.f32 %v473_v8, 0.0 }
  0xc6   :  { %v423_v50 = vpop.f32.mrf.mxu3 }
  0xc7   :  { %v424_v33 = vadd.f32 %v423_v50, %v10031_v36 }
  0xc8   :  { %v415_v52 = vpop.f32.mrf.mxu0 }
  0xc9   :  { %v416_v48 = vadd.f32 %v415_v52, %v10031_v36  ;;  %v616_v44 = vmax.f32 %v424_v33, 0.0 }
  0xca   :  { %v474_v47 = vpop.f32.mrf.mxu1 }
  0xcb   :  { %v604_v57 = vmax.f32 %v416_v48, 0.0  ;;  %v9299_v48 = vld [vmem:[#allocation8 + $0x65c] sm:$0xf0]  ;;  %v475_v9 = vadd.f32 %v474_v47, %v10048_v18  ;;  %v7907_v47 = vld [vmem:[#allocation8 + $0x5e0] sm:$0xf0] }
  0xcd   :  { %v10036_v58 = vpack.c.bf16 %v604_v57, %v600_v53  ;;  %v7969_v53 = vld [vmem:[#allocation8 + $0x640] sm:$0xf]  ;;  %v621_v21 = vmax.f32 %v475_v9, 0.0  ;;  %v9215_v9 = vld [vmem:[#allocation8 + $0x3c4] sm:$0xf] }
  0xce   :  { %v425_v61 = vpop.f32.mrf.mxu3  ;;  %v7970_v54 = vor.u32 %v9299_v48, %v7969_v53  ;;  %v7366_v53 = vor.u32 %v9143_v40, %v7363_v41  ;;  %v9271_v41 = vld [vmem:[#allocation8 + $0x584] sm:$0xf] }
  0xcf   :  { %2258 = vmatmul.bf16.vlgmr.msrb.gmra.mxu0 %v10036_v58  ;;  %v426_v26 = vadd.f32 %v425_v61, %v10031_v36 }
  0xd0   :  { %v418_v63 = vpop.f32.mrf.mxu0  ;;  %2403 = vmatpush.bf16.msra.mxu3 %v7970_v54 }
  0xd1   :  { %v419_v3 = vadd.f32 %v418_v63, %v10031_v36  ;;  %v620_v37 = vmax.f32 %v426_v26, 0.0 }
  0xd2   :  { %v477_v59 = vpop.f32.mrf.mxu1 }
  0xd3   :  { %574 = vmatmul.bf16.gmra.mxu3 %v9994_v11  ;;  %v608_v6 = vmax.f32 %v419_v3, 0.0  ;;  %v7777_v11 = vld [vmem:[#allocation8 + $0x4c0] sm:$0xf]  ;;  %v10055_v49 = vpack.c.bf16 %v620_v37, %v616_v44  ;;  %v7395_v37 = vld [vmem:[#allocation8 + $0x1e0] sm:$0xf0] }
  0xd4   :  { %v7778_v16 = vor.u32 %v9251_v14, %v7777_v11  ;;  %v9291_v11 = vld [vmem:[#allocation8 + $0x61c] sm:$0xf0] }
  0xd6   :  { %v10041_v4 = vpop.f32.mrf.mxu3  ;;  %2352 = vmatpush.bf16.msrb.mxu2 %v7778_v16 }
  0xd7   :  { %v429_v60 = vadd.f32 %v10041_v4, %v10031_v36  ;;  %v10076_v4 = vperm.slane %v10028_v29, 2 }
  0xd8   :  { %v420_v5 = vpop.f32.mrf.mxu0 }
  0xd9   :  { %v421_v7 = vadd.f32 %v420_v5, %v10031_v36 }
  0xda   :  { %2353 = vmatpush.bf16.msrb.mxu2 %v7746_v22 }
  0xdb   :  { %v612_v45 = vmax.f32 %v421_v7, 0.0  ;;  %v479_v7 = vpop.f32.mrf.mxu1 }
  0xdc   :  { %v10081_v12 = vpop.f32.mrf.mxu2  ;;  %v480_v44 = vadd.f32 %v479_v7, %v10048_v18 }
  0xdd   :  { %v10044_v13 = vpack.c.bf16 %v612_v45, %v608_v6  ;;  %v7937_v45 = vld [vmem:[#allocation8 + $0x600] sm:$0xf] }
  0xde   :  { %v430_v15 = vpop.f32.mrf.mxu3  ;;  %2354 = vmatpush.bf16.msrb.mxu2 %v7714_v32  ;;  %v7938_v14 = vor.u32 %v9291_v11, %v7937_v45  ;;  %v7651_v45 = vld [vmem:[#allocation8 + $0x3e0] sm:$0xf0] }
  0xdf   :  { %2263 = vmatmul.bf16.gmra.mxu0 %v10044_v13  ;;  %v431_v55 = vadd.f32 %v430_v15, %v10031_v36  ;;  %v7654_v11 = vor.u32 %v9215_v9, %v7651_v45 }
  0xe0   :  { %v462_v17 = vpop.f32.mrf.mxu0  ;;  %2404 = vmatpush.bf16.msra.mxu3 %v7938_v14  ;;  %v9127_v14 = vld [vmem:[#allocation8 + $0x104] sm:$0xf] }
  0xe1   :  { %v463_v10 = vadd.f32 %v462_v17, %v10048_v18  ;;  %v628_v62 = vmax.f32 %v431_v55, 0.0  ;;  %v9343_v55 = vld [vmem:[#allocation8 + $0x7c4] sm:$0xf]  ;;  %2495 = vmatpush.bf16.msra.mxu1 %v7654_v11 }
  0xe2   :  { %2355 = vmatpush.bf16.msrb.mxu2 %v7682_v43  ;;  %v478_v43 = vadd.f32 %v477_v59, %v10048_v18 }
  0xe3   :  { %579 = vmatmul.bf16.gmra.mxu3 %v10000_v30  ;;  %v601_v39 = vmax.f32 %v463_v10, 0.0  ;;  %v10089_v25 = vpop.f32.mrf.mxu1  ;;  %v10091_v10 = vpack.c.bf16 %v621_v21, %v617_v20 }
  0xe4   :  { %v10097_v33 = vpop.f32.mrf.mxu2 }
  0xe5   :  { %12879 = vst [vmem:[#allocation20_spill] sm:$0xff] %v10091_v10 }
  0xe6   :  { %v433_v31 = vpop.f32.mrf.mxu3 }
  0xe7   :  { %v434_v19 = vadd.f32 %v433_v31, %v10031_v36 }
  0xe8   :  { %v464_v35 = vpop.f32.mrf.mxu0 }
  0xe9   :  { %v465_v30 = vadd.f32 %v464_v35, %v10048_v18  ;;  %v632_v26 = vmax.f32 %v434_v19, 0.0  ;;  %v9151_v35 = vld [vmem:[#allocation8 + $0x1c4] sm:$0xf] }
  0xeb   :  { %v605_v46 = vmax.f32 %v465_v30, 0.0 }
  0xed   :  { %v10057_v51 = vpack.c.bf16 %v605_v46, %v601_v39  ;;  %v7398_v39 = vor.u32 %v9151_v35, %v7395_v37  ;;  %v9279_v46 = vld [vmem:[#allocation8 + $0x5c4] sm:$0xf] }
  0xee   :  { %v435_v52 = vpop.f32.mrf.mxu3  ;;  %v9111_v37 = vld [vmem:[#allocation8 + $0x84] sm:$0xf] }
  0xef   :  { %2268 = vmatmul.bf16.gmra.mxu0 %v10055_v49  ;;  %2307 = vmatmul.bf16.vlgmr.msrb.gmra.mxu1 %v10057_v51  ;;  %v436_v15 = vadd.f32 %v435_v52, %v10031_v36  ;;  %v484_v52 = vpop.f32.mrf.mxu1 }
  0xf0   :  { %v467_v50 = vpop.f32.mrf.mxu0  ;;  %2446 = vmatpush.bf16.msra.mxu0 %v7398_v39  ;;  %v7235_v39 = vld [vmem:[#allocation8 + $0xa0] sm:$0xf0]  ;;  %v485_v40 = vadd.f32 %v484_v52, %v10048_v18 }
  0xf1   :  { %v468_v56 = vadd.f32 %v467_v50, %v10048_v18  ;;  %v7910_v50 = vor.u32 %v9279_v46, %v7907_v47  ;;  %v522_v46 = vadd.f32 %v10081_v12, %v10076_v4  ;;  %v524_v47 = vadd.f32 %v10097_v33, %v10076_v4  ;;  %v9103_v52 = vld [vmem:[#allocation8 + $0x44] sm:$0xf] }
  0xf2   :  { %v637_v12 = vmax.f32 %v485_v40, 0.0  ;;  %v7843_v40 = vld [vmem:[#allocation8 + $0x560] sm:$0xf0] }
  0xf3   :  { %584 = vmatmul.bf16.gmra.mxu3 %v10006_v34  ;;  %v609_v63 = vmax.f32 %v468_v56, 0.0  ;;  %v624_v34 = vmax.f32 %v429_v60, 0.0  ;;  %v8163_v56 = vld [vmem:[#allocation8 + $0x7e0] sm:$0xf0]  ;;  %2544 = vmatpush.bf16.msra.mxu2 %v7910_v50  ;;  %v622_v33 = vmax.f32 %v524_v47, 0.0 }
  0xf4   :  { %2447 = vmatpush.bf16.msra.mxu0 %v7366_v53  ;;  %v8166_v59 = vor.u32 %v9343_v55, %v8163_v56  ;;  %v7203_v56 = vld [vmem:[#allocation8 + $0x60] sm:$0xf0] }
  0xf5   :  { %v10069_v2 = vpack.c.bf16 %v628_v62, %v624_v34  ;;  %v10113_v34 = vpop.f32.mrf.mxu2 }
  0xf6   :  { %v10064_v57 = vpop.f32.mrf.mxu3  ;;  %2593 = vmatpush.bf16.msrb.mxu3 %v8166_v59 }
  0xf7   :  { %v439_v62 = vadd.f32 %v10064_v57, %v10031_v36 }
  0xf8   :  { %v469_v61 = vpop.f32.mrf.mxu0 }
  0xf9   :  { %v470_v0 = vadd.f32 %v469_v61, %v10048_v18  ;;  %v9135_v61 = vld [vmem:[#allocation8 + $0x144] sm:$0xf] }
  0xfb   :  { %v613_v1 = vmax.f32 %v470_v0, 0.0  ;;  %v629_v0 = vmax.f32 %v480_v44, 0.0  ;;  %v7238_v44 = vor.u32 %v9111_v37, %v7235_v39 }
  0xfd   :  { %v10071_v3 = vpack.c.bf16 %v613_v1, %v609_v63  ;;  %v625_v63 = vmax.f32 %v478_v43, 0.0  ;;  %v528_v35 = vpop.f32.mrf.mxu2  ;;  %v7875_v43 = vld [vmem:[#allocation8 + $0x5a0] sm:$0xf0] }
  0xfe   :  { %v440_v5 = vpop.f32.mrf.mxu3  ;;  %v7878_v50 = vor.u32 %v9271_v41, %v7875_v43  ;;  %v527_v41 = vadd.f32 %v10113_v34, %v10076_v4  ;;  %v529_v43 = vadd.f32 %v528_v35, %v10076_v4 }
  0xff   :  { %2273 = vmatmul.bf16.gmra.mxu0 %v10069_v2  ;;  %2312 = vmatmul.bf16.gmra.mxu1 %v10071_v3  ;;  %v441_v48 = vadd.f32 %v440_v5, %v10031_v36  ;;  %v10116_v19 = vpack.c.bf16 %v629_v0, %v625_v63 }
 0x100   :  { %v511_v6 = vpop.f32.mrf.mxu0  ;;  %2545 = vmatpush.bf16.msra.mxu2 %v7878_v50  ;;  %v9327_v50 = vld [vmem:[#allocation8 + $0x744] sm:$0xf] }
 0x101   :  { %v512_v16 = vadd.f32 %v511_v6, %v10076_v4  ;;  %v644_v6 = vmax.f32 %v441_v48, 0.0  ;;  %v9335_v48 = vld [vmem:[#allocation8 + $0x784] sm:$0xf] }
 0x103   :  { %589 = vmatmul.bf16.gmra.mxu3 %v10012_v38  ;;  %v636_v38 = vmax.f32 %v436_v15, 0.0  ;;  %v602_v23 = vmax.f32 %v512_v16, 0.0  ;;  %v7299_v15 = vld [vmem:[#allocation8 + $0x120] sm:$0xf0]  ;;  %v640_v16 = vmax.f32 %v439_v62, 0.0  ;;  %v618_v62 = vmax.f32 %v522_v46, 0.0 }
 0x104   :  { %v7302_v20 = vor.u32 %v9127_v14, %v7299_v15 }
 0x105   :  { %v10093_v28 = vpack.c.bf16 %v636_v38, %v632_v26  ;;  %v10118_v21 = vpack.c.bf16 %v644_v6, %v640_v16  ;;  %v7267_v26 = vld [vmem:[#allocation8 + $0xe0] sm:$0xf0]  ;;  %v10147_v14 = vpack.c.bf16 %v622_v33, %v618_v62 }
 0x106   :  { %v10085_v17 = vpop.f32.mrf.mxu3 }
 0x107   :  { %12880 = vst [vmem:[#allocation21_spill] sm:$0xff] %v10093_v28  ;;  %v444_v59 = vadd.f32 %v10085_v17, %v10031_v36  ;;  %v10145_v17 = vpop.f32.mrf.mxu2 }
 0x108   :  { %v513_v22 = vpop.f32.mrf.mxu0 }
 0x109   :  { %v514_v24 = vadd.f32 %v513_v22, %v10076_v4  ;;  %v648_v9 = vmax.f32 %v444_v59, 0.0  ;;  %v630_v59 = vmax.f32 %v529_v43, 0.0 }
 0x10b   :  { %v606_v27 = vmax.f32 %v514_v24, 0.0  ;;  %v9119_v24 = vld [vmem:[#allocation8 + $0xc4] sm:$0xf] }
 0x10d   :  { %v10095_v32 = vpack.c.bf16 %v606_v27, %v602_v23  ;;  %v10124_v23 = vpop.f32.mrf.mxu1  ;;  %v7270_v27 = vor.u32 %v9119_v24, %v7267_v26 }
 0x10e   :  { %v10099_v31 = vpop.f32.mrf.mxu3  ;;  %v488_v37 = vadd.f32 %v10124_v23, %v10048_v18 }
 0x10f   :  { %12881 = vst [vmem:[#allocation22_spill] sm:$0xff] %v10095_v32  ;;  %2278 = vmatmul.bf16.gmra.mxu0 %v10093_v28  ;;  %2317 = vmatmul.bf16.gmra.mxu1 %v10091_v10  ;;  %v446_v53 = vadd.f32 %v10099_v31, %v10031_v36  ;;  %v10141_v31 = vperm.slane %v10028_v29, 3  ;;  %v533_v47 = vpop.f32.mrf.mxu2 }
 0x110   :  { %2356 = vmatmul.bf16.vlgmr.msrb.gmra.mxu2 %v10095_v32  ;;  %v516_v30 = vpop.f32.mrf.mxu0  ;;  %v641_v34 = vmax.f32 %v488_v37, 0.0  ;;  %v534_v43 = vadd.f32 %v533_v47, %v10076_v4  ;;  %v9159_v47 = vld [vmem:[#allocation8 + $0x204] sm:$0xf] }
 0x111   :  { %v517_v54 = vadd.f32 %v516_v30, %v10076_v4  ;;  %v483_v30 = vadd.f32 %v10089_v25, %v10048_v18  ;;  %v652_v0 = vmax.f32 %v446_v53, 0.0  ;;  %v8099_v53 = vld [vmem:[#allocation8 + $0x760] sm:$0xf0] }
 0x112   :  { %v8102_v23 = vor.u32 %v9327_v50, %v8099_v53  ;;  %v8067_v50 = vld [vmem:[#allocation8 + $0x720] sm:$0xf0] }
 0x113   :  { %594 = vmatmul.bf16.gmra.mxu3 %v10018_v42  ;;  %v7331_v42 = vld [vmem:[#allocation8 + $0x160] sm:$0xf0]  ;;  %v610_v7 = vmax.f32 %v517_v54, 0.0  ;;  %v10149_v15 = vpack.c.bf16 %v652_v0, %v648_v9 }
 0x114   :  { %v7334_v1 = vor.u32 %v9135_v61, %v7331_v42  ;;  %v8131_v54 = vld [vmem:[#allocation8 + $0x7a0] sm:$0xf0]  ;;  %v633_v61 = vmax.f32 %v483_v30, 0.0  ;;  %v7206_v42 = vor.u32 %v9103_v52, %v7203_v56  ;;  %v626_v56 = vmax.f32 %v527_v41, 0.0 }
 0x115   :  { %v8134_v25 = vor.u32 %v9335_v48, %v8131_v54  ;;  %v489_v63 = vpop.f32.mrf.mxu1  ;;  %v9263_v30 = vld [vmem:[#allocation8 + $0x544] sm:$0xf]  ;;  %v532_v41 = vadd.f32 %v10145_v17, %v10076_v4 }
 0x116   :  { %v10109_v60 = vpop.f32.mrf.mxu3  ;;  %2448 = vmatpush.bf16.msra.mxu0 %v7334_v1  ;;  %v9207_v1 = vld [vmem:[#allocation8 + $0x384] sm:$0xf]  ;;  %v10143_v45 = vpack.c.bf16 %v637_v12, %v633_v61  ;;  %v490_v39 = vadd.f32 %v489_v63, %v10048_v18  ;;  %v10171_v63 = vpack.c.bf16 %v630_v59, %v626_v56 }
 0x117   :  { %2594 = vmatpush.bf16.msrb.mxu3 %v8134_v25  ;;  %v9199_v54 = vld [vmem:[#allocation8 + $0x344] sm:$0xf]  ;;  %v449_v25 = vadd.f32 %v10109_v60, %v10031_v36 }
 0x118   :  { %v518_v5 = vpop.f32.mrf.mxu0  ;;  %v645_v52 = vmax.f32 %v490_v39, 0.0  ;;  %v9191_v61 = vld [vmem:[#allocation8 + $0x304] sm:$0xf]  ;;  %12882 = vst [vmem:[#allocation23_spill] sm:$0xff] %v10171_v63 }
 0x119   :  { %v519_v8 = vadd.f32 %v518_v5, %v10076_v4  ;;  %v7619_v5 = vld [vmem:[#allocation8 + $0x3a0] sm:$0xf0] }
 0x11a   :  { %2449 = vmatpush.bf16.msra.mxu0 %v7302_v20  ;;  %v7622_v6 = vor.u32 %v9207_v1, %v7619_v5  ;;  %v7555_v12 = vld [vmem:[#allocation8 + $0x320] sm:$0xf0]  ;;  %v10169_v62 = vpack.c.bf16 %v645_v52, %v641_v34  ;;  %v634_v52 = vmax.f32 %v532_v41, 0.0 }
 0x11b   :  { %v614_v57 = vmax.f32 %v519_v8, 0.0  ;;  %v7171_v8 = vld [vmem:[#allocation8 + $0x20] sm:$0xf0]  ;;  %2595 = vmatpush.bf16.msrb.mxu3 %v8102_v23  ;;  %v7558_v33 = vor.u32 %v9191_v61, %v7555_v12 }
 0x11c   :  { %2496 = vmatpush.bf16.msra.mxu1 %v7622_v6  ;;  %v9183_v5 = vld [vmem:[#allocation8 + $0x2c4] sm:$0xf] }
 0x11d   :  { %v10120_v22 = vpack.c.bf16 %v614_v57, %v610_v7  ;;  %v9095_v7 = vld [vmem:[#allocation8 + $0x4] sm:$0xf]  ;;  %v492_v26 = vpop.f32.mrf.mxu1 }
 0x11e   :  { %v10122_v38 = vpop.f32.mrf.mxu3  ;;  %2450 = vmatpush.bf16.msra.mxu0 %v7270_v27  ;;  %v7174_v11 = vor.u32 %v9095_v7, %v7171_v8  ;;  %v7523_v6 = vld [vmem:[#allocation8 + $0x2e0] sm:$0xf0]  ;;  %v536_v8 = vpop.f32.mrf.mxu2 }
 0x11f   :  { %2283 = vmatmul.bf16.gmra.mxu0 %v10118_v21  ;;  %2322 = vmatmul.bf16.gmra.mxu1 %v10116_v19  ;;  %v451_v46 = vadd.f32 %v10122_v38, %v10031_v36  ;;  %v7526_v9 = vor.u32 %v9183_v5, %v7523_v6  ;;  %v9255_v39 = vld [vmem:[#allocation8 + $0x504] sm:$0xf] }
 0x120   :  { %2361 = vmatmul.bf16.gmra.mxu2 %v10120_v22  ;;  %v9167_v23 = vld [vmem:[#allocation8 + $0x244] sm:$0xf] }
 0x121   :  { %v660_v38 = vmax.f32 %v451_v46, 0.0  ;;  %v9319_v46 = vld [vmem:[#allocation8 + $0x704] sm:$0xf] }
 0x122   :  { %2451 = vmatpush.bf16.msra.mxu0 %v7238_v44  ;;  %v7846_v44 = vor.u32 %v9263_v30, %v7843_v40  ;;  %v7811_v30 = vld [vmem:[#allocation8 + $0x520] sm:$0xf0] }
 0x123   :  { %v7427_v56 = vld [vmem:[#allocation8 + $0x220] sm:$0xf0] }
 0x124   :  { %2546 = vmatpush.bf16.msra.mxu2 %v7846_v44  ;;  %v7814_v44 = vor.u32 %v9255_v39, %v7811_v30  ;;  %v9311_v30 = vld [vmem:[#allocation8 + $0x6c4] sm:$0xf] }
 0x125   :  { %v494_v0 = vpop.f32.mrf.mxu1 }
 0x126   :  { %v560_v55 = vpop.f32.mrf.mxu3  ;;  %2452 = vmatpush.bf16.msra.mxu0 %v7206_v42  ;;  %v656_v42 = vmax.f32 %v449_v25, 0.0  ;;  %v495_v37 = vadd.f32 %v494_v0, %v10048_v18  ;;  %v538_v17 = vpop.f32.mrf.mxu2 }
 0x127   :  { %v561_v29 = vadd.f32 %v560_v55, %v10141_v31  ;;  %v7587_v55 = vld [vmem:[#allocation8 + $0x360] sm:$0xf0] }
 0x128   :  { %v7590_v35 = vor.u32 %v9199_v54, %v7587_v55  ;;  %v10173_v1 = vpack.c.bf16 %v660_v38, %v656_v42  ;;  %2547 = vmatpush.bf16.msra.mxu2 %v7814_v44  ;;  %v7459_v54 = vld [vmem:[#allocation8 + $0x260] sm:$0xf0]  ;;  %v653_v25 = vmax.f32 %v495_v37, 0.0  ;;  %v7430_v38 = vor.u32 %v9159_v47, %v7427_v56 }
 0x129   :  { %v603_v20 = vmax.f32 %v561_v29, 0.0  ;;  %v7462_v34 = vor.u32 %v9167_v23, %v7459_v54  ;;  %v539_v37 = vadd.f32 %v538_v17, %v10076_v4  ;;  %v10221_v56 = vld [vmem:[#allocation10] sm:$0xff] }
 0x12a   :  { %2453 = vmatpush.bf16.msra.mxu0 %v7174_v11  ;;  %2497 = vmatpush.bf16.msra.mxu1 %v7590_v35  ;;  %v638_v35 = vmax.f32 %v534_v43, 0.0 }
 0x12c   :  { %v10190_v61 = vpack.c.bf16 %v638_v35, %v634_v52  ;;  %v9239_v52 = vld [vmem:[#allocation8 + $0x484] sm:$0xf] }
 0x12d   :  { %v7747_v35 = vld [vmem:[#allocation8 + $0x4a0] sm:$0xf0] }
 0x12e   :  { %v562_v16 = vpop.f32.mrf.mxu3  ;;  %2498 = vmatpush.bf16.msra.mxu1 %v7558_v33  ;;  %v7750_v47 = vor.u32 %v9239_v52, %v7747_v35 }
 0x12f   :  { %v563_v57 = vadd.f32 %v562_v16, %v10141_v31  ;;  %2288 = vmatmul.bf16.gmra.mxu0 %v10149_v15  ;;  %2327 = vmatmul.bf16.gmra.mxu1 %v10143_v45  ;;  %v9175_v16 = vld [vmem:[#allocation8 + $0x284] sm:$0xf] }
 0x130   :  { %2366 = vmatmul.bf16.gmra.mxu2 %v10147_v14 }
 0x131   :  { %v607_v24 = vmax.f32 %v563_v57, 0.0  ;;  %v7491_v57 = vld [vmem:[#allocation8 + $0x2a0] sm:$0xf0] }
 0x132   :  { %2499 = vmatpush.bf16.msra.mxu1 %v7526_v9  ;;  %v7494_v40 = vor.u32 %v9175_v16, %v7491_v57  ;;  %v7779_v16 = vld [vmem:[#allocation8 + $0x4e0] sm:$0xf0]  ;;  %v537_v57 = vadd.f32 %v536_v8, %v10076_v4 }
 0x133   :  { %v10156_v27 = vpack.c.bf16 %v607_v24, %v603_v20  ;;  %v493_v24 = vadd.f32 %v492_v26, %v10048_v18  ;;  %v8070_v26 = vor.u32 %v9319_v46, %v8067_v50  ;;  %v646_v50 = vmax.f32 %v539_v37, 0.0 }
 0x135   :  { %2405 = vmatmul.bf16.vlgmr.msra.gmra.mxu3 %v10156_v27  ;;  %v649_v55 = vmax.f32 %v493_v24, 0.0 }
 0x136   :  { %v565_v48 = vpop.f32.mrf.mxu3  ;;  %2500 = vmatpush.bf16.msra.mxu1 %v7494_v40  ;;  %2596 = vmatpush.bf16.msrb.mxu3 %v8070_v26  ;;  %v8035_v40 = vld [vmem:[#allocation8 + $0x6e0] sm:$0xf0] }
 0x137   :  { %v566_v36 = vadd.f32 %v565_v48, %v10141_v31  ;;  %v497_v48 = vpop.f32.mrf.mxu1  ;;  %v10188_v59 = vpack.c.bf16 %v653_v25, %v649_v55  ;;  %v8038_v43 = vor.u32 %v9311_v30, %v8035_v40  ;;  %v7683_v30 = vld [vmem:[#allocation8 + $0x420] sm:$0xf0] }
 0x139   :  { %v611_v11 = vmax.f32 %v566_v36, 0.0 }
 0x13a   :  { %2501 = vmatpush.bf16.msra.mxu1 %v7462_v34  ;;  %2597 = vmatpush.bf16.msrb.mxu3 %v8038_v43 }
 0x13e   :  { %v567_v60 = vpop.f32.mrf.mxu3  ;;  %2502 = vmatpush.bf16.msra.mxu1 %v7430_v38 }
 0x13f   :  { %v568_v7 = vadd.f32 %v567_v60, %v10141_v31  ;;  %2293 = vmatmul.bf16.gmra.mxu0 %v10173_v1  ;;  %2332 = vmatmul.bf16.gmra.mxu1 %v10169_v62  ;;  %v499_v36 = vpop.f32.mrf.mxu1 }
 0x140   :  { %2371 = vmatmul.bf16.gmra.mxu2 %v10171_v63  ;;  %v500_v9 = vadd.f32 %v499_v36, %v10048_v18  ;;  %v8003_v36 = vld [vmem:[#allocation8 + $0x6a0] sm:$0xf0] }
 0x141   :  { %v615_v29 = vmax.f32 %v568_v7, 0.0  ;;  %v498_v7 = vadd.f32 %v497_v48, %v10048_v18  ;;  %v642_v18 = vmax.f32 %v537_v57, 0.0 }
 0x142   :  { %v661_v46 = vmax.f32 %v500_v9, 0.0  ;;  %v7715_v9 = vld [vmem:[#allocation8 + $0x460] sm:$0xf0] }
 0x143   :  { %v10180_v20 = vpack.c.bf16 %v615_v29, %v611_v11  ;;  %v541_v11 = vpop.f32.mrf.mxu2  ;;  %v9247_v29 = vld [vmem:[#allocation8 + $0x4c4] sm:$0xf]  ;;  %v657_v44 = vmax.f32 %v498_v7, 0.0  ;;  %v10210_v8 = vpack.c.bf16 %v646_v50, %v642_v18 }
 0x144   :  { %v7782_v39 = vor.u32 %v9247_v29, %v7779_v16  ;;  %v542_v38 = vadd.f32 %v541_v11, %v10076_v4  ;;  %v9231_v7 = vld [vmem:[#allocation8 + $0x444] sm:$0xf]  ;;  %v10229_v29 = vperm.slane %v10221_v56, 0 }
 0x145   :  { %2410 = vmatmul.bf16.gmra.mxu3 %v10180_v20  ;;  %v7718_v57 = vor.u32 %v9231_v7, %v7715_v9 }
 0x146   :  { %v570_v53 = vpop.f32.mrf.mxu3  ;;  %2548 = vmatpush.bf16.msra.mxu2 %v7782_v39  ;;  %v650_v37 = vmax.f32 %v542_v38, 0.0  ;;  %v9223_v39 = vld [vmem:[#allocation8 + $0x404] sm:$0xf] }
 0x147   :  { %v571_v42 = vadd.f32 %v570_v53, %v10141_v31  ;;  %v10208_v53 = vpack.c.bf16 %v661_v46, %v657_v44 }
 0x149   :  { %v619_v60 = vmax.f32 %v571_v42, 0.0 }
 0x14a   :  { %2549 = vmatpush.bf16.msra.mxu2 %v7750_v47 }
 0x14b   :  { %v543_v23 = vpop.f32.mrf.mxu2 }
 0x14c   :  { %v10192_v12 = vpop.f32.mrf.mxu0 }
 0x14d   :  { %v2260_v40 = vadd.f32 %v10192_v12, %v10229_v29 }
 0x14e   :  { %v572_v33 = vpop.f32.mrf.mxu3  ;;  %2550 = vmatpush.bf16.msra.mxu2 %v7718_v57 }
 0x14f   :  { %v573_v0 = vadd.f32 %v572_v33, %v10141_v31  ;;  %2337 = vmatmul.bf16.gmra.mxu1 %v10188_v59  ;;  %2454 = vmatmul.bf16.vlgmr.msra.gmra.mxu0 %v10036_v58  ;;  %v544_v33 = vadd.f32 %v543_v23, %v10076_v4 }
 0x150   :  { %2376 = vmatmul.bf16.gmra.mxu2 %v10190_v61 }
 0x151   :  { %v623_v5 = vmax.f32 %v573_v0, 0.0  ;;  %v9303_v0 = vld [vmem:[#allocation8 + $0x684] sm:$0xf]  ;;  %v654_v11 = vmax.f32 %v544_v33, 0.0 }
 0x153   :  { %v10199_v6 = vpack.c.bf16 %v623_v5, %v619_v60  ;;  %v8006_v5 = vor.u32 %v9303_v0, %v8003_v36  ;;  %v546_v16 = vpop.f32.mrf.mxu2  ;;  %v10233_v43 = vpack.c.bf16 %v654_v11, %v650_v37  ;;  %v9295_v0 = vld [vmem:[#allocation8 + $0x644] sm:$0xf] }
 0x154   :  { %v10204_v24 = vpop.f32.mrf.mxu0  ;;  %v547_v52 = vadd.f32 %v546_v16, %v10076_v4  ;;  %v7971_v36 = vld [vmem:[#allocation8 + $0x660] sm:$0xf0] }
 0x155   :  { %2415 = vmatmul.bf16.gmra.mxu3 %v10199_v6 }
 0x156   :  { %v575_v41 = vpop.f32.mrf.mxu3  ;;  %2598 = vmatpush.bf16.msrb.mxu3 %v8006_v5  ;;  %v7974_v5 = vor.u32 %v9295_v0, %v7971_v36  ;;  %v658_v7 = vmax.f32 %v547_v52, 0.0 }
 0x157   :  { %v576_v26 = vadd.f32 %v575_v41, %v10141_v31  ;;  %v7686_v41 = vor.u32 %v9223_v39, %v7683_v30 }
 0x159   :  { %v627_v25 = vmax.f32 %v576_v26, 0.0  ;;  %2551 = vmatpush.bf16.msra.mxu2 %v7686_v41 }
 0x15a   :  { %2599 = vmatpush.bf16.msrb.mxu3 %v7974_v5  ;;  %v9156_v5 = vld [vmem:[#allocation8 + $0x1e4] sm:$0xf0] }
 0x15c   :  { %v10212_v48 = vpop.f32.mrf.mxu0 }
 0x15e   :  { %v577_v54 = vpop.f32.mrf.mxu3 }
 0x15f   :  { %v578_v55 = vadd.f32 %v577_v54, %v10141_v31  ;;  %2342 = vmatmul.bf16.gmra.mxu1 %v10208_v53  ;;  %2459 = vmatmul.bf16.gmra.mxu0 %v10044_v13 }
 0x160   :  { %2381 = vmatmul.bf16.gmra.mxu2 %v10210_v8 }
 0x161   :  { %v631_v34 = vmax.f32 %v578_v55, 0.0  ;;  %v548_v55 = vpop.f32.mrf.mxu2 }
 0x162   :  { %v549_v38 = vadd.f32 %v548_v55, %v10076_v4 }
 0x163   :  { %v10219_v17 = vpack.c.bf16 %v631_v34, %v627_v25  ;;  %v2262_v25 = vadd.f32 %v10204_v24, %v10229_v29  ;;  %v2265_v24 = vadd.f32 %v10212_v48, %v10229_v29 }
 0x164   :  { %v10224_v42 = vpop.f32.mrf.mxu0  ;;  %v662_v9 = vmax.f32 %v549_v38, 0.0 }
 0x165   :  { %2420 = vmatmul.bf16.gmra.mxu3 %v10219_v17  ;;  %v2267_v41 = vadd.f32 %v10224_v42, %v10229_v29 }
 0x166   :  { %v580_v60 = vpop.f32.mrf.mxu3  ;;  %v10253_v57 = vpack.c.bf16 %v662_v9, %v658_v7 }
 0x167   :  { %v581_v18 = vadd.f32 %v580_v60, %v10141_v31 }
 0x169   :  { %v635_v12 = vmax.f32 %v581_v18, 0.0 }
 0x16c   :  { %v2269_v44 = vpop.f32.mrf.mxu0  ;;  %v2308_v46 = vpop.f32.mrf.mxu1 }
 0x16d   :  { %v10236_v50 = vadd.f32 %v2308_v46, %v2260_v40  ;;  %v2270_v52 = vadd.f32 %v2269_v44, %v10229_v29 }
 0x16e   :  { %v582_v26 = vpop.f32.mrf.mxu3 }
 0x16f   :  { %v583_v23 = vadd.f32 %v582_v26, %v10141_v31  ;;  %2464 = vmatmul.bf16.gmra.mxu0 %v10055_v49  ;;  %2503 = vmatmul.bf16.vlgmr.msra.gmra.mxu1 %v10057_v51 }
 0x170   :  { %2386 = vmatmul.bf16.gmra.mxu2 %v10233_v43 }
 0x171   :  { %v639_v54 = vmax.f32 %v583_v23, 0.0 }
 0x173   :  { %v10244_v34 = vpack.c.bf16 %v639_v54, %v635_v12  ;;  %v9287_v12 = vld [vmem:[#allocation8 + $0x604] sm:$0xf] }
 0x174   :  { %v2271_v35 = vpop.f32.mrf.mxu0  ;;  %v2310_v47 = vpop.f32.mrf.mxu1  ;;  %v7939_v54 = vld [vmem:[#allocation8 + $0x620] sm:$0xf0] }
 0x175   :  { %v10248_v33 = vadd.f32 %v2310_v47, %v2262_v25  ;;  %2425 = vmatmul.bf16.gmra.mxu3 %v10244_v34  ;;  %v7942_v25 = vor.u32 %v9287_v12, %v7939_v54  ;;  %v7913_v54 = vld [vmem:[#allocation8 + $0x5c8] sm:$0xf] }
 0x176   :  { %v585_v60 = vpop.f32.mrf.mxu3 }
 0x177   :  { %v586_v4 = vadd.f32 %v585_v60, %v10141_v31  ;;  %2600 = vmatpush.bf16.msrb.mxu3 %v7942_v25  ;;  %v7401_v60 = vld [vmem:[#allocation8 + $0x1c8] sm:$0xf] }
 0x178   :  { %v7402_v9 = vor.u32 %v9156_v5, %v7401_v60  ;;  %v9220_v5 = vld [vmem:[#allocation8 + $0x3e4] sm:$0xf0] }
 0x179   :  { %v643_v40 = vmax.f32 %v586_v4, 0.0  ;;  %v9148_v4 = vld [vmem:[#allocation8 + $0x1a4] sm:$0xf0] }
 0x17a   :  { %2642 = vmatpush.bf16.msrb.mxu0 %v7402_v9 }
 0x17c   :  { %v10255_v16 = vpop.f32.mrf.mxu0  ;;  %v2313_v37 = vpop.f32.mrf.mxu1 }
 0x17d   :  { %v10258_v11 = vadd.f32 %v2313_v37, %v2265_v24  ;;  %v7369_v37 = vld [vmem:[#allocation8 + $0x188] sm:$0xf] }
 0x17e   :  { %v587_v39 = vpop.f32.mrf.mxu3 }
 0x17f   :  { %v588_v30 = vadd.f32 %v587_v39, %v10141_v31  ;;  %2469 = vmatmul.bf16.gmra.mxu0 %v10069_v2  ;;  %2508 = vmatmul.bf16.gmra.mxu1 %v10071_v3  ;;  %v2272_v39 = vadd.f32 %v2271_v35, %v10229_v29  ;;  %v9348_v35 = vld [vmem:[#allocation8 + $0x7e4] sm:$0xf0] }
 0x180   :  { %2391 = vmatmul.bf16.gmra.mxu2 %v10253_v57 }
 0x181   :  { %v647_v48 = vmax.f32 %v588_v30, 0.0 }
 0x183   :  { %v10266_v46 = vpack.c.bf16 %v647_v48, %v643_v40  ;;  %v7370_v48 = vor.u32 %v9148_v4, %v7369_v37  ;;  %v9132_v37 = vld [vmem:[#allocation8 + $0x124] sm:$0xf0]  ;;  %v2275_v4 = vadd.f32 %v10255_v16, %v10229_v29 }
 0x184   :  { %v10268_v18 = vpop.f32.mrf.mxu0  ;;  %v2315_v26 = vpop.f32.mrf.mxu1 }
 0x185   :  { %v10270_v23 = vadd.f32 %v2315_v26, %v2267_v41  ;;  %2430 = vmatmul.bf16.gmra.mxu3 %v10266_v46  ;;  %2643 = vmatpush.bf16.msrb.mxu0 %v7370_v48 }
 0x186   :  { %v590_v55 = vpop.f32.mrf.mxu3 }
 0x187   :  { %v591_v42 = vadd.f32 %v590_v55, %v10141_v31  ;;  %v9284_v55 = vld [vmem:[#allocation8 + $0x5e4] sm:$0xf0] }
 0x189   :  { %v651_v44 = vmax.f32 %v591_v42, 0.0  ;;  %v7657_v42 = vld [vmem:[#allocation8 + $0x3c8] sm:$0xf] }
 0x18a   :  { %v7658_v9 = vor.u32 %v9220_v5, %v7657_v42  ;;  %v9124_v42 = vld [vmem:[#allocation8 + $0xe4] sm:$0xf0] }
 0x18c   :  { %v10274_v47 = vpop.f32.mrf.mxu0  ;;  %v2318_v38 = vpop.f32.mrf.mxu1  ;;  %2691 = vmatpush.bf16.msrb.mxu1 %v7658_v9 }
 0x18d   :  { %v10277_v0 = vadd.f32 %v2318_v38, %v2270_v52  ;;  %v7914_v52 = vor.u32 %v9284_v55, %v7913_v54  ;;  %v8169_v38 = vld [vmem:[#allocation8 + $0x7c8] sm:$0xf] }
 0x18e   :  { %v592_v36 = vpop.f32.mrf.mxu3  ;;  %v8170_v60 = vor.u32 %v9348_v35, %v8169_v38  ;;  %v7273_v35 = vld [vmem:[#allocation8 + $0xc8] sm:$0xf] }
 0x18f   :  { %v593_v7 = vadd.f32 %v592_v36, %v10141_v31  ;;  %2474 = vmatmul.bf16.gmra.mxu0 %v10093_v28  ;;  %2513 = vmatmul.bf16.gmra.mxu1 %v10091_v10  ;;  %v7274_v16 = vor.u32 %v9124_v42, %v7273_v35  ;;  %v7625_v35 = vld [vmem:[#allocation8 + $0x388] sm:$0xf] }
 0x190   :  { %2552 = vmatmul.bf16.vlgmr.msra.gmra.mxu2 %v10095_v32  ;;  %2789 = vmatpush.bf16.msra.mxu3 %v8170_v60  ;;  %v9212_v42 = vld [vmem:[#allocation8 + $0x3a4] sm:$0xf0] }
 0x191   :  { %v655_v24 = vmax.f32 %v593_v7, 0.0  ;;  %v7337_v7 = vld [vmem:[#allocation8 + $0x148] sm:$0xf]  ;;  %2740 = vmatpush.bf16.msrb.mxu2 %v7914_v52 }
 0x193   :  { %v10284_v30 = vpack.c.bf16 %v655_v24, %v651_v44  ;;  %v2357_v40 = vpop.f32.mrf.mxu2  ;;  %v7305_v24 = vld [vmem:[#allocation8 + $0x108] sm:$0xf] }
 0x194   :  { %v10287_v41 = vadd.f32 %v2357_v40, %v10236_v50  ;;  %v10289_v26 = vpop.f32.mrf.mxu0  ;;  %v2320_v12 = vpop.f32.mrf.mxu1  ;;  %v9140_v50 = vld [vmem:[#allocation8 + $0x164] sm:$0xf0]  ;;  %v7306_v40 = vor.u32 %v9132_v37, %v7305_v24 }
 0x195   :  { %v10291_v25 = vadd.f32 %v2320_v12, %v2272_v39  ;;  %2435 = vmatmul.bf16.gmra.mxu3 %v10284_v30  ;;  %v7338_v44 = vor.u32 %v9140_v50, %v7337_v7  ;;  %v7241_v7 = vld [vmem:[#allocation8 + $0x88] sm:$0xf]  ;;  %v2277_v50 = vadd.f32 %v10268_v18, %v10229_v29 }
 0x196   :  { %v595_v36 = vpop.f32.mrf.mxu3  ;;  %v9340_v18 = vld [vmem:[#allocation8 + $0x7a4] sm:$0xf0] }
 0x197   :  { %2644 = vmatpush.bf16.msrb.mxu0 %v7338_v44  ;;  %v596_v55 = vadd.f32 %v595_v36, %v10141_v31  ;;  %v9116_v36 = vld [vmem:[#allocation8 + $0xa4] sm:$0xf0] }
 0x198   :  { %v7242_v24 = vor.u32 %v9116_v36, %v7241_v7  ;;  %v7177_v7 = vld [vmem:[#allocation8 + $0x8] sm:$0xf] }
 0x199   :  { %v9100_v36 = vld [vmem:[#allocation8 + $0x24] sm:$0xf0] }
 0x19b   :  { %v2359_v39 = vpop.f32.mrf.mxu2  ;;  %2645 = vmatpush.bf16.msrb.mxu0 %v7306_v40  ;;  %v7881_v40 = vld [vmem:[#allocation8 + $0x588] sm:$0xf] }
 0x19c   :  { %v10297_v48 = vadd.f32 %v2359_v39, %v10248_v33  ;;  %v10299_v12 = vpop.f32.mrf.mxu0  ;;  %v2323_v54 = vpop.f32.mrf.mxu1  ;;  %v659_v33 = vmax.f32 %v596_v55, 0.0  ;;  %v8137_v55 = vld [vmem:[#allocation8 + $0x788] sm:$0xf] }
 0x19d   :  { %v10302_v52 = vadd.f32 %v2323_v54, %v2275_v4  ;;  %v9276_v54 = vld [vmem:[#allocation8 + $0x5a4] sm:$0xf0] }
 0x19e   :  { %v597_v38 = vpop.f32.mrf.mxu3 }
 0x19f   :  { %v598_v60 = vadd.f32 %v597_v38, %v10141_v31  ;;  %2479 = vmatmul.bf16.gmra.mxu0 %v10118_v21  ;;  %2518 = vmatmul.bf16.gmra.mxu1 %v10116_v19  ;;  %v7882_v38 = vor.u32 %v9276_v54, %v7881_v40 }
 0x1a0   :  { %2557 = vmatmul.bf16.gmra.mxu2 %v10120_v22  ;;  %2646 = vmatpush.bf16.msrb.mxu0 %v7274_v16  ;;  %v7626_v16 = vor.u32 %v9212_v42, %v7625_v35  ;;  %v7849_v42 = vld [vmem:[#allocation8 + $0x548] sm:$0xf] }
 0x1a1   :  { %v663_v5 = vmax.f32 %v598_v60, 0.0  ;;  %v8138_v60 = vor.u32 %v9340_v18, %v8137_v55  ;;  %2741 = vmatpush.bf16.msrb.mxu2 %v7882_v38 }
 0x1a2   :  { %2692 = vmatpush.bf16.msrb.mxu1 %v7626_v16 }
 0x1a3   :  { %v10310_v9 = vpack.c.bf16 %v663_v5, %v659_v33  ;;  %v2362_v44 = vpop.f32.mrf.mxu2  ;;  %v7209_v33 = vld [vmem:[#allocation8 + $0x48] sm:$0xf]  ;;  %2790 = vmatpush.bf16.msra.mxu3 %v8138_v60 }
 0x1a4   :  { %v10313_v31 = vadd.f32 %v2362_v44, %v10258_v11  ;;  %v10315_v37 = vpop.f32.mrf.mxu0  ;;  %v2325_v4 = vpop.f32.mrf.mxu1  ;;  %2647 = vmatpush.bf16.msrb.mxu0 %v7242_v24  ;;  %v9108_v11 = vld [vmem:[#allocation8 + $0x64] sm:$0xf0]  ;;  %v7178_v24 = vor.u32 %v9100_v36, %v7177_v7 }
 0x1a5   :  { %v10317_v39 = vadd.f32 %v2325_v4, %v2277_v50  ;;  %2440 = vmatmul.bf16.gmra.mxu3 %v10310_v9  ;;  %v7210_v5 = vor.u32 %v9108_v11, %v7209_v33  ;;  %v2280_v50 = vadd.f32 %v10274_v47, %v10229_v29  ;;  %v2282_v47 = vadd.f32 %v10289_v26, %v10229_v29  ;;  %v9268_v60 = vld [vmem:[#allocation8 + $0x564] sm:$0xf0] }
 0x1a6   :  { %v7850_v33 = vor.u32 %v9268_v60, %v7849_v42  ;;  %v8105_v11 = vld [vmem:[#allocation8 + $0x748] sm:$0xf] }
 0x1a7   :  { %v7593_v7 = vld [vmem:[#allocation8 + $0x348] sm:$0xf] }
 0x1a8   :  { %2648 = vmatpush.bf16.msrb.mxu0 %v7210_v5  ;;  %v9332_v5 = vld [vmem:[#allocation8 + $0x764] sm:$0xf0]  ;;  %2742 = vmatpush.bf16.msrb.mxu2 %v7850_v33 }
 0x1a9   :  { %v8106_v36 = vor.u32 %v9332_v5, %v8105_v11  ;;  %v7529_v5 = vld [vmem:[#allocation8 + $0x2c8] sm:$0xf] }
 0x1ab   :  { %v2364_v44 = vpop.f32.mrf.mxu2  ;;  %2791 = vmatpush.bf16.msra.mxu3 %v8106_v36 }
 0x1ac   :  { %v10323_v4 = vadd.f32 %v2364_v44, %v10270_v23  ;;  %v10325_v40 = vpop.f32.mrf.mxu0  ;;  %v2328_v54 = vpop.f32.mrf.mxu1  ;;  %2649 = vmatpush.bf16.msrb.mxu0 %v7178_v24  ;;  %v7561_v24 = vld [vmem:[#allocation8 + $0x308] sm:$0xf] }
 0x1ad   :  { %v10327_v55 = vadd.f32 %v2328_v54, %v2280_v50  ;;  %v9204_v50 = vld [vmem:[#allocation8 + $0x364] sm:$0xf0] }
 0x1ae   :  { %v7594_v26 = vor.u32 %v9204_v50, %v7593_v7  ;;  %v9196_v54 = vld [vmem:[#allocation8 + $0x324] sm:$0xf0] }
 0x1af   :  { %2484 = vmatmul.bf16.gmra.mxu0 %v10149_v15  ;;  %2523 = vmatmul.bf16.gmra.mxu1 %v10143_v45  ;;  %v9188_v7 = vld [vmem:[#allocation8 + $0x2e4] sm:$0xf0] }
 0x1b0   :  { %2562 = vmatmul.bf16.gmra.mxu2 %v10147_v14  ;;  %2693 = vmatpush.bf16.msrb.mxu1 %v7594_v26  ;;  %v9180_v50 = vld [vmem:[#allocation8 + $0x2a4] sm:$0xf0]  ;;  %v2287_v26 = vadd.f32 %v10315_v37, %v10229_v29 }
 0x1b1   :  { %v8073_v37 = vld [vmem:[#allocation8 + $0x708] sm:$0xf] }
 0x1b3   :  { %v2367_v38 = vpop.f32.mrf.mxu2 }
 0x1b4   :  { %v10335_v18 = vadd.f32 %v2367_v38, %v10277_v0  ;;  %v10337_v23 = vpop.f32.mrf.mxu0  ;;  %v2330_v35 = vpop.f32.mrf.mxu1 }
 0x1b5   :  { %v10339_v16 = vadd.f32 %v2330_v35, %v2282_v47  ;;  %2601 = vmatmul.bf16.vlgmr.msrb.gmra.mxu3 %v10156_v27  ;;  %v2285_v47 = vadd.f32 %v10299_v12, %v10229_v29  ;;  %v7562_v35 = vor.u32 %v9196_v54, %v7561_v24 }
 0x1b7   :  { %2694 = vmatpush.bf16.msrb.mxu1 %v7562_v35 }
 0x1b8   :  { %v2406_v44 = vpop.f32.mrf.mxu3 }
 0x1b9   :  { %v2407_v0 = vadd.f32 %v2406_v44, %v10287_v41  ;;  %v7530_v41 = vor.u32 %v9188_v7, %v7529_v5  ;;  %v7817_v5 = vld [vmem:[#allocation8 + $0x508] sm:$0xf] }
 0x1ba   :  { %v9260_v7 = vld [vmem:[#allocation8 + $0x524] sm:$0xf0] }
 0x1bb   :  { %v2369_v38 = vpop.f32.mrf.mxu2  ;;  %2695 = vmatpush.bf16.msrb.mxu1 %v7530_v41  ;;  %v3818_v44 = vmax.f32 %v2407_v0, 0.0  ;;  %v7818_v41 = vor.u32 %v9260_v7, %v7817_v5  ;;  %v9324_v0 = vld [vmem:[#allocation8 + $0x724] sm:$0xf0] }
 0x1bc   :  { %v10346_v42 = vadd.f32 %v2369_v38, %v10291_v25  ;;  %v10348_v60 = vpop.f32.mrf.mxu0  ;;  %v2333_v11 = vpop.f32.mrf.mxu1  ;;  %v7497_v25 = vld [vmem:[#allocation8 + $0x288] sm:$0xf] }
 0x1bd   :  { %v10350_v33 = vadd.f32 %v2333_v11, %v2285_v47  ;;  %v7498_v47 = vor.u32 %v9180_v50, %v7497_v25  ;;  %v9172_v25 = vld [vmem:[#allocation8 + $0x264] sm:$0xf0]  ;;  %2743 = vmatpush.bf16.msrb.mxu2 %v7818_v41 }
 0x1bf   :  { %2489 = vmatmul.bf16.gmra.mxu0 %v10173_v1  ;;  %2528 = vmatmul.bf16.gmra.mxu1 %v10169_v62 }
 0x1c0   :  { %2567 = vmatmul.bf16.gmra.mxu2 %v10171_v63  ;;  %v2408_v12 = vpop.f32.mrf.mxu3  ;;  %2696 = vmatpush.bf16.msrb.mxu1 %v7498_v47 }
 0x1c1   :  { %v2409_v36 = vadd.f32 %v2408_v12, %v10297_v48  ;;  %v8074_v12 = vor.u32 %v9324_v0, %v8073_v37  ;;  %v2292_v0 = vadd.f32 %v10337_v23, %v10229_v29 }
 0x1c3   :  { %v3826_v24 = vmax.f32 %v2409_v36, 0.0  ;;  %v2372_v54 = vpop.f32.mrf.mxu2  ;;  %v7465_v36 = vld [vmem:[#allocation8 + $0x248] sm:$0xf]  ;;  %2792 = vmatpush.bf16.msra.mxu3 %v8074_v12 }
 0x1c4   :  { %v10359_v38 = vadd.f32 %v2372_v54, %v10302_v52  ;;  %v10361_v35 = vpop.f32.mrf.mxu0  ;;  %v2335_v11 = vpop.f32.mrf.mxu1  ;;  %v7466_v52 = vor.u32 %v9172_v25, %v7465_v36 }
 0x1c5   :  { %v10363_v63 = vpack.c.bf16 %v3826_v24, %v3818_v44  ;;  %v10365_v48 = vadd.f32 %v2335_v11, %v2287_v26  ;;  %2606 = vmatmul.bf16.gmra.mxu3 %v10180_v20  ;;  %v7433_v44 = vld [vmem:[#allocation8 + $0x208] sm:$0xf]  ;;  %v2290_v26 = vadd.f32 %v10325_v40, %v10229_v29 }
 0x1c6   :  { %2697 = vmatpush.bf16.msrb.mxu1 %v7466_v52  ;;  %v9164_v24 = vld [vmem:[#allocation8 + $0x224] sm:$0xf0] }
 0x1c7   :  { %12883 = vst [vmem:[#allocation24_spill] sm:$0xff] %v10363_v63  ;;  %v7434_v5 = vor.u32 %v9164_v24, %v7433_v44  ;;  %v7785_v44 = vld [vmem:[#allocation8 + $0x4c8] sm:$0xf] }
 0x1c8   :  { %v2411_v50 = vpop.f32.mrf.mxu3  ;;  %v9252_v24 = vld [vmem:[#allocation8 + $0x4e4] sm:$0xf0] }
 0x1c9   :  { %v2412_v54 = vadd.f32 %v2411_v50, %v10313_v31 }
 0x1ca   :  { %2698 = vmatpush.bf16.msrb.mxu1 %v7434_v5  ;;  %v9316_v5 = vld [vmem:[#allocation8 + $0x6e4] sm:$0xf0] }
 0x1cb   :  { %v2374_v11 = vpop.f32.mrf.mxu2 }
 0x1cc   :  { %v10372_v7 = vadd.f32 %v2374_v11, %v10317_v39  ;;  %v2338_v47 = vpop.f32.mrf.mxu1  ;;  %v10374_v37 = vpop.f32.mrf.mxu0  ;;  %v3834_v39 = vmax.f32 %v2412_v54, 0.0  ;;  %v7786_v11 = vor.u32 %v9252_v24, %v7785_v44 }
 0x1cd   :  { %v10376_v41 = vadd.f32 %v2338_v47, %v2290_v26 }
 0x1ce   :  { %2744 = vmatpush.bf16.msrb.mxu2 %v7786_v11 }
 0x1cf   :  { %2533 = vmatmul.bf16.gmra.mxu1 %v10188_v59  ;;  %2650 = vmatmul.bf16.vlgmr.msrb.gmra.mxu0 %v10036_v58 }
 0x1d0   :  { %2572 = vmatmul.bf16.gmra.mxu2 %v10190_v61  ;;  %v2413_v31 = vpop.f32.mrf.mxu3 }
 0x1d1   :  { %v2414_v40 = vadd.f32 %v2413_v31, %v10323_v4  ;;  %v8041_v4 = vld [vmem:[#allocation8 + $0x6c8] sm:$0xf]  ;;  %v2295_v31 = vadd.f32 %v10348_v60, %v10229_v29 }
 0x1d2   :  { %v8042_v23 = vor.u32 %v9316_v5, %v8041_v4  ;;  %v9244_v60 = vld [vmem:[#allocation8 + $0x4a4] sm:$0xf0] }
 0x1d3   :  { %v3842_v12 = vmax.f32 %v2414_v40, 0.0  ;;  %v2377_v36 = vpop.f32.mrf.mxu2 }
 0x1d4   :  { %v10385_v25 = vadd.f32 %v2377_v36, %v10327_v55  ;;  %v2340_v52 = vpop.f32.mrf.mxu1  ;;  %v10387_v50 = vpop.f32.mrf.mxu0  ;;  %2793 = vmatpush.bf16.msra.mxu3 %v8042_v23 }
 0x1d5   :  { %v10389_v26 = vadd.f32 %v2340_v52, %v2292_v0  ;;  %2611 = vmatmul.bf16.gmra.mxu3 %v10199_v6  ;;  %v10392_v47 = vpack.c.bf16 %v3842_v12, %v3834_v39  ;;  %v7753_v12 = vld [vmem:[#allocation8 + $0x488] sm:$0xf] }
 0x1d6   :  { %v7754_v5 = vor.u32 %v9244_v60, %v7753_v12  ;;  %v7689_v60 = vld [vmem:[#allocation8 + $0x408] sm:$0xf] }
 0x1d7   :  { %12884 = vst [vmem:[#allocation25_spill] sm:$0xff] %v10392_v47 }
 0x1d8   :  { %v2416_v54 = vpop.f32.mrf.mxu3  ;;  %2745 = vmatpush.bf16.msrb.mxu2 %v7754_v5 }
 0x1d9   :  { %v2417_v55 = vadd.f32 %v2416_v54, %v10335_v18 }
 0x1db   :  { %v2379_v40 = vpop.f32.mrf.mxu2  ;;  %v3850_v24 = vmax.f32 %v2417_v55, 0.0  ;;  %v10419_v55 = vperm.slane %v10221_v56, 1 }
 0x1dc   :  { %v10398_v0 = vadd.f32 %v2379_v40, %v10339_v16  ;;  %v2343_v36 = vpop.f32.mrf.mxu1  ;;  %v10400_v52 = vpop.f32.mrf.mxu0  ;;  %v2297_v16 = vadd.f32 %v10361_v35, %v10229_v29  ;;  %v7721_v29 = vld [vmem:[#allocation8 + $0x448] sm:$0xf] }
 0x1dd   :  { %v10402_v44 = vadd.f32 %v2343_v36, %v2295_v31  ;;  %v9308_v36 = vld [vmem:[#allocation8 + $0x6a4] sm:$0xf0] }
 0x1de   :  { %v9236_v35 = vld [vmem:[#allocation8 + $0x464] sm:$0xf0] }
 0x1df   :  { %2538 = vmatmul.bf16.gmra.mxu1 %v10208_v53  ;;  %2655 = vmatmul.bf16.gmra.mxu0 %v10044_v13 }
 0x1e0   :  { %2577 = vmatmul.bf16.gmra.mxu2 %v10210_v8  ;;  %v2418_v39 = vpop.f32.mrf.mxu3 }
 0x1e1   :  { %v2419_v18 = vadd.f32 %v2418_v39, %v10346_v42  ;;  %v8009_v42 = vld [vmem:[#allocation8 + $0x688] sm:$0xf] }
 0x1e2   :  { %v8010_v47 = vor.u32 %v9308_v36, %v8009_v42 }
 0x1e3   :  { %v3858_v11 = vmax.f32 %v2419_v18, 0.0  ;;  %v2382_v4 = vpop.f32.mrf.mxu2  ;;  %v7722_v18 = vor.u32 %v9236_v35, %v7721_v29 }
 0x1e4   :  { %v10411_v23 = vadd.f32 %v2382_v4, %v10350_v33  ;;  %v2345_v54 = vpop.f32.mrf.mxu1  ;;  %v2462_v31 = vpop.f32.mrf.mxu0  ;;  %2794 = vmatpush.bf16.msra.mxu3 %v8010_v47  ;;  %v2456_v4 = vadd.f32 %v10374_v37, %v10419_v55  ;;  %v2458_v37 = vadd.f32 %v10387_v50, %v10419_v55 }
 0x1e5   :  { %v10413_v40 = vadd.f32 %v2345_v54, %v2297_v16  ;;  %2616 = vmatmul.bf16.gmra.mxu3 %v10219_v17  ;;  %v10416_v39 = vpack.c.bf16 %v3858_v11, %v3850_v24  ;;  %2746 = vmatpush.bf16.msrb.mxu2 %v7722_v18  ;;  %v9228_v16 = vld [vmem:[#allocation8 + $0x424] sm:$0xf0] }
 0x1e6   :  { %v7690_v24 = vor.u32 %v9228_v16, %v7689_v60  ;;  %v7977_v16 = vld [vmem:[#allocation8 + $0x648] sm:$0xf] }
 0x1e7   :  { %12885 = vst [vmem:[#allocation26_spill] sm:$0xff] %v10416_v39 }
 0x1e8   :  { %v2421_v33 = vpop.f32.mrf.mxu3 }
 0x1e9   :  { %v2422_v12 = vadd.f32 %v2421_v33, %v10359_v38  ;;  %2747 = vmatpush.bf16.msrb.mxu2 %v7690_v24 }
 0x1eb   :  { %v2384_v5 = vpop.f32.mrf.mxu2  ;;  %v3866_v36 = vmax.f32 %v2422_v12, 0.0  ;;  %v2461_v12 = vadd.f32 %v10400_v52, %v10419_v55  ;;  %v2463_v52 = vadd.f32 %v2462_v31, %v10419_v55 }
 0x1ec   :  { %v10425_v11 = vadd.f32 %v2384_v5, %v10365_v48  ;;  %v2465_v54 = vpop.f32.mrf.mxu0  ;;  %v2504_v42 = vpop.f32.mrf.mxu1 }
 0x1ed   :  { %v10427_v56 = vadd.f32 %v2504_v42, %v2456_v4  ;;  %v9300_v4 = vld [vmem:[#allocation8 + $0x664] sm:$0xf0] }
 0x1ef   :  { %2660 = vmatmul.bf16.gmra.mxu0 %v10055_v49  ;;  %2699 = vmatmul.bf16.vlgmr.msrb.gmra.mxu1 %v10057_v51 }
 0x1f0   :  { %2582 = vmatmul.bf16.gmra.mxu2 %v10233_v43  ;;  %v2423_v38 = vpop.f32.mrf.mxu3 }
 0x1f1   :  { %v2424_v47 = vadd.f32 %v2423_v38, %v10372_v7  ;;  %v7978_v7 = vor.u32 %v9300_v4, %v7977_v16 }
 0x1f3   :  { %v3874_v48 = vmax.f32 %v2424_v47, 0.0  ;;  %v2387_v29 = vpop.f32.mrf.mxu2  ;;  %2795 = vmatpush.bf16.msra.mxu3 %v7978_v7 }
 0x1f4   :  { %v10436_v35 = vadd.f32 %v2387_v29, %v10376_v41  ;;  %v2467_v18 = vpop.f32.mrf.mxu0  ;;  %v2506_v33 = vpop.f32.mrf.mxu1 }
 0x1f5   :  { %v10438_v60 = vadd.f32 %v2506_v33, %v2458_v37  ;;  %2621 = vmatmul.bf16.gmra.mxu3 %v10244_v34  ;;  %v10441_v5 = vpack.c.bf16 %v3874_v48, %v3866_v36 }
 0x1f7   :  { %12886 = vst [vmem:[#allocation27_spill] sm:$0xff] %v10441_v5  ;;  %v7403_v5 = vld [vmem:[#allocation8 + $0x1e8] sm:$0xf0] }
 0x1f8   :  { %v2426_v24 = vpop.f32.mrf.mxu3 }
 0x1f9   :  { %v2427_v50 = vadd.f32 %v2426_v24, %v10385_v25  ;;  %v7945_v24 = vld [vmem:[#allocation8 + $0x608] sm:$0xf] }
 0x1fb   :  { %v2389_v41 = vpop.f32.mrf.mxu2  ;;  %v3882_v48 = vmax.f32 %v2427_v50, 0.0  ;;  %v2466_v50 = vadd.f32 %v2465_v54, %v10419_v55 }
 0x1fc   :  { %v10447_v42 = vadd.f32 %v2389_v41, %v10389_v26  ;;  %v10449_v38 = vpop.f32.mrf.mxu0  ;;  %v2509_v47 = vpop.f32.mrf.mxu1 }
 0x1fd   :  { %v10451_v37 = vadd.f32 %v2509_v47, %v2461_v12  ;;  %v9292_v12 = vld [vmem:[#allocation8 + $0x624] sm:$0xf0] }
 0x1ff   :  { %2665 = vmatmul.bf16.gmra.mxu0 %v10069_v2  ;;  %2704 = vmatmul.bf16.gmra.mxu1 %v10071_v3 }
 0x200   :  { %2587 = vmatmul.bf16.gmra.mxu2 %v10253_v57  ;;  %v2428_v36 = vpop.f32.mrf.mxu3 }
 0x201   :  { %v2429_v25 = vadd.f32 %v2428_v36, %v10398_v0  ;;  %v7946_v0 = vor.u32 %v9292_v12, %v7945_v24  ;;  %v2468_v24 = vadd.f32 %v2467_v18, %v10419_v55  ;;  %v8171_v18 = vld [vmem:[#allocation8 + $0x7e8] sm:$0xf0] }
 0x203   :  { %v3890_v29 = vmax.f32 %v2429_v25, 0.0  ;;  %v2392_v26 = vpop.f32.mrf.mxu2  ;;  %2796 = vmatpush.bf16.msra.mxu3 %v7946_v0 }
 0x204   :  { %v10459_v33 = vadd.f32 %v2392_v26, %v10402_v44  ;;  %v10461_v16 = vpop.f32.mrf.mxu0  ;;  %v2511_v4 = vpop.f32.mrf.mxu1 }
 0x205   :  { %v10463_v7 = vadd.f32 %v2511_v4, %v2463_v52  ;;  %2626 = vmatmul.bf16.gmra.mxu3 %v10266_v46  ;;  %v10466_v41 = vpack.c.bf16 %v3890_v29, %v3882_v48  ;;  %v9152_v4 = vld [vmem:[#allocation8 + $0x1cc] sm:$0xf] }
 0x206   :  { %v7406_v48 = vor.u32 %v9152_v4, %v7403_v5  ;;  %v7371_v29 = vld [vmem:[#allocation8 + $0x1a8] sm:$0xf0] }
 0x207   :  { %12887 = vst [vmem:[#allocation28_spill] sm:$0xff] %v10466_v41  ;;  %v9280_v4 = vld [vmem:[#allocation8 + $0x5cc] sm:$0xf] }
 0x208   :  { %v2431_v47 = vpop.f32.mrf.mxu3  ;;  %2838 = vmatpush.bf16.msra.mxu0 %v7406_v48  ;;  %v7915_v41 = vld [vmem:[#allocation8 + $0x5e8] sm:$0xf0] }
 0x209   :  { %v2432_v31 = vadd.f32 %v2431_v47, %v10411_v23  ;;  %v9344_v48 = vld [vmem:[#allocation8 + $0x7cc] sm:$0xf] }
 0x20b   :  { %v2394_v44 = vpop.f32.mrf.mxu2 }
 0x20c   :  { %v10471_v36 = vadd.f32 %v2394_v44, %v10413_v40  ;;  %v10473_v25 = vpop.f32.mrf.mxu0  ;;  %v2514_v52 = vpop.f32.mrf.mxu1  ;;  %v9144_v40 = vld [vmem:[#allocation8 + $0x18c] sm:$0xf] }
 0x20d   :  { %v10475_v26 = vadd.f32 %v2514_v52, %v2466_v50  ;;  %v7374_v47 = vor.u32 %v9144_v40, %v7371_v29  ;;  %v3898_v50 = vmax.f32 %v2432_v31, 0.0  ;;  %v7659_v40 = vld [vmem:[#allocation8 + $0x3e8] sm:$0xf0] }
 0x20e   :  { %v9136_v31 = vld [vmem:[#allocation8 + $0x14c] sm:$0xf] }
 0x20f   :  { %2670 = vmatmul.bf16.gmra.mxu0 %v10093_v28  ;;  %2709 = vmatmul.bf16.gmra.mxu1 %v10091_v10  ;;  %v7339_v29 = vld [vmem:[#allocation8 + $0x168] sm:$0xf0] }
 0x210   :  { %2748 = vmatmul.bf16.vlgmr.msrb.gmra.mxu2 %v10095_v32  ;;  %v2433_v23 = vpop.f32.mrf.mxu3  ;;  %2839 = vmatpush.bf16.msra.mxu0 %v7374_v47  ;;  %v7342_v63 = vor.u32 %v9136_v31, %v7339_v29  ;;  %v7307_v47 = vld [vmem:[#allocation8 + $0x128] sm:$0xf0] }
 0x211   :  { %v2434_v54 = vadd.f32 %v2433_v23, %v10425_v11  ;;  %v7918_v11 = vor.u32 %v9280_v4, %v7915_v41  ;;  %v9216_v23 = vld [vmem:[#allocation8 + $0x3cc] sm:$0xf] }
 0x212   :  { %v9128_v41 = vld [vmem:[#allocation8 + $0x10c] sm:$0xf] }
 0x213   :  { %v3906_v12 = vmax.f32 %v2434_v54, 0.0  ;;  %v2553_v0 = vpop.f32.mrf.mxu2  ;;  %v8174_v54 = vor.u32 %v9344_v48, %v8171_v18  ;;  %2936 = vmatpush.bf16.msra.mxu2 %v7918_v11  ;;  %v7310_v48 = vor.u32 %v9128_v41, %v7307_v47 }
 0x214   :  { %v10483_v44 = vadd.f32 %v2553_v0, %v10427_v56  ;;  %v10485_v52 = vpop.f32.mrf.mxu0  ;;  %v2516_v5 = vpop.f32.mrf.mxu1  ;;  %v7662_v0 = vor.u32 %v9216_v23, %v7659_v40  ;;  %2840 = vmatpush.bf16.msra.mxu0 %v7342_v63  ;;  %v9120_v23 = vld [vmem:[#allocation8 + $0xcc] sm:$0xf]  ;;  %v2473_v40 = vadd.f32 %v10461_v16, %v10419_v55 }
 0x215   :  { %v10487_v39 = vadd.f32 %v2516_v5, %v2468_v24  ;;  %2631 = vmatmul.bf16.gmra.mxu3 %v10284_v30  ;;  %v10490_v56 = vpack.c.bf16 %v3906_v12, %v3898_v50  ;;  %v2471_v5 = vadd.f32 %v10449_v38, %v10419_v55 }
 0x216   :  { %2985 = vmatpush.bf16.msrb.mxu3 %v8174_v54  ;;  %2887 = vmatpush.bf16.msra.mxu1 %v7662_v0  ;;  %v7243_v54 = vld [vmem:[#allocation8 + $0xa8] sm:$0xf0] }
 0x217   :  { %12888 = vst [vmem:[#allocation29_spill] sm:$0xff] %v10490_v56  ;;  %v7179_v56 = vld [vmem:[#allocation8 + $0x28] sm:$0xf0] }
 0x218   :  { %v2436_v32 = vpop.f32.mrf.mxu3  ;;  %2841 = vmatpush.bf16.msra.mxu0 %v7310_v48 }
 0x219   :  { %v2437_v24 = vadd.f32 %v2436_v32, %v10436_v35  ;;  %v7275_v32 = vld [vmem:[#allocation8 + $0xe8] sm:$0xf0] }
 0x21a   :  { %v7278_v63 = vor.u32 %v9120_v23, %v7275_v32  ;;  %v9336_v23 = vld [vmem:[#allocation8 + $0x78c] sm:$0xf] }
 0x21b   :  { %v2555_v4 = vpop.f32.mrf.mxu2  ;;  %v3914_v31 = vmax.f32 %v2437_v24, 0.0  ;;  %v8139_v24 = vld [vmem:[#allocation8 + $0x7a8] sm:$0xf0] }
 0x21c   :  { %v10496_v18 = vadd.f32 %v2555_v4, %v10438_v60  ;;  %v10498_v12 = vpop.f32.mrf.mxu0  ;;  %v2519_v50 = vpop.f32.mrf.mxu1  ;;  %2842 = vmatpush.bf16.msra.mxu0 %v7278_v63  ;;  %v9112_v60 = vld [vmem:[#allocation8 + $0x8c] sm:$0xf] }
 0x21d   :  { %v10500_v11 = vadd.f32 %v2519_v50, %v2471_v5  ;;  %v7246_v41 = vor.u32 %v9112_v60, %v7243_v54  ;;  %v7883_v50 = vld [vmem:[#allocation8 + $0x5a8] sm:$0xf0] }
 0x21e   :  { %v9208_v63 = vld [vmem:[#allocation8 + $0x38c] sm:$0xf] }
 0x21f   :  { %2675 = vmatmul.bf16.gmra.mxu0 %v10118_v21  ;;  %2714 = vmatmul.bf16.gmra.mxu1 %v10116_v19  ;;  %v9104_v60 = vld [vmem:[#allocation8 + $0x4c] sm:$0xf] }
 0x220   :  { %2753 = vmatmul.bf16.gmra.mxu2 %v10120_v22  ;;  %v2438_v35 = vpop.f32.mrf.mxu3  ;;  %2843 = vmatpush.bf16.msra.mxu0 %v7246_v41  ;;  %v7211_v54 = vld [vmem:[#allocation8 + $0x68] sm:$0xf0] }
 0x221   :  { %v2439_v38 = vadd.f32 %v2438_v35, %v10447_v42  ;;  %v9272_v42 = vld [vmem:[#allocation8 + $0x58c] sm:$0xf] }
 0x222   :  { %v7886_v16 = vor.u32 %v9272_v42, %v7883_v50  ;;  %v7627_v35 = vld [vmem:[#allocation8 + $0x3a8] sm:$0xf0] }
 0x223   :  { %v3922_v29 = vmax.f32 %v2439_v38, 0.0  ;;  %v2558_v0 = vpop.f32.mrf.mxu2  ;;  %v8142_v38 = vor.u32 %v9336_v23, %v8139_v24  ;;  %v9096_v41 = vld [vmem:[#allocation8 + $0xc] sm:$0xf] }
 0x224   :  { %v10509_v47 = vadd.f32 %v2558_v0, %v10451_v37  ;;  %v10511_v5 = vpop.f32.mrf.mxu0  ;;  %v2521_v4 = vpop.f32.mrf.mxu1  ;;  %v7630_v37 = vor.u32 %v9208_v63, %v7627_v35  ;;  %2937 = vmatpush.bf16.msra.mxu2 %v7886_v16  ;;  %v7182_v42 = vor.u32 %v9096_v41, %v7179_v56  ;;  %v2478_v56 = vadd.f32 %v10485_v52, %v10419_v55 }
 0x225   :  { %v10513_v48 = vadd.f32 %v2521_v4, %v2473_v40  ;;  %2636 = vmatmul.bf16.gmra.mxu3 %v10310_v9  ;;  %v10516_v32 = vpack.c.bf16 %v3922_v29, %v3914_v31  ;;  %v7214_v40 = vor.u32 %v9104_v60, %v7211_v54  ;;  %v2476_v31 = vadd.f32 %v10473_v25, %v10419_v55  ;;  %v9264_v54 = vld [vmem:[#allocation8 + $0x54c] sm:$0xf] }
 0x226   :  { %2986 = vmatpush.bf16.msrb.mxu3 %v8142_v38  ;;  %2888 = vmatpush.bf16.msra.mxu1 %v7630_v37 }
 0x227   :  { %12889 = vst [vmem:[#allocation30_spill] sm:$0xff] %v10516_v32  ;;  %2844 = vmatpush.bf16.msra.mxu0 %v7214_v40 }
 0x228   :  { %v2441_v0 = vpop.f32.mrf.mxu3 }
 0x229   :  { %v2442_v4 = vadd.f32 %v2441_v0, %v10459_v33  ;;  %v7851_v0 = vld [vmem:[#allocation8 + $0x568] sm:$0xf0] }
 0x22a   :  { %v7854_v41 = vor.u32 %v9264_v54, %v7851_v0 }
 0x22b   :  { %v2560_v29 = vpop.f32.mrf.mxu2  ;;  %2845 = vmatpush.bf16.msra.mxu0 %v7182_v42  ;;  %v7595_v42 = vld [vmem:[#allocation8 + $0x368] sm:$0xf0] }
 0x22c   :  { %v10522_v50 = vadd.f32 %v2560_v29, %v10463_v7  ;;  %v10524_v23 = vpop.f32.mrf.mxu0  ;;  %v2524_v24 = vpop.f32.mrf.mxu1  ;;  %v3930_v7 = vmax.f32 %v2442_v4, 0.0  ;;  %v9200_v29 = vld [vmem:[#allocation8 + $0x34c] sm:$0xf]  ;;  %2938 = vmatpush.bf16.msra.mxu2 %v7854_v41 }
 0x22d   :  { %v10526_v16 = vadd.f32 %v2524_v24, %v2476_v31  ;;  %v8107_v31 = vld [vmem:[#allocation8 + $0x768] sm:$0xf0] }
 0x22f   :  { %2680 = vmatmul.bf16.gmra.mxu0 %v10149_v15  ;;  %2719 = vmatmul.bf16.gmra.mxu1 %v10143_v45 }
 0x230   :  { %2758 = vmatmul.bf16.gmra.mxu2 %v10147_v14  ;;  %v2443_v33 = vpop.f32.mrf.mxu3 }
 0x231   :  { %v2444_v25 = vadd.f32 %v2443_v33, %v10471_v36  ;;  %v9328_v36 = vld [vmem:[#allocation8 + $0x74c] sm:$0xf] }
 0x232   :  { %v8110_v4 = vor.u32 %v9328_v36, %v8107_v31  ;;  %v9184_v36 = vld [vmem:[#allocation8 + $0x2cc] sm:$0xf] }
 0x233   :  { %v3938_v63 = vmax.f32 %v2444_v25, 0.0  ;;  %v2563_v35 = vpop.f32.mrf.mxu2  ;;  %v9192_v25 = vld [vmem:[#allocation8 + $0x30c] sm:$0xf] }
 0x234   :  { %v10535_v38 = vadd.f32 %v2563_v35, %v10475_v26  ;;  %v10537_v37 = vpop.f32.mrf.mxu0  ;;  %v2526_v60 = vpop.f32.mrf.mxu1  ;;  %v7598_v26 = vor.u32 %v9200_v29, %v7595_v42  ;;  %2987 = vmatpush.bf16.msrb.mxu3 %v8110_v4  ;;  %v2481_v35 = vadd.f32 %v10498_v12, %v10419_v55  ;;  %v7531_v31 = vld [vmem:[#allocation8 + $0x2e8] sm:$0xf0]  ;;  %v12891_v29 = vld [vmem:[#allocation23_spill] sm:$0xff] }
 0x235   :  { %v10539_v40 = vadd.f32 %v2526_v60, %v2478_v56  ;;  %2797 = vmatmul.bf16.vlgmr.msra.gmra.mxu3 %v10156_v27  ;;  %v10542_v52 = vpack.c.bf16 %v3938_v63, %v3930_v7  ;;  %v7563_v56 = vld [vmem:[#allocation8 + $0x328] sm:$0xf0] }
 0x236   :  { %2889 = vmatpush.bf16.msra.mxu1 %v7598_v26  ;;  %v7566_v54 = vor.u32 %v9192_v25, %v7563_v56  ;;  %v7499_v42 = vld [vmem:[#allocation8 + $0x2a8] sm:$0xf0]  ;;  %v2483_v26 = vadd.f32 %v10511_v5, %v10419_v55 }
 0x237   :  { %12890 = vst [vmem:[#allocation31_spill] sm:$0xff] %v10542_v52  ;;  %v9320_v5 = vld [vmem:[#allocation8 + $0x70c] sm:$0xf] }
 0x238   :  { %v2602_v24 = vpop.f32.mrf.mxu3 }
 0x239   :  { %v2603_v33 = vadd.f32 %v2602_v24, %v10483_v44  ;;  %v7534_v44 = vor.u32 %v9184_v36, %v7531_v31  ;;  %v9256_v36 = vld [vmem:[#allocation8 + $0x50c] sm:$0xf] }
 0x23a   :  { %2890 = vmatpush.bf16.msra.mxu1 %v7566_v54  ;;  %v7819_v31 = vld [vmem:[#allocation8 + $0x528] sm:$0xf0] }
 0x23b   :  { %v2565_v60 = vpop.f32.mrf.mxu2  ;;  %v3819_v24 = vmax.f32 %v2603_v33, 0.0  ;;  %v8075_v33 = vld [vmem:[#allocation8 + $0x728] sm:$0xf0] }
 0x23c   :  { %v10548_v0 = vadd.f32 %v2565_v60, %v10487_v39  ;;  %v10550_v7 = vpop.f32.mrf.mxu0  ;;  %v2529_v63 = vpop.f32.mrf.mxu1  ;;  %v9176_v39 = vld [vmem:[#allocation8 + $0x28c] sm:$0xf] }
 0x23d   :  { %v10552_v41 = vadd.f32 %v2529_v63, %v2481_v35  ;;  %v7502_v35 = vor.u32 %v9176_v39, %v7499_v42  ;;  %v7467_v39 = vld [vmem:[#allocation8 + $0x268] sm:$0xf0] }
 0x23e   :  { %2891 = vmatpush.bf16.msra.mxu1 %v7534_v44  ;;  %v7822_v44 = vor.u32 %v9256_v36, %v7819_v31 }
 0x23f   :  { %2685 = vmatmul.bf16.gmra.mxu0 %v10173_v1  ;;  %2724 = vmatmul.bf16.gmra.mxu1 %v10169_v62 }
 0x240   :  { %2763 = vmatmul.bf16.gmra.mxu2 %v12891_v29  ;;  %v2604_v12 = vpop.f32.mrf.mxu3 }
 0x241   :  { %v2605_v4 = vadd.f32 %v2604_v12, %v10496_v18  ;;  %v8078_v12 = vor.u32 %v9320_v5, %v8075_v33  ;;  %2939 = vmatpush.bf16.msra.mxu2 %v7822_v44  ;;  %v2488_v33 = vadd.f32 %v10537_v37, %v10419_v55 }
 0x242   :  { %2892 = vmatpush.bf16.msra.mxu1 %v7502_v35 }
 0x243   :  { %v3827_v25 = vmax.f32 %v2605_v4, 0.0  ;;  %v2568_v56 = vpop.f32.mrf.mxu2  ;;  %v9168_v4 = vld [vmem:[#allocation8 + $0x24c] sm:$0xf]  ;;  %2988 = vmatpush.bf16.msrb.mxu3 %v8078_v12 }
 0x244   :  { %v10561_v60 = vadd.f32 %v2568_v56, %v10500_v11  ;;  %v10563_v54 = vpop.f32.mrf.mxu0  ;;  %v2531_v63 = vpop.f32.mrf.mxu1  ;;  %v7470_v11 = vor.u32 %v9168_v4, %v7467_v39 }
 0x245   :  { %v10565_v52 = vpack.c.bf16 %v3827_v25, %v3819_v24  ;;  %v10567_v18 = vadd.f32 %v2531_v63, %v2483_v26  ;;  %2802 = vmatmul.bf16.gmra.mxu3 %v10180_v20  ;;  %v9160_v24 = vld [vmem:[#allocation8 + $0x20c] sm:$0xf]  ;;  %v2486_v26 = vadd.f32 %v10524_v23, %v10419_v55 }
 0x246   :  { %2893 = vmatpush.bf16.msra.mxu1 %v7470_v11  ;;  %v7435_v25 = vld [vmem:[#allocation8 + $0x228] sm:$0xf0] }
 0x247   :  { %12892 = vst [vmem:[#allocation23_spill] sm:$0xff] %v10565_v52  ;;  %v7438_v36 = vor.u32 %v9160_v24, %v7435_v25  ;;  %v9248_v24 = vld [vmem:[#allocation8 + $0x4cc] sm:$0xf]  ;;  %v9285_v52 = vld [vmem:[#allocation8 + $0x5ec] sm:$0xf0] }
 0x248   :  { %v2607_v42 = vpop.f32.mrf.mxu3  ;;  %v7787_v25 = vld [vmem:[#allocation8 + $0x4e8] sm:$0xf0] }
 0x249   :  { %v2608_v56 = vadd.f32 %v2607_v42, %v10509_v47 }
 0x24a   :  { %2894 = vmatpush.bf16.msra.mxu1 %v7438_v36  ;;  %v8043_v36 = vld [vmem:[#allocation8 + $0x6e8] sm:$0xf0] }
 0x24b   :  { %v2570_v63 = vpop.f32.mrf.mxu2 }
 0x24c   :  { %v10574_v31 = vadd.f32 %v2570_v63, %v10513_v48  ;;  %v2534_v35 = vpop.f32.mrf.mxu1  ;;  %v10576_v5 = vpop.f32.mrf.mxu0  ;;  %v3835_v48 = vmax.f32 %v2608_v56, 0.0  ;;  %v7790_v63 = vor.u32 %v9248_v24, %v7787_v25 }
 0x24d   :  { %v10578_v44 = vadd.f32 %v2534_v35, %v2486_v26 }
 0x24e   :  { %2940 = vmatpush.bf16.msra.mxu2 %v7790_v63 }
 0x24f   :  { %2729 = vmatmul.bf16.gmra.mxu1 %v10188_v59  ;;  %2846 = vmatmul.bf16.vlgmr.msra.gmra.mxu0 %v10036_v58 }
 0x250   :  { %2768 = vmatmul.bf16.gmra.mxu2 %v10190_v61  ;;  %v2609_v47 = vpop.f32.mrf.mxu3 }
 0x251   :  { %v2610_v23 = vadd.f32 %v2609_v47, %v10522_v50  ;;  %v9312_v50 = vld [vmem:[#allocation8 + $0x6cc] sm:$0xf]  ;;  %v2491_v47 = vadd.f32 %v10550_v7, %v10419_v55 }
 0x252   :  { %v8046_v37 = vor.u32 %v9312_v50, %v8043_v36  ;;  %v7755_v7 = vld [vmem:[#allocation8 + $0x4a8] sm:$0xf0] }
 0x253   :  { %v3843_v12 = vmax.f32 %v2610_v23, 0.0  ;;  %v2573_v4 = vpop.f32.mrf.mxu2 }
 0x254   :  { %v10587_v39 = vadd.f32 %v2573_v4, %v10526_v16  ;;  %v2536_v11 = vpop.f32.mrf.mxu1  ;;  %v10589_v42 = vpop.f32.mrf.mxu0  ;;  %2989 = vmatpush.bf16.msrb.mxu3 %v8046_v37 }
 0x255   :  { %v10591_v26 = vadd.f32 %v2536_v11, %v2488_v33  ;;  %2807 = vmatmul.bf16.gmra.mxu3 %v10199_v6  ;;  %v10594_v35 = vpack.c.bf16 %v3843_v12, %v3835_v48  ;;  %v9240_v12 = vld [vmem:[#allocation8 + $0x48c] sm:$0xf] }
 0x256   :  { %v7758_v36 = vor.u32 %v9240_v12, %v7755_v7 }
 0x257   :  { %12893 = vst [vmem:[#allocation32_spill] sm:$0xff] %v10594_v35  ;;  %v9157_v35 = vld [vmem:[#allocation8 + $0x1ec] sm:$0xf0] }
 0x258   :  { %v2612_v56 = vpop.f32.mrf.mxu3  ;;  %2941 = vmatpush.bf16.msra.mxu2 %v7758_v36 }
 0x259   :  { %v2613_v16 = vadd.f32 %v2612_v56, %v10535_v38 }
 0x25b   :  { %v2575_v23 = vpop.f32.mrf.mxu2  ;;  %v3851_v25 = vmax.f32 %v2613_v16, 0.0  ;;  %v10620_v16 = vld [vmem:[#allocation10] sm:$0xff] }
 0x25c   :  { %v10600_v33 = vadd.f32 %v2575_v23, %v10539_v40  ;;  %v2539_v4 = vpop.f32.mrf.mxu1  ;;  %v10602_v11 = vpop.f32.mrf.mxu0  ;;  %v2493_v40 = vadd.f32 %v10563_v54, %v10419_v55  ;;  %v9232_v55 = vld [vmem:[#allocation8 + $0x44c] sm:$0xf] }
 0x25d   :  { %v10604_v24 = vadd.f32 %v2539_v4, %v2491_v47  ;;  %v8011_v4 = vld [vmem:[#allocation8 + $0x6a8] sm:$0xf0] }
 0x25e   :  { %v7723_v54 = vld [vmem:[#allocation8 + $0x468] sm:$0xf0] }
 0x25f   :  { %2734 = vmatmul.bf16.gmra.mxu1 %v10208_v53  ;;  %2851 = vmatmul.bf16.gmra.mxu0 %v10044_v13 }
 0x260   :  { %2773 = vmatmul.bf16.gmra.mxu2 %v10210_v8  ;;  %v2614_v48 = vpop.f32.mrf.mxu3 }
 0x261   :  { %v2615_v38 = vadd.f32 %v2614_v48, %v10548_v0  ;;  %v9304_v0 = vld [vmem:[#allocation8 + $0x68c] sm:$0xf] }
 0x262   :  { %v8014_v32 = vor.u32 %v9304_v0, %v8011_v4 }
 0x263   :  { %v3859_v63 = vmax.f32 %v2615_v38, 0.0  ;;  %v2578_v50 = vpop.f32.mrf.mxu2  ;;  %v10623_v38 = vperm.slane %v10620_v16, 2 }
 0x264   :  { %v10613_v37 = vadd.f32 %v2578_v50, %v10552_v41  ;;  %v2541_v56 = vpop.f32.mrf.mxu1  ;;  %v2658_v47 = vpop.f32.mrf.mxu0  ;;  %v7726_v41 = vor.u32 %v9232_v55, %v7723_v54  ;;  %2990 = vmatpush.bf16.msrb.mxu3 %v8014_v32  ;;  %v7691_v50 = vld [vmem:[#allocation8 + $0x428] sm:$0xf0] }
 0x265   :  { %v10615_v23 = vadd.f32 %v2541_v56, %v2493_v40  ;;  %2812 = vmatmul.bf16.gmra.mxu3 %v10219_v17  ;;  %v10618_v48 = vpack.c.bf16 %v3859_v63, %v3851_v25  ;;  %v9224_v40 = vld [vmem:[#allocation8 + $0x40c] sm:$0xf]  ;;  %v2652_v25 = vadd.f32 %v10576_v5, %v10623_v38  ;;  %v2654_v5 = vadd.f32 %v10589_v42, %v10623_v38 }
 0x266   :  { %2942 = vmatpush.bf16.msra.mxu2 %v7726_v41  ;;  %v7694_v36 = vor.u32 %v9224_v40, %v7691_v50 }
 0x267   :  { %12894 = vst [vmem:[#allocation33_spill] sm:$0xff] %v10618_v48 }
 0x268   :  { %v2617_v12 = vpop.f32.mrf.mxu3 }
 0x269   :  { %v2618_v7 = vadd.f32 %v2617_v12, %v10561_v60 }
 0x26a   :  { %2943 = vmatpush.bf16.msra.mxu2 %v7694_v36 }
 0x26b   :  { %v2580_v63 = vpop.f32.mrf.mxu2  ;;  %v3867_v55 = vmax.f32 %v2618_v7, 0.0  ;;  %v2657_v7 = vadd.f32 %v10602_v11, %v10623_v38  ;;  %v2659_v11 = vadd.f32 %v2658_v47, %v10623_v38 }
 0x26c   :  { %v10629_v56 = vadd.f32 %v2580_v63, %v10567_v18  ;;  %v2661_v0 = vpop.f32.mrf.mxu0  ;;  %v2700_v4 = vpop.f32.mrf.mxu1  ;;  %v7979_v63 = vld [vmem:[#allocation8 + $0x668] sm:$0xf0] }
 0x26d   :  { %v10631_v48 = vadd.f32 %v2700_v4, %v2652_v25  ;;  %v9296_v25 = vld [vmem:[#allocation8 + $0x64c] sm:$0xf] }
 0x26f   :  { %2856 = vmatmul.bf16.gmra.mxu0 %v10055_v49  ;;  %2895 = vmatmul.bf16.vlgmr.msra.gmra.mxu1 %v10057_v51 }
 0x270   :  { %2778 = vmatmul.bf16.gmra.mxu2 %v10233_v43  ;;  %v2619_v32 = vpop.f32.mrf.mxu3 }
 0x271   :  { %v2620_v60 = vadd.f32 %v2619_v32, %v10574_v31  ;;  %v7982_v31 = vor.u32 %v9296_v25, %v7979_v63 }
 0x273   :  { %v3875_v18 = vmax.f32 %v2620_v60, 0.0  ;;  %v2583_v54 = vpop.f32.mrf.mxu2  ;;  %2991 = vmatpush.bf16.msrb.mxu3 %v7982_v31 }
 0x274   :  { %v10640_v41 = vadd.f32 %v2583_v54, %v10578_v44  ;;  %v2663_v12 = vpop.f32.mrf.mxu0  ;;  %v2702_v40 = vpop.f32.mrf.mxu1 }
 0x275   :  { %v10642_v50 = vadd.f32 %v2702_v40, %v2654_v5  ;;  %2817 = vmatmul.bf16.gmra.mxu3 %v10244_v34  ;;  %v10645_v36 = vpack.c.bf16 %v3875_v18, %v3867_v55 }
 0x277   :  { %12895 = vst [vmem:[#allocation34_spill] sm:$0xff] %v10645_v36  ;;  %v7409_v36 = vld [vmem:[#allocation8 + $0x1d0] sm:$0xf] }
 0x278   :  { %v2622_v4 = vpop.f32.mrf.mxu3 }
 0x279   :  { %v2623_v42 = vadd.f32 %v2622_v4, %v10587_v39 }
 0x27b   :  { %v2585_v44 = vpop.f32.mrf.mxu2  ;;  %v3883_v18 = vmax.f32 %v2623_v42, 0.0  ;;  %v2662_v42 = vadd.f32 %v2661_v0, %v10623_v38 }
 0x27c   :  { %v10651_v32 = vadd.f32 %v2585_v44, %v10591_v26  ;;  %v10653_v60 = vpop.f32.mrf.mxu0  ;;  %v2705_v5 = vpop.f32.mrf.mxu1  ;;  %v7947_v44 = vld [vmem:[#allocation8 + $0x628] sm:$0xf0] }
 0x27d   :  { %v10655_v54 = vadd.f32 %v2705_v5, %v2657_v7  ;;  %v9288_v7 = vld [vmem:[#allocation8 + $0x60c] sm:$0xf] }
 0x27f   :  { %2861 = vmatmul.bf16.gmra.mxu0 %v10069_v2  ;;  %2900 = vmatmul.bf16.gmra.mxu1 %v10071_v3 }
 0x280   :  { %2783 = vmatmul.bf16.gmra.mxu2 %v10253_v57  ;;  %v2624_v55 = vpop.f32.mrf.mxu3 }
 0x281   :  { %v2625_v39 = vadd.f32 %v2624_v55, %v10600_v33  ;;  %v7950_v33 = vor.u32 %v9288_v7, %v7947_v44  ;;  %v9149_v7 = vld [vmem:[#allocation8 + $0x1ac] sm:$0xf0]  ;;  %v2664_v44 = vadd.f32 %v2663_v12, %v10623_v38 }
 0x282   :  { %v9349_v12 = vld [vmem:[#allocation8 + $0x7ec] sm:$0xf0] }
 0x283   :  { %v3891_v40 = vmax.f32 %v2625_v39, 0.0  ;;  %v2588_v26 = vpop.f32.mrf.mxu2  ;;  %2992 = vmatpush.bf16.msrb.mxu3 %v7950_v33 }
 0x284   :  { %v10663_v25 = vadd.f32 %v2588_v26, %v10604_v24  ;;  %v10665_v63 = vpop.f32.mrf.mxu0  ;;  %v2707_v31 = vpop.f32.mrf.mxu1 }
 0x285   :  { %v10667_v4 = vadd.f32 %v2707_v31, %v2659_v11  ;;  %2822 = vmatmul.bf16.gmra.mxu3 %v10266_v46  ;;  %v10670_v5 = vpack.c.bf16 %v3891_v40, %v3883_v18  ;;  %v7410_v18 = vor.u32 %v9157_v35, %v7409_v36  ;;  %v12897_v40 = vld [vmem:[#allocation22_spill] sm:$0xff]  ;;  %v7921_v36 = vld [vmem:[#allocation8 + $0x5d0] sm:$0xf] }
 0x287   :  { %12896 = vst [vmem:[#allocation35_spill] sm:$0xff] %v10670_v5  ;;  %3034 = vmatpush.bf16.msrb.mxu0 %v7410_v18  ;;  %v8177_v18 = vld [vmem:[#allocation8 + $0x7d0] sm:$0xf] }
 0x288   :  { %v2627_v55 = vpop.f32.mrf.mxu3 }
 0x289   :  { %v2628_v47 = vadd.f32 %v2627_v55, %v10613_v37 }
 0x28b   :  { %v2590_v24 = vpop.f32.mrf.mxu2 }
 0x28c   :  { %v10675_v39 = vadd.f32 %v2590_v24, %v10615_v23  ;;  %v10677_v26 = vpop.f32.mrf.mxu0  ;;  %v2710_v11 = vpop.f32.mrf.mxu1  ;;  %v7377_v23 = vld [vmem:[#allocation8 + $0x190] sm:$0xf]  ;;  %v3899_v24 = vmax.f32 %v2628_v47, 0.0 }
 0x28d   :  { %v10679_v31 = vadd.f32 %v2710_v11, %v2662_v42  ;;  %v7378_v42 = vor.u32 %v9149_v7, %v7377_v23  ;;  %v9221_v23 = vld [vmem:[#allocation8 + $0x3ec] sm:$0xf0] }
 0x28e   :  { %v7345_v47 = vld [vmem:[#allocation8 + $0x150] sm:$0xf] }
 0x28f   :  { %2866 = vmatmul.bf16.gmra.mxu0 %v10093_v28  ;;  %2905 = vmatmul.bf16.gmra.mxu1 %v10091_v10  ;;  %v9141_v7 = vld [vmem:[#allocation8 + $0x16c] sm:$0xf0] }
 0x290   :  { %2944 = vmatmul.bf16.vlgmr.msra.gmra.mxu2 %v12897_v40  ;;  %v2629_v37 = vpop.f32.mrf.mxu3  ;;  %3035 = vmatpush.bf16.msrb.mxu0 %v7378_v42  ;;  %v7346_v10 = vor.u32 %v9141_v7, %v7345_v47  ;;  %v9133_v42 = vld [vmem:[#allocation8 + $0x12c] sm:$0xf0] }
 0x291   :  { %v2630_v0 = vadd.f32 %v2629_v37, %v10629_v56  ;;  %v7922_v56 = vor.u32 %v9285_v52, %v7921_v36  ;;  %v7665_v37 = vld [vmem:[#allocation8 + $0x3d0] sm:$0xf] }
 0x292   :  { %v7313_v52 = vld [vmem:[#allocation8 + $0x110] sm:$0xf] }
 0x293   :  { %v3907_v33 = vmax.f32 %v2630_v0, 0.0  ;;  %v2749_v55 = vpop.f32.mrf.mxu2  ;;  %v8178_v0 = vor.u32 %v9349_v12, %v8177_v18  ;;  %3132 = vmatpush.bf16.msrb.mxu2 %v7922_v56  ;;  %v7314_v18 = vor.u32 %v9133_v42, %v7313_v52 }
 0x294   :  { %v10687_v11 = vadd.f32 %v2749_v55, %v10631_v48  ;;  %v10689_v5 = vpop.f32.mrf.mxu0  ;;  %v2712_v35 = vpop.f32.mrf.mxu1  ;;  %v7666_v55 = vor.u32 %v9221_v23, %v7665_v37  ;;  %3036 = vmatpush.bf16.msrb.mxu0 %v7346_v10  ;;  %v7281_v37 = vld [vmem:[#allocation8 + $0xd0] sm:$0xf]  ;;  %v2669_v23 = vadd.f32 %v10665_v63, %v10623_v38 }
 0x295   :  { %v10691_v40 = vadd.f32 %v2712_v35, %v2664_v44  ;;  %2827 = vmatmul.bf16.gmra.mxu3 %v10284_v30  ;;  %v10694_v48 = vpack.c.bf16 %v3907_v33, %v3899_v24  ;;  %v2667_v35 = vadd.f32 %v10653_v60, %v10623_v38 }
 0x296   :  { %3181 = vmatpush.bf16.msra.mxu3 %v8178_v0  ;;  %3083 = vmatpush.bf16.msrb.mxu1 %v7666_v55  ;;  %v9117_v0 = vld [vmem:[#allocation8 + $0xac] sm:$0xf0] }
 0x297   :  { %12898 = vst [vmem:[#allocation36_spill] sm:$0xff] %v10694_v48  ;;  %v9101_v48 = vld [vmem:[#allocation8 + $0x2c] sm:$0xf0] }
 0x298   :  { %v2632_v28 = vpop.f32.mrf.mxu3  ;;  %3037 = vmatpush.bf16.msrb.mxu0 %v7314_v18 }
 0x299   :  { %v2633_v44 = vadd.f32 %v2632_v28, %v10640_v41  ;;  %v9125_v28 = vld [vmem:[#allocation8 + $0xec] sm:$0xf0] }
 0x29a   :  { %v7282_v10 = vor.u32 %v9125_v28, %v7281_v37  ;;  %v8145_v37 = vld [vmem:[#allocation8 + $0x790] sm:$0xf] }
 0x29b   :  { %v2751_v36 = vpop.f32.mrf.mxu2  ;;  %v3915_v47 = vmax.f32 %v2633_v44, 0.0  ;;  %v9341_v44 = vld [vmem:[#allocation8 + $0x7ac] sm:$0xf0] }
 0x29c   :  { %v10700_v12 = vadd.f32 %v2751_v36, %v10642_v50  ;;  %v10702_v33 = vpop.f32.mrf.mxu0  ;;  %v2715_v24 = vpop.f32.mrf.mxu1  ;;  %3038 = vmatpush.bf16.msrb.mxu0 %v7282_v10  ;;  %v7249_v50 = vld [vmem:[#allocation8 + $0x90] sm:$0xf] }
 0x29d   :  { %v10704_v56 = vadd.f32 %v2715_v24, %v2667_v35  ;;  %v7250_v52 = vor.u32 %v9117_v0, %v7249_v50  ;;  %v9277_v24 = vld [vmem:[#allocation8 + $0x5ac] sm:$0xf0] }
 0x29e   :  { %v7633_v10 = vld [vmem:[#allocation8 + $0x390] sm:$0xf] }
 0x29f   :  { %2871 = vmatmul.bf16.gmra.mxu0 %v10118_v21  ;;  %2910 = vmatmul.bf16.gmra.mxu1 %v10116_v19  ;;  %v7217_v50 = vld [vmem:[#allocation8 + $0x50] sm:$0xf] }
 0x2a0   :  { %2949 = vmatmul.bf16.gmra.mxu2 %v10120_v22  ;;  %v2634_v41 = vpop.f32.mrf.mxu3  ;;  %3039 = vmatpush.bf16.msrb.mxu0 %v7250_v52  ;;  %v9109_v0 = vld [vmem:[#allocation8 + $0x6c] sm:$0xf0] }
 0x2a1   :  { %v2635_v60 = vadd.f32 %v2634_v41, %v10651_v32  ;;  %v7889_v32 = vld [vmem:[#allocation8 + $0x590] sm:$0xf] }
 0x2a2   :  { %v7890_v63 = vor.u32 %v9277_v24, %v7889_v32  ;;  %v9213_v41 = vld [vmem:[#allocation8 + $0x3ac] sm:$0xf0] }
 0x2a3   :  { %v3923_v7 = vmax.f32 %v2635_v60, 0.0  ;;  %v2754_v55 = vpop.f32.mrf.mxu2  ;;  %v8146_v60 = vor.u32 %v9341_v44, %v8145_v37  ;;  %v7185_v52 = vld [vmem:[#allocation8 + $0x10] sm:$0xf] }
 0x2a4   :  { %v10713_v42 = vadd.f32 %v2754_v55, %v10655_v54  ;;  %v10715_v35 = vpop.f32.mrf.mxu0  ;;  %v2717_v36 = vpop.f32.mrf.mxu1  ;;  %v7634_v54 = vor.u32 %v9213_v41, %v7633_v10  ;;  %3133 = vmatpush.bf16.msrb.mxu2 %v7890_v63  ;;  %v7186_v32 = vor.u32 %v9101_v48, %v7185_v52  ;;  %v2674_v48 = vadd.f32 %v10689_v5, %v10623_v38 }
 0x2a5   :  { %v10717_v18 = vadd.f32 %v2717_v36, %v2669_v23  ;;  %2832 = vmatmul.bf16.gmra.mxu3 %v10310_v9  ;;  %v10720_v28 = vpack.c.bf16 %v3923_v7, %v3915_v47  ;;  %v7218_v23 = vor.u32 %v9109_v0, %v7217_v50  ;;  %v2672_v47 = vadd.f32 %v10677_v26, %v10623_v38  ;;  %v7857_v0 = vld [vmem:[#allocation8 + $0x550] sm:$0xf] }
 0x2a6   :  { %3182 = vmatpush.bf16.msra.mxu3 %v8146_v60  ;;  %3084 = vmatpush.bf16.msrb.mxu1 %v7634_v54 }
 0x2a7   :  { %12899 = vst [vmem:[#allocation37_spill] sm:$0xff] %v10720_v28  ;;  %3040 = vmatpush.bf16.msrb.mxu0 %v7218_v23  ;;  %v7411_v28 = vld [vmem:[#allocation8 + $0x1f0] sm:$0xf0] }
 0x2a8   :  { %v2637_v55 = vpop.f32.mrf.mxu3 }
 0x2a9   :  { %v2638_v36 = vadd.f32 %v2637_v55, %v10663_v25  ;;  %v9269_v55 = vld [vmem:[#allocation8 + $0x56c] sm:$0xf0] }
 0x2aa   :  { %v7858_v52 = vor.u32 %v9269_v55, %v7857_v0 }
 0x2ab   :  { %v2756_v7 = vpop.f32.mrf.mxu2  ;;  %3041 = vmatpush.bf16.msrb.mxu0 %v7186_v32  ;;  %v9205_v32 = vld [vmem:[#allocation8 + $0x36c] sm:$0xf0] }
 0x2ac   :  { %v10726_v24 = vadd.f32 %v2756_v7, %v10667_v4  ;;  %v10728_v37 = vpop.f32.mrf.mxu0  ;;  %v2720_v44 = vpop.f32.mrf.mxu1  ;;  %v3931_v4 = vmax.f32 %v2638_v36, 0.0  ;;  %v7601_v7 = vld [vmem:[#allocation8 + $0x350] sm:$0xf]  ;;  %3134 = vmatpush.bf16.msrb.mxu2 %v7858_v52 }
 0x2ad   :  { %v10730_v63 = vadd.f32 %v2720_v44, %v2672_v47  ;;  %v9333_v47 = vld [vmem:[#allocation8 + $0x76c] sm:$0xf0] }
 0x2af   :  { %2876 = vmatmul.bf16.gmra.mxu0 %v10149_v15  ;;  %2915 = vmatmul.bf16.gmra.mxu1 %v10143_v45 }
 0x2b0   :  { %2954 = vmatmul.bf16.gmra.mxu2 %v10147_v14  ;;  %v2639_v25 = vpop.f32.mrf.mxu3 }
 0x2b1   :  { %v2640_v26 = vadd.f32 %v2639_v25, %v10675_v39  ;;  %v8113_v39 = vld [vmem:[#allocation8 + $0x750] sm:$0xf] }
 0x2b2   :  { %v8114_v36 = vor.u32 %v9333_v47, %v8113_v39  ;;  %v7537_v39 = vld [vmem:[#allocation8 + $0x2d0] sm:$0xf] }
 0x2b3   :  { %v3939_v10 = vmax.f32 %v2640_v26, 0.0  ;;  %v2759_v41 = vpop.f32.mrf.mxu2  ;;  %v7569_v26 = vld [vmem:[#allocation8 + $0x310] sm:$0xf] }
 0x2b4   :  { %v10739_v60 = vadd.f32 %v2759_v41, %v10679_v31  ;;  %v10741_v54 = vpop.f32.mrf.mxu0  ;;  %v2722_v50 = vpop.f32.mrf.mxu1  ;;  %v7602_v31 = vor.u32 %v9205_v32, %v7601_v7  ;;  %3183 = vmatpush.bf16.msra.mxu3 %v8114_v36  ;;  %v2677_v41 = vadd.f32 %v10702_v33, %v10623_v38  ;;  %v9189_v47 = vld [vmem:[#allocation8 + $0x2ec] sm:$0xf0]  ;;  %v2679_v32 = vadd.f32 %v10715_v35, %v10623_v38 }
 0x2b5   :  { %v10743_v23 = vadd.f32 %v2722_v50, %v2674_v48  ;;  %2993 = vmatmul.bf16.vlgmr.msrb.gmra.mxu3 %v10156_v27  ;;  %v10746_v5 = vpack.c.bf16 %v3939_v10, %v3931_v4  ;;  %v9197_v48 = vld [vmem:[#allocation8 + $0x32c] sm:$0xf0] }
 0x2b6   :  { %3085 = vmatpush.bf16.msrb.mxu1 %v7602_v31  ;;  %v7570_v0 = vor.u32 %v9197_v48, %v7569_v26  ;;  %v9181_v36 = vld [vmem:[#allocation8 + $0x2ac] sm:$0xf0] }
 0x2b7   :  { %12900 = vst [vmem:[#allocation38_spill] sm:$0xff] %v10746_v5  ;;  %v8081_v35 = vld [vmem:[#allocation8 + $0x710] sm:$0xf] }
 0x2b8   :  { %v2798_v44 = vpop.f32.mrf.mxu3 }
 0x2b9   :  { %v2799_v25 = vadd.f32 %v2798_v44, %v10687_v11  ;;  %v7538_v11 = vor.u32 %v9189_v47, %v7537_v39  ;;  %v9261_v39 = vld [vmem:[#allocation8 + $0x52c] sm:$0xf0] }
 0x2ba   :  { %3086 = vmatpush.bf16.msrb.mxu1 %v7570_v0 }
 0x2bb   :  { %v2761_v50 = vpop.f32.mrf.mxu2  ;;  %v3820_v31 = vmax.f32 %v2799_v25, 0.0  ;;  %v9325_v25 = vld [vmem:[#allocation8 + $0x72c] sm:$0xf0] }
 0x2bc   :  { %v10752_v55 = vadd.f32 %v2761_v50, %v10691_v40  ;;  %v10754_v4 = vpop.f32.mrf.mxu0  ;;  %v2725_v10 = vpop.f32.mrf.mxu1  ;;  %v7505_v40 = vld [vmem:[#allocation8 + $0x290] sm:$0xf] }
 0x2bd   :  { %v10756_v52 = vadd.f32 %v2725_v10, %v2677_v41  ;;  %v7506_v48 = vor.u32 %v9181_v36, %v7505_v40  ;;  %v7825_v10 = vld [vmem:[#allocation8 + $0x510] sm:$0xf] }
 0x2be   :  { %3087 = vmatpush.bf16.msrb.mxu1 %v7538_v11  ;;  %v7826_v11 = vor.u32 %v9261_v39, %v7825_v10  ;;  %v9173_v40 = vld [vmem:[#allocation8 + $0x26c] sm:$0xf0] }
 0x2bf   :  { %2881 = vmatmul.bf16.gmra.mxu0 %v10173_v1  ;;  %2920 = vmatmul.bf16.gmra.mxu1 %v10169_v62 }
 0x2c0   :  { %2959 = vmatmul.bf16.gmra.mxu2 %v12891_v29  ;;  %v2800_v33 = vpop.f32.mrf.mxu3 }
 0x2c1   :  { %v2801_v7 = vadd.f32 %v2800_v33, %v10700_v12  ;;  %v8082_v33 = vor.u32 %v9325_v25, %v8081_v35  ;;  %3135 = vmatpush.bf16.msrb.mxu2 %v7826_v11  ;;  %v2684_v25 = vadd.f32 %v10741_v54, %v10623_v38 }
 0x2c2   :  { %3088 = vmatpush.bf16.msrb.mxu1 %v7506_v48 }
 0x2c3   :  { %v3828_v44 = vmax.f32 %v2801_v7, 0.0  ;;  %v2764_v26 = vpop.f32.mrf.mxu2  ;;  %v7473_v7 = vld [vmem:[#allocation8 + $0x250] sm:$0xf]  ;;  %3184 = vmatpush.bf16.msra.mxu3 %v8082_v33 }
 0x2c4   :  { %v10765_v41 = vadd.f32 %v2764_v26, %v10704_v56  ;;  %v10767_v50 = vpop.f32.mrf.mxu0  ;;  %v2727_v0 = vpop.f32.mrf.mxu1  ;;  %v7474_v56 = vor.u32 %v9173_v40, %v7473_v7 }
 0x2c5   :  { %v10769_v47 = vpack.c.bf16 %v3828_v44, %v3820_v31  ;;  %v10771_v12 = vadd.f32 %v2727_v0, %v2679_v32  ;;  %2998 = vmatmul.bf16.gmra.mxu3 %v10180_v20  ;;  %v7441_v31 = vld [vmem:[#allocation8 + $0x210] sm:$0xf]  ;;  %v2682_v32 = vadd.f32 %v10728_v37, %v10623_v38 }
 0x2c6   :  { %3089 = vmatpush.bf16.msrb.mxu1 %v7474_v56  ;;  %v9165_v44 = vld [vmem:[#allocation8 + $0x22c] sm:$0xf0] }
 0x2c7   :  { %12901 = vst [vmem:[#allocation39_spill] sm:$0xff] %v10769_v47  ;;  %v7442_v10 = vor.u32 %v9165_v44, %v7441_v31  ;;  %v7793_v31 = vld [vmem:[#allocation8 + $0x4d0] sm:$0xf] }
 0x2c8   :  { %v2803_v36 = vpop.f32.mrf.mxu3  ;;  %v9253_v44 = vld [vmem:[#allocation8 + $0x4ec] sm:$0xf0] }
 0x2c9   :  { %v2804_v26 = vadd.f32 %v2803_v36, %v10713_v42 }
 0x2ca   :  { %3090 = vmatpush.bf16.msrb.mxu1 %v7442_v10  ;;  %v9317_v10 = vld [vmem:[#allocation8 + $0x6ec] sm:$0xf0] }
 0x2cb   :  { %v2766_v0 = vpop.f32.mrf.mxu2 }
 0x2cc   :  { %v10778_v39 = vadd.f32 %v2766_v0, %v10717_v18  ;;  %v2730_v48 = vpop.f32.mrf.mxu1  ;;  %v10780_v35 = vpop.f32.mrf.mxu0  ;;  %v3836_v18 = vmax.f32 %v2804_v26, 0.0  ;;  %v7794_v0 = vor.u32 %v9253_v44, %v7793_v31 }
 0x2cd   :  { %v10782_v11 = vadd.f32 %v2730_v48, %v2682_v32 }
 0x2ce   :  { %3136 = vmatpush.bf16.msrb.mxu2 %v7794_v0 }
 0x2cf   :  { %2925 = vmatmul.bf16.gmra.mxu1 %v10188_v59  ;;  %3042 = vmatmul.bf16.vlgmr.msrb.gmra.mxu0 %v10036_v58 }
 0x2d0   :  { %2964 = vmatmul.bf16.gmra.mxu2 %v10190_v61  ;;  %v2805_v42 = vpop.f32.mrf.mxu3 }
 0x2d1   :  { %v2806_v37 = vadd.f32 %v2805_v42, %v10726_v24  ;;  %v8049_v24 = vld [vmem:[#allocation8 + $0x6d0] sm:$0xf]  ;;  %v2687_v42 = vadd.f32 %v10754_v4, %v10623_v38 }
 0x2d2   :  { %v8050_v54 = vor.u32 %v9317_v10, %v8049_v24  ;;  %v9245_v4 = vld [vmem:[#allocation8 + $0x4ac] sm:$0xf0] }
 0x2d3   :  { %v3844_v33 = vmax.f32 %v2806_v37, 0.0  ;;  %v2769_v7 = vpop.f32.mrf.mxu2 }
 0x2d4   :  { %v10791_v40 = vadd.f32 %v2769_v7, %v10730_v63  ;;  %v2732_v56 = vpop.f32.mrf.mxu1  ;;  %v10793_v36 = vpop.f32.mrf.mxu0  ;;  %3185 = vmatpush.bf16.msra.mxu3 %v8050_v54 }
 0x2d5   :  { %v10795_v32 = vadd.f32 %v2732_v56, %v2684_v25  ;;  %3003 = vmatmul.bf16.gmra.mxu3 %v10199_v6  ;;  %v10798_v48 = vpack.c.bf16 %v3844_v33, %v3836_v18  ;;  %v7761_v33 = vld [vmem:[#allocation8 + $0x490] sm:$0xf] }
 0x2d6   :  { %v7762_v10 = vor.u32 %v9245_v4, %v7761_v33  ;;  %v7697_v4 = vld [vmem:[#allocation8 + $0x410] sm:$0xf] }
 0x2d7   :  { %12902 = vst [vmem:[#allocation40_spill] sm:$0xff] %v10798_v48  ;;  %v7923_v48 = vld [vmem:[#allocation8 + $0x5f0] sm:$0xf0] }
 0x2d8   :  { %v2808_v26 = vpop.f32.mrf.mxu3  ;;  %3137 = vmatpush.bf16.msrb.mxu2 %v7762_v10 }
 0x2d9   :  { %v2809_v63 = vadd.f32 %v2808_v26, %v10739_v60 }
 0x2db   :  { %v2771_v37 = vpop.f32.mrf.mxu2  ;;  %v3852_v44 = vmax.f32 %v2809_v63, 0.0  ;;  %v10825_v63 = vperm.slane %v10620_v16, 3 }
 0x2dc   :  { %v10804_v25 = vadd.f32 %v2771_v37, %v10743_v23  ;;  %v2735_v7 = vpop.f32.mrf.mxu1  ;;  %v10806_v56 = vpop.f32.mrf.mxu0  ;;  %v2689_v23 = vadd.f32 %v10767_v50, %v10623_v38  ;;  %v7729_v38 = vld [vmem:[#allocation8 + $0x450] sm:$0xf] }
 0x2dd   :  { %v10808_v31 = vadd.f32 %v2735_v7, %v2687_v42  ;;  %v9309_v7 = vld [vmem:[#allocation8 + $0x6ac] sm:$0xf0] }
 0x2de   :  { %v9237_v50 = vld [vmem:[#allocation8 + $0x46c] sm:$0xf0] }
 0x2df   :  { %2930 = vmatmul.bf16.gmra.mxu1 %v10208_v53  ;;  %3047 = vmatmul.bf16.gmra.mxu0 %v10044_v13 }
 0x2e0   :  { %2969 = vmatmul.bf16.gmra.mxu2 %v10210_v8  ;;  %v2810_v18 = vpop.f32.mrf.mxu3 }
 0x2e1   :  { %v2811_v60 = vadd.f32 %v2810_v18, %v10752_v55  ;;  %v8017_v55 = vld [vmem:[#allocation8 + $0x690] sm:$0xf] }
 0x2e2   :  { %v8018_v5 = vor.u32 %v9309_v7, %v8017_v55 }
 0x2e3   :  { %v3860_v0 = vmax.f32 %v2811_v60, 0.0  ;;  %v2774_v24 = vpop.f32.mrf.mxu2  ;;  %v7730_v60 = vor.u32 %v9237_v50, %v7729_v38 }
 0x2e4   :  { %v10817_v54 = vadd.f32 %v2774_v24, %v10756_v52  ;;  %v2737_v26 = vpop.f32.mrf.mxu1  ;;  %v2854_v42 = vpop.f32.mrf.mxu0  ;;  %3186 = vmatpush.bf16.msra.mxu3 %v8018_v5  ;;  %v2848_v24 = vadd.f32 %v10780_v35, %v10825_v63  ;;  %v2850_v35 = vadd.f32 %v10793_v36, %v10825_v63 }
 0x2e5   :  { %v10819_v37 = vadd.f32 %v2737_v26, %v2689_v23  ;;  %3008 = vmatmul.bf16.gmra.mxu3 %v10219_v17  ;;  %v10822_v18 = vpack.c.bf16 %v3860_v0, %v3852_v44  ;;  %3138 = vmatpush.bf16.msrb.mxu2 %v7730_v60  ;;  %v9229_v23 = vld [vmem:[#allocation8 + $0x42c] sm:$0xf0] }
 0x2e6   :  { %v7698_v44 = vor.u32 %v9229_v23, %v7697_v4  ;;  %v7985_v23 = vld [vmem:[#allocation8 + $0x650] sm:$0xf] }
 0x2e7   :  { %12903 = vst [vmem:[#allocation41_spill] sm:$0xff] %v10822_v18 }
 0x2e8   :  { %v2813_v52 = vpop.f32.mrf.mxu3 }
 0x2e9   :  { %v2814_v33 = vadd.f32 %v2813_v52, %v10765_v41  ;;  %3139 = vmatpush.bf16.msrb.mxu2 %v7698_v44 }
 0x2eb   :  { %v2776_v10 = vpop.f32.mrf.mxu2  ;;  %v3868_v7 = vmax.f32 %v2814_v33, 0.0  ;;  %v2853_v33 = vadd.f32 %v10806_v56, %v10825_v63  ;;  %v2855_v56 = vadd.f32 %v2854_v42, %v10825_v63 }
 0x2ec   :  { %v10831_v0 = vadd.f32 %v2776_v10, %v10771_v12  ;;  %v2857_v26 = vpop.f32.mrf.mxu0  ;;  %v2896_v55 = vpop.f32.mrf.mxu1 }
 0x2ed   :  { %v10833_v16 = vadd.f32 %v2896_v55, %v2848_v24  ;;  %v9301_v24 = vld [vmem:[#allocation8 + $0x66c] sm:$0xf0] }
 0x2ef   :  { %3052 = vmatmul.bf16.gmra.mxu0 %v10055_v49  ;;  %3091 = vmatmul.bf16.vlgmr.msrb.gmra.mxu1 %v10057_v51 }
 0x2f0   :  { %2974 = vmatmul.bf16.gmra.mxu2 %v10233_v43  ;;  %v2815_v5 = vpop.f32.mrf.mxu3 }
 0x2f1   :  { %v2816_v41 = vadd.f32 %v2815_v5, %v10778_v39  ;;  %v7986_v39 = vor.u32 %v9301_v24, %v7985_v23 }
 0x2f3   :  { %v3876_v12 = vmax.f32 %v2816_v41, 0.0  ;;  %v2779_v38 = vpop.f32.mrf.mxu2  ;;  %3187 = vmatpush.bf16.msra.mxu3 %v7986_v39 }
 0x2f4   :  { %v10842_v50 = vadd.f32 %v2779_v38, %v10782_v11  ;;  %v2859_v60 = vpop.f32.mrf.mxu0  ;;  %v2898_v52 = vpop.f32.mrf.mxu1 }
 0x2f5   :  { %v10844_v4 = vadd.f32 %v2898_v52, %v2850_v35  ;;  %3013 = vmatmul.bf16.gmra.mxu3 %v10244_v34  ;;  %v10847_v10 = vpack.c.bf16 %v3876_v12, %v3868_v7 }
 0x2f7   :  { %12904 = vst [vmem:[#allocation42_spill] sm:$0xff] %v10847_v10 }
 0x2f8   :  { %v2818_v44 = vpop.f32.mrf.mxu3 }
 0x2f9   :  { %v2819_v36 = vadd.f32 %v2818_v44, %v10791_v40  ;;  %v7953_v44 = vld [vmem:[#allocation8 + $0x610] sm:$0xf] }
 0x2fb   :  { %v2781_v11 = vpop.f32.mrf.mxu2  ;;  %v3884_v12 = vmax.f32 %v2819_v36, 0.0  ;;  %v2858_v36 = vadd.f32 %v2857_v26, %v10825_v63 }
 0x2fc   :  { %v10853_v55 = vadd.f32 %v2781_v11, %v10795_v32  ;;  %v10855_v5 = vpop.f32.mrf.mxu0  ;;  %v2901_v41 = vpop.f32.mrf.mxu1 }
 0x2fd   :  { %v10857_v35 = vadd.f32 %v2901_v41, %v2853_v33  ;;  %v9293_v33 = vld [vmem:[#allocation8 + $0x62c] sm:$0xf0] }
 0x2ff   :  { %3057 = vmatmul.bf16.gmra.mxu0 %v10069_v2  ;;  %3096 = vmatmul.bf16.gmra.mxu1 %v10071_v3 }
 0x300   :  { %2979 = vmatmul.bf16.gmra.mxu2 %v10253_v57  ;;  %v2820_v7 = vpop.f32.mrf.mxu3 }
 0x301   :  { %v2821_v40 = vadd.f32 %v2820_v7, %v10804_v25  ;;  %v7954_v25 = vor.u32 %v9293_v33, %v7953_v44  ;;  %v12908_v33 = vld [vmem:[#allocation22_spill] sm:$0xff] }
 0x303   :  { %v3892_v38 = vmax.f32 %v2821_v40, 0.0  ;;  %v2784_v32 = vpop.f32.mrf.mxu2  ;;  %3188 = vmatpush.bf16.msra.mxu3 %v7954_v25  ;;  %v7379_v25 = vld [vmem:[#allocation8 + $0x1b0] sm:$0xf0] }
 0x304   :  { %v10865_v52 = vadd.f32 %v2784_v32, %v10808_v31  ;;  %v10867_v23 = vpop.f32.mrf.mxu0  ;;  %v2903_v24 = vpop.f32.mrf.mxu1 }
 0x305   :  { %v10869_v39 = vadd.f32 %v2903_v24, %v2855_v56  ;;  %3018 = vmatmul.bf16.gmra.mxu3 %v10266_v46  ;;  %v10872_v11 = vpack.c.bf16 %v3892_v38, %v3884_v12  ;;  %v9153_v24 = vld [vmem:[#allocation8 + $0x1d4] sm:$0xf]  ;;  %v12907_v38 = vld [vmem:[#allocation20_spill] sm:$0xff] }
 0x306   :  { %v12906_v12 = vld [vmem:[#allocation21_spill] sm:$0xff]  ;;  %v7414_v44 = vor.u32 %v9153_v24, %v7411_v28 }
 0x307   :  { %12905 = vst [vmem:[#allocation43_spill] sm:$0xff] %v10872_v11  ;;  %v9281_v24 = vld [vmem:[#allocation8 + $0x5d4] sm:$0xf] }
 0x308   :  { %v2823_v41 = vpop.f32.mrf.mxu3  ;;  %3230 = vmatpush.bf16.msra.mxu0 %v7414_v44  ;;  %v9345_v44 = vld [vmem:[#allocation8 + $0x7d4] sm:$0xf] }
 0x309   :  { %v2824_v42 = vadd.f32 %v2823_v41, %v10817_v54  ;;  %v2860_v41 = vadd.f32 %v2859_v60, %v10825_v63  ;;  %v8179_v60 = vld [vmem:[#allocation8 + $0x7f0] sm:$0xf0] }
 0x30b   :  { %v2786_v31 = vpop.f32.mrf.mxu2  ;;  %v3900_v11 = vmax.f32 %v2824_v42, 0.0  ;;  %v9137_v42 = vld [vmem:[#allocation8 + $0x154] sm:$0xf] }
 0x30c   :  { %v10877_v7 = vadd.f32 %v2786_v31, %v10819_v37  ;;  %v10879_v40 = vpop.f32.mrf.mxu0  ;;  %v2906_v56 = vpop.f32.mrf.mxu1  ;;  %v9145_v37 = vld [vmem:[#allocation8 + $0x194] sm:$0xf] }
 0x30d   :  { %v10881_v32 = vadd.f32 %v2906_v56, %v2858_v36  ;;  %v7382_v56 = vor.u32 %v9145_v37, %v7379_v25  ;;  %v7667_v37 = vld [vmem:[#allocation8 + $0x3f0] sm:$0xf0] }
 0x30e   :  { %v7347_v25 = vld [vmem:[#allocation8 + $0x170] sm:$0xf0] }
 0x30f   :  { %3062 = vmatmul.bf16.gmra.mxu0 %v12906_v12  ;;  %3101 = vmatmul.bf16.gmra.mxu1 %v12907_v38 }
 0x310   :  { %3140 = vmatmul.bf16.vlgmr.msrb.gmra.mxu2 %v12908_v33  ;;  %v2825_v54 = vpop.f32.mrf.mxu3  ;;  %3231 = vmatpush.bf16.msra.mxu0 %v7382_v56  ;;  %v7350_v33 = vor.u32 %v9137_v42, %v7347_v25  ;;  %v7315_v56 = vld [vmem:[#allocation8 + $0x130] sm:$0xf0] }
 0x311   :  { %v2826_v26 = vadd.f32 %v2825_v54, %v10831_v0  ;;  %v7926_v0 = vor.u32 %v9281_v24, %v7923_v48  ;;  %v9217_v54 = vld [vmem:[#allocation8 + $0x3d4] sm:$0xf] }
 0x312   :  { %v9129_v48 = vld [vmem:[#allocation8 + $0x114] sm:$0xf] }
 0x313   :  { %v3908_v31 = vmax.f32 %v2826_v26, 0.0  ;;  %v2945_v36 = vpop.f32.mrf.mxu2  ;;  %v8182_v26 = vor.u32 %v9345_v44, %v8179_v60  ;;  %3328 = vmatpush.bf16.msra.mxu2 %v7926_v0  ;;  %v7318_v44 = vor.u32 %v9129_v48, %v7315_v56 }
 0x314   :  { %v10889_v10 = vadd.f32 %v2945_v36, %v10833_v16  ;;  %v10891_v18 = vpop.f32.mrf.mxu0  ;;  %v2908_v28 = vpop.f32.mrf.mxu1  ;;  %v7670_v36 = vor.u32 %v9217_v54, %v7667_v37  ;;  %3232 = vmatpush.bf16.msra.mxu0 %v7350_v33  ;;  %v9121_v54 = vld [vmem:[#allocation8 + $0xd4] sm:$0xf]  ;;  %v2865_v37 = vadd.f32 %v10867_v23, %v10825_v63 }
 0x315   :  { %v10893_v47 = vadd.f32 %v2908_v28, %v2860_v41  ;;  %3023 = vmatmul.bf16.gmra.mxu3 %v10284_v30  ;;  %v10896_v16 = vpack.c.bf16 %v3908_v31, %v3900_v11  ;;  %v2863_v28 = vadd.f32 %v10855_v5, %v10825_v63 }
 0x316   :  { %3377 = vmatpush.bf16.msrb.mxu3 %v8182_v26  ;;  %3279 = vmatpush.bf16.msra.mxu1 %v7670_v36  ;;  %v7251_v26 = vld [vmem:[#allocation8 + $0xb0] sm:$0xf0] }
 0x317   :  { %12909 = vst [vmem:[#allocation44_spill] sm:$0xff] %v10896_v16  ;;  %v7187_v16 = vld [vmem:[#allocation8 + $0x30] sm:$0xf0] }
 0x318   :  { %v2828_v38 = vpop.f32.mrf.mxu3  ;;  %3233 = vmatpush.bf16.msra.mxu0 %v7318_v44 }
 0x319   :  { %v2829_v41 = vadd.f32 %v2828_v38, %v10842_v50  ;;  %v7283_v50 = vld [vmem:[#allocation8 + $0xf0] sm:$0xf0] }
 0x31a   :  { %v7286_v38 = vor.u32 %v9121_v54, %v7283_v50  ;;  %v9337_v54 = vld [vmem:[#allocation8 + $0x794] sm:$0xf] }
 0x31b   :  { %v2947_v24 = vpop.f32.mrf.mxu2  ;;  %v3916_v42 = vmax.f32 %v2829_v41, 0.0  ;;  %v8147_v41 = vld [vmem:[#allocation8 + $0x7b0] sm:$0xf0] }
 0x31c   :  { %v10902_v60 = vadd.f32 %v2947_v24, %v10844_v4  ;;  %v10904_v11 = vpop.f32.mrf.mxu0  ;;  %v2911_v31 = vpop.f32.mrf.mxu1  ;;  %3234 = vmatpush.bf16.msra.mxu0 %v7286_v38  ;;  %v9113_v4 = vld [vmem:[#allocation8 + $0x94] sm:$0xf] }
 0x31d   :  { %v10906_v0 = vadd.f32 %v2911_v31, %v2863_v28  ;;  %v7254_v48 = vor.u32 %v9113_v4, %v7251_v26  ;;  %v7891_v31 = vld [vmem:[#allocation8 + $0x5b0] sm:$0xf0] }
 0x31e   :  { %v9209_v38 = vld [vmem:[#allocation8 + $0x394] sm:$0xf] }
 0x31f   :  { %3067 = vmatmul.bf16.gmra.mxu0 %v10118_v21  ;;  %3106 = vmatmul.bf16.gmra.mxu1 %v10116_v19  ;;  %v9105_v4 = vld [vmem:[#allocation8 + $0x54] sm:$0xf] }
 0x320   :  { %3145 = vmatmul.bf16.gmra.mxu2 %v10120_v22  ;;  %v2830_v5 = vpop.f32.mrf.mxu3  ;;  %3235 = vmatpush.bf16.msra.mxu0 %v7254_v48  ;;  %v7219_v26 = vld [vmem:[#allocation8 + $0x70] sm:$0xf0] }
 0x321   :  { %v2831_v33 = vadd.f32 %v2830_v5, %v10853_v55  ;;  %v9273_v55 = vld [vmem:[#allocation8 + $0x594] sm:$0xf] }
 0x322   :  { %v7894_v23 = vor.u32 %v9273_v55, %v7891_v31  ;;  %v7635_v5 = vld [vmem:[#allocation8 + $0x3b0] sm:$0xf0] }
 0x323   :  { %v3924_v25 = vmax.f32 %v2831_v33, 0.0  ;;  %v2950_v36 = vpop.f32.mrf.mxu2  ;;  %v8150_v33 = vor.u32 %v9337_v54, %v8147_v41  ;;  %v9097_v48 = vld [vmem:[#allocation8 + $0x14] sm:$0xf] }
 0x324   :  { %v10915_v56 = vadd.f32 %v2950_v36, %v10857_v35  ;;  %v10917_v28 = vpop.f32.mrf.mxu0  ;;  %v2913_v24 = vpop.f32.mrf.mxu1  ;;  %v7638_v35 = vor.u32 %v9209_v38, %v7635_v5  ;;  %3329 = vmatpush.bf16.msra.mxu2 %v7894_v23  ;;  %v7190_v55 = vor.u32 %v9097_v48, %v7187_v16  ;;  %v2870_v16 = vadd.f32 %v10891_v18, %v10825_v63 }
 0x325   :  { %v10919_v44 = vadd.f32 %v2913_v24, %v2865_v37  ;;  %3028 = vmatmul.bf16.gmra.mxu3 %v10310_v9  ;;  %v10922_v50 = vpack.c.bf16 %v3924_v25, %v3916_v42  ;;  %v7222_v37 = vor.u32 %v9105_v4, %v7219_v26  ;;  %v2868_v42 = vadd.f32 %v10879_v40, %v10825_v63  ;;  %v9265_v26 = vld [vmem:[#allocation8 + $0x554] sm:$0xf] }
 0x326   :  { %3378 = vmatpush.bf16.msrb.mxu3 %v8150_v33  ;;  %3280 = vmatpush.bf16.msra.mxu1 %v7638_v35 }
 0x327   :  { %12910 = vst [vmem:[#allocation45_spill] sm:$0xff] %v10922_v50  ;;  %3236 = vmatpush.bf16.msra.mxu0 %v7222_v37 }
 0x328   :  { %v2833_v36 = vpop.f32.mrf.mxu3 }
 0x329   :  { %v2834_v24 = vadd.f32 %v2833_v36, %v10865_v52  ;;  %v7859_v36 = vld [vmem:[#allocation8 + $0x570] sm:$0xf0] }
 0x32a   :  { %v7862_v48 = vor.u32 %v9265_v26, %v7859_v36 }
 0x32b   :  { %v2952_v25 = vpop.f32.mrf.mxu2  ;;  %3237 = vmatpush.bf16.msra.mxu0 %v7190_v55  ;;  %v7603_v55 = vld [vmem:[#allocation8 + $0x370] sm:$0xf0] }
 0x32c   :  { %v10928_v31 = vadd.f32 %v2952_v25, %v10869_v39  ;;  %v10930_v54 = vpop.f32.mrf.mxu0  ;;  %v2916_v41 = vpop.f32.mrf.mxu1  ;;  %v3932_v39 = vmax.f32 %v2834_v24, 0.0  ;;  %v9201_v25 = vld [vmem:[#allocation8 + $0x354] sm:$0xf]  ;;  %3330 = vmatpush.bf16.msra.mxu2 %v7862_v48 }
 0x32d   :  { %v10932_v23 = vadd.f32 %v2916_v41, %v2868_v42  ;;  %v8115_v42 = vld [vmem:[#allocation8 + $0x770] sm:$0xf0] }
 0x32f   :  { %3072 = vmatmul.bf16.gmra.mxu0 %v10149_v15  ;;  %3111 = vmatmul.bf16.gmra.mxu1 %v10143_v45 }
 0x330   :  { %3150 = vmatmul.bf16.gmra.mxu2 %v10147_v14  ;;  %v2835_v52 = vpop.f32.mrf.mxu3 }
 0x331   :  { %v2836_v40 = vadd.f32 %v2835_v52, %v10877_v7  ;;  %v9329_v7 = vld [vmem:[#allocation8 + $0x754] sm:$0xf] }
 0x332   :  { %v8118_v24 = vor.u32 %v9329_v7, %v8115_v42  ;;  %v9185_v7 = vld [vmem:[#allocation8 + $0x2d4] sm:$0xf] }
 0x333   :  { %v3940_v38 = vmax.f32 %v2836_v40, 0.0  ;;  %v2955_v5 = vpop.f32.mrf.mxu2  ;;  %v9193_v40 = vld [vmem:[#allocation8 + $0x314] sm:$0xf] }
 0x334   :  { %v10941_v33 = vadd.f32 %v2955_v5, %v10881_v32  ;;  %v10943_v35 = vpop.f32.mrf.mxu0  ;;  %v2918_v4 = vpop.f32.mrf.mxu1  ;;  %v7606_v32 = vor.u32 %v9201_v25, %v7603_v55  ;;  %3379 = vmatpush.bf16.msrb.mxu3 %v8118_v24  ;;  %v2873_v5 = vadd.f32 %v10904_v11, %v10825_v63  ;;  %v7539_v42 = vld [vmem:[#allocation8 + $0x2f0] sm:$0xf0]  ;;  %v2875_v55 = vadd.f32 %v10917_v28, %v10825_v63 }
 0x335   :  { %v10945_v37 = vadd.f32 %v2918_v4, %v2870_v16  ;;  %3189 = vmatmul.bf16.vlgmr.msra.gmra.mxu3 %v10156_v27  ;;  %v10948_v18 = vpack.c.bf16 %v3940_v38, %v3932_v39  ;;  %v7571_v16 = vld [vmem:[#allocation8 + $0x330] sm:$0xf0] }
 0x336   :  { %3281 = vmatpush.bf16.msra.mxu1 %v7606_v32  ;;  %v7574_v26 = vor.u32 %v9193_v40, %v7571_v16  ;;  %v7507_v24 = vld [vmem:[#allocation8 + $0x2b0] sm:$0xf0] }
 0x337   :  { %12911 = vst [vmem:[#allocation46_spill] sm:$0xff] %v10948_v18  ;;  %v9321_v28 = vld [vmem:[#allocation8 + $0x714] sm:$0xf] }
 0x338   :  { %v2994_v41 = vpop.f32.mrf.mxu3 }
 0x339   :  { %v2995_v52 = vadd.f32 %v2994_v41, %v10889_v10  ;;  %v7542_v10 = vor.u32 %v9185_v7, %v7539_v42  ;;  %v7827_v7 = vld [vmem:[#allocation8 + $0x530] sm:$0xf0] }
 0x33a   :  { %3282 = vmatpush.bf16.msra.mxu1 %v7574_v26 }
 0x33b   :  { %v2957_v4 = vpop.f32.mrf.mxu2  ;;  %v3821_v32 = vmax.f32 %v2995_v52, 0.0  ;;  %v8083_v52 = vld [vmem:[#allocation8 + $0x730] sm:$0xf0] }
 0x33c   :  { %v10954_v36 = vadd.f32 %v2957_v4, %v10893_v47  ;;  %v10956_v39 = vpop.f32.mrf.mxu0  ;;  %v2921_v38 = vpop.f32.mrf.mxu1  ;;  %v9177_v47 = vld [vmem:[#allocation8 + $0x294] sm:$0xf] }
 0x33d   :  { %v10958_v48 = vadd.f32 %v2921_v38, %v2873_v5  ;;  %v7510_v16 = vor.u32 %v9177_v47, %v7507_v24  ;;  %v9257_v38 = vld [vmem:[#allocation8 + $0x514] sm:$0xf] }
 0x33e   :  { %3283 = vmatpush.bf16.msra.mxu1 %v7542_v10  ;;  %v7830_v10 = vor.u32 %v9257_v38, %v7827_v7  ;;  %v7475_v47 = vld [vmem:[#allocation8 + $0x270] sm:$0xf0] }
 0x33f   :  { %3077 = vmatmul.bf16.gmra.mxu0 %v10173_v1  ;;  %3116 = vmatmul.bf16.gmra.mxu1 %v10169_v62 }
 0x340   :  { %3155 = vmatmul.bf16.gmra.mxu2 %v12891_v29  ;;  %v2996_v11 = vpop.f32.mrf.mxu3 }
 0x341   :  { %v2997_v25 = vadd.f32 %v2996_v11, %v10902_v60  ;;  %v8086_v11 = vor.u32 %v9321_v28, %v8083_v52  ;;  %3331 = vmatpush.bf16.msra.mxu2 %v7830_v10  ;;  %v2880_v52 = vadd.f32 %v10943_v35, %v10825_v63 }
 0x342   :  { %3284 = vmatpush.bf16.msra.mxu1 %v7510_v16 }
 0x343   :  { %v3829_v41 = vmax.f32 %v2997_v25, 0.0  ;;  %v2960_v40 = vpop.f32.mrf.mxu2  ;;  %v9169_v25 = vld [vmem:[#allocation8 + $0x254] sm:$0xf]  ;;  %3380 = vmatpush.bf16.msrb.mxu3 %v8086_v11 }
 0x344   :  { %v10967_v5 = vadd.f32 %v2960_v40, %v10906_v0  ;;  %v10969_v4 = vpop.f32.mrf.mxu0  ;;  %v2923_v26 = vpop.f32.mrf.mxu1  ;;  %v7478_v0 = vor.u32 %v9169_v25, %v7475_v47 }
 0x345   :  { %v10971_v42 = vpack.c.bf16 %v3829_v41, %v3821_v32  ;;  %v10973_v60 = vadd.f32 %v2923_v26, %v2875_v55  ;;  %3194 = vmatmul.bf16.gmra.mxu3 %v10180_v20  ;;  %v9161_v32 = vld [vmem:[#allocation8 + $0x214] sm:$0xf]  ;;  %v2878_v55 = vadd.f32 %v10930_v54, %v10825_v63 }
 0x346   :  { %3285 = vmatpush.bf16.msra.mxu1 %v7478_v0  ;;  %v7443_v41 = vld [vmem:[#allocation8 + $0x230] sm:$0xf0] }
 0x347   :  { %12912 = vst [vmem:[#allocation47_spill] sm:$0xff] %v10971_v42  ;;  %v7446_v38 = vor.u32 %v9161_v32, %v7443_v41  ;;  %v9249_v32 = vld [vmem:[#allocation8 + $0x4d4] sm:$0xf]  ;;  %v9286_v42 = vld [vmem:[#allocation8 + $0x5f4] sm:$0xf0] }
 0x348   :  { %v2999_v24 = vpop.f32.mrf.mxu3  ;;  %v7795_v41 = vld [vmem:[#allocation8 + $0x4f0] sm:$0xf0] }
 0x349   :  { %v3000_v40 = vadd.f32 %v2999_v24, %v10915_v56 }
 0x34a   :  { %3286 = vmatpush.bf16.msra.mxu1 %v7446_v38  ;;  %v8051_v38 = vld [vmem:[#allocation8 + $0x6f0] sm:$0xf0] }
 0x34b   :  { %v2962_v26 = vpop.f32.mrf.mxu2 }
 0x34c   :  { %v10980_v7 = vadd.f32 %v2962_v26, %v10919_v44  ;;  %v2926_v16 = vpop.f32.mrf.mxu1  ;;  %v10982_v28 = vpop.f32.mrf.mxu0  ;;  %v3837_v44 = vmax.f32 %v3000_v40, 0.0  ;;  %v7798_v26 = vor.u32 %v9249_v32, %v7795_v41 }
 0x34d   :  { %v10984_v10 = vadd.f32 %v2926_v16, %v2878_v55 }
 0x34e   :  { %3332 = vmatpush.bf16.msra.mxu2 %v7798_v26 }
 0x34f   :  { %3121 = vmatmul.bf16.gmra.mxu1 %v10188_v59  ;;  %3238 = vmatmul.bf16.vlgmr.msra.gmra.mxu0 %v10036_v58 }
 0x350   :  { %3160 = vmatmul.bf16.gmra.mxu2 %v10190_v61  ;;  %v3001_v56 = vpop.f32.mrf.mxu3 }
 0x351   :  { %v3002_v54 = vadd.f32 %v3001_v56, %v10928_v31  ;;  %v9313_v31 = vld [vmem:[#allocation8 + $0x6d4] sm:$0xf]  ;;  %v2883_v56 = vadd.f32 %v10956_v39, %v10825_v63 }
 0x352   :  { %v8054_v35 = vor.u32 %v9313_v31, %v8051_v38  ;;  %v7763_v39 = vld [vmem:[#allocation8 + $0x4b0] sm:$0xf0] }
 0x353   :  { %v3845_v11 = vmax.f32 %v3002_v54, 0.0  ;;  %v2965_v25 = vpop.f32.mrf.mxu2 }
 0x354   :  { %v10993_v47 = vadd.f32 %v2965_v25, %v10932_v23  ;;  %v2928_v0 = vpop.f32.mrf.mxu1  ;;  %v10995_v24 = vpop.f32.mrf.mxu0  ;;  %3381 = vmatpush.bf16.msrb.mxu3 %v8054_v35 }
 0x355   :  { %v10997_v55 = vadd.f32 %v2928_v0, %v2880_v52  ;;  %3199 = vmatmul.bf16.gmra.mxu3 %v10199_v6  ;;  %v11000_v16 = vpack.c.bf16 %v3845_v11, %v3837_v44  ;;  %v9241_v11 = vld [vmem:[#allocation8 + $0x494] sm:$0xf] }
 0x356   :  { %v7766_v38 = vor.u32 %v9241_v11, %v7763_v39 }
 0x357   :  { %12913 = vst [vmem:[#allocation48_spill] sm:$0xff] %v11000_v16 }
 0x358   :  { %v3004_v40 = vpop.f32.mrf.mxu3  ;;  %3333 = vmatpush.bf16.msra.mxu2 %v7766_v38 }
 0x359   :  { %v3005_v23 = vadd.f32 %v3004_v40, %v10941_v33 }
 0x35b   :  { %v2967_v54 = vpop.f32.mrf.mxu2  ;;  %v3853_v41 = vmax.f32 %v3005_v23, 0.0  ;;  %v11026_v23 = vld [vmem:[#allocation10] sm:$0xff] }
 0x35c   :  { %v11006_v52 = vadd.f32 %v2967_v54, %v10945_v37  ;;  %v2931_v25 = vpop.f32.mrf.mxu1  ;;  %v11008_v0 = vpop.f32.mrf.mxu0  ;;  %v2885_v37 = vadd.f32 %v10969_v4, %v10825_v63  ;;  %v9233_v63 = vld [vmem:[#allocation8 + $0x454] sm:$0xf] }
 0x35d   :  { %v11010_v32 = vadd.f32 %v2931_v25, %v2883_v56  ;;  %v8019_v25 = vld [vmem:[#allocation8 + $0x6b0] sm:$0xf0] }
 0x35e   :  { %v7731_v4 = vld [vmem:[#allocation8 + $0x470] sm:$0xf0] }
 0x35f   :  { %3126 = vmatmul.bf16.gmra.mxu1 %v10208_v53  ;;  %3243 = vmatmul.bf16.gmra.mxu0 %v10044_v13 }
 0x360   :  { %3165 = vmatmul.bf16.gmra.mxu2 %v10210_v8  ;;  %v3006_v44 = vpop.f32.mrf.mxu3 }
 0x361   :  { %v3007_v33 = vadd.f32 %v3006_v44, %v10954_v36  ;;  %v9305_v36 = vld [vmem:[#allocation8 + $0x694] sm:$0xf] }
 0x362   :  { %v8022_v18 = vor.u32 %v9305_v36, %v8019_v25 }
 0x363   :  { %v3861_v26 = vmax.f32 %v3007_v33, 0.0  ;;  %v2970_v31 = vpop.f32.mrf.mxu2  ;;  %v11029_v33 = vperm.slane %v11026_v23, 4 }
 0x364   :  { %v11019_v35 = vadd.f32 %v2970_v31, %v10958_v48  ;;  %v2933_v40 = vpop.f32.mrf.mxu1  ;;  %v3050_v56 = vpop.f32.mrf.mxu0  ;;  %v7734_v48 = vor.u32 %v9233_v63, %v7731_v4  ;;  %3382 = vmatpush.bf16.msrb.mxu3 %v8022_v18  ;;  %v7699_v31 = vld [vmem:[#allocation8 + $0x430] sm:$0xf0] }
 0x365   :  { %v11021_v54 = vadd.f32 %v2933_v40, %v2885_v37  ;;  %3204 = vmatmul.bf16.gmra.mxu3 %v10219_v17  ;;  %v11024_v44 = vpack.c.bf16 %v3861_v26, %v3853_v41  ;;  %v9225_v37 = vld [vmem:[#allocation8 + $0x414] sm:$0xf]  ;;  %v3044_v41 = vadd.f32 %v10982_v28, %v11029_v33  ;;  %v3046_v28 = vadd.f32 %v10995_v24, %v11029_v33 }
 0x366   :  { %3334 = vmatpush.bf16.msra.mxu2 %v7734_v48  ;;  %v7702_v38 = vor.u32 %v9225_v37, %v7699_v31 }
 0x367   :  { %12914 = vst [vmem:[#allocation49_spill] sm:$0xff] %v11024_v44  ;;  %v9158_v44 = vld [vmem:[#allocation8 + $0x1f4] sm:$0xf0] }
 0x368   :  { %v3009_v11 = vpop.f32.mrf.mxu3 }
 0x369   :  { %v3010_v39 = vadd.f32 %v3009_v11, %v10967_v5 }
 0x36a   :  { %3335 = vmatpush.bf16.msra.mxu2 %v7702_v38 }
 0x36b   :  { %v2972_v26 = vpop.f32.mrf.mxu2  ;;  %v3869_v63 = vmax.f32 %v3010_v39, 0.0  ;;  %v3049_v39 = vadd.f32 %v11008_v0, %v11029_v33  ;;  %v3051_v0 = vadd.f32 %v3050_v56, %v11029_v33 }
 0x36c   :  { %v11035_v40 = vadd.f32 %v2972_v26, %v10973_v60  ;;  %v3053_v36 = vpop.f32.mrf.mxu0  ;;  %v3092_v25 = vpop.f32.mrf.mxu1  ;;  %v7987_v26 = vld [vmem:[#allocation8 + $0x670] sm:$0xf0] }
 0x36d   :  { %v11037_v50 = vadd.f32 %v3092_v25, %v3044_v41  ;;  %v9297_v41 = vld [vmem:[#allocation8 + $0x654] sm:$0xf] }
 0x36f   :  { %3248 = vmatmul.bf16.gmra.mxu0 %v10055_v49  ;;  %3287 = vmatmul.bf16.vlgmr.msra.gmra.mxu1 %v10057_v51 }
 0x370   :  { %3170 = vmatmul.bf16.gmra.mxu2 %v10233_v43  ;;  %v3011_v18 = vpop.f32.mrf.mxu3 }
 0x371   :  { %v3012_v5 = vadd.f32 %v3011_v18, %v10980_v7  ;;  %v7990_v7 = vor.u32 %v9297_v41, %v7987_v26 }
 0x373   :  { %v3877_v60 = vmax.f32 %v3012_v5, 0.0  ;;  %v2975_v4 = vpop.f32.mrf.mxu2  ;;  %3383 = vmatpush.bf16.msrb.mxu3 %v7990_v7 }
 0x374   :  { %v11046_v48 = vadd.f32 %v2975_v4, %v10984_v10  ;;  %v3055_v11 = vpop.f32.mrf.mxu0  ;;  %v3094_v37 = vpop.f32.mrf.mxu1 }
 0x375   :  { %v11048_v31 = vadd.f32 %v3094_v37, %v3046_v28  ;;  %3209 = vmatmul.bf16.gmra.mxu3 %v10244_v34  ;;  %v11051_v38 = vpack.c.bf16 %v3877_v60, %v3869_v63 }
 0x377   :  { %12915 = vst [vmem:[#allocation50_spill] sm:$0xff] %v11051_v38  ;;  %v7417_v38 = vld [vmem:[#allocation8 + $0x1d8] sm:$0xf] }
 0x378   :  { %v3014_v25 = vpop.f32.mrf.mxu3 }
 0x379   :  { %v3015_v24 = vadd.f32 %v3014_v25, %v10993_v47 }
 0x37b   :  { %v2977_v10 = vpop.f32.mrf.mxu2  ;;  %v3885_v60 = vmax.f32 %v3015_v24, 0.0  ;;  %v3054_v24 = vadd.f32 %v3053_v36, %v11029_v33 }
 0x37c   :  { %v11057_v18 = vadd.f32 %v2977_v10, %v10997_v55  ;;  %v11059_v5 = vpop.f32.mrf.mxu0  ;;  %v3097_v28 = vpop.f32.mrf.mxu1  ;;  %v7955_v10 = vld [vmem:[#allocation8 + $0x630] sm:$0xf0] }
 0x37d   :  { %v11061_v4 = vadd.f32 %v3097_v28, %v3049_v39  ;;  %v9289_v39 = vld [vmem:[#allocation8 + $0x614] sm:$0xf] }
 0x37f   :  { %3253 = vmatmul.bf16.gmra.mxu0 %v10069_v2  ;;  %3292 = vmatmul.bf16.gmra.mxu1 %v10071_v3 }
 0x380   :  { %3175 = vmatmul.bf16.gmra.mxu2 %v10253_v57  ;;  %v3016_v63 = vpop.f32.mrf.mxu3 }
 0x381   :  { %v3017_v47 = vadd.f32 %v3016_v63, %v11006_v52  ;;  %v7958_v52 = vor.u32 %v9289_v39, %v7955_v10  ;;  %v12918_v39 = vld [vmem:[#allocation22_spill] sm:$0xff] }
 0x382   :  { %v9150_v10 = vld [vmem:[#allocation8 + $0x1b4] sm:$0xf0] }
 0x383   :  { %v3893_v37 = vmax.f32 %v3017_v47, 0.0  ;;  %v2980_v55 = vpop.f32.mrf.mxu2  ;;  %3384 = vmatpush.bf16.msrb.mxu3 %v7958_v52  ;;  %v3056_v52 = vadd.f32 %v3055_v11, %v11029_v33  ;;  %v9350_v11 = vld [vmem:[#allocation8 + $0x7f4] sm:$0xf0] }
 0x384   :  { %v11069_v41 = vadd.f32 %v2980_v55, %v11010_v32  ;;  %v11071_v26 = vpop.f32.mrf.mxu0  ;;  %v3099_v7 = vpop.f32.mrf.mxu1 }
 0x385   :  { %v11073_v25 = vadd.f32 %v3099_v7, %v3051_v0  ;;  %3214 = vmatmul.bf16.gmra.mxu3 %v10266_v46  ;;  %v11076_v28 = vpack.c.bf16 %v3893_v37, %v3885_v60  ;;  %v12917_v60 = vld [vmem:[#allocation20_spill] sm:$0xff]  ;;  %v7418_v37 = vor.u32 %v9158_v44, %v7417_v38  ;;  %v7929_v38 = vld [vmem:[#allocation8 + $0x5d8] sm:$0xf] }
 0x387   :  { %12916 = vst [vmem:[#allocation51_spill] sm:$0xff] %v11076_v28  ;;  %3426 = vmatpush.bf16.msrb.mxu0 %v7418_v37  ;;  %v8185_v37 = vld [vmem:[#allocation8 + $0x7d8] sm:$0xf] }
 0x388   :  { %v3019_v63 = vpop.f32.mrf.mxu3 }
 0x389   :  { %v3020_v56 = vadd.f32 %v3019_v63, %v11019_v35 }
 0x38b   :  { %v2982_v32 = vpop.f32.mrf.mxu2 }
 0x38c   :  { %v11081_v47 = vadd.f32 %v2982_v32, %v11021_v54  ;;  %v11083_v55 = vpop.f32.mrf.mxu0  ;;  %v3102_v0 = vpop.f32.mrf.mxu1  ;;  %v7385_v54 = vld [vmem:[#allocation8 + $0x198] sm:$0xf] }
 0x38d   :  { %v11085_v7 = vadd.f32 %v3102_v0, %v3054_v24  ;;  %v7386_v32 = vor.u32 %v9150_v10, %v7385_v54  ;;  %v3901_v0 = vmax.f32 %v3020_v56, 0.0  ;;  %v9222_v54 = vld [vmem:[#allocation8 + $0x3f4] sm:$0xf0] }
 0x38e   :  { %v7353_v56 = vld [vmem:[#allocation8 + $0x158] sm:$0xf] }
 0x38f   :  { %3258 = vmatmul.bf16.gmra.mxu0 %v12906_v12  ;;  %3297 = vmatmul.bf16.gmra.mxu1 %v12917_v60  ;;  %v9142_v10 = vld [vmem:[#allocation8 + $0x174] sm:$0xf0] }
 0x390   :  { %3336 = vmatmul.bf16.vlgmr.msra.gmra.mxu2 %v12918_v39  ;;  %v3021_v35 = vpop.f32.mrf.mxu3  ;;  %3427 = vmatpush.bf16.msrb.mxu0 %v7386_v32  ;;  %v7354_v60 = vor.u32 %v9142_v10, %v7353_v56  ;;  %v9134_v32 = vld [vmem:[#allocation8 + $0x134] sm:$0xf0] }
 0x391   :  { %v3022_v36 = vadd.f32 %v3021_v35, %v11035_v40  ;;  %v7930_v40 = vor.u32 %v9286_v42, %v7929_v38  ;;  %v7673_v35 = vld [vmem:[#allocation8 + $0x3d8] sm:$0xf] }
 0x392   :  { %v7321_v42 = vld [vmem:[#allocation8 + $0x118] sm:$0xf] }
 0x393   :  { %v3909_v63 = vmax.f32 %v3022_v36, 0.0  ;;  %v3141_v24 = vpop.f32.mrf.mxu2  ;;  %v8186_v36 = vor.u32 %v9350_v11, %v8185_v37  ;;  %3524 = vmatpush.bf16.msrb.mxu2 %v7930_v40  ;;  %v7322_v37 = vor.u32 %v9134_v32, %v7321_v42 }
 0x394   :  { %v11093_v28 = vadd.f32 %v3141_v24, %v11037_v50  ;;  %v11095_v16 = vpop.f32.mrf.mxu0  ;;  %v3104_v44 = vpop.f32.mrf.mxu1  ;;  %v7674_v24 = vor.u32 %v9222_v54, %v7673_v35  ;;  %3428 = vmatpush.bf16.msrb.mxu0 %v7354_v60  ;;  %v7289_v35 = vld [vmem:[#allocation8 + $0xd8] sm:$0xf]  ;;  %v3061_v54 = vadd.f32 %v11071_v26, %v11029_v33 }
 0x395   :  { %v11097_v39 = vadd.f32 %v3104_v44, %v3056_v52  ;;  %3219 = vmatmul.bf16.gmra.mxu3 %v10284_v30  ;;  %v11100_v50 = vpack.c.bf16 %v3909_v63, %v3901_v0  ;;  %v3059_v44 = vadd.f32 %v11059_v5, %v11029_v33 }
 0x396   :  { %3573 = vmatpush.bf16.msra.mxu3 %v8186_v36  ;;  %3475 = vmatpush.bf16.msrb.mxu1 %v7674_v24  ;;  %v9118_v36 = vld [vmem:[#allocation8 + $0xb4] sm:$0xf0] }
 0x397   :  { %12919 = vst [vmem:[#allocation52_spill] sm:$0xff] %v11100_v50  ;;  %v9102_v50 = vld [vmem:[#allocation8 + $0x34] sm:$0xf0] }
 0x398   :  { %v3024_v12 = vpop.f32.mrf.mxu3  ;;  %3429 = vmatpush.bf16.msrb.mxu0 %v7322_v37 }
 0x399   :  { %v3025_v52 = vadd.f32 %v3024_v12, %v11046_v48  ;;  %v9126_v12 = vld [vmem:[#allocation8 + $0xf4] sm:$0xf0] }
 0x39a   :  { %v7290_v48 = vor.u32 %v9126_v12, %v7289_v35  ;;  %v8153_v35 = vld [vmem:[#allocation8 + $0x798] sm:$0xf] }
 0x39b   :  { %v3143_v38 = vpop.f32.mrf.mxu2  ;;  %v3917_v56 = vmax.f32 %v3025_v52, 0.0  ;;  %v9342_v52 = vld [vmem:[#allocation8 + $0x7b4] sm:$0xf0] }
 0x39c   :  { %v11106_v11 = vadd.f32 %v3143_v38, %v11048_v31  ;;  %v11108_v63 = vpop.f32.mrf.mxu0  ;;  %v3107_v0 = vpop.f32.mrf.mxu1  ;;  %3430 = vmatpush.bf16.msrb.mxu0 %v7290_v48  ;;  %v7257_v31 = vld [vmem:[#allocation8 + $0x98] sm:$0xf] }
 0x39d   :  { %v11110_v40 = vadd.f32 %v3107_v0, %v3059_v44  ;;  %v7258_v42 = vor.u32 %v9118_v36, %v7257_v31  ;;  %v9278_v0 = vld [vmem:[#allocation8 + $0x5b4] sm:$0xf0] }
 0x39e   :  { %v7641_v48 = vld [vmem:[#allocation8 + $0x398] sm:$0xf] }
 0x39f   :  { %3263 = vmatmul.bf16.gmra.mxu0 %v10118_v21  ;;  %3302 = vmatmul.bf16.gmra.mxu1 %v10116_v19  ;;  %v7225_v31 = vld [vmem:[#allocation8 + $0x58] sm:$0xf] }
 0x3a0   :  { %3341 = vmatmul.bf16.gmra.mxu2 %v10120_v22  ;;  %v3026_v5 = vpop.f32.mrf.mxu3  ;;  %3431 = vmatpush.bf16.msrb.mxu0 %v7258_v42  ;;  %v9110_v36 = vld [vmem:[#allocation8 + $0x74] sm:$0xf0] }
 0x3a1   :  { %v3027_v60 = vadd.f32 %v3026_v5, %v11057_v18  ;;  %v7897_v18 = vld [vmem:[#allocation8 + $0x598] sm:$0xf] }
 0x3a2   :  { %v7898_v26 = vor.u32 %v9278_v0, %v7897_v18  ;;  %v9214_v5 = vld [vmem:[#allocation8 + $0x3b4] sm:$0xf0] }
 0x3a3   :  { %v3925_v10 = vmax.f32 %v3027_v60, 0.0  ;;  %v3146_v24 = vpop.f32.mrf.mxu2  ;;  %v8154_v60 = vor.u32 %v9342_v52, %v8153_v35  ;;  %v7193_v42 = vld [vmem:[#allocation8 + $0x18] sm:$0xf] }
 0x3a4   :  { %v11119_v32 = vadd.f32 %v3146_v24, %v11061_v4  ;;  %v11121_v44 = vpop.f32.mrf.mxu0  ;;  %v3109_v38 = vpop.f32.mrf.mxu1  ;;  %v7642_v4 = vor.u32 %v9214_v5, %v7641_v48  ;;  %3525 = vmatpush.bf16.msrb.mxu2 %v7898_v26  ;;  %v7194_v18 = vor.u32 %v9102_v50, %v7193_v42  ;;  %v3066_v50 = vadd.f32 %v11095_v16, %v11029_v33 }
 0x3a5   :  { %v11123_v37 = vadd.f32 %v3109_v38, %v3061_v54  ;;  %3224 = vmatmul.bf16.gmra.mxu3 %v10310_v9  ;;  %v11126_v12 = vpack.c.bf16 %v3925_v10, %v3917_v56  ;;  %v7226_v54 = vor.u32 %v9110_v36, %v7225_v31  ;;  %v3064_v56 = vadd.f32 %v11083_v55, %v11029_v33  ;;  %v7865_v36 = vld [vmem:[#allocation8 + $0x558] sm:$0xf] }
 0x3a6   :  { %3574 = vmatpush.bf16.msra.mxu3 %v8154_v60  ;;  %3476 = vmatpush.bf16.msrb.mxu1 %v7642_v4 }
 0x3a7   :  { %12920 = vst [vmem:[#allocation53_spill] sm:$0xff] %v11126_v12  ;;  %3432 = vmatpush.bf16.msrb.mxu0 %v7226_v54  ;;  %v7419_v12 = vld [vmem:[#allocation8 + $0x1f8] sm:$0xf0] }
 0x3a8   :  { %v3029_v24 = vpop.f32.mrf.mxu3 }
 0x3a9   :  { %v3030_v38 = vadd.f32 %v3029_v24, %v11069_v41  ;;  %v9270_v24 = vld [vmem:[#allocation8 + $0x574] sm:$0xf0] }
 0x3aa   :  { %v7866_v42 = vor.u32 %v9270_v24, %v7865_v36 }
 0x3ab   :  { %v3148_v10 = vpop.f32.mrf.mxu2  ;;  %3433 = vmatpush.bf16.msrb.mxu0 %v7194_v18  ;;  %v9206_v18 = vld [vmem:[#allocation8 + $0x374] sm:$0xf0] }
 0x3ac   :  { %v11132_v0 = vadd.f32 %v3148_v10, %v11073_v25  ;;  %v11134_v35 = vpop.f32.mrf.mxu0  ;;  %v3112_v52 = vpop.f32.mrf.mxu1  ;;  %v3933_v25 = vmax.f32 %v3030_v38, 0.0  ;;  %v7609_v10 = vld [vmem:[#allocation8 + $0x358] sm:$0xf]  ;;  %3526 = vmatpush.bf16.msrb.mxu2 %v7866_v42 }
 0x3ad   :  { %v11136_v26 = vadd.f32 %v3112_v52, %v3064_v56  ;;  %v9334_v56 = vld [vmem:[#allocation8 + $0x774] sm:$0xf0] }
 0x3af   :  { %3268 = vmatmul.bf16.gmra.mxu0 %v10149_v15  ;;  %3307 = vmatmul.bf16.gmra.mxu1 %v10143_v45 }
 0x3b0   :  { %3346 = vmatmul.bf16.gmra.mxu2 %v10147_v14  ;;  %v3031_v41 = vpop.f32.mrf.mxu3 }
 0x3b1   :  { %v3032_v55 = vadd.f32 %v3031_v41, %v11081_v47  ;;  %v8121_v47 = vld [vmem:[#allocation8 + $0x758] sm:$0xf] }
 0x3b2   :  { %v8122_v38 = vor.u32 %v9334_v56, %v8121_v47  ;;  %v7545_v47 = vld [vmem:[#allocation8 + $0x2d8] sm:$0xf] }
 0x3b3   :  { %v3941_v48 = vmax.f32 %v3032_v55, 0.0  ;;  %v3151_v5 = vpop.f32.mrf.mxu2  ;;  %v7577_v55 = vld [vmem:[#allocation8 + $0x318] sm:$0xf] }
 0x3b4   :  { %v11145_v60 = vadd.f32 %v3151_v5, %v11085_v7  ;;  %v11147_v4 = vpop.f32.mrf.mxu0  ;;  %v3114_v31 = vpop.f32.mrf.mxu1  ;;  %v7610_v7 = vor.u32 %v9206_v18, %v7609_v10  ;;  %3575 = vmatpush.bf16.msra.mxu3 %v8122_v38  ;;  %v3069_v5 = vadd.f32 %v11108_v63, %v11029_v33  ;;  %v9190_v56 = vld [vmem:[#allocation8 + $0x2f4] sm:$0xf0]  ;;  %v3071_v18 = vadd.f32 %v11121_v44, %v11029_v33 }
 0x3b5   :  { %v11149_v54 = vadd.f32 %v3114_v31, %v3066_v50  ;;  %3385 = vmatmul.bf16.vlgmr.msrb.gmra.mxu3 %v10156_v27  ;;  %v11152_v16 = vpack.c.bf16 %v3941_v48, %v3933_v25  ;;  %v9198_v50 = vld [vmem:[#allocation8 + $0x334] sm:$0xf0] }
 0x3b6   :  { %3477 = vmatpush.bf16.msrb.mxu1 %v7610_v7  ;;  %v7578_v36 = vor.u32 %v9198_v50, %v7577_v55  ;;  %v9182_v38 = vld [vmem:[#allocation8 + $0x2b4] sm:$0xf0] }
 0x3b7   :  { %12921 = vst [vmem:[#allocation54_spill] sm:$0xff] %v11152_v16  ;;  %v8089_v44 = vld [vmem:[#allocation8 + $0x718] sm:$0xf] }
 0x3b8   :  { %v3190_v52 = vpop.f32.mrf.mxu3 }
 0x3b9   :  { %v3191_v41 = vadd.f32 %v3190_v52, %v11093_v28  ;;  %v7546_v28 = vor.u32 %v9190_v56, %v7545_v47  ;;  %v9262_v47 = vld [vmem:[#allocation8 + $0x534] sm:$0xf0] }
 0x3ba   :  { %3478 = vmatpush.bf16.msrb.mxu1 %v7578_v36 }
 0x3bb   :  { %v3153_v31 = vpop.f32.mrf.mxu2  ;;  %v3822_v7 = vmax.f32 %v3191_v41, 0.0  ;;  %v9326_v41 = vld [vmem:[#allocation8 + $0x734] sm:$0xf0] }
 0x3bc   :  { %v11158_v24 = vadd.f32 %v3153_v31, %v11097_v39  ;;  %v11160_v25 = vpop.f32.mrf.mxu0  ;;  %v3117_v48 = vpop.f32.mrf.mxu1  ;;  %v7513_v39 = vld [vmem:[#allocation8 + $0x298] sm:$0xf] }
 0x3bd   :  { %v11162_v42 = vadd.f32 %v3117_v48, %v3069_v5  ;;  %v7514_v50 = vor.u32 %v9182_v38, %v7513_v39  ;;  %v7833_v48 = vld [vmem:[#allocation8 + $0x518] sm:$0xf] }
 0x3be   :  { %3479 = vmatpush.bf16.msrb.mxu1 %v7546_v28  ;;  %v7834_v28 = vor.u32 %v9262_v47, %v7833_v48  ;;  %v9174_v39 = vld [vmem:[#allocation8 + $0x274] sm:$0xf0] }
 0x3bf   :  { %3273 = vmatmul.bf16.gmra.mxu0 %v10173_v1  ;;  %3312 = vmatmul.bf16.gmra.mxu1 %v10169_v62 }
 0x3c0   :  { %3351 = vmatmul.bf16.gmra.mxu2 %v12891_v29  ;;  %v3192_v63 = vpop.f32.mrf.mxu3 }
 0x3c1   :  { %v3193_v10 = vadd.f32 %v3192_v63, %v11106_v11  ;;  %v8090_v63 = vor.u32 %v9326_v41, %v8089_v44  ;;  %3527 = vmatpush.bf16.msrb.mxu2 %v7834_v28  ;;  %v3076_v41 = vadd.f32 %v11147_v4, %v11029_v33 }
 0x3c2   :  { %3480 = vmatpush.bf16.msrb.mxu1 %v7514_v50 }
 0x3c3   :  { %v3830_v52 = vmax.f32 %v3193_v10, 0.0  ;;  %v3156_v55 = vpop.f32.mrf.mxu2  ;;  %v7481_v10 = vld [vmem:[#allocation8 + $0x258] sm:$0xf]  ;;  %3576 = vmatpush.bf16.msra.mxu3 %v8090_v63 }
 0x3c4   :  { %v11171_v5 = vadd.f32 %v3156_v55, %v11110_v40  ;;  %v11173_v31 = vpop.f32.mrf.mxu0  ;;  %v3119_v36 = vpop.f32.mrf.mxu1  ;;  %v7482_v40 = vor.u32 %v9174_v39, %v7481_v10 }
 0x3c5   :  { %v11175_v56 = vpack.c.bf16 %v3830_v52, %v3822_v7  ;;  %v11177_v11 = vadd.f32 %v3119_v36, %v3071_v18  ;;  %3390 = vmatmul.bf16.gmra.mxu3 %v10180_v20  ;;  %v7449_v7 = vld [vmem:[#allocation8 + $0x218] sm:$0xf]  ;;  %v3074_v18 = vadd.f32 %v11134_v35, %v11029_v33 }
 0x3c6   :  { %3481 = vmatpush.bf16.msrb.mxu1 %v7482_v40  ;;  %v9166_v52 = vld [vmem:[#allocation8 + $0x234] sm:$0xf0] }
 0x3c7   :  { %12922 = vst [vmem:[#allocation55_spill] sm:$0xff] %v11175_v56  ;;  %v7450_v48 = vor.u32 %v9166_v52, %v7449_v7  ;;  %v7801_v7 = vld [vmem:[#allocation8 + $0x4d8] sm:$0xf] }
 0x3c8   :  { %v3195_v38 = vpop.f32.mrf.mxu3  ;;  %v9254_v52 = vld [vmem:[#allocation8 + $0x4f4] sm:$0xf0] }
 0x3c9   :  { %v3196_v55 = vadd.f32 %v3195_v38, %v11119_v32 }
 0x3ca   :  { %3482 = vmatpush.bf16.msrb.mxu1 %v7450_v48  ;;  %v9318_v48 = vld [vmem:[#allocation8 + $0x6f4] sm:$0xf0] }
 0x3cb   :  { %v3158_v36 = vpop.f32.mrf.mxu2 }
 0x3cc   :  { %v11184_v47 = vadd.f32 %v3158_v36, %v11123_v37  ;;  %v3122_v50 = vpop.f32.mrf.mxu1  ;;  %v11186_v44 = vpop.f32.mrf.mxu0  ;;  %v3838_v37 = vmax.f32 %v3196_v55, 0.0  ;;  %v7802_v36 = vor.u32 %v9254_v52, %v7801_v7 }
 0x3cd   :  { %v11188_v28 = vadd.f32 %v3122_v50, %v3074_v18 }
 0x3ce   :  { %3528 = vmatpush.bf16.msrb.mxu2 %v7802_v36 }
 0x3cf   :  { %3317 = vmatmul.bf16.gmra.mxu1 %v10188_v59  ;;  %3434 = vmatmul.bf16.vlgmr.msrb.gmra.mxu0 %v10036_v58 }
 0x3d0   :  { %3356 = vmatmul.bf16.gmra.mxu2 %v10190_v61  ;;  %v3197_v32 = vpop.f32.mrf.mxu3 }
 0x3d1   :  { %v3198_v35 = vadd.f32 %v3197_v32, %v11132_v0  ;;  %v8057_v0 = vld [vmem:[#allocation8 + $0x6d8] sm:$0xf]  ;;  %v3079_v32 = vadd.f32 %v11160_v25, %v11029_v33 }
 0x3d2   :  { %v8058_v4 = vor.u32 %v9318_v48, %v8057_v0  ;;  %v9246_v25 = vld [vmem:[#allocation8 + $0x4b4] sm:$0xf0] }
 0x3d3   :  { %v3846_v63 = vmax.f32 %v3198_v35, 0.0  ;;  %v3161_v10 = vpop.f32.mrf.mxu2 }
 0x3d4   :  { %v11197_v39 = vadd.f32 %v3161_v10, %v11136_v26  ;;  %v3124_v40 = vpop.f32.mrf.mxu1  ;;  %v11199_v38 = vpop.f32.mrf.mxu0  ;;  %3577 = vmatpush.bf16.msra.mxu3 %v8058_v4 }
 0x3d5   :  { %v11201_v18 = vadd.f32 %v3124_v40, %v3076_v41  ;;  %3395 = vmatmul.bf16.gmra.mxu3 %v10199_v6  ;;  %v11204_v50 = vpack.c.bf16 %v3846_v63, %v3838_v37  ;;  %v7769_v63 = vld [vmem:[#allocation8 + $0x498] sm:$0xf] }
 0x3d6   :  { %v7770_v48 = vor.u32 %v9246_v25, %v7769_v63  ;;  %v7705_v25 = vld [vmem:[#allocation8 + $0x418] sm:$0xf] }
 0x3d7   :  { %12923 = vst [vmem:[#allocation56_spill] sm:$0xff] %v11204_v50  ;;  %v7931_v50 = vld [vmem:[#allocation8 + $0x5f8] sm:$0xf0] }
 0x3d8   :  { %v3200_v55 = vpop.f32.mrf.mxu3  ;;  %3529 = vmatpush.bf16.msrb.mxu2 %v7770_v48 }
 0x3d9   :  { %v3201_v26 = vadd.f32 %v3200_v55, %v11145_v60 }
 0x3db   :  { %v3163_v35 = vpop.f32.mrf.mxu2  ;;  %v3854_v52 = vmax.f32 %v3201_v26, 0.0  ;;  %v11231_v26 = vperm.slane %v11026_v23, 5 }
 0x3dc   :  { %v11210_v41 = vadd.f32 %v3163_v35, %v11149_v54  ;;  %v3127_v10 = vpop.f32.mrf.mxu1  ;;  %v11212_v40 = vpop.f32.mrf.mxu0  ;;  %v3081_v54 = vadd.f32 %v11173_v31, %v11029_v33  ;;  %v7737_v33 = vld [vmem:[#allocation8 + $0x458] sm:$0xf] }
 0x3dd   :  { %v11214_v7 = vadd.f32 %v3127_v10, %v3079_v32  ;;  %v9310_v10 = vld [vmem:[#allocation8 + $0x6b4] sm:$0xf0] }
 0x3de   :  { %v9238_v31 = vld [vmem:[#allocation8 + $0x474] sm:$0xf0] }
 0x3df   :  { %3322 = vmatmul.bf16.gmra.mxu1 %v10208_v53  ;;  %3439 = vmatmul.bf16.gmra.mxu0 %v10044_v13 }
 0x3e0   :  { %3361 = vmatmul.bf16.gmra.mxu2 %v10210_v8  ;;  %v3202_v37 = vpop.f32.mrf.mxu3 }
 0x3e1   :  { %v3203_v60 = vadd.f32 %v3202_v37, %v11158_v24  ;;  %v8025_v24 = vld [vmem:[#allocation8 + $0x698] sm:$0xf] }
 0x3e2   :  { %v8026_v16 = vor.u32 %v9310_v10, %v8025_v24 }
 0x3e3   :  { %v3862_v36 = vmax.f32 %v3203_v60, 0.0  ;;  %v3166_v0 = vpop.f32.mrf.mxu2  ;;  %v7738_v60 = vor.u32 %v9238_v31, %v7737_v33 }
 0x3e4   :  { %v11223_v4 = vadd.f32 %v3166_v0, %v11162_v42  ;;  %v3129_v55 = vpop.f32.mrf.mxu1  ;;  %v3246_v32 = vpop.f32.mrf.mxu0  ;;  %3578 = vmatpush.bf16.msra.mxu3 %v8026_v16  ;;  %v3240_v0 = vadd.f32 %v11186_v44, %v11231_v26  ;;  %v3242_v44 = vadd.f32 %v11199_v38, %v11231_v26 }
 0x3e5   :  { %v11225_v35 = vadd.f32 %v3129_v55, %v3081_v54  ;;  %3400 = vmatmul.bf16.gmra.mxu3 %v10219_v17  ;;  %v11228_v37 = vpack.c.bf16 %v3862_v36, %v3854_v52  ;;  %3530 = vmatpush.bf16.msrb.mxu2 %v7738_v60  ;;  %v9230_v54 = vld [vmem:[#allocation8 + $0x434] sm:$0xf0] }
 0x3e6   :  { %v7706_v52 = vor.u32 %v9230_v54, %v7705_v25  ;;  %v7993_v54 = vld [vmem:[#allocation8 + $0x658] sm:$0xf] }
 0x3e7   :  { %12924 = vst [vmem:[#allocation57_spill] sm:$0xff] %v11228_v37 }
 0x3e8   :  { %v3205_v42 = vpop.f32.mrf.mxu3 }
 0x3e9   :  { %v3206_v63 = vadd.f32 %v3205_v42, %v11171_v5  ;;  %3531 = vmatpush.bf16.msrb.mxu2 %v7706_v52 }
 0x3eb   :  { %v3168_v48 = vpop.f32.mrf.mxu2  ;;  %v3870_v10 = vmax.f32 %v3206_v63, 0.0  ;;  %v3245_v63 = vadd.f32 %v11212_v40, %v11231_v26  ;;  %v3247_v40 = vadd.f32 %v3246_v32, %v11231_v26 }
 0x3ec   :  { %v11237_v36 = vadd.f32 %v3168_v48, %v11177_v11  ;;  %v3249_v55 = vpop.f32.mrf.mxu0  ;;  %v3288_v24 = vpop.f32.mrf.mxu1 }
 0x3ed   :  { %v11239_v23 = vadd.f32 %v3288_v24, %v3240_v0  ;;  %v9302_v0 = vld [vmem:[#allocation8 + $0x674] sm:$0xf0] }
 0x3ef   :  { %3444 = vmatmul.bf16.gmra.mxu0 %v10055_v49  ;;  %3483 = vmatmul.bf16.vlgmr.msrb.gmra.mxu1 %v10057_v51 }
 0x3f0   :  { %3366 = vmatmul.bf16.gmra.mxu2 %v10233_v43  ;;  %v3207_v16 = vpop.f32.mrf.mxu3 }
 0x3f1   :  { %v3208_v5 = vadd.f32 %v3207_v16, %v11184_v47  ;;  %v7994_v47 = vor.u32 %v9302_v0, %v7993_v54 }
 0x3f3   :  { %v3878_v11 = vmax.f32 %v3208_v5, 0.0  ;;  %v3171_v33 = vpop.f32.mrf.mxu2  ;;  %3579 = vmatpush.bf16.msra.mxu3 %v7994_v47 }
 0x3f4   :  { %v11248_v31 = vadd.f32 %v3171_v33, %v11188_v28  ;;  %v3251_v60 = vpop.f32.mrf.mxu0  ;;  %v3290_v42 = vpop.f32.mrf.mxu1 }
 0x3f5   :  { %v11250_v25 = vadd.f32 %v3290_v42, %v3242_v44  ;;  %3405 = vmatmul.bf16.gmra.mxu3 %v10244_v34  ;;  %v11253_v48 = vpack.c.bf16 %v3878_v11, %v3870_v10 }
 0x3f7   :  { %12925 = vst [vmem:[#allocation58_spill] sm:$0xff] %v11253_v48 }
 0x3f8   :  { %v3210_v52 = vpop.f32.mrf.mxu3 }
 0x3f9   :  { %v3211_v38 = vadd.f32 %v3210_v52, %v11197_v39  ;;  %v7961_v52 = vld [vmem:[#allocation8 + $0x618] sm:$0xf] }
 0x3fb   :  { %v3173_v28 = vpop.f32.mrf.mxu2  ;;  %v3886_v11 = vmax.f32 %v3211_v38, 0.0  ;;  %v3250_v38 = vadd.f32 %v3249_v55, %v11231_v26 }
 0x3fc   :  { %v11259_v24 = vadd.f32 %v3173_v28, %v11201_v18  ;;  %v11261_v16 = vpop.f32.mrf.mxu0  ;;  %v3293_v5 = vpop.f32.mrf.mxu1 }
 0x3fd   :  { %v11263_v44 = vadd.f32 %v3293_v5, %v3245_v63  ;;  %v9294_v63 = vld [vmem:[#allocation8 + $0x634] sm:$0xf0] }
 0x3ff   :  { %3449 = vmatmul.bf16.gmra.mxu0 %v10069_v2  ;;  %3488 = vmatmul.bf16.gmra.mxu1 %v10071_v3 }
 0x400   :  { %3371 = vmatmul.bf16.gmra.mxu2 %v10253_v57  ;;  %v3212_v10 = vpop.f32.mrf.mxu3 }
 0x401   :  { %v3213_v39 = vadd.f32 %v3212_v10, %v11210_v41  ;;  %v7962_v41 = vor.u32 %v9294_v63, %v7961_v52  ;;  %v12929_v63 = vld [vmem:[#allocation22_spill] sm:$0xff] }
 0x403   :  { %v3894_v33 = vmax.f32 %v3213_v39, 0.0  ;;  %v3176_v18 = vpop.f32.mrf.mxu2  ;;  %3580 = vmatpush.bf16.msra.mxu3 %v7962_v41  ;;  %v7387_v41 = vld [vmem:[#allocation8 + $0x1b8] sm:$0xf0] }
 0x404   :  { %v11271_v42 = vadd.f32 %v3176_v18, %v11214_v7  ;;  %v11273_v54 = vpop.f32.mrf.mxu0  ;;  %v3295_v0 = vpop.f32.mrf.mxu1 }
 0x405   :  { %v11275_v47 = vadd.f32 %v3295_v0, %v3247_v40  ;;  %3410 = vmatmul.bf16.gmra.mxu3 %v10266_v46  ;;  %v11278_v28 = vpack.c.bf16 %v3894_v33, %v3886_v11  ;;  %v9154_v0 = vld [vmem:[#allocation8 + $0x1dc] sm:$0xf]  ;;  %v12927_v11 = vld [vmem:[#allocation21_spill] sm:$0xff]  ;;  %v12928_v33 = vld [vmem:[#allocation20_spill] sm:$0xff] }
 0x406   :  { %v7422_v52 = vor.u32 %v9154_v0, %v7419_v12  ;;  %v9282_v0 = vld [vmem:[#allocation8 + $0x5dc] sm:$0xf] }
 0x407   :  { %12926 = vst [vmem:[#allocation59_spill] sm:$0xff] %v11278_v28 }
 0x408   :  { %v3215_v5 = vpop.f32.mrf.mxu3  ;;  %3622 = vmatpush.bf16.msra.mxu0 %v7422_v52  ;;  %v9346_v52 = vld [vmem:[#allocation8 + $0x7dc] sm:$0xf] }
 0x409   :  { %v3216_v32 = vadd.f32 %v3215_v5, %v11223_v4  ;;  %v3252_v5 = vadd.f32 %v3251_v60, %v11231_v26  ;;  %v8187_v60 = vld [vmem:[#allocation8 + $0x7f8] sm:$0xf0] }
 0x40b   :  { %v3178_v7 = vpop.f32.mrf.mxu2  ;;  %v3902_v28 = vmax.f32 %v3216_v32, 0.0  ;;  %v9138_v32 = vld [vmem:[#allocation8 + $0x15c] sm:$0xf] }
 0x40c   :  { %v11283_v10 = vadd.f32 %v3178_v7, %v11225_v35  ;;  %v11285_v39 = vpop.f32.mrf.mxu0  ;;  %v3298_v40 = vpop.f32.mrf.mxu1  ;;  %v9146_v35 = vld [vmem:[#allocation8 + $0x19c] sm:$0xf] }
 0x40d   :  { %v11287_v18 = vadd.f32 %v3298_v40, %v3250_v38  ;;  %v7390_v40 = vor.u32 %v9146_v35, %v7387_v41  ;;  %v7675_v35 = vld [vmem:[#allocation8 + $0x3f8] sm:$0xf0] }
 0x40e   :  { %v7355_v41 = vld [vmem:[#allocation8 + $0x178] sm:$0xf0] }
 0x40f   :  { %3454 = vmatmul.bf16.gmra.mxu0 %v12927_v11  ;;  %3493 = vmatmul.bf16.gmra.mxu1 %v12928_v33 }
 0x410   :  { %3532 = vmatmul.bf16.vlgmr.msrb.gmra.mxu2 %v12929_v63  ;;  %v3217_v4 = vpop.f32.mrf.mxu3  ;;  %3623 = vmatpush.bf16.msra.mxu0 %v7390_v40  ;;  %v7358_v63 = vor.u32 %v9138_v32, %v7355_v41  ;;  %v7323_v40 = vld [vmem:[#allocation8 + $0x138] sm:$0xf0] }
 0x411   :  { %v3218_v55 = vadd.f32 %v3217_v4, %v11237_v36  ;;  %v7934_v36 = vor.u32 %v9282_v0, %v7931_v50  ;;  %v9218_v4 = vld [vmem:[#allocation8 + $0x3dc] sm:$0xf] }
 0x412   :  { %v9130_v50 = vld [vmem:[#allocation8 + $0x11c] sm:$0xf] }
 0x413   :  { %v3910_v7 = vmax.f32 %v3218_v55, 0.0  ;;  %v3337_v38 = vpop.f32.mrf.mxu2  ;;  %v8190_v55 = vor.u32 %v9346_v52, %v8187_v60  ;;  %3720 = vmatpush.bf16.msra.mxu2 %v7934_v36  ;;  %v7326_v52 = vor.u32 %v9130_v50, %v7323_v40 }
 0x414   :  { %v11295_v48 = vadd.f32 %v3337_v38, %v11239_v23  ;;  %v11297_v37 = vpop.f32.mrf.mxu0  ;;  %v3300_v12 = vpop.f32.mrf.mxu1  ;;  %v7678_v38 = vor.u32 %v9218_v4, %v7675_v35  ;;  %3624 = vmatpush.bf16.msra.mxu0 %v7358_v63  ;;  %v9122_v4 = vld [vmem:[#allocation8 + $0xdc] sm:$0xf]  ;;  %v3257_v35 = vadd.f32 %v11273_v54, %v11231_v26 }
 0x415   :  { %v11299_v56 = vadd.f32 %v3300_v12, %v3252_v5  ;;  %3415 = vmatmul.bf16.gmra.mxu3 %v10284_v30  ;;  %v11302_v23 = vpack.c.bf16 %v3910_v7, %v3902_v28  ;;  %v3255_v12 = vadd.f32 %v11261_v16, %v11231_v26 }
 0x416   :  { %3769 = vmatpush.bf16.msrb.mxu3 %v8190_v55  ;;  %3671 = vmatpush.bf16.msra.mxu1 %v7678_v38  ;;  %v7259_v55 = vld [vmem:[#allocation8 + $0xb8] sm:$0xf0] }
 0x417   :  { %12930 = vst [vmem:[#allocation21_spill] sm:$0xff] %v11302_v23  ;;  %v7195_v23 = vld [vmem:[#allocation8 + $0x38] sm:$0xf0] }
 0x418   :  { %v3220_v33 = vpop.f32.mrf.mxu3  ;;  %3625 = vmatpush.bf16.msra.mxu0 %v7326_v52 }
 0x419   :  { %v3221_v5 = vadd.f32 %v3220_v33, %v11248_v31  ;;  %v7291_v31 = vld [vmem:[#allocation8 + $0xf8] sm:$0xf0] }
 0x41a   :  { %v7294_v33 = vor.u32 %v9122_v4, %v7291_v31  ;;  %v9338_v4 = vld [vmem:[#allocation8 + $0x79c] sm:$0xf] }
 0x41b   :  { %v3339_v0 = vpop.f32.mrf.mxu2  ;;  %v3918_v32 = vmax.f32 %v3221_v5, 0.0  ;;  %v8155_v5 = vld [vmem:[#allocation8 + $0x7b8] sm:$0xf0] }
 0x41c   :  { %v11308_v60 = vadd.f32 %v3339_v0, %v11250_v25  ;;  %v11310_v28 = vpop.f32.mrf.mxu0  ;;  %v3303_v7 = vpop.f32.mrf.mxu1  ;;  %3626 = vmatpush.bf16.msra.mxu0 %v7294_v33  ;;  %v9114_v25 = vld [vmem:[#allocation8 + $0x9c] sm:$0xf] }
 0x41d   :  { %v11312_v36 = vadd.f32 %v3303_v7, %v3255_v12  ;;  %v7262_v50 = vor.u32 %v9114_v25, %v7259_v55  ;;  %v7899_v7 = vld [vmem:[#allocation8 + $0x5b8] sm:$0xf0] }
 0x41e   :  { %v9210_v33 = vld [vmem:[#allocation8 + $0x39c] sm:$0xf] }
 0x41f   :  { %3459 = vmatmul.bf16.gmra.mxu0 %v10118_v21  ;;  %3498 = vmatmul.bf16.gmra.mxu1 %v10116_v19  ;;  %v9106_v25 = vld [vmem:[#allocation8 + $0x5c] sm:$0xf] }
 0x420   :  { %3537 = vmatmul.bf16.gmra.mxu2 %v10120_v22  ;;  %v3222_v16 = vpop.f32.mrf.mxu3  ;;  %3627 = vmatpush.bf16.msra.mxu0 %v7262_v50  ;;  %v7227_v55 = vld [vmem:[#allocation8 + $0x78] sm:$0xf0] }
 0x421   :  { %v3223_v63 = vadd.f32 %v3222_v16, %v11259_v24  ;;  %v9274_v24 = vld [vmem:[#allocation8 + $0x59c] sm:$0xf] }
 0x422   :  { %v7902_v54 = vor.u32 %v9274_v24, %v7899_v7  ;;  %v7643_v16 = vld [vmem:[#allocation8 + $0x3b8] sm:$0xf0] }
 0x423   :  { %v3926_v41 = vmax.f32 %v3223_v63, 0.0  ;;  %v3342_v38 = vpop.f32.mrf.mxu2  ;;  %v8158_v63 = vor.u32 %v9338_v4, %v8155_v5  ;;  %v9098_v50 = vld [vmem:[#allocation8 + $0x1c] sm:$0xf] }
 0x424   :  { %v11321_v40 = vadd.f32 %v3342_v38, %v11263_v44  ;;  %v11323_v12 = vpop.f32.mrf.mxu0  ;;  %v3305_v0 = vpop.f32.mrf.mxu1  ;;  %v7646_v44 = vor.u32 %v9210_v33, %v7643_v16  ;;  %3721 = vmatpush.bf16.msra.mxu2 %v7902_v54  ;;  %v7198_v24 = vor.u32 %v9098_v50, %v7195_v23  ;;  %v3262_v23 = vadd.f32 %v11297_v37, %v11231_v26 }
 0x425   :  { %v11325_v52 = vadd.f32 %v3305_v0, %v3257_v35  ;;  %3420 = vmatmul.bf16.gmra.mxu3 %v10310_v9  ;;  %v11328_v31 = vpack.c.bf16 %v3926_v41, %v3918_v32  ;;  %v7230_v35 = vor.u32 %v9106_v25, %v7227_v55  ;;  %v3260_v32 = vadd.f32 %v11285_v39, %v11231_v26  ;;  %v9266_v55 = vld [vmem:[#allocation8 + $0x55c] sm:$0xf] }
 0x426   :  { %3770 = vmatpush.bf16.msrb.mxu3 %v8158_v63  ;;  %3672 = vmatpush.bf16.msra.mxu1 %v7646_v44 }
 0x427   :  { %3628 = vmatpush.bf16.msra.mxu0 %v7230_v35 }
 0x428   :  { %v3225_v38 = vpop.f32.mrf.mxu3 }
 0x429   :  { %v3226_v0 = vadd.f32 %v3225_v38, %v11271_v42  ;;  %v7867_v38 = vld [vmem:[#allocation8 + $0x578] sm:$0xf0] }
 0x42a   :  { %v7870_v50 = vor.u32 %v9266_v55, %v7867_v38 }
 0x42b   :  { %v3344_v41 = vpop.f32.mrf.mxu2  ;;  %3629 = vmatpush.bf16.msra.mxu0 %v7198_v24  ;;  %v7611_v24 = vld [vmem:[#allocation8 + $0x378] sm:$0xf0] }
 0x42c   :  { %v11334_v7 = vadd.f32 %v3344_v41, %v11275_v47  ;;  %v11336_v4 = vpop.f32.mrf.mxu0  ;;  %v3308_v5 = vpop.f32.mrf.mxu1  ;;  %v3934_v47 = vmax.f32 %v3226_v0, 0.0  ;;  %v9202_v41 = vld [vmem:[#allocation8 + $0x35c] sm:$0xf]  ;;  %3722 = vmatpush.bf16.msra.mxu2 %v7870_v50 }
 0x42d   :  { %v11338_v54 = vadd.f32 %v3308_v5, %v3260_v32  ;;  %v8123_v32 = vld [vmem:[#allocation8 + $0x778] sm:$0xf0] }
 0x42f   :  { %3464 = vmatmul.bf16.gmra.mxu0 %v10149_v15  ;;  %3503 = vmatmul.bf16.gmra.mxu1 %v10143_v45 }
 0x430   :  { %3542 = vmatmul.bf16.gmra.mxu2 %v10147_v14  ;;  %v3227_v42 = vpop.f32.mrf.mxu3 }
 0x431   :  { %v3228_v39 = vadd.f32 %v3227_v42, %v11283_v10  ;;  %v9330_v10 = vld [vmem:[#allocation8 + $0x75c] sm:$0xf] }
 0x432   :  { %v8126_v0 = vor.u32 %v9330_v10, %v8123_v32  ;;  %v9186_v10 = vld [vmem:[#allocation8 + $0x2dc] sm:$0xf] }
 0x433   :  { %v3942_v33 = vmax.f32 %v3228_v39, 0.0  ;;  %v3347_v16 = vpop.f32.mrf.mxu2  ;;  %v9194_v39 = vld [vmem:[#allocation8 + $0x31c] sm:$0xf] }
 0x434   :  { %v11347_v63 = vadd.f32 %v3347_v16, %v11287_v18  ;;  %v11349_v44 = vpop.f32.mrf.mxu0  ;;  %v3310_v25 = vpop.f32.mrf.mxu1  ;;  %v7614_v18 = vor.u32 %v9202_v41, %v7611_v24  ;;  %3771 = vmatpush.bf16.msrb.mxu3 %v8126_v0  ;;  %v3265_v16 = vadd.f32 %v11310_v28, %v11231_v26  ;;  %v7547_v32 = vld [vmem:[#allocation8 + $0x2f8] sm:$0xf0]  ;;  %v3267_v24 = vadd.f32 %v11323_v12, %v11231_v26 }
 0x435   :  { %v11351_v35 = vadd.f32 %v3310_v25, %v3262_v23  ;;  %3581 = vmatmul.bf16.vlgmr.msra.gmra.mxu3 %v10156_v27  ;;  %v11354_v37 = vpack.c.bf16 %v3942_v33, %v3934_v47  ;;  %v7579_v23 = vld [vmem:[#allocation8 + $0x338] sm:$0xf0] }
 0x436   :  { %3673 = vmatpush.bf16.msra.mxu1 %v7614_v18  ;;  %v7582_v55 = vor.u32 %v9194_v39, %v7579_v23  ;;  %v7515_v0 = vld [vmem:[#allocation8 + $0x2b8] sm:$0xf0] }
 0x437   :  { %12931 = vst [vmem:[#allocation60_spill] sm:$0xff] %v11354_v37  ;;  %v9322_v12 = vld [vmem:[#allocation8 + $0x71c] sm:$0xf] }
 0x438   :  { %v3386_v5 = vpop.f32.mrf.mxu3 }
 0x439   :  { %v3387_v42 = vadd.f32 %v3386_v5, %v11295_v48  ;;  %v7550_v48 = vor.u32 %v9186_v10, %v7547_v32  ;;  %v7835_v10 = vld [vmem:[#allocation8 + $0x538] sm:$0xf0] }
 0x43a   :  { %3674 = vmatpush.bf16.msra.mxu1 %v7582_v55 }
 0x43b   :  { %v3349_v25 = vpop.f32.mrf.mxu2  ;;  %v3823_v18 = vmax.f32 %v3387_v42, 0.0  ;;  %v8091_v42 = vld [vmem:[#allocation8 + $0x738] sm:$0xf0] }
 0x43c   :  { %v11360_v38 = vadd.f32 %v3349_v25, %v11299_v56  ;;  %v11362_v47 = vpop.f32.mrf.mxu0  ;;  %v3313_v33 = vpop.f32.mrf.mxu1  ;;  %v9178_v56 = vld [vmem:[#allocation8 + $0x29c] sm:$0xf] }
 0x43d   :  { %v11364_v50 = vadd.f32 %v3313_v33, %v3265_v16  ;;  %v7518_v23 = vor.u32 %v9178_v56, %v7515_v0  ;;  %v9258_v33 = vld [vmem:[#allocation8 + $0x51c] sm:$0xf] }
 0x43e   :  { %3675 = vmatpush.bf16.msra.mxu1 %v7550_v48  ;;  %v7838_v48 = vor.u32 %v9258_v33, %v7835_v10  ;;  %v7483_v56 = vld [vmem:[#allocation8 + $0x278] sm:$0xf0] }
 0x43f   :  { %3469 = vmatmul.bf16.gmra.mxu0 %v10173_v1  ;;  %3508 = vmatmul.bf16.gmra.mxu1 %v10169_v62 }
 0x440   :  { %3547 = vmatmul.bf16.gmra.mxu2 %v12891_v29  ;;  %v3388_v28 = vpop.f32.mrf.mxu3 }
 0x441   :  { %v3389_v41 = vadd.f32 %v3388_v28, %v11308_v60  ;;  %v8094_v28 = vor.u32 %v9322_v12, %v8091_v42  ;;  %3723 = vmatpush.bf16.msra.mxu2 %v7838_v48  ;;  %v3272_v42 = vadd.f32 %v11349_v44, %v11231_v26 }
 0x442   :  { %3676 = vmatpush.bf16.msra.mxu1 %v7518_v23 }
 0x443   :  { %v3831_v5 = vmax.f32 %v3389_v41, 0.0  ;;  %v3352_v39 = vpop.f32.mrf.mxu2  ;;  %v9170_v41 = vld [vmem:[#allocation8 + $0x25c] sm:$0xf]  ;;  %3772 = vmatpush.bf16.msrb.mxu3 %v8094_v28 }
 0x444   :  { %v11373_v16 = vadd.f32 %v3352_v39, %v11312_v36  ;;  %v11375_v25 = vpop.f32.mrf.mxu0  ;;  %v3315_v55 = vpop.f32.mrf.mxu1  ;;  %v7486_v36 = vor.u32 %v9170_v41, %v7483_v56 }
 0x445   :  { %v11377_v32 = vpack.c.bf16 %v3831_v5, %v3823_v18  ;;  %v11379_v60 = vadd.f32 %v3315_v55, %v3267_v24  ;;  %3586 = vmatmul.bf16.gmra.mxu3 %v10180_v20  ;;  %v9162_v18 = vld [vmem:[#allocation8 + $0x21c] sm:$0xf]  ;;  %v3270_v24 = vadd.f32 %v11336_v4, %v11231_v26 }
 0x446   :  { %3677 = vmatpush.bf16.msra.mxu1 %v7486_v36  ;;  %v7451_v5 = vld [vmem:[#allocation8 + $0x238] sm:$0xf0] }
 0x447   :  { %12932 = vst [vmem:[#allocation61_spill] sm:$0xff] %v11377_v32  ;;  %v7454_v33 = vor.u32 %v9162_v18, %v7451_v5  ;;  %v9250_v18 = vld [vmem:[#allocation8 + $0x4dc] sm:$0xf] }
 0x448   :  { %v3391_v0 = vpop.f32.mrf.mxu3  ;;  %v7803_v5 = vld [vmem:[#allocation8 + $0x4f8] sm:$0xf0] }
 0x449   :  { %v3392_v39 = vadd.f32 %v3391_v0, %v11321_v40 }
 0x44a   :  { %3678 = vmatpush.bf16.msra.mxu1 %v7454_v33 }
 0x44b   :  { %v3354_v55 = vpop.f32.mrf.mxu2 }
 0x44c   :  { %v11386_v10 = vadd.f32 %v3354_v55, %v11325_v52  ;;  %v3318_v23 = vpop.f32.mrf.mxu1  ;;  %v11388_v12 = vpop.f32.mrf.mxu0  ;;  %v3839_v52 = vmax.f32 %v3392_v39, 0.0  ;;  %v8059_v55 = vld [vmem:[#allocation8 + $0x6f8] sm:$0xf0] }
 0x44d   :  { %v11390_v48 = vadd.f32 %v3318_v23, %v3270_v24  ;;  %v7806_v24 = vor.u32 %v9250_v18, %v7803_v5  ;;  %v3275_v23 = vadd.f32 %v11362_v47, %v11231_v26  ;;  %v7771_v47 = vld [vmem:[#allocation8 + $0x4b8] sm:$0xf0] }
 0x44f   :  { %3513 = vmatmul.bf16.gmra.mxu1 %v10188_v59  ;;  %3630 = vmatmul.bf16.vlgmr.msra.gmra.mxu0 %v10036_v58 }
 0x450   :  { %3552 = vmatmul.bf16.gmra.mxu2 %v10190_v61  ;;  %v3393_v40 = vpop.f32.mrf.mxu3 }
 0x451   :  { %v3394_v4 = vadd.f32 %v3393_v40, %v11334_v7  ;;  %v9314_v7 = vld [vmem:[#allocation8 + $0x6dc] sm:$0xf]  ;;  %3724 = vmatpush.bf16.msra.mxu2 %v7806_v24 }
 0x452   :  { %v8062_v44 = vor.u32 %v9314_v7, %v8059_v55 }
 0x453   :  { %v3847_v28 = vmax.f32 %v3394_v4, 0.0  ;;  %v3357_v41 = vpop.f32.mrf.mxu2 }
 0x454   :  { %v11399_v56 = vadd.f32 %v3357_v41, %v11338_v54  ;;  %v3320_v36 = vpop.f32.mrf.mxu1  ;;  %v11401_v0 = vpop.f32.mrf.mxu0  ;;  %3773 = vmatpush.bf16.msrb.mxu3 %v8062_v44 }
 0x455   :  { %v11403_v58 = vadd.f32 %v3320_v36, %v3272_v42  ;;  %3591 = vmatmul.bf16.gmra.mxu3 %v10199_v6  ;;  %v11406_v33 = vpack.c.bf16 %v3847_v28, %v3839_v52  ;;  %v9242_v28 = vld [vmem:[#allocation8 + $0x49c] sm:$0xf] }
 0x456   :  { %v7774_v7 = vor.u32 %v9242_v28, %v7771_v47  ;;  %v9226_v47 = vld [vmem:[#allocation8 + $0x41c] sm:$0xf] }
 0x457   :  { %12933 = vst [vmem:[#allocation62_spill] sm:$0xff] %v11406_v33 }
 0x458   :  { %v3396_v39 = vpop.f32.mrf.mxu3  ;;  %3725 = vmatpush.bf16.msra.mxu2 %v7774_v7 }
 0x459   :  { %v3397_v54 = vadd.f32 %v3396_v39, %v11347_v63 }
 0x45b   :  { %v3359_v40 = vpop.f32.mrf.mxu2  ;;  %v3855_v18 = vmax.f32 %v3397_v54, 0.0  ;;  %v11432_v54 = vld [vmem:[#allocation10] sm:$0xff] }
 0x45c   :  { %v11412_v4 = vadd.f32 %v3359_v40, %v11351_v35  ;;  %v3323_v42 = vpop.f32.mrf.mxu1  ;;  %v11414_v41 = vpop.f32.mrf.mxu0  ;;  %v3277_v35 = vadd.f32 %v11375_v25, %v11231_v26  ;;  %v9234_v26 = vld [vmem:[#allocation8 + $0x45c] sm:$0xf] }
 0x45d   :  { %v11416_v36 = vadd.f32 %v3323_v42, %v3275_v23  ;;  %v8027_v23 = vld [vmem:[#allocation8 + $0x6b8] sm:$0xf0] }
 0x45e   :  { %v7739_v25 = vld [vmem:[#allocation8 + $0x478] sm:$0xf0] }
 0x45f   :  { %3518 = vmatmul.bf16.gmra.mxu1 %v10208_v53  ;;  %3635 = vmatmul.bf16.gmra.mxu0 %v10044_v13 }
 0x460   :  { %3557 = vmatmul.bf16.gmra.mxu2 %v10210_v8  ;;  %v3398_v52 = vpop.f32.mrf.mxu3 }
 0x461   :  { %v3399_v63 = vadd.f32 %v3398_v52, %v11360_v38  ;;  %v9306_v38 = vld [vmem:[#allocation8 + $0x69c] sm:$0xf]  ;;  %v11435_v52 = vperm.slane %v11432_v54, 6 }
 0x462   :  { %v8030_v42 = vor.u32 %v9306_v38, %v8027_v23 }
 0x463   :  { %v3863_v5 = vmax.f32 %v3399_v63, 0.0  ;;  %v3362_v24 = vpop.f32.mrf.mxu2 }
 0x464   :  { %v11425_v55 = vadd.f32 %v3362_v24, %v11364_v50  ;;  %v3325_v44 = vpop.f32.mrf.mxu1  ;;  %v3442_v39 = vpop.f32.mrf.mxu0  ;;  %v7742_v50 = vor.u32 %v9234_v26, %v7739_v25  ;;  %3774 = vmatpush.bf16.msrb.mxu3 %v8030_v42 }
 0x465   :  { %v11427_v13 = vadd.f32 %v3325_v44, %v3277_v35  ;;  %3596 = vmatmul.bf16.gmra.mxu3 %v10219_v17  ;;  %v11430_v40 = vpack.c.bf16 %v3863_v5, %v3855_v18  ;;  %v7707_v35 = vld [vmem:[#allocation8 + $0x438] sm:$0xf0]  ;;  %v3436_v18 = vadd.f32 %v11388_v12, %v11435_v52  ;;  %v3438_v12 = vadd.f32 %v11401_v0, %v11435_v52 }
 0x466   :  { %3726 = vmatpush.bf16.msra.mxu2 %v7742_v50  ;;  %v7710_v24 = vor.u32 %v9226_v47, %v7707_v35 }
 0x467   :  { %12934 = vst [vmem:[#allocation63_spill] sm:$0xff] %v11430_v40 }
 0x468   :  { %v3401_v63 = vpop.f32.mrf.mxu3 }
 0x469   :  { %v3402_v28 = vadd.f32 %v3401_v63, %v11373_v16 }
 0x46a   :  { %3727 = vmatpush.bf16.msra.mxu2 %v7710_v24 }
 0x46b   :  { %v3364_v5 = vpop.f32.mrf.mxu2  ;;  %v3871_v26 = vmax.f32 %v3402_v28, 0.0  ;;  %v3441_v28 = vadd.f32 %v11414_v41, %v11435_v52  ;;  %v3443_v41 = vadd.f32 %v3442_v39, %v11435_v52 }
 0x46c   :  { %v11441_v7 = vadd.f32 %v3364_v5, %v11379_v60  ;;  %v3445_v44 = vpop.f32.mrf.mxu0  ;;  %v3484_v38 = vpop.f32.mrf.mxu1 }
 0x46d   :  { %v11443_v23 = vadd.f32 %v3484_v38, %v3436_v18 }
 0x46f   :  { %3640 = vmatmul.bf16.gmra.mxu0 %v10055_v49  ;;  %3679 = vmatmul.bf16.vlgmr.msra.gmra.mxu1 %v10057_v51  ;;  %v9298_v49 = vld [vmem:[#allocation8 + $0x65c] sm:$0xf] }
 0x470   :  { %3562 = vmatmul.bf16.gmra.mxu2 %v10233_v43  ;;  %v3403_v16 = vpop.f32.mrf.mxu3  ;;  %v7995_v51 = vld [vmem:[#allocation8 + $0x678] sm:$0xf0] }
 0x471   :  { %v3404_v42 = vadd.f32 %v3403_v16, %v11386_v10  ;;  %v7998_v10 = vor.u32 %v9298_v49, %v7995_v51 }
 0x473   :  { %v3879_v60 = vmax.f32 %v3404_v42, 0.0  ;;  %v3367_v25 = vpop.f32.mrf.mxu2  ;;  %3775 = vmatpush.bf16.msrb.mxu3 %v7998_v10 }
 0x474   :  { %v11452_v50 = vadd.f32 %v3367_v25, %v11390_v48  ;;  %v3447_v63 = vpop.f32.mrf.mxu0  ;;  %v3486_v47 = vpop.f32.mrf.mxu1 }
 0x475   :  { %v11454_v35 = vadd.f32 %v3486_v47, %v3438_v12  ;;  %3601 = vmatmul.bf16.gmra.mxu3 %v10244_v34  ;;  %v11457_v18 = vpack.c.bf16 %v3879_v60, %v3871_v26 }
 0x477   :  { %12935 = vst [vmem:[#allocation64_spill] sm:$0xff] %v11457_v18 }
 0x478   :  { %v3406_v5 = vpop.f32.mrf.mxu3 }
 0x479   :  { %v3407_v0 = vadd.f32 %v3406_v5, %v11399_v56 }
 0x47b   :  { %v3369_v48 = vpop.f32.mrf.mxu2  ;;  %v3887_v26 = vmax.f32 %v3407_v0, 0.0  ;;  %v3446_v0 = vadd.f32 %v3445_v44, %v11435_v52 }
 0x47c   :  { %v11463_v24 = vadd.f32 %v3369_v48, %v11403_v58  ;;  %v11465_v38 = vpop.f32.mrf.mxu0  ;;  %v3489_v16 = vpop.f32.mrf.mxu1 }
 0x47d   :  { %v11467_v42 = vadd.f32 %v3489_v16, %v3441_v28 }
 0x47f   :  { %3645 = vmatmul.bf16.gmra.mxu0 %v10069_v2  ;;  %3684 = vmatmul.bf16.gmra.mxu1 %v10071_v3  ;;  %v9290_v2 = vld [vmem:[#allocation8 + $0x61c] sm:$0xf] }
 0x480   :  { %3567 = vmatmul.bf16.gmra.mxu2 %v10253_v57  ;;  %v3408_v12 = vpop.f32.mrf.mxu3  ;;  %v7963_v3 = vld [vmem:[#allocation8 + $0x638] sm:$0xf0] }
 0x481   :  { %v3409_v56 = vadd.f32 %v3408_v12, %v11412_v4  ;;  %v7966_v4 = vor.u32 %v9290_v2, %v7963_v3  ;;  %v3448_v2 = vadd.f32 %v3447_v63, %v11435_v52  ;;  %v9445_v63 = vld [vmem:[#allocation11 + $0x2f0] sm:$0xf0] }
 0x483   :  { %v3895_v60 = vmax.f32 %v3409_v56, 0.0  ;;  %v3372_v58 = vpop.f32.mrf.mxu2  ;;  %3776 = vmatpush.bf16.msrb.mxu3 %v7966_v4  ;;  %v8277_v56 = vld [vmem:[#allocation11 + $0xa8] sm:$0xf] }
 0x484   :  { %v11475_v25 = vadd.f32 %v3372_v58, %v11416_v36  ;;  %v11477_v47 = vpop.f32.mrf.mxu0  ;;  %v3491_v49 = vpop.f32.mrf.mxu1  ;;  %v12937_v58 = vld [vmem:[#allocation22_spill] sm:$0xff] }
 0x485   :  { %v11479_v51 = vadd.f32 %v3491_v49, %v3443_v41  ;;  %3606 = vmatmul.bf16.gmra.mxu3 %v10266_v46  ;;  %v11482_v10 = vpack.c.bf16 %v3895_v60, %v3887_v26  ;;  %v9373_v41 = vld [vmem:[#allocation11 + $0xb0] sm:$0xf0]  ;;  %v12936_v26 = vld [vmem:[#allocation20_spill] sm:$0xff]  ;;  %v9370_v49 = vld [vmem:[#allocation11 + $0x98] sm:$0xf0] }
 0x486   :  { %v8278_v60 = vor.u32 %v9373_v41, %v8277_v56  ;;  %v8469_v56 = vld [vmem:[#allocation11 + $0x228] sm:$0xf]  ;;  %v9421_v41 = vld [vmem:[#allocation11 + $0x230] sm:$0xf0] }
 0x488   :  { %v3411_v5 = vpop.f32.mrf.mxu3  ;;  %5298 = vmatpush.bf16.msrb.mxu0 %v8278_v60  ;;  %v8565_v60 = vld [vmem:[#allocation11 + $0x2e8] sm:$0xf] }
 0x489   :  { %v3412_v39 = vadd.f32 %v3411_v5, %v11425_v55 }
 0x48b   :  { %v3374_v36 = vpop.f32.mrf.mxu2 }
 0x48c   :  { %v11487_v28 = vadd.f32 %v3374_v36, %v11427_v13  ;;  %v11489_v48 = vpop.f32.mrf.mxu0  ;;  %v3494_v16 = vpop.f32.mrf.mxu1  ;;  %v8265_v13 = vld [vmem:[#allocation11 + $0x90] sm:$0xf] }
 0x48d   :  { %v11491_v12 = vadd.f32 %v3494_v16, %v3446_v0  ;;  %v8266_v5 = vor.u32 %v9370_v49, %v8265_v13  ;;  %v3903_v0 = vmax.f32 %v3412_v39, 0.0  ;;  %v8253_v39 = vld [vmem:[#allocation11 + $0x78] sm:$0xf]  ;;  %v9367_v13 = vld [vmem:[#allocation11 + $0x80] sm:$0xf0] }
 0x48f   :  { %3650 = vmatmul.bf16.gmra.mxu0 %v12927_v11  ;;  %3689 = vmatmul.bf16.gmra.mxu1 %v12936_v26 }
 0x490   :  { %3728 = vmatmul.bf16.vlgmr.msra.gmra.mxu2 %v12937_v58  ;;  %v3413_v55 = vpop.f32.mrf.mxu3  ;;  %5299 = vmatpush.bf16.msrb.mxu0 %v8266_v5  ;;  %v8373_v58 = vld [vmem:[#allocation11 + $0x168] sm:$0xf]  ;;  %v9364_v5 = vld [vmem:[#allocation11 + $0x68] sm:$0xf0] }
 0x491   :  { %v3414_v44 = vadd.f32 %v3413_v55, %v11441_v7  ;;  %v8470_v7 = vor.u32 %v9421_v41, %v8469_v56  ;;  %v8566_v55 = vor.u32 %v9445_v63, %v8565_v60  ;;  %v3451_v56 = vadd.f32 %v11465_v38, %v11435_v52 }
 0x493   :  { %v3911_v3 = vmax.f32 %v3414_v44, 0.0  ;;  %v3533_v4 = vpop.f32.mrf.mxu2  ;;  %v9397_v44 = vld [vmem:[#allocation11 + $0x170] sm:$0xf0]  ;;  %5396 = vmatpush.bf16.msrb.mxu2 %v8470_v7  ;;  %5445 = vmatpush.bf16.msra.mxu3 %v8566_v55 }
 0x494   :  { %v11499_v36 = vadd.f32 %v3533_v4, %v11443_v23  ;;  %v11501_v11 = vpop.f32.mrf.mxu0  ;;  %v3496_v16 = vpop.f32.mrf.mxu1  ;;  %v8374_v49 = vor.u32 %v9397_v44, %v8373_v58  ;;  %v8254_v4 = vor.u32 %v9367_v13, %v8253_v39  ;;  %v8229_v58 = vld [vmem:[#allocation11 + $0x48] sm:$0xf]  ;;  %v9358_v44 = vld [vmem:[#allocation11 + $0x38] sm:$0xf0]  ;;  %v3453_v39 = vadd.f32 %v11477_v47, %v11435_v52 }
 0x495   :  { %v11503_v26 = vadd.f32 %v3496_v16, %v3448_v2  ;;  %3611 = vmatmul.bf16.gmra.mxu3 %v10284_v30  ;;  %v11506_v23 = vpack.c.bf16 %v3911_v3, %v3903_v0  ;;  %v8241_v16 = vld [vmem:[#allocation11 + $0x60] sm:$0xf] }
 0x496   :  { %5347 = vmatpush.bf16.msrb.mxu1 %v8374_v49  ;;  %5300 = vmatpush.bf16.msrb.mxu0 %v8254_v4  ;;  %v8242_v60 = vor.u32 %v9364_v5, %v8241_v16 }
 0x497   :  { %12938 = vst [vmem:[#allocation20_spill] sm:$0xff] %v11506_v23 }
 0x498   :  { %v3416_v37 = vpop.f32.mrf.mxu3 }
 0x499   :  { %v3417_v2 = vadd.f32 %v3416_v37, %v11452_v50  ;;  %v9361_v37 = vld [vmem:[#allocation11 + $0x50] sm:$0xf0] }
 0x49a   :  { %5301 = vmatpush.bf16.msrb.mxu0 %v8242_v60  ;;  %v8230_v50 = vor.u32 %v9361_v37, %v8229_v58  ;;  %v9394_v58 = vld [vmem:[#allocation11 + $0x158] sm:$0xf0] }
 0x49b   :  { %v3535_v41 = vpop.f32.mrf.mxu2  ;;  %v3919_v13 = vmax.f32 %v3417_v2, 0.0  ;;  %v9442_v2 = vld [vmem:[#allocation11 + $0x2d8] sm:$0xf0] }
 0x49c   :  { %v11512_v63 = vadd.f32 %v3535_v41, %v11454_v35  ;;  %v11514_v3 = vpop.f32.mrf.mxu0  ;;  %v3499_v0 = vpop.f32.mrf.mxu1  ;;  %v8217_v35 = vld [vmem:[#allocation11 + $0x30] sm:$0xf] }
 0x49d   :  { %v11516_v7 = vadd.f32 %v3499_v0, %v3451_v56  ;;  %v8218_v16 = vor.u32 %v9358_v44, %v8217_v35  ;;  %v9418_v56 = vld [vmem:[#allocation11 + $0x218] sm:$0xf0]  ;;  %v8553_v41 = vld [vmem:[#allocation11 + $0x2d0] sm:$0xf] }
 0x49e   :  { %5302 = vmatpush.bf16.msrb.mxu0 %v8230_v50  ;;  %v8361_v0 = vld [vmem:[#allocation11 + $0x150] sm:$0xf]  ;;  %v8554_v37 = vor.u32 %v9442_v2, %v8553_v41  ;;  %v8205_v50 = vld [vmem:[#allocation11 + $0x18] sm:$0xf] }
 0x49f   :  { %3655 = vmatmul.bf16.gmra.mxu0 %v10118_v21  ;;  %3694 = vmatmul.bf16.gmra.mxu1 %v10116_v19 }
 0x4a0   :  { %3733 = vmatmul.bf16.gmra.mxu2 %v10120_v22  ;;  %v3418_v38 = vpop.f32.mrf.mxu3  ;;  %5446 = vmatpush.bf16.msra.mxu3 %v8554_v37 }
 0x4a1   :  { %v3419_v55 = vadd.f32 %v3418_v38, %v11463_v24  ;;  %v8457_v24 = vld [vmem:[#allocation11 + $0x210] sm:$0xf]  ;;  %v9355_v38 = vld [vmem:[#allocation11 + $0x20] sm:$0xf0] }
 0x4a2   :  { %5303 = vmatpush.bf16.msrb.mxu0 %v8218_v16  ;;  %v8458_v47 = vor.u32 %v9418_v56, %v8457_v24  ;;  %v8206_v35 = vor.u32 %v9355_v38, %v8205_v50  ;;  %v9415_v50 = vld [vmem:[#allocation11 + $0x200] sm:$0xf0] }
 0x4a3   :  { %v3927_v49 = vmax.f32 %v3419_v55, 0.0  ;;  %v3538_v4 = vpop.f32.mrf.mxu2  ;;  %v9439_v38 = vld [vmem:[#allocation11 + $0x2c0] sm:$0xf0] }
 0x4a4   :  { %v11525_v21 = vadd.f32 %v3538_v4, %v11467_v42  ;;  %v11527_v19 = vpop.f32.mrf.mxu0  ;;  %v3501_v5 = vpop.f32.mrf.mxu1  ;;  %v8362_v42 = vor.u32 %v9394_v58, %v8361_v0  ;;  %5397 = vmatpush.bf16.msrb.mxu2 %v8458_v47  ;;  %v9352_v4 = vld [vmem:[#allocation11 + $0x8] sm:$0xf0]  ;;  %v3458_v47 = vadd.f32 %v11501_v11, %v11435_v52 }
 0x4a5   :  { %v11529_v22 = vadd.f32 %v3501_v5, %v3453_v39  ;;  %3616 = vmatmul.bf16.gmra.mxu3 %v10310_v9  ;;  %v11532_v60 = vpack.c.bf16 %v3927_v49, %v3919_v13  ;;  %v8193_v39 = vld [vmem:[#allocation11] sm:$0xf]  ;;  %v3456_v13 = vadd.f32 %v11489_v48, %v11435_v52 }
 0x4a6   :  { %5348 = vmatpush.bf16.msrb.mxu1 %v8362_v42  ;;  %5304 = vmatpush.bf16.msrb.mxu0 %v8206_v35  ;;  %v8194_v16 = vor.u32 %v9352_v4, %v8193_v39 }
 0x4a8   :  { %v3421_v55 = vpop.f32.mrf.mxu3 }
 0x4a9   :  { %v3422_v44 = vadd.f32 %v3421_v55, %v11475_v25  ;;  %v8349_v55 = vld [vmem:[#allocation11 + $0x138] sm:$0xf] }
 0x4aa   :  { %5305 = vmatpush.bf16.msrb.mxu0 %v8194_v16 }
 0x4ab   :  { %v3540_v49 = vpop.f32.mrf.mxu2 }
 0x4ac   :  { %v11538_v5 = vadd.f32 %v3540_v49, %v11479_v51  ;;  %v11540_v24 = vpop.f32.mrf.mxu0  ;;  %v3504_v56 = vpop.f32.mrf.mxu1  ;;  %v3935_v51 = vmax.f32 %v3422_v44, 0.0  ;;  %v9391_v44 = vld [vmem:[#allocation11 + $0x140] sm:$0xf0]  ;;  %v9388_v49 = vld [vmem:[#allocation11 + $0x128] sm:$0xf0] }
 0x4ad   :  { %v11542_v41 = vadd.f32 %v3504_v56, %v3456_v13  ;;  %v8337_v13 = vld [vmem:[#allocation11 + $0x120] sm:$0xf] }
 0x4ae   :  { %v8338_v56 = vor.u32 %v9388_v49, %v8337_v13  ;;  %v8301_v49 = vld [vmem:[#allocation11 + $0xd8] sm:$0xf] }
 0x4af   :  { %3660 = vmatmul.bf16.gmra.mxu0 %v10149_v15  ;;  %3699 = vmatmul.bf16.gmra.mxu1 %v10143_v45  ;;  %v8445_v15 = vld [vmem:[#allocation11 + $0x1f8] sm:$0xf] }
 0x4b0   :  { %3738 = vmatmul.bf16.gmra.mxu2 %v10147_v14  ;;  %v3423_v25 = vpop.f32.mrf.mxu3  ;;  %v8446_v14 = vor.u32 %v9415_v50, %v8445_v15  ;;  %v9382_v15 = vld [vmem:[#allocation11 + $0xf8] sm:$0xf0]  ;;  %v3463_v50 = vadd.f32 %v11527_v19, %v11435_v52  ;;  %v8529_v19 = vld [vmem:[#allocation11 + $0x2a0] sm:$0xf] }
 0x4b1   :  { %v3424_v48 = vadd.f32 %v3423_v25, %v11487_v28  ;;  %v8541_v28 = vld [vmem:[#allocation11 + $0x2b8] sm:$0xf] }
 0x4b2   :  { %v8542_v35 = vor.u32 %v9439_v38, %v8541_v28  ;;  %5398 = vmatpush.bf16.msrb.mxu2 %v8446_v14 }
 0x4b3   :  { %v3943_v2 = vmax.f32 %v3424_v48, 0.0  ;;  %v3543_v0 = vpop.f32.mrf.mxu2 }
 0x4b4   :  { %v11551_v58 = vadd.f32 %v3543_v0, %v11491_v12  ;;  %v11553_v37 = vpop.f32.mrf.mxu0  ;;  %v3506_v42 = vpop.f32.mrf.mxu1  ;;  %v8350_v12 = vor.u32 %v9391_v44, %v8349_v55  ;;  %5447 = vmatpush.bf16.msra.mxu3 %v8542_v35  ;;  %v9385_v0 = vld [vmem:[#allocation11 + $0x110] sm:$0xf0]  ;;  %v9412_v44 = vld [vmem:[#allocation11 + $0x1e8] sm:$0xf0] }
 0x4b5   :  { %v11555_v45 = vadd.f32 %v3506_v42, %v3458_v47  ;;  %3777 = vmatmul.bf16.vlgmr.msrb.gmra.mxu3 %v10156_v27  ;;  %v11558_v11 = vpack.c.bf16 %v3943_v2, %v3935_v51  ;;  %v3461_v27 = vadd.f32 %v11514_v3, %v11435_v52  ;;  %v8325_v2 = vld [vmem:[#allocation11 + $0x108] sm:$0xf] }
 0x4b6   :  { %5349 = vmatpush.bf16.msrb.mxu1 %v8350_v12 }
 0x4b8   :  { %v3582_v39 = vpop.f32.mrf.mxu3 }
 0x4b9   :  { %v3583_v4 = vadd.f32 %v3582_v39, %v11499_v36  ;;  %v8326_v36 = vor.u32 %v9385_v0, %v8325_v2  ;;  %v9376_v2 = vld [vmem:[#allocation11 + $0xc8] sm:$0xf0]  ;;  %v3466_v0 = vadd.f32 %v11540_v24, %v11435_v52 }
 0x4ba   :  { %5350 = vmatpush.bf16.msrb.mxu1 %v8338_v56 }
 0x4bb   :  { %v3545_v16 = vpop.f32.mrf.mxu2  ;;  %v3824_v14 = vmax.f32 %v3583_v4, 0.0  ;;  %v9436_v4 = vld [vmem:[#allocation11 + $0x2a8] sm:$0xf0] }
 0x4bc   :  { %v11564_v25 = vadd.f32 %v3545_v16, %v11503_v26  ;;  %v11566_v48 = vpop.f32.mrf.mxu0  ;;  %v3509_v47 = vpop.f32.mrf.mxu1  ;;  %v8313_v26 = vld [vmem:[#allocation11 + $0xf0] sm:$0xf]  ;;  %v8530_v13 = vor.u32 %v9436_v4, %v8529_v19  ;;  %v9433_v19 = vld [vmem:[#allocation11 + $0x290] sm:$0xf0] }
 0x4bd   :  { %v11568_v51 = vadd.f32 %v3509_v47, %v3461_v27  ;;  %v8314_v55 = vor.u32 %v9382_v15, %v8313_v26  ;;  %v9379_v27 = vld [vmem:[#allocation11 + $0xe0] sm:$0xf0]  ;;  %v8289_v47 = vld [vmem:[#allocation11 + $0xc0] sm:$0xf] }
 0x4be   :  { %5351 = vmatpush.bf16.msrb.mxu1 %v8326_v36  ;;  %5448 = vmatpush.bf16.msra.mxu3 %v8530_v13  ;;  %v8290_v36 = vor.u32 %v9376_v2, %v8289_v47  ;;  %v12942_v47 = vld [vmem:[#allocation25_spill] sm:$0xff] }
 0x4bf   :  { %3665 = vmatmul.bf16.gmra.mxu0 %v10173_v1  ;;  %3704 = vmatmul.bf16.gmra.mxu1 %v10169_v62 }
 0x4c0   :  { %3743 = vmatmul.bf16.gmra.mxu2 %v12891_v29  ;;  %v3584_v3 = vpop.f32.mrf.mxu3  ;;  %v8433_v29 = vld [vmem:[#allocation11 + $0x1e0] sm:$0xf] }
 0x4c1   :  { %v3585_v42 = vadd.f32 %v3584_v3, %v11512_v63  ;;  %v8434_v39 = vor.u32 %v9412_v44, %v8433_v29  ;;  %v9409_v44 = vld [vmem:[#allocation11 + $0x1d0] sm:$0xf0] }
 0x4c2   :  { %5352 = vmatpush.bf16.msrb.mxu1 %v8314_v55 }
 0x4c3   :  { %v3832_v28 = vmax.f32 %v3585_v42, 0.0  ;;  %v3548_v38 = vpop.f32.mrf.mxu2  ;;  %5399 = vmatpush.bf16.msrb.mxu2 %v8434_v39 }
 0x4c4   :  { %v11577_v1 = vadd.f32 %v3548_v38, %v11516_v7  ;;  %v11579_v62 = vpop.f32.mrf.mxu0  ;;  %v3511_v35 = vpop.f32.mrf.mxu1  ;;  %v8302_v7 = vor.u32 %v9379_v27, %v8301_v49  ;;  %v3471_v49 = vadd.f32 %v11566_v48, %v11435_v52  ;;  %v9406_v48 = vld [vmem:[#allocation11 + $0x1b8] sm:$0xf0] }
 0x4c5   :  { %v11581_v12 = vpack.c.bf16 %v3832_v28, %v3824_v14  ;;  %v11583_v63 = vadd.f32 %v3511_v35, %v3463_v50  ;;  %3782 = vmatmul.bf16.gmra.mxu3 %v10180_v20  ;;  %v3468_v14 = vadd.f32 %v11553_v37, %v11435_v52 }
 0x4c6   :  { %5353 = vmatpush.bf16.msrb.mxu1 %v8302_v7 }
 0x4c7   :  { %12939 = vst [vmem:[#allocation22_spill] sm:$0xff] %v11581_v12 }
 0x4c8   :  { %v3587_v16 = vpop.f32.mrf.mxu3 }
 0x4c9   :  { %v3588_v56 = vadd.f32 %v3587_v16, %v11525_v21  ;;  %v12940_v21 = vld [vmem:[#allocation24_spill] sm:$0xff] }
 0x4ca   :  { %5354 = vmatpush.bf16.msrb.mxu1 %v8290_v36 }
 0x4cb   :  { %v3550_v20 = vpop.f32.mrf.mxu2 }
 0x4cc   :  { %v11590_v3 = vadd.f32 %v3550_v20, %v11529_v22  ;;  %v3514_v42 = vpop.f32.mrf.mxu1  ;;  %v11592_v26 = vpop.f32.mrf.mxu0  ;;  %v3840_v22 = vmax.f32 %v3588_v56, 0.0 }
 0x4cd   :  { %v11594_v15 = vadd.f32 %v3514_v42, %v3466_v0  ;;  %v8409_v0 = vld [vmem:[#allocation11 + $0x1b0] sm:$0xf] }
 0x4cf   :  { %3709 = vmatmul.bf16.gmra.mxu1 %v10188_v59  ;;  %5306 = vmatmul.bf16.vlgmr.msrb.gmra.mxu0 %v12940_v21  ;;  %v8421_v59 = vld [vmem:[#allocation11 + $0x1c8] sm:$0xf] }
 0x4d0   :  { %3748 = vmatmul.bf16.gmra.mxu2 %v10190_v61  ;;  %v3589_v50 = vpop.f32.mrf.mxu3  ;;  %v8422_v61 = vor.u32 %v9409_v44, %v8421_v59 }
 0x4d1   :  { %v3590_v24 = vadd.f32 %v3589_v50, %v11538_v5  ;;  %v8517_v5 = vld [vmem:[#allocation11 + $0x288] sm:$0xf]  ;;  %v8410_v50 = vor.u32 %v9406_v48, %v8409_v0 }
 0x4d2   :  { %v8518_v37 = vor.u32 %v9433_v19, %v8517_v5  ;;  %5400 = vmatpush.bf16.msrb.mxu2 %v8422_v61  ;;  %v8385_v61 = vld [vmem:[#allocation11 + $0x180] sm:$0xf]  ;;  %v9400_v5 = vld [vmem:[#allocation11 + $0x188] sm:$0xf0] }
 0x4d3   :  { %v3848_v28 = vmax.f32 %v3590_v24, 0.0  ;;  %v3553_v38 = vpop.f32.mrf.mxu2 }
 0x4d4   :  { %v11603_v55 = vadd.f32 %v3553_v38, %v11542_v41  ;;  %v3516_v35 = vpop.f32.mrf.mxu1  ;;  %v11605_v29 = vpop.f32.mrf.mxu0  ;;  %5449 = vmatpush.bf16.msra.mxu3 %v8518_v37  ;;  %v8386_v37 = vor.u32 %v9400_v5, %v8385_v61 }
 0x4d5   :  { %v11607_v39 = vadd.f32 %v3516_v35, %v3468_v14  ;;  %3787 = vmatmul.bf16.gmra.mxu3 %v10199_v6  ;;  %v11610_v4 = vpack.c.bf16 %v3848_v28, %v3840_v22  ;;  %v11637_v35 = vperm.slane %v11432_v54, 7 }
 0x4d6   :  { %5401 = vmatpush.bf16.msrb.mxu2 %v8410_v50 }
 0x4d7   :  { %12941 = vst [vmem:[#allocation24_spill] sm:$0xff] %v11610_v4 }
 0x4d8   :  { %v3592_v13 = vpop.f32.mrf.mxu3 }
 0x4d9   :  { %v3593_v41 = vadd.f32 %v3592_v13, %v11551_v58 }
 0x4db   :  { %v3555_v27 = vpop.f32.mrf.mxu2  ;;  %v3856_v20 = vmax.f32 %v3593_v41, 0.0 }
 0x4dc   :  { %v11616_v7 = vadd.f32 %v3555_v27, %v11555_v45  ;;  %v3519_v16 = vpop.f32.mrf.mxu1  ;;  %v11618_v6 = vpop.f32.mrf.mxu0  ;;  %v3473_v45 = vadd.f32 %v11579_v62, %v11435_v52  ;;  %v8397_v52 = vld [vmem:[#allocation11 + $0x198] sm:$0xf]  ;;  %v9403_v62 = vld [vmem:[#allocation11 + $0x1a0] sm:$0xf0]  ;;  %v12943_v27 = vld [vmem:[#allocation26_spill] sm:$0xff] }
 0x4dd   :  { %v11620_v56 = vadd.f32 %v3519_v16, %v3471_v49  ;;  %v8398_v59 = vor.u32 %v9403_v62, %v8397_v52  ;;  %v12944_v16 = vld [vmem:[#allocation23_spill] sm:$0xff] }
 0x4de   :  { %v12946_v62 = vld [vmem:[#allocation27_spill] sm:$0xff] }
 0x4df   :  { %3714 = vmatmul.bf16.gmra.mxu1 %v10208_v53  ;;  %5311 = vmatmul.bf16.gmra.mxu0 %v12942_v47 }
 0x4e0   :  { %3753 = vmatmul.bf16.gmra.mxu2 %v10210_v8  ;;  %v3594_v2 = vpop.f32.mrf.mxu3  ;;  %v8505_v8 = vld [vmem:[#allocation11 + $0x270] sm:$0xf] }
 0x4e1   :  { %v3595_v58 = vadd.f32 %v3594_v2, %v11564_v25  ;;  %v9430_v25 = vld [vmem:[#allocation11 + $0x278] sm:$0xf0]  ;;  %5402 = vmatpush.bf16.msrb.mxu2 %v8398_v59  ;;  %v12947_v59 = vld [vmem:[#allocation32_spill] sm:$0xff] }
 0x4e2   :  { %v8506_v38 = vor.u32 %v9430_v25, %v8505_v8  ;;  %v3637_v8 = vadd.f32 %v11618_v6, %v11637_v35 }
 0x4e3   :  { %v3864_v36 = vmax.f32 %v3595_v58, 0.0  ;;  %v3558_v42 = vpop.f32.mrf.mxu2 }
 0x4e4   :  { %v11629_v24 = vadd.f32 %v3558_v42, %v11568_v51  ;;  %v3521_v53 = vpop.f32.mrf.mxu1  ;;  %v3638_v14 = vpop.f32.mrf.mxu0  ;;  %5450 = vmatpush.bf16.msra.mxu3 %v8506_v38  ;;  %v8493_v42 = vld [vmem:[#allocation11 + $0x258] sm:$0xf] }
 0x4e5   :  { %v11631_v22 = vadd.f32 %v3521_v53, %v3473_v45  ;;  %3792 = vmatmul.bf16.gmra.mxu3 %v10219_v17  ;;  %v11634_v28 = vpack.c.bf16 %v3864_v36, %v3856_v20  ;;  %v3632_v17 = vadd.f32 %v11592_v26, %v11637_v35  ;;  %5403 = vmatpush.bf16.msrb.mxu2 %v8386_v37 }
 0x4e6   :  { %v3634_v26 = vadd.f32 %v11605_v29, %v11637_v35  ;;  %v3639_v6 = vadd.f32 %v3638_v14, %v11637_v35 }
 0x4e8   :  { %v3597_v51 = vpop.f32.mrf.mxu3 }
 0x4e9   :  { %v3598_v44 = vadd.f32 %v3597_v51, %v11577_v1 }
 0x4eb   :  { %v3560_v19 = vpop.f32.mrf.mxu2  ;;  %v3872_v58 = vmax.f32 %v3598_v44, 0.0 }
 0x4ec   :  { %v11643_v13 = vadd.f32 %v3560_v19, %v11583_v63  ;;  %v3641_v41 = vpop.f32.mrf.mxu0  ;;  %v3680_v49 = vpop.f32.mrf.mxu1 }
 0x4ed   :  { %v11645_v54 = vadd.f32 %v3680_v49, %v3632_v17  ;;  %v8481_v49 = vld [vmem:[#allocation11 + $0x240] sm:$0xf] }
 0x4ef   :  { %5316 = vmatmul.bf16.gmra.mxu0 %v12943_v27  ;;  %5355 = vmatmul.bf16.vlgmr.msrb.gmra.mxu1 %v12944_v16 }
 0x4f0   :  { %3758 = vmatmul.bf16.gmra.mxu2 %v10233_v43  ;;  %v3599_v1 = vpop.f32.mrf.mxu3  ;;  %v9427_v43 = vld [vmem:[#allocation11 + $0x260] sm:$0xf0] }
 0x4f1   :  { %v3600_v2 = vadd.f32 %v3599_v1, %v11590_v3  ;;  %v8494_v3 = vor.u32 %v9427_v43, %v8493_v42  ;;  %v9469_v42 = vld [vmem:[#allocation11 + $0x3b0] sm:$0xf0]  ;;  %v12948_v43 = vld [vmem:[#allocation28_spill] sm:$0xff] }
 0x4f3   :  { %v3880_v63 = vmax.f32 %v3600_v2, 0.0  ;;  %v3563_v0 = vpop.f32.mrf.mxu2  ;;  %5451 = vmatpush.bf16.msra.mxu3 %v8494_v3  ;;  %v12949_v3 = vld [vmem:[#allocation33_spill] sm:$0xff] }
 0x4f4   :  { %v11654_v48 = vadd.f32 %v3563_v0, %v11594_v15  ;;  %v3643_v45 = vpop.f32.mrf.mxu0  ;;  %v3682_v20 = vpop.f32.mrf.mxu1 }
 0x4f5   :  { %v11656_v36 = vadd.f32 %v3682_v20, %v3634_v26  ;;  %3797 = vmatmul.bf16.gmra.mxu3 %v10244_v34  ;;  %v11659_v50 = vpack.c.bf16 %v3880_v63, %v3872_v58  ;;  %v3642_v26 = vadd.f32 %v3641_v41, %v11637_v35 }
 0x4f7   :  { %12945 = vst [vmem:[#allocation25_spill] sm:$0xff] %v11659_v50 }
 0x4f8   :  { %v3602_v53 = vpop.f32.mrf.mxu3 }
 0x4f9   :  { %v3603_v29 = vadd.f32 %v3602_v53, %v11603_v55 }
 0x4fb   :  { %v3565_v15 = vpop.f32.mrf.mxu2  ;;  %v3888_v44 = vmax.f32 %v3603_v29, 0.0  ;;  %v12950_v29 = vld [vmem:[#allocation39_spill] sm:$0xff] }
 0x4fc   :  { %v11665_v25 = vadd.f32 %v3565_v15, %v11607_v39  ;;  %v11667_v38 = vpop.f32.mrf.mxu0  ;;  %v3685_v52 = vpop.f32.mrf.mxu1  ;;  %v3644_v15 = vadd.f32 %v3643_v45, %v11637_v35  ;;  %v9541_v45 = vld [vmem:[#allocation11 + $0x5f0] sm:$0xf0] }
 0x4fd   :  { %v11669_v34 = vadd.f32 %v3685_v52, %v3637_v8  ;;  %v9466_v8 = vld [vmem:[#allocation11 + $0x398] sm:$0xf0] }
 0x4ff   :  { %5321 = vmatmul.bf16.gmra.mxu0 %v12946_v62  ;;  %5360 = vmatmul.bf16.gmra.mxu1 %v12947_v59 }
 0x500   :  { %3763 = vmatmul.bf16.gmra.mxu2 %v10253_v57  ;;  %v3604_v51 = vpop.f32.mrf.mxu3  ;;  %v9424_v57 = vld [vmem:[#allocation11 + $0x248] sm:$0xf0] }
 0x501   :  { %v3605_v55 = vadd.f32 %v3604_v51, %v11616_v7  ;;  %v8482_v7 = vor.u32 %v9424_v57, %v8481_v49  ;;  %v9517_v49 = vld [vmem:[#allocation11 + $0x530] sm:$0xf0] }
 0x503   :  { %v3896_v61 = vmax.f32 %v3605_v55, 0.0  ;;  %v3568_v39 = vpop.f32.mrf.mxu2  ;;  %5452 = vmatpush.bf16.msra.mxu3 %v8482_v7  ;;  %v8949_v7 = vld [vmem:[#allocation11 + $0x5e8] sm:$0xf] }
 0x504   :  { %v11677_v5 = vadd.f32 %v3568_v39, %v11620_v56  ;;  %v11679_v17 = vpop.f32.mrf.mxu0  ;;  %v3687_v19 = vpop.f32.mrf.mxu1 }
 0x505   :  { %v11681_v37 = vadd.f32 %v3687_v19, %v3639_v6  ;;  %3802 = vmatmul.bf16.gmra.mxu3 %v10266_v46  ;;  %v11684_v1 = vpack.c.bf16 %v3896_v61, %v3888_v44  ;;  %v8661_v46 = vld [vmem:[#allocation11 + $0x3a8] sm:$0xf] }
 0x506   :  { %v8662_v53 = vor.u32 %v9469_v42, %v8661_v46  ;;  %v8853_v19 = vld [vmem:[#allocation11 + $0x528] sm:$0xf] }
 0x508   :  { %v3607_v2 = vpop.f32.mrf.mxu3  ;;  %5494 = vmatpush.bf16.msra.mxu0 %v8662_v53 }
 0x509   :  { %v3608_v14 = vadd.f32 %v3607_v2, %v11629_v24  ;;  %v8757_v2 = vld [vmem:[#allocation11 + $0x468] sm:$0xf] }
 0x50b   :  { %v3570_v56 = vpop.f32.mrf.mxu2  ;;  %v3904_v6 = vmax.f32 %v3608_v14, 0.0  ;;  %v8637_v14 = vld [vmem:[#allocation11 + $0x378] sm:$0xf] }
 0x50c   :  { %v11689_v58 = vadd.f32 %v3570_v56, %v11631_v22  ;;  %v11691_v63 = vpop.f32.mrf.mxu0  ;;  %v3690_v0 = vpop.f32.mrf.mxu1  ;;  %v8649_v22 = vld [vmem:[#allocation11 + $0x390] sm:$0xf]  ;;  %v9493_v56 = vld [vmem:[#allocation11 + $0x470] sm:$0xf0] }
 0x50d   :  { %v11693_v20 = vadd.f32 %v3690_v0, %v3642_v26  ;;  %v8650_v55 = vor.u32 %v9466_v8, %v8649_v22  ;;  %v8950_v26 = vor.u32 %v9541_v45, %v8949_v7  ;;  %v9463_v0 = vld [vmem:[#allocation11 + $0x380] sm:$0xf0]  ;;  %v8758_v46 = vor.u32 %v9493_v56, %v8757_v2  ;;  %v9454_v2 = vld [vmem:[#allocation11 + $0x338] sm:$0xf0] }
 0x50e   :  { %v8638_v42 = vor.u32 %v9463_v0, %v8637_v14  ;;  %v3647_v22 = vadd.f32 %v11667_v38, %v11637_v35  ;;  %v12953_v7 = vld [vmem:[#allocation40_spill] sm:$0xff] }
 0x50f   :  { %5326 = vmatmul.bf16.gmra.mxu0 %v12948_v43  ;;  %5365 = vmatmul.bf16.gmra.mxu1 %v12949_v3 }
 0x510   :  { %5404 = vmatmul.bf16.vlgmr.msrb.gmra.mxu2 %v12950_v29  ;;  %v3609_v24 = vpop.f32.mrf.mxu3  ;;  %5495 = vmatpush.bf16.msra.mxu0 %v8650_v55 }
 0x511   :  { %v3610_v41 = vadd.f32 %v3609_v24, %v11643_v13  ;;  %v8854_v13 = vor.u32 %v9517_v49, %v8853_v19  ;;  %5641 = vmatpush.bf16.msrb.mxu3 %v8950_v26  ;;  %5543 = vmatpush.bf16.msra.mxu1 %v8758_v46  ;;  %v12951_v19 = vld [vmem:[#allocation29_spill] sm:$0xff]  ;;  %v12952_v49 = vld [vmem:[#allocation34_spill] sm:$0xff]  ;;  %v3649_v26 = vadd.f32 %v11679_v17, %v11637_v35 }
 0x513   :  { %v3912_v52 = vmax.f32 %v3610_v41, 0.0  ;;  %v3729_v51 = vpop.f32.mrf.mxu2  ;;  %5592 = vmatpush.bf16.msra.mxu2 %v8854_v13  ;;  %v9460_v41 = vld [vmem:[#allocation11 + $0x368] sm:$0xf0] }
 0x514   :  { %v11701_v44 = vadd.f32 %v3729_v51, %v11645_v54  ;;  %v11703_v61 = vpop.f32.mrf.mxu0  ;;  %v3692_v39 = vpop.f32.mrf.mxu1  ;;  %5496 = vmatpush.bf16.msra.mxu0 %v8638_v42 }
 0x515   :  { %v11705_v57 = vadd.f32 %v3692_v39, %v3644_v15  ;;  %3807 = vmatmul.bf16.gmra.mxu3 %v10284_v30  ;;  %v11708_v54 = vpack.c.bf16 %v3912_v52, %v3904_v6  ;;  %v8625_v30 = vld [vmem:[#allocation11 + $0x360] sm:$0xf]  ;;  %v8613_v39 = vld [vmem:[#allocation11 + $0x348] sm:$0xf] }
 0x516   :  { %v8626_v15 = vor.u32 %v9460_v41, %v8625_v30 }
 0x518   :  { %v3612_v53 = vpop.f32.mrf.mxu3  ;;  %5497 = vmatpush.bf16.msra.mxu0 %v8626_v15 }
 0x519   :  { %v3613_v24 = vadd.f32 %v3612_v53, %v11654_v48  ;;  %v9457_v48 = vld [vmem:[#allocation11 + $0x350] sm:$0xf0] }
 0x51a   :  { %v8614_v13 = vor.u32 %v9457_v48, %v8613_v39  ;;  %v9490_v39 = vld [vmem:[#allocation11 + $0x458] sm:$0xf0] }
 0x51b   :  { %v3731_v8 = vpop.f32.mrf.mxu2  ;;  %v3920_v56 = vmax.f32 %v3613_v24, 0.0  ;;  %v9538_v24 = vld [vmem:[#allocation11 + $0x5d8] sm:$0xf0] }
 0x51c   :  { %v11714_v51 = vadd.f32 %v3731_v8, %v11656_v36  ;;  %v11716_v52 = vpop.f32.mrf.mxu0  ;;  %v3695_v55 = vpop.f32.mrf.mxu1  ;;  %5498 = vmatpush.bf16.msra.mxu0 %v8614_v13  ;;  %v8601_v36 = vld [vmem:[#allocation11 + $0x330] sm:$0xf]  ;;  %v8589_v13 = vld [vmem:[#allocation11 + $0x318] sm:$0xf] }
 0x51d   :  { %v11718_v6 = vadd.f32 %v3695_v55, %v3647_v22  ;;  %v8602_v46 = vor.u32 %v9454_v2, %v8601_v36  ;;  %v9514_v22 = vld [vmem:[#allocation11 + $0x518] sm:$0xf0]  ;;  %v8937_v8 = vld [vmem:[#allocation11 + $0x5d0] sm:$0xf] }
 0x51e   :  { %v8745_v55 = vld [vmem:[#allocation11 + $0x450] sm:$0xf]  ;;  %v8938_v48 = vor.u32 %v9538_v24, %v8937_v8  ;;  %v12955_v8 = vld [vmem:[#allocation35_spill] sm:$0xff] }
 0x51f   :  { %5331 = vmatmul.bf16.gmra.mxu0 %v12951_v19  ;;  %5370 = vmatmul.bf16.gmra.mxu1 %v12952_v49 }
 0x520   :  { %5409 = vmatmul.bf16.gmra.mxu2 %v12953_v7  ;;  %v3614_v38 = vpop.f32.mrf.mxu3  ;;  %5499 = vmatpush.bf16.msra.mxu0 %v8602_v46 }
 0x521   :  { %v3615_v45 = vadd.f32 %v3614_v38, %v11665_v25  ;;  %v8841_v25 = vld [vmem:[#allocation11 + $0x510] sm:$0xf]  ;;  %v9451_v38 = vld [vmem:[#allocation11 + $0x320] sm:$0xf0]  ;;  %5642 = vmatpush.bf16.msrb.mxu3 %v8938_v48 }
 0x522   :  { %v8842_v17 = vor.u32 %v9514_v22, %v8841_v25  ;;  %v8590_v36 = vor.u32 %v9451_v38, %v8589_v13 }
 0x523   :  { %v3928_v14 = vmax.f32 %v3615_v45, 0.0  ;;  %v3734_v0 = vpop.f32.mrf.mxu2 }
 0x524   :  { %v11727_v42 = vadd.f32 %v3734_v0, %v11669_v34  ;;  %v11729_v53 = vpop.f32.mrf.mxu0  ;;  %v3697_v30 = vpop.f32.mrf.mxu1  ;;  %v8746_v34 = vor.u32 %v9490_v39, %v8745_v55  ;;  %5593 = vmatpush.bf16.msra.mxu2 %v8842_v17  ;;  %5500 = vmatpush.bf16.msra.mxu0 %v8590_v36  ;;  %v12956_v17 = vld [vmem:[#allocation41_spill] sm:$0xff]  ;;  %v3654_v55 = vadd.f32 %v11703_v61, %v11637_v35  ;;  %v9511_v36 = vld [vmem:[#allocation11 + $0x500] sm:$0xf0] }
 0x525   :  { %v11731_v41 = vadd.f32 %v3697_v30, %v3649_v26  ;;  %3812 = vmatmul.bf16.gmra.mxu3 %v10310_v9  ;;  %v11734_v15 = vpack.c.bf16 %v3928_v14, %v3920_v56  ;;  %v8577_v9 = vld [vmem:[#allocation11 + $0x300] sm:$0xf]  ;;  %v9448_v26 = vld [vmem:[#allocation11 + $0x308] sm:$0xf0]  ;;  %v3652_v56 = vadd.f32 %v11691_v63, %v11637_v35 }
 0x526   :  { %5544 = vmatpush.bf16.msra.mxu1 %v8746_v34  ;;  %v8578_v0 = vor.u32 %v9448_v26, %v8577_v9  ;;  %v12957_v26 = vld [vmem:[#allocation47_spill] sm:$0xff] }
 0x528   :  { %v3617_v45 = vpop.f32.mrf.mxu3  ;;  %5501 = vmatpush.bf16.msra.mxu0 %v8578_v0  ;;  %v8733_v0 = vld [vmem:[#allocation11 + $0x438] sm:$0xf] }
 0x529   :  { %v3618_v2 = vadd.f32 %v3617_v45, %v11677_v5  ;;  %v12954_v5 = vld [vmem:[#allocation30_spill] sm:$0xff]  ;;  %v8829_v45 = vld [vmem:[#allocation11 + $0x4f8] sm:$0xf] }
 0x52b   :  { %v3736_v14 = vpop.f32.mrf.mxu2 }
 0x52c   :  { %v11740_v46 = vadd.f32 %v3736_v14, %v11681_v37  ;;  %v11742_v30 = vpop.f32.mrf.mxu0  ;;  %v3700_v25 = vpop.f32.mrf.mxu1  ;;  %v3936_v37 = vmax.f32 %v3618_v2, 0.0  ;;  %v9535_v14 = vld [vmem:[#allocation11 + $0x5c0] sm:$0xf0] }
 0x52d   :  { %v11744_v22 = vadd.f32 %v3700_v25, %v3652_v56  ;;  %v8830_v56 = vor.u32 %v9511_v36, %v8829_v45  ;;  %v9487_v25 = vld [vmem:[#allocation11 + $0x440] sm:$0xf0] }
 0x52f   :  { %5336 = vmatmul.bf16.gmra.mxu0 %v12954_v5  ;;  %5375 = vmatmul.bf16.gmra.mxu1 %v12955_v8 }
 0x530   :  { %5414 = vmatmul.bf16.gmra.mxu2 %v12956_v17  ;;  %v3619_v24 = vpop.f32.mrf.mxu3 }
 0x531   :  { %v3620_v63 = vadd.f32 %v3619_v24, %v11689_v58  ;;  %v8925_v58 = vld [vmem:[#allocation11 + $0x5b8] sm:$0xf]  ;;  %5594 = vmatpush.bf16.msra.mxu2 %v8830_v56 }
 0x532   :  { %v8926_v2 = vor.u32 %v9535_v14, %v8925_v58  ;;  %v8709_v58 = vld [vmem:[#allocation11 + $0x408] sm:$0xf]  ;;  %v9481_v14 = vld [vmem:[#allocation11 + $0x410] sm:$0xf0] }
 0x533   :  { %v3944_v39 = vmax.f32 %v3620_v63, 0.0  ;;  %v3739_v48 = vpop.f32.mrf.mxu2 }
 0x534   :  { %v11753_v34 = vadd.f32 %v3739_v48, %v11693_v20  ;;  %v11755_v13 = vpop.f32.mrf.mxu0  ;;  %v3702_v38 = vpop.f32.mrf.mxu1  ;;  %v8734_v20 = vor.u32 %v9487_v25, %v8733_v0  ;;  %5643 = vmatpush.bf16.msrb.mxu3 %v8926_v2  ;;  %v8721_v48 = vld [vmem:[#allocation11 + $0x420] sm:$0xf]  ;;  %v8710_v2 = vor.u32 %v9481_v14, %v8709_v58  ;;  %v12960_v25 = vld [vmem:[#allocation42_spill] sm:$0xff] }
 0x535   :  { %v11757_v9 = vadd.f32 %v3702_v38, %v3654_v55  ;;  %5453 = vmatmul.bf16.vlgmr.msra.gmra.mxu3 %v12957_v26  ;;  %v11760_v61 = vpack.c.bf16 %v3944_v39, %v3936_v37  ;;  %v9484_v55 = vld [vmem:[#allocation11 + $0x428] sm:$0xf0]  ;;  %v3657_v38 = vadd.f32 %v11716_v52, %v11637_v35  ;;  %v12959_v0 = vld [vmem:[#allocation36_spill] sm:$0xff] }
 0x536   :  { %5545 = vmatpush.bf16.msra.mxu1 %v8734_v20  ;;  %v8722_v36 = vor.u32 %v9484_v55, %v8721_v48  ;;  %v3659_v48 = vadd.f32 %v11729_v53, %v11637_v35  ;;  %v8817_v14 = vld [vmem:[#allocation11 + $0x4e0] sm:$0xf] }
 0x537   :  { %v8913_v53 = vld [vmem:[#allocation11 + $0x5a0] sm:$0xf] }
 0x538   :  { %v3778_v24 = vpop.f32.mrf.mxu3 }
 0x539   :  { %v3779_v63 = vadd.f32 %v3778_v24, %v11701_v44  ;;  %v12958_v44 = vld [vmem:[#allocation31_spill] sm:$0xff] }
 0x53a   :  { %5546 = vmatpush.bf16.msra.mxu1 %v8722_v36  ;;  %v9478_v24 = vld [vmem:[#allocation11 + $0x3f8] sm:$0xf0] }
 0x53b   :  { %v3741_v45 = vpop.f32.mrf.mxu2  ;;  %v3825_v55 = vmax.f32 %v3779_v63, 0.0  ;;  %v9532_v63 = vld [vmem:[#allocation11 + $0x5a8] sm:$0xf0] }
 0x53c   :  { %v11766_v26 = vadd.f32 %v3741_v45, %v11705_v57  ;;  %v11768_v37 = vpop.f32.mrf.mxu0  ;;  %v3705_v39 = vpop.f32.mrf.mxu1  ;;  %v8697_v57 = vld [vmem:[#allocation11 + $0x3f0] sm:$0xf] }
 0x53d   :  { %v11770_v56 = vadd.f32 %v3705_v39, %v3657_v38  ;;  %v8698_v36 = vor.u32 %v9478_v24, %v8697_v57  ;;  %v8685_v57 = vld [vmem:[#allocation11 + $0x3d8] sm:$0xf]  ;;  %v9475_v24 = vld [vmem:[#allocation11 + $0x3e0] sm:$0xf0] }
 0x53e   :  { %5547 = vmatpush.bf16.msra.mxu1 %v8710_v2  ;;  %v12961_v2 = vld [vmem:[#allocation48_spill] sm:$0xff] }
 0x53f   :  { %5341 = vmatmul.bf16.gmra.mxu0 %v12958_v44  ;;  %5380 = vmatmul.bf16.gmra.mxu1 %v12959_v0 }
 0x540   :  { %5419 = vmatmul.bf16.gmra.mxu2 %v12960_v25  ;;  %v3780_v52 = vpop.f32.mrf.mxu3  ;;  %v9508_v25 = vld [vmem:[#allocation11 + $0x4e8] sm:$0xf0] }
 0x541   :  { %v3781_v20 = vadd.f32 %v3780_v52, %v11714_v51  ;;  %v8818_v52 = vor.u32 %v9508_v25, %v8817_v14 }
 0x542   :  { %5548 = vmatpush.bf16.msra.mxu1 %v8698_v36 }
 0x543   :  { %v3833_v38 = vmax.f32 %v3781_v20, 0.0  ;;  %v3744_v45 = vpop.f32.mrf.mxu2  ;;  %v8914_v20 = vor.u32 %v9532_v63, %v8913_v53  ;;  %5595 = vmatpush.bf16.msra.mxu2 %v8818_v52  ;;  %v12962_v63 = vld [vmem:[#allocation37_spill] sm:$0xff] }
 0x544   :  { %v11779_v39 = vadd.f32 %v3744_v45, %v11718_v6  ;;  %v11781_v0 = vpop.f32.mrf.mxu0  ;;  %v3707_v58 = vpop.f32.mrf.mxu1  ;;  %v8686_v6 = vor.u32 %v9475_v24, %v8685_v57  ;;  %v3664_v24 = vadd.f32 %v11755_v13, %v11637_v35 }
 0x545   :  { %v11783_v44 = vpack.c.bf16 %v3833_v38, %v3825_v55  ;;  %v11785_v51 = vadd.f32 %v3707_v58, %v3659_v48  ;;  %5458 = vmatmul.bf16.gmra.mxu3 %v12961_v2  ;;  %v8673_v55 = vld [vmem:[#allocation11 + $0x3c0] sm:$0xf]  ;;  %v9472_v38 = vld [vmem:[#allocation11 + $0x3c8] sm:$0xf0]  ;;  %v3662_v48 = vadd.f32 %v11742_v30, %v11637_v35 }
 0x546   :  { %5644 = vmatpush.bf16.msrb.mxu3 %v8914_v20  ;;  %5549 = vmatpush.bf16.msra.mxu1 %v8686_v6  ;;  %v8674_v25 = vor.u32 %v9472_v38, %v8673_v55  ;;  %v12964_v20 = vld [vmem:[#allocation43_spill] sm:$0xff] }
 0x548   :  { %v3783_v45 = vpop.f32.mrf.mxu3 }
 0x549   :  { %v3784_v17 = vadd.f32 %v3783_v45, %v11727_v42  ;;  %v12963_v42 = vld [vmem:[#allocation55_spill] sm:$0xff] }
 0x54a   :  { %5550 = vmatpush.bf16.msra.mxu1 %v8674_v25  ;;  %v9505_v25 = vld [vmem:[#allocation11 + $0x4d0] sm:$0xf0] }
 0x54b   :  { %v3746_v58 = vpop.f32.mrf.mxu2 }
 0x54c   :  { %v11792_v14 = vadd.f32 %v3746_v58, %v11731_v41  ;;  %v3710_v36 = vpop.f32.mrf.mxu1  ;;  %v11794_v53 = vpop.f32.mrf.mxu0  ;;  %v3841_v41 = vmax.f32 %v3784_v17, 0.0  ;;  %v8805_v58 = vld [vmem:[#allocation11 + $0x4c8] sm:$0xf] }
 0x54d   :  { %v11796_v52 = vadd.f32 %v3710_v36, %v3662_v48 }
 0x54f   :  { %5385 = vmatmul.bf16.gmra.mxu1 %v12962_v63  ;;  %5502 = vmatmul.bf16.vlgmr.msra.gmra.mxu0 %v12963_v42  ;;  %v8806_v42 = vor.u32 %v9505_v25, %v8805_v58 }
 0x550   :  { %5424 = vmatmul.bf16.gmra.mxu2 %v12964_v20  ;;  %v3785_v57 = vpop.f32.mrf.mxu3  ;;  %v12965_v20 = vld [vmem:[#allocation49_spill] sm:$0xff] }
 0x551   :  { %v3786_v30 = vadd.f32 %v3785_v57, %v11740_v46  ;;  %v8901_v46 = vld [vmem:[#allocation11 + $0x588] sm:$0xf]  ;;  %v9529_v57 = vld [vmem:[#allocation11 + $0x590] sm:$0xf0]  ;;  %5596 = vmatpush.bf16.msra.mxu2 %v8806_v42  ;;  %v12968_v42 = vld [vmem:[#allocation44_spill] sm:$0xff] }
 0x552   :  { %v8902_v17 = vor.u32 %v9529_v57, %v8901_v46  ;;  %v8793_v46 = vld [vmem:[#allocation11 + $0x4b0] sm:$0xf] }
 0x553   :  { %v3849_v6 = vmax.f32 %v3786_v30, 0.0  ;;  %v3749_v45 = vpop.f32.mrf.mxu2  ;;  %v3667_v30 = vadd.f32 %v11768_v37, %v11637_v35  ;;  %v9502_v37 = vld [vmem:[#allocation11 + $0x4b8] sm:$0xf0] }
 0x554   :  { %v11805_v55 = vadd.f32 %v3749_v45, %v11744_v22  ;;  %v3712_v38 = vpop.f32.mrf.mxu1  ;;  %v11807_v48 = vpop.f32.mrf.mxu0  ;;  %5645 = vmatpush.bf16.msrb.mxu3 %v8902_v17 }
 0x555   :  { %v11809_v36 = vadd.f32 %v3712_v38, %v3664_v24  ;;  %5463 = vmatmul.bf16.gmra.mxu3 %v12965_v20  ;;  %v11812_v63 = vpack.c.bf16 %v3849_v6, %v3841_v41  ;;  %v12966_v41 = vld [vmem:[#allocation38_spill] sm:$0xff]  ;;  %v12967_v6 = vld [vmem:[#allocation56_spill] sm:$0xff] }
 0x558   :  { %v3788_v13 = vpop.f32.mrf.mxu3 }
 0x559   :  { %v3789_v22 = vadd.f32 %v3788_v13, %v11753_v34 }
 0x55b   :  { %v3751_v45 = vpop.f32.mrf.mxu2  ;;  %v3857_v57 = vmax.f32 %v3789_v22, 0.0 }
 0x55c   :  { %v11818_v24 = vadd.f32 %v3751_v45, %v11757_v9  ;;  %v3715_v38 = vpop.f32.mrf.mxu1  ;;  %v11820_v20 = vpop.f32.mrf.mxu0  ;;  %v3669_v9 = vadd.f32 %v11781_v0, %v11637_v35  ;;  %v8794_v45 = vor.u32 %v9502_v37, %v8793_v46  ;;  %v9526_v35 = vld [vmem:[#allocation11 + $0x578] sm:$0xf0]  ;;  %v9499_v46 = vld [vmem:[#allocation11 + $0x4a0] sm:$0xf0] }
 0x55d   :  { %v11822_v58 = vadd.f32 %v3715_v38, %v3667_v30  ;;  %v4266_v30 = vld [vmem:[%s12808_s6] sm:$0x7] }
 0x55e   :  { %5597 = vmatpush.bf16.msra.mxu2 %v8794_v45  ;;  %v11841_v37 = vperm.slane %v4266_v30, 0 }
 0x55f   :  { %5390 = vmatmul.bf16.gmra.mxu1 %v12966_v41  ;;  %5507 = vmatmul.bf16.gmra.mxu0 %v12967_v6 }
 0x560   :  { %5429 = vmatmul.bf16.gmra.mxu2 %v12968_v42  ;;  %v3790_v25 = vpop.f32.mrf.mxu3 }
 0x561   :  { %v3791_v34 = vadd.f32 %v3790_v25, %v11766_v26  ;;  %v12969_v26 = vld [vmem:[#allocation50_spill] sm:$0xff] }
 0x562   :  { %v8889_v25 = vld [vmem:[#allocation11 + $0x570] sm:$0xf] }
 0x563   :  { %v3865_v17 = vmax.f32 %v3791_v34, 0.0  ;;  %v3754_v13 = vpop.f32.mrf.mxu2  ;;  %v8890_v22 = vor.u32 %v9526_v35, %v8889_v25  ;;  %v8781_v34 = vld [vmem:[#allocation11 + $0x498] sm:$0xf]  ;;  %v12970_v35 = vld [vmem:[#allocation57_spill] sm:$0xff] }
 0x564   :  { %v11834_v38 = vadd.f32 %v3754_v13, %v11770_v56  ;;  %v3717_v42 = vpop.f32.mrf.mxu1  ;;  %v5314_v6 = vpop.f32.mrf.mxu0  ;;  %v8782_v2 = vor.u32 %v9499_v46, %v8781_v34  ;;  %v5308_v13 = vadd.f32 %v11794_v53, %v11841_v37  ;;  %v5310_v53 = vadd.f32 %v11807_v48, %v11841_v37 }
 0x565   :  { %v11836_v41 = vadd.f32 %v3717_v42, %v3669_v9  ;;  %5468 = vmatmul.bf16.gmra.mxu3 %v12969_v26  ;;  %v11839_v0 = vpack.c.bf16 %v3865_v17, %v3857_v57  ;;  %v8769_v42 = vld [vmem:[#allocation11 + $0x480] sm:$0xf]  ;;  %v9496_v9 = vld [vmem:[#allocation11 + $0x488] sm:$0xf0] }
 0x566   :  { %5646 = vmatpush.bf16.msrb.mxu3 %v8890_v22  ;;  %5598 = vmatpush.bf16.msra.mxu2 %v8782_v2  ;;  %v8770_v26 = vor.u32 %v9496_v9, %v8769_v42 }
 0x568   :  { %v3793_v8 = vpop.f32.mrf.mxu3 }
 0x569   :  { %v3794_v56 = vadd.f32 %v3793_v8, %v11779_v39  ;;  %v12971_v8 = vld [vmem:[#allocation45_spill] sm:$0xff] }
 0x56a   :  { %5599 = vmatpush.bf16.msra.mxu2 %v8770_v26 }
 0x56b   :  { %v3756_v45 = vpop.f32.mrf.mxu2  ;;  %v3873_v22 = vmax.f32 %v3794_v56, 0.0  ;;  %v5313_v56 = vadd.f32 %v11820_v20, %v11841_v37  ;;  %v5315_v20 = vadd.f32 %v5314_v6, %v11841_v37 }
 0x56c   :  { %v11847_v57 = vadd.f32 %v3756_v45, %v11785_v51  ;;  %v5317_v17 = vpop.f32.mrf.mxu0  ;;  %v5356_v25 = vpop.f32.mrf.mxu1  ;;  %v8877_v45 = vld [vmem:[#allocation11 + $0x558] sm:$0xf] }
 0x56d   :  { %v11849_v30 = vadd.f32 %v5356_v25, %v5308_v13  ;;  %v12972_v13 = vld [vmem:[#allocation51_spill] sm:$0xff]  ;;  %v9523_v25 = vld [vmem:[#allocation11 + $0x560] sm:$0xf0] }
 0x56f   :  { %5512 = vmatmul.bf16.gmra.mxu0 %v12970_v35  ;;  %5551 = vmatmul.bf16.vlgmr.msra.gmra.mxu1 %v11377_v32  ;;  %v8279_v32 = vld [vmem:[#allocation11 + $0xb4] sm:$0xf0] }
 0x570   :  { %5434 = vmatmul.bf16.gmra.mxu2 %v12971_v8  ;;  %v3795_v39 = vpop.f32.mrf.mxu3 }
 0x571   :  { %v3796_v2 = vadd.f32 %v3795_v39, %v11792_v14  ;;  %v8878_v14 = vor.u32 %v9523_v25, %v8877_v45 }
 0x573   :  { %v3881_v51 = vmax.f32 %v3796_v2, 0.0  ;;  %v3759_v34 = vpop.f32.mrf.mxu2  ;;  %5647 = vmatpush.bf16.msrb.mxu3 %v8878_v14 }
 0x574   :  { %v11858_v46 = vadd.f32 %v3759_v34, %v11796_v52  ;;  %v5319_v42 = vpop.f32.mrf.mxu0  ;;  %v5358_v26 = vpop.f32.mrf.mxu1 }
 0x575   :  { %v11860_v9 = vadd.f32 %v5358_v26, %v5310_v53  ;;  %5473 = vmatmul.bf16.gmra.mxu3 %v12972_v13  ;;  %v11863_v8 = vpack.c.bf16 %v3881_v51, %v3873_v22  ;;  %v12973_v13 = vld [vmem:[#allocation58_spill] sm:$0xff] }
 0x576   :  { %v12974_v22 = vld [vmem:[#allocation46_spill] sm:$0xff] }
 0x578   :  { %v3798_v39 = vpop.f32.mrf.mxu3 }
 0x579   :  { %v3799_v48 = vadd.f32 %v3798_v39, %v11805_v55 }
 0x57b   :  { %v3761_v52 = vpop.f32.mrf.mxu2  ;;  %v3889_v45 = vmax.f32 %v3799_v48, 0.0  ;;  %v5318_v48 = vadd.f32 %v5317_v17, %v11841_v37 }
 0x57c   :  { %v11869_v2 = vadd.f32 %v3761_v52, %v11809_v36  ;;  %v11871_v53 = vpop.f32.mrf.mxu0  ;;  %v5361_v34 = vpop.f32.mrf.mxu1 }
 0x57d   :  { %v11873_v26 = vadd.f32 %v5361_v34, %v5313_v56  ;;  %v12975_v34 = vld [vmem:[#allocation52_spill] sm:$0xff] }
 0x57f   :  { %5517 = vmatmul.bf16.gmra.mxu0 %v12973_v13  ;;  %5556 = vmatmul.bf16.gmra.mxu1 %v11406_v33  ;;  %v8865_v33 = vld [vmem:[#allocation11 + $0x540] sm:$0xf] }
 0x580   :  { %5439 = vmatmul.bf16.gmra.mxu2 %v12974_v22  ;;  %v3800_v51 = vpop.f32.mrf.mxu3  ;;  %v9520_v22 = vld [vmem:[#allocation11 + $0x548] sm:$0xf0] }
 0x581   :  { %v3801_v55 = vadd.f32 %v3800_v51, %v11818_v24  ;;  %v8866_v24 = vor.u32 %v9520_v22, %v8865_v33  ;;  %v8267_v22 = vld [vmem:[#allocation11 + $0x9c] sm:$0xf0] }
 0x583   :  { %v3897_v25 = vmax.f32 %v3801_v55, 0.0  ;;  %v3764_v36 = vpop.f32.mrf.mxu2  ;;  %5648 = vmatpush.bf16.msrb.mxu3 %v8866_v24 }
 0x584   :  { %v11881_v14 = vadd.f32 %v3764_v36, %v11822_v58  ;;  %v11883_v39 = vpop.f32.mrf.mxu0  ;;  %v5363_v56 = vpop.f32.mrf.mxu1 }
 0x585   :  { %v11885_v52 = vadd.f32 %v5363_v56, %v5315_v20  ;;  %5478 = vmatmul.bf16.gmra.mxu3 %v12975_v34  ;;  %v11888_v13 = vpack.c.bf16 %v3897_v25, %v3889_v45  ;;  %v9372_v34 = vld [vmem:[#allocation11 + $0xac] sm:$0xf]  ;;  %v12976_v45 = vld [vmem:[#allocation59_spill] sm:$0xff]  ;;  %v5320_v25 = vadd.f32 %v5319_v42, %v11841_v37 }
 0x586   :  { %v8282_v33 = vor.u32 %v9372_v34, %v8279_v32  ;;  %v9420_v34 = vld [vmem:[#allocation11 + $0x22c] sm:$0xf]  ;;  %v8567_v42 = vld [vmem:[#allocation11 + $0x2f4] sm:$0xf0] }
 0x588   :  { %v3803_v51 = vpop.f32.mrf.mxu3  ;;  %5690 = vmatpush.bf16.msrb.mxu0 %v8282_v33 }
 0x589   :  { %v3804_v6 = vadd.f32 %v3803_v51, %v11834_v38 }
 0x58b   :  { %v3766_v58 = vpop.f32.mrf.mxu2 }
 0x58c   :  { %v11893_v55 = vadd.f32 %v3766_v58, %v11836_v41  ;;  %v11895_v36 = vpop.f32.mrf.mxu0  ;;  %v5366_v20 = vpop.f32.mrf.mxu1  ;;  %v9369_v41 = vld [vmem:[#allocation11 + $0x94] sm:$0xf]  ;;  %v3905_v58 = vmax.f32 %v3804_v6, 0.0  ;;  %v9366_v6 = vld [vmem:[#allocation11 + $0x7c] sm:$0xf] }
 0x58d   :  { %v11897_v56 = vadd.f32 %v5366_v20, %v5318_v48  ;;  %v8270_v48 = vor.u32 %v9369_v41, %v8267_v22  ;;  %v8375_v41 = vld [vmem:[#allocation11 + $0x174] sm:$0xf0]  ;;  %v8255_v22 = vld [vmem:[#allocation11 + $0x84] sm:$0xf0] }
 0x58e   :  { %v8258_v5 = vor.u32 %v9366_v6, %v8255_v22  ;;  %v5325_v6 = vadd.f32 %v11883_v39, %v11841_v37  ;;  %v8555_v39 = vld [vmem:[#allocation11 + $0x2dc] sm:$0xf0] }
 0x58f   :  { %5522 = vmatmul.bf16.gmra.mxu0 %v12976_v45  ;;  %5561 = vmatmul.bf16.gmra.mxu1 %v11430_v40 }
 0x590   :  { %5600 = vmatmul.bf16.vlgmr.msra.gmra.mxu2 %v11581_v12  ;;  %v3805_v38 = vpop.f32.mrf.mxu3  ;;  %v8471_v12 = vld [vmem:[#allocation11 + $0x234] sm:$0xf0]  ;;  %5691 = vmatpush.bf16.msrb.mxu0 %v8270_v48  ;;  %v8243_v48 = vld [vmem:[#allocation11 + $0x6c] sm:$0xf0] }
 0x591   :  { %v3806_v17 = vadd.f32 %v3805_v38, %v11847_v57  ;;  %v12977_v57 = vld [vmem:[#allocation53_spill] sm:$0xff]  ;;  %v8474_v33 = vor.u32 %v9420_v34, %v8471_v12  ;;  %v9363_v12 = vld [vmem:[#allocation11 + $0x64] sm:$0xf] }
 0x592   :  { %v9444_v38 = vld [vmem:[#allocation11 + $0x2ec] sm:$0xf] }
 0x593   :  { %v3913_v24 = vmax.f32 %v3806_v17, 0.0  ;;  %v5405_v51 = vpop.f32.mrf.mxu2  ;;  %v9396_v17 = vld [vmem:[#allocation11 + $0x16c] sm:$0xf]  ;;  %v8570_v35 = vor.u32 %v9444_v38, %v8567_v42  ;;  %5788 = vmatpush.bf16.msrb.mxu2 %v8474_v33  ;;  %v8246_v38 = vor.u32 %v9363_v12, %v8243_v48 }
 0x594   :  { %v11905_v20 = vadd.f32 %v5405_v51, %v11849_v30  ;;  %v11907_v45 = vpop.f32.mrf.mxu0  ;;  %v5368_v32 = vpop.f32.mrf.mxu1  ;;  %v8378_v51 = vor.u32 %v9396_v17, %v8375_v41  ;;  %5692 = vmatpush.bf16.msrb.mxu0 %v8258_v5  ;;  %v8219_v41 = vld [vmem:[#allocation11 + $0x3c] sm:$0xf0] }
 0x595   :  { %v11909_v40 = vadd.f32 %v5368_v32, %v5320_v25  ;;  %5483 = vmatmul.bf16.gmra.mxu3 %v12977_v57  ;;  %v11912_v30 = vpack.c.bf16 %v3913_v24, %v3905_v58  ;;  %v5323_v32 = vadd.f32 %v11871_v53, %v11841_v37 }
 0x596   :  { %5837 = vmatpush.bf16.msra.mxu3 %v8570_v35  ;;  %5739 = vmatpush.bf16.msrb.mxu1 %v8378_v51  ;;  %v9360_v35 = vld [vmem:[#allocation11 + $0x4c] sm:$0xf] }
 0x598   :  { %v3808_v7 = vpop.f32.mrf.mxu3  ;;  %5693 = vmatpush.bf16.msrb.mxu0 %v8246_v38 }
 0x599   :  { %v3809_v25 = vadd.f32 %v3808_v7, %v11858_v46  ;;  %v8231_v7 = vld [vmem:[#allocation11 + $0x54] sm:$0xf0]  ;;  %v12978_v46 = vld [vmem:[#allocation21_spill] sm:$0xff] }
 0x59a   :  { %v8234_v5 = vor.u32 %v9360_v35, %v8231_v7  ;;  %v8459_v35 = vld [vmem:[#allocation11 + $0x21c] sm:$0xf0] }
 0x59b   :  { %v5407_v34 = vpop.f32.mrf.mxu2  ;;  %v3921_v48 = vmax.f32 %v3809_v25, 0.0  ;;  %v9354_v25 = vld [vmem:[#allocation11 + $0x1c] sm:$0xf] }
 0x59c   :  { %v11918_v42 = vadd.f32 %v5407_v34, %v11860_v9  ;;  %v11920_v24 = vpop.f32.mrf.mxu0  ;;  %v5371_v58 = vpop.f32.mrf.mxu1  ;;  %5694 = vmatpush.bf16.msrb.mxu0 %v8234_v5  ;;  %v9357_v9 = vld [vmem:[#allocation11 + $0x34] sm:$0xf] }
 0x59d   :  { %v11922_v33 = vadd.f32 %v5371_v58, %v5323_v32  ;;  %v8222_v12 = vor.u32 %v9357_v9, %v8219_v41  ;;  %v9417_v58 = vld [vmem:[#allocation11 + $0x214] sm:$0xf]  ;;  %v8363_v9 = vld [vmem:[#allocation11 + $0x15c] sm:$0xf0]  ;;  %v8207_v41 = vld [vmem:[#allocation11 + $0x24] sm:$0xf0] }
 0x59e   :  { %v8462_v5 = vor.u32 %v9417_v58, %v8459_v35  ;;  %v5328_v58 = vadd.f32 %v11895_v36, %v11841_v37 }
 0x59f   :  { %5527 = vmatmul.bf16.gmra.mxu0 %v12978_v46  ;;  %5566 = vmatmul.bf16.gmra.mxu1 %v11457_v18  ;;  %v8210_v18 = vor.u32 %v9354_v25, %v8207_v41  ;;  %v9414_v41 = vld [vmem:[#allocation11 + $0x1fc] sm:$0xf] }
 0x5a0   :  { %5605 = vmatmul.bf16.gmra.mxu2 %v11610_v4  ;;  %v3810_v53 = vpop.f32.mrf.mxu3  ;;  %5695 = vmatpush.bf16.msrb.mxu0 %v8222_v12  ;;  %v8195_v12 = vld [vmem:[#allocation11 + $0xc] sm:$0xf0] }
 0x5a1   :  { %v3811_v17 = vadd.f32 %v3810_v53, %v11869_v2  ;;  %v12979_v2 = vld [vmem:[#allocation54_spill] sm:$0xff]  ;;  %5789 = vmatpush.bf16.msrb.mxu2 %v8462_v5 }
 0x5a2   :  { %v9441_v53 = vld [vmem:[#allocation11 + $0x2d4] sm:$0xf] }
 0x5a3   :  { %v3929_v22 = vmax.f32 %v3811_v17, 0.0  ;;  %v5410_v51 = vpop.f32.mrf.mxu2  ;;  %v9393_v17 = vld [vmem:[#allocation11 + $0x154] sm:$0xf]  ;;  %v8558_v4 = vor.u32 %v9441_v53, %v8555_v39 }
 0x5a4   :  { %v11931_v32 = vadd.f32 %v5410_v51, %v11873_v26  ;;  %v11933_v34 = vpop.f32.mrf.mxu0  ;;  %v5373_v38 = vpop.f32.mrf.mxu1  ;;  %v8366_v51 = vor.u32 %v9393_v17, %v8363_v9  ;;  %5696 = vmatpush.bf16.msrb.mxu0 %v8210_v18 }
 0x5a5   :  { %v11935_v7 = vadd.f32 %v5373_v38, %v5325_v6  ;;  %5488 = vmatmul.bf16.gmra.mxu3 %v12979_v2  ;;  %v11938_v26 = vpack.c.bf16 %v3929_v22, %v3921_v48  ;;  %v9351_v38 = vld [vmem:[#allocation11 + $0x4] sm:$0xf] }
 0x5a6   :  { %5838 = vmatpush.bf16.msra.mxu3 %v8558_v4  ;;  %5740 = vmatpush.bf16.msrb.mxu1 %v8366_v51  ;;  %v8198_v53 = vor.u32 %v9351_v38, %v8195_v12  ;;  %v8447_v51 = vld [vmem:[#allocation11 + $0x204] sm:$0xf0] }
 0x5a7   :  { %v8450_v12 = vor.u32 %v9414_v41, %v8447_v51 }
 0x5a8   :  { %v3813_v46 = vpop.f32.mrf.mxu3  ;;  %5697 = vmatpush.bf16.msrb.mxu0 %v8198_v53  ;;  %v8351_v53 = vld [vmem:[#allocation11 + $0x144] sm:$0xf0] }
 0x5a9   :  { %v3814_v6 = vadd.f32 %v3813_v46, %v11881_v14  ;;  %v5330_v14 = vadd.f32 %v11907_v45, %v11841_v37  ;;  %5790 = vmatpush.bf16.msrb.mxu2 %v8450_v12 }
 0x5ab   :  { %v5412_v35 = vpop.f32.mrf.mxu2 }
 0x5ac   :  { %v11944_v39 = vadd.f32 %v5412_v35, %v11885_v52  ;;  %v11946_v22 = vpop.f32.mrf.mxu0  ;;  %v5376_v48 = vpop.f32.mrf.mxu1  ;;  %v3937_v52 = vmax.f32 %v3814_v6, 0.0  ;;  %v9390_v35 = vld [vmem:[#allocation11 + $0x13c] sm:$0xf] }
 0x5ad   :  { %v11948_v5 = vadd.f32 %v5376_v48, %v5328_v58  ;;  %v8543_v58 = vld [vmem:[#allocation11 + $0x2c4] sm:$0xf0] }
 0x5af   :  { %5532 = vmatmul.bf16.gmra.mxu0 %v11328_v31  ;;  %5571 = vmatmul.bf16.gmra.mxu1 %v11482_v10 }
 0x5b0   :  { %5610 = vmatmul.bf16.gmra.mxu2 %v11634_v28  ;;  %v3815_v18 = vpop.f32.mrf.mxu3 }
 0x5b1   :  { %v3816_v4 = vadd.f32 %v3815_v18, %v11893_v55  ;;  %v9438_v55 = vld [vmem:[#allocation11 + $0x2bc] sm:$0xf] }
 0x5b2   :  { %v8546_v6 = vor.u32 %v9438_v55, %v8543_v58  ;;  %v9384_v55 = vld [vmem:[#allocation11 + $0x10c] sm:$0xf]  ;;  %v8327_v58 = vld [vmem:[#allocation11 + $0x114] sm:$0xf0] }
 0x5b3   :  { %v3945_v36 = vmax.f32 %v3816_v4, 0.0  ;;  %v5415_v46 = vpop.f32.mrf.mxu2  ;;  %v9387_v4 = vld [vmem:[#allocation11 + $0x124] sm:$0xf] }
 0x5b4   :  { %v11957_v17 = vadd.f32 %v5415_v46, %v11897_v56  ;;  %v11959_v9 = vpop.f32.mrf.mxu0  ;;  %v5378_v25 = vpop.f32.mrf.mxu1  ;;  %v8354_v56 = vor.u32 %v9390_v35, %v8351_v53  ;;  %5839 = vmatpush.bf16.msra.mxu3 %v8546_v6  ;;  %v5333_v46 = vadd.f32 %v11920_v24, %v11841_v37  ;;  %v8330_v35 = vor.u32 %v9384_v55, %v8327_v58  ;;  %v8315_v53 = vld [vmem:[#allocation11 + $0xfc] sm:$0xf0]  ;;  %v9435_v58 = vld [vmem:[#allocation11 + $0x2a4] sm:$0xf] }
 0x5b5   :  { %v11961_v38 = vadd.f32 %v5378_v25, %v5330_v14  ;;  %5649 = vmatmul.bf16.vlgmr.msrb.gmra.mxu3 %v11783_v44  ;;  %v11964_v45 = vpack.c.bf16 %v3945_v36, %v3937_v52  ;;  %v8339_v14 = vld [vmem:[#allocation11 + $0x12c] sm:$0xf0] }
 0x5b6   :  { %5741 = vmatpush.bf16.msrb.mxu1 %v8354_v56  ;;  %v8342_v41 = vor.u32 %v9387_v4, %v8339_v14  ;;  %v5335_v56 = vadd.f32 %v11933_v34, %v11841_v37  ;;  %v9378_v34 = vld [vmem:[#allocation11 + $0xdc] sm:$0xf] }
 0x5b7   :  { %12980 = vst [vmem:[#allocation26_spill] sm:$0xff] %v11964_v45 }
 0x5b8   :  { %v5454_v48 = vpop.f32.mrf.mxu3 }
 0x5b9   :  { %v5455_v18 = vadd.f32 %v5454_v48, %v11905_v20  ;;  %v12981_v20 = vld [vmem:[#allocation60_spill] sm:$0xff] }
 0x5ba   :  { %5742 = vmatpush.bf16.msrb.mxu1 %v8342_v41  ;;  %v9411_v41 = vld [vmem:[#allocation11 + $0x1e4] sm:$0xf] }
 0x5bb   :  { %v5417_v25 = vpop.f32.mrf.mxu2 }
 0x5bc   :  { %v11970_v51 = vadd.f32 %v5417_v25, %v11909_v40  ;;  %v11972_v52 = vpop.f32.mrf.mxu0  ;;  %v5381_v36 = vpop.f32.mrf.mxu1  ;;  %v9381_v40 = vld [vmem:[#allocation11 + $0xf4] sm:$0xf] }
 0x5bd   :  { %v11974_v12 = vadd.f32 %v5381_v36, %v5333_v46  ;;  %v8318_v4 = vor.u32 %v9381_v40, %v8315_v53  ;;  %v8435_v36 = vld [vmem:[#allocation11 + $0x1ec] sm:$0xf0] }
 0x5be   :  { %5743 = vmatpush.bf16.msrb.mxu1 %v8330_v35  ;;  %v8531_v35 = vld [vmem:[#allocation11 + $0x2ac] sm:$0xf0] }
 0x5bf   :  { %5537 = vmatmul.bf16.gmra.mxu0 %v12981_v20  ;;  %5576 = vmatmul.bf16.gmra.mxu1 %v11506_v23  ;;  %v8291_v23 = vld [vmem:[#allocation11 + $0xcc] sm:$0xf0] }
 0x5c0   :  { %5615 = vmatmul.bf16.gmra.mxu2 %v11659_v50  ;;  %v5456_v24 = vpop.f32.mrf.mxu3  ;;  %v8303_v50 = vld [vmem:[#allocation11 + $0xe4] sm:$0xf0] }
 0x5c1   :  { %v5457_v6 = vadd.f32 %v5456_v24, %v11918_v42  ;;  %v8438_v42 = vor.u32 %v9411_v41, %v8435_v36  ;;  %v8534_v24 = vor.u32 %v9435_v58, %v8531_v35  ;;  %v8306_v40 = vor.u32 %v9378_v34, %v8303_v50  ;;  %v9408_v34 = vld [vmem:[#allocation11 + $0x1cc] sm:$0xf] }
 0x5c2   :  { %5744 = vmatpush.bf16.msrb.mxu1 %v8318_v4 }
 0x5c3   :  { %v5420_v48 = vpop.f32.mrf.mxu2  ;;  %5791 = vmatpush.bf16.msrb.mxu2 %v8438_v42  ;;  %5840 = vmatpush.bf16.msra.mxu3 %v8534_v24 }
 0x5c4   :  { %v11983_v14 = vadd.f32 %v5420_v48, %v11922_v33  ;;  %v11985_v46 = vpop.f32.mrf.mxu0  ;;  %v5383_v25 = vpop.f32.mrf.mxu1  ;;  %v9375_v48 = vld [vmem:[#allocation11 + $0xc4] sm:$0xf] }
 0x5c5   :  { %v11987_v55 = vadd.f32 %v5383_v25, %v5335_v56  ;;  %5654 = vmatmul.bf16.gmra.mxu3 %v11812_v63  ;;  %v5338_v56 = vadd.f32 %v11946_v22, %v11841_v37  ;;  %v8294_v41 = vor.u32 %v9375_v48, %v8291_v23  ;;  %v5340_v23 = vadd.f32 %v11959_v9, %v11841_v37 }
 0x5c6   :  { %5745 = vmatpush.bf16.msrb.mxu1 %v8306_v40  ;;  %v8423_v40 = vld [vmem:[#allocation11 + $0x1d4] sm:$0xf0] }
 0x5c8   :  { %v5459_v33 = vpop.f32.mrf.mxu3 }
 0x5c9   :  { %v5460_v53 = vadd.f32 %v5459_v33, %v11931_v32 }
 0x5ca   :  { %5746 = vmatpush.bf16.msrb.mxu1 %v8294_v41 }
 0x5cb   :  { %v5422_v25 = vpop.f32.mrf.mxu2 }
 0x5cc   :  { %v11994_v4 = vadd.f32 %v5422_v25, %v11935_v7  ;;  %v5386_v36 = vpop.f32.mrf.mxu1  ;;  %v5503_v58 = vpop.f32.mrf.mxu0  ;;  %v9432_v25 = vld [vmem:[#allocation11 + $0x28c] sm:$0xf] }
 0x5cd   :  { %v11996_v35 = vadd.f32 %v5386_v36, %v5338_v56  ;;  %v11998_v50 = vadd.f32 %v5503_v58, %v5455_v18  ;;  %v8426_v56 = vor.u32 %v9408_v34, %v8423_v40  ;;  %v5343_v36 = vadd.f32 %v11972_v52, %v11841_v37  ;;  %v9405_v34 = vld [vmem:[#allocation11 + $0x1b4] sm:$0xf]  ;;  %v8411_v52 = vld [vmem:[#allocation11 + $0x1bc] sm:$0xf0] }
 0x5cf   :  { %5581 = vmatmul.bf16.gmra.mxu1 %v11532_v60  ;;  %5698 = vmatmul.bf16.vlgmr.msrb.gmra.mxu0 %v12940_v21 }
 0x5d0   :  { %5620 = vmatmul.bf16.gmra.mxu2 %v11684_v1  ;;  %v5461_v32 = vpop.f32.mrf.mxu3 }
 0x5d1   :  { %v5462_v22 = vadd.f32 %v5461_v32, %v11944_v39  ;;  %v8519_v39 = vld [vmem:[#allocation11 + $0x294] sm:$0xf0]  ;;  %5792 = vmatpush.bf16.msrb.mxu2 %v8426_v56  ;;  %v8414_v56 = vor.u32 %v9405_v34, %v8411_v52  ;;  %v8387_v34 = vld [vmem:[#allocation11 + $0x18c] sm:$0xf0] }
 0x5d2   :  { %v8522_v41 = vor.u32 %v9432_v25, %v8519_v39 }
 0x5d3   :  { %v5425_v7 = vpop.f32.mrf.mxu2 }
 0x5d4   :  { %v12007_v42 = vadd.f32 %v5425_v7, %v11948_v5  ;;  %v5388_v24 = vpop.f32.mrf.mxu1  ;;  %v5505_v18 = vpop.f32.mrf.mxu0  ;;  %5841 = vmatpush.bf16.msra.mxu3 %v8522_v41 }
 0x5d5   :  { %v12009_v33 = vadd.f32 %v5388_v24, %v5340_v23  ;;  %v12011_v48 = vadd.f32 %v5505_v18, %v5457_v6  ;;  %5659 = vmatmul.bf16.gmra.mxu3 %v11839_v0  ;;  %5793 = vmatpush.bf16.msrb.mxu2 %v8414_v56 }
 0x5d8   :  { %v5464_v9 = vpop.f32.mrf.mxu3 }
 0x5d9   :  { %v5465_v5 = vadd.f32 %v5464_v9, %v11957_v17 }
 0x5db   :  { %v5427_v58 = vpop.f32.mrf.mxu2 }
 0x5dc   :  { %v12018_v32 = vadd.f32 %v5427_v58, %v11961_v38  ;;  %v5391_v6 = vpop.f32.mrf.mxu1  ;;  %v5508_v23 = vpop.f32.mrf.mxu0  ;;  %v5345_v38 = vadd.f32 %v11985_v46, %v11841_v37 }
 0x5dd   :  { %v12020_v7 = vadd.f32 %v5391_v6, %v5343_v36  ;;  %v5509_v24 = vadd.f32 %v5508_v23, %v5460_v53  ;;  %v9429_v36 = vld [vmem:[#allocation11 + $0x274] sm:$0xf]  ;;  %v9402_v6 = vld [vmem:[#allocation11 + $0x19c] sm:$0xf]  ;;  %v8399_v23 = vld [vmem:[#allocation11 + $0x1a4] sm:$0xf0] }
 0x5df   :  { %5586 = vmatmul.bf16.gmra.mxu1 %v11558_v11  ;;  %5703 = vmatmul.bf16.gmra.mxu0 %v12942_v47 }
 0x5e0   :  { %5625 = vmatmul.bf16.gmra.mxu2 %v11708_v54  ;;  %v5466_v18 = vpop.f32.mrf.mxu3 }
 0x5e1   :  { %v5467_v17 = vadd.f32 %v5466_v18, %v11970_v51  ;;  %v8507_v51 = vld [vmem:[#allocation11 + $0x27c] sm:$0xf0]  ;;  %v8402_v18 = vor.u32 %v9402_v6, %v8399_v23  ;;  %v9426_v23 = vld [vmem:[#allocation11 + $0x25c] sm:$0xf] }
 0x5e2   :  { %v8510_v58 = vor.u32 %v9429_v36, %v8507_v51 }
 0x5e3   :  { %v5430_v40 = vpop.f32.mrf.mxu2  ;;  %5794 = vmatpush.bf16.msrb.mxu2 %v8402_v18  ;;  %v8495_v18 = vld [vmem:[#allocation11 + $0x264] sm:$0xf0] }
 0x5e4   :  { %v12029_v25 = vadd.f32 %v5430_v40, %v11974_v12  ;;  %v5393_v53 = vpop.f32.mrf.mxu1  ;;  %v5510_v39 = vpop.f32.mrf.mxu0  ;;  %5842 = vmatpush.bf16.msra.mxu3 %v8510_v58  ;;  %v9399_v12 = vld [vmem:[#allocation11 + $0x184] sm:$0xf] }
 0x5e5   :  { %v12031_v41 = vadd.f32 %v5393_v53, %v5345_v38  ;;  %v5511_v9 = vadd.f32 %v5510_v39, %v5462_v22  ;;  %5664 = vmatmul.bf16.gmra.mxu3 %v11863_v8  ;;  %v8390_v38 = vor.u32 %v9399_v12, %v8387_v34 }
 0x5e7   :  { %5795 = vmatpush.bf16.msrb.mxu2 %v8390_v38 }
 0x5e8   :  { %v5469_v37 = vpop.f32.mrf.mxu3 }
 0x5e9   :  { %v5470_v46 = vadd.f32 %v5469_v37, %v11983_v14  ;;  %v8498_v37 = vor.u32 %v9426_v23, %v8495_v18 }
 0x5eb   :  { %v5432_v52 = vpop.f32.mrf.mxu2  ;;  %5843 = vmatpush.bf16.msra.mxu3 %v8498_v37 }
 0x5ec   :  { %v5433_v22 = vadd.f32 %v5432_v52, %v11987_v55  ;;  %v5513_v40 = vpop.f32.mrf.mxu0  ;;  %v5552_v53 = vpop.f32.mrf.mxu1 }
 0x5ed   :  { %v5514_v56 = vadd.f32 %v5513_v40, %v5465_v5  ;;  %v12037_v39 = vadd.f32 %v5552_v53, %v11998_v50 }
 0x5ef   :  { %5708 = vmatmul.bf16.gmra.mxu0 %v12943_v27  ;;  %5747 = vmatmul.bf16.vlgmr.msrb.gmra.mxu1 %v12944_v16 }
 0x5f0   :  { %5630 = vmatmul.bf16.gmra.mxu2 %v11734_v15  ;;  %v5471_v14 = vpop.f32.mrf.mxu3 }
 0x5f1   :  { %v5472_v36 = vadd.f32 %v5471_v14, %v11994_v4 }
 0x5f3   :  { %v5435_v51 = vpop.f32.mrf.mxu2 }
 0x5f4   :  { %v12044_v58 = vadd.f32 %v5435_v51, %v11996_v35  ;;  %v5515_v55 = vpop.f32.mrf.mxu0  ;;  %v5554_v6 = vpop.f32.mrf.mxu1 }
 0x5f5   :  { %v5516_v5 = vadd.f32 %v5515_v55, %v5467_v17  ;;  %v12047_v50 = vadd.f32 %v5554_v6, %v12011_v48  ;;  %5669 = vmatmul.bf16.gmra.mxu3 %v11888_v13  ;;  %v8483_v6 = vld [vmem:[#allocation11 + $0x24c] sm:$0xf0] }
 0x5f8   :  { %v5474_v12 = vpop.f32.mrf.mxu3 }
 0x5f9   :  { %v5475_v34 = vadd.f32 %v5474_v12, %v12007_v42 }
 0x5fb   :  { %v5437_v4 = vpop.f32.mrf.mxu2 }
 0x5fc   :  { %v12052_v52 = vadd.f32 %v5437_v4, %v12009_v33  ;;  %v5518_v35 = vpop.f32.mrf.mxu0  ;;  %v5557_v38 = vpop.f32.mrf.mxu1 }
 0x5fd   :  { %v12054_v40 = vadd.f32 %v5518_v35, %v5470_v46  ;;  %v12056_v17 = vadd.f32 %v5557_v38, %v5509_v24  ;;  %v9423_v24 = vld [vmem:[#allocation11 + $0x244] sm:$0xf]  ;;  %v8663_v38 = vld [vmem:[#allocation11 + $0x3b4] sm:$0xf0] }
 0x5fe   :  { %v8486_v23 = vor.u32 %v9423_v24, %v8483_v6 }
 0x5ff   :  { %5713 = vmatmul.bf16.gmra.mxu0 %v12946_v62  ;;  %5752 = vmatmul.bf16.gmra.mxu1 %v12947_v59 }
 0x600   :  { %5635 = vmatmul.bf16.gmra.mxu2 %v11760_v61  ;;  %v5476_v48 = vpop.f32.mrf.mxu3  ;;  %5844 = vmatpush.bf16.msra.mxu3 %v8486_v23  ;;  %v9516_v23 = vld [vmem:[#allocation11 + $0x52c] sm:$0xf] }
 0x601   :  { %v5477_v53 = vadd.f32 %v5476_v48, %v12018_v32 }
 0x603   :  { %v5440_v42 = vpop.f32.mrf.mxu2 }
 0x604   :  { %v12063_v14 = vadd.f32 %v5440_v42, %v12020_v7  ;;  %v5520_v33 = vpop.f32.mrf.mxu0  ;;  %v5559_v51 = vpop.f32.mrf.mxu1 }
 0x605   :  { %v12065_v55 = vadd.f32 %v5520_v33, %v5472_v36  ;;  %v12067_v46 = vadd.f32 %v5559_v51, %v5511_v9  ;;  %5674 = vmatmul.bf16.gmra.mxu3 %v11912_v30  ;;  %v9468_v9 = vld [vmem:[#allocation11 + $0x3ac] sm:$0xf]  ;;  %v8651_v33 = vld [vmem:[#allocation11 + $0x39c] sm:$0xf0] }
 0x606   :  { %v8666_v48 = vor.u32 %v9468_v9, %v8663_v38  ;;  %v8951_v9 = vld [vmem:[#allocation11 + $0x5f4] sm:$0xf0]  ;;  %v9492_v38 = vld [vmem:[#allocation11 + $0x46c] sm:$0xf] }
 0x608   :  { %v5479_v18 = vpop.f32.mrf.mxu3  ;;  %5886 = vmatpush.bf16.msra.mxu0 %v8666_v48 }
 0x609   :  { %v5480_v37 = vadd.f32 %v5479_v18, %v12029_v25  ;;  %v8855_v18 = vld [vmem:[#allocation11 + $0x534] sm:$0xf0] }
 0x60b   :  { %v5442_v32 = vpop.f32.mrf.mxu2 }
 0x60c   :  { %v12072_v12 = vadd.f32 %v5442_v32, %v12031_v41  ;;  %v5523_v7 = vpop.f32.mrf.mxu0  ;;  %v5562_v4 = vpop.f32.mrf.mxu1  ;;  %v9465_v41 = vld [vmem:[#allocation11 + $0x394] sm:$0xf] }
 0x60d   :  { %v12074_v35 = vadd.f32 %v5523_v7, %v5475_v34  ;;  %v12076_v36 = vadd.f32 %v5562_v4, %v5514_v56  ;;  %v8654_v24 = vor.u32 %v9465_v41, %v8651_v33  ;;  %v8858_v4 = vor.u32 %v9516_v23, %v8855_v18  ;;  %v9462_v41 = vld [vmem:[#allocation11 + $0x37c] sm:$0xf] }
 0x60f   :  { %5718 = vmatmul.bf16.gmra.mxu0 %v12948_v43  ;;  %5757 = vmatmul.bf16.gmra.mxu1 %v12949_v3 }
 0x610   :  { %5796 = vmatmul.bf16.vlgmr.msrb.gmra.mxu2 %v12950_v29  ;;  %v5481_v25 = vpop.f32.mrf.mxu3  ;;  %5887 = vmatpush.bf16.msra.mxu0 %v8654_v24 }
 0x611   :  { %v5482_v42 = vadd.f32 %v5481_v25, %v5433_v22  ;;  %v9540_v22 = vld [vmem:[#allocation11 + $0x5ec] sm:$0xf]  ;;  %v8759_v25 = vld [vmem:[#allocation11 + $0x474] sm:$0xf0]  ;;  %5984 = vmatpush.bf16.msra.mxu2 %v8858_v4 }
 0x612   :  { %v8954_v48 = vor.u32 %v9540_v22, %v8951_v9  ;;  %v8762_v33 = vor.u32 %v9492_v38, %v8759_v25  ;;  %v9456_v38 = vld [vmem:[#allocation11 + $0x34c] sm:$0xf] }
 0x613   :  { %v5601_v51 = vpop.f32.mrf.mxu2 }
 0x614   :  { %v12082_v34 = vadd.f32 %v5601_v51, %v12037_v39  ;;  %v5525_v56 = vpop.f32.mrf.mxu0  ;;  %v5564_v6 = vpop.f32.mrf.mxu1  ;;  %v8639_v39 = vld [vmem:[#allocation11 + $0x384] sm:$0xf0]  ;;  %6033 = vmatpush.bf16.msrb.mxu3 %v8954_v48  ;;  %5935 = vmatpush.bf16.msra.mxu1 %v8762_v33  ;;  %v8615_v48 = vld [vmem:[#allocation11 + $0x354] sm:$0xf0] }
 0x615   :  { %v12084_v32 = vadd.f32 %v5525_v56, %v5477_v53  ;;  %v12086_v7 = vadd.f32 %v5564_v6, %v5516_v5  ;;  %5679 = vmatmul.bf16.gmra.mxu3 %v11938_v26  ;;  %v8642_v51 = vor.u32 %v9462_v41, %v8639_v39  ;;  %v9459_v5 = vld [vmem:[#allocation11 + $0x364] sm:$0xf]  ;;  %v8627_v56 = vld [vmem:[#allocation11 + $0x36c] sm:$0xf0]  ;;  %v9453_v41 = vld [vmem:[#allocation11 + $0x334] sm:$0xf] }
 0x616   :  { %v8630_v24 = vor.u32 %v9459_v5, %v8627_v56 }
 0x617   :  { %5888 = vmatpush.bf16.msra.mxu0 %v8642_v51 }
 0x618   :  { %v5484_v29 = vpop.f32.mrf.mxu3 }
 0x619   :  { %v5485_v53 = vadd.f32 %v5484_v29, %v12044_v58  ;;  %v8618_v29 = vor.u32 %v9456_v38, %v8615_v48  ;;  %v12982_v58 = vld [vmem:[#allocation40_spill] sm:$0xff]  ;;  %v9489_v48 = vld [vmem:[#allocation11 + $0x454] sm:$0xf] }
 0x61a   :  { %v8939_v38 = vld [vmem:[#allocation11 + $0x5dc] sm:$0xf0] }
 0x61b   :  { %v5603_v6 = vpop.f32.mrf.mxu2  ;;  %5889 = vmatpush.bf16.msra.mxu0 %v8630_v24  ;;  %v9513_v24 = vld [vmem:[#allocation11 + $0x514] sm:$0xf] }
 0x61c   :  { %v12091_v23 = vadd.f32 %v5603_v6, %v12047_v50  ;;  %v5528_v18 = vpop.f32.mrf.mxu0  ;;  %v5567_v22 = vpop.f32.mrf.mxu1 }
 0x61d   :  { %v12093_v9 = vadd.f32 %v5528_v18, %v5480_v37  ;;  %v12096_v4 = vadd.f32 %v5567_v22, %v12054_v40  ;;  %v8603_v37 = vld [vmem:[#allocation11 + $0x33c] sm:$0xf0] }
 0x61e   :  { %v8606_v33 = vor.u32 %v9453_v41, %v8603_v37  ;;  %v8843_v18 = vld [vmem:[#allocation11 + $0x51c] sm:$0xf0]  ;;  %v9450_v41 = vld [vmem:[#allocation11 + $0x31c] sm:$0xf]  ;;  %v8591_v37 = vld [vmem:[#allocation11 + $0x324] sm:$0xf0] }
 0x61f   :  { %5723 = vmatmul.bf16.gmra.mxu0 %v12951_v19  ;;  %5762 = vmatmul.bf16.gmra.mxu1 %v12952_v49  ;;  %v8846_v22 = vor.u32 %v9513_v24, %v8843_v18 }
 0x620   :  { %5801 = vmatmul.bf16.gmra.mxu2 %v12982_v58  ;;  %v5486_v25 = vpop.f32.mrf.mxu3  ;;  %5890 = vmatpush.bf16.msra.mxu0 %v8618_v29  ;;  %v8747_v29 = vld [vmem:[#allocation11 + $0x45c] sm:$0xf0] }
 0x621   :  { %v5487_v50 = vadd.f32 %v5486_v25, %v12052_v52  ;;  %v9537_v52 = vld [vmem:[#allocation11 + $0x5d4] sm:$0xf]  ;;  %5985 = vmatpush.bf16.msra.mxu2 %v8846_v22 }
 0x622   :  { %v8942_v25 = vor.u32 %v9537_v52, %v8939_v38  ;;  %v12983_v22 = vld [vmem:[#allocation30_spill] sm:$0xff] }
 0x623   :  { %v5606_v39 = vpop.f32.mrf.mxu2 }
 0x624   :  { %v12103_v40 = vadd.f32 %v5606_v39, %v12056_v17  ;;  %v5530_v51 = vpop.f32.mrf.mxu0  ;;  %v5569_v5 = vpop.f32.mrf.mxu1  ;;  %5891 = vmatpush.bf16.msra.mxu0 %v8606_v33  ;;  %v8750_v17 = vor.u32 %v9489_v48, %v8747_v29  ;;  %6034 = vmatpush.bf16.msrb.mxu3 %v8942_v25  ;;  %v12985_v29 = vld [vmem:[#allocation41_spill] sm:$0xff] }
 0x625   :  { %v12105_v56 = vadd.f32 %v5530_v51, %v5482_v42  ;;  %v12108_v6 = vadd.f32 %v5569_v5, %v12065_v55  ;;  %5684 = vmatmul.bf16.gmra.mxu3 %v11964_v45  ;;  %v8594_v42 = vor.u32 %v9450_v41, %v8591_v37  ;;  %v9447_v51 = vld [vmem:[#allocation11 + $0x304] sm:$0xf]  ;;  %v8579_v5 = vld [vmem:[#allocation11 + $0x30c] sm:$0xf0] }
 0x626   :  { %5936 = vmatpush.bf16.msra.mxu1 %v8750_v17  ;;  %v8582_v45 = vor.u32 %v9447_v51, %v8579_v5  ;;  %v12986_v51 = vld [vmem:[#allocation47_spill] sm:$0xff] }
 0x628   :  { %v5489_v39 = vpop.f32.mrf.mxu3  ;;  %5892 = vmatpush.bf16.msra.mxu0 %v8594_v42  ;;  %v8831_v42 = vld [vmem:[#allocation11 + $0x504] sm:$0xf0] }
 0x629   :  { %v5490_v55 = vadd.f32 %v5489_v39, %v12063_v14  ;;  %v12984_v14 = vld [vmem:[#allocation35_spill] sm:$0xff] }
 0x62a   :  { %v9510_v39 = vld [vmem:[#allocation11 + $0x4fc] sm:$0xf] }
 0x62b   :  { %v5608_v33 = vpop.f32.mrf.mxu2  ;;  %v8834_v5 = vor.u32 %v9510_v39, %v8831_v42 }
 0x62c   :  { %v12113_v24 = vadd.f32 %v5608_v33, %v12067_v46  ;;  %v5533_v18 = vpop.f32.mrf.mxu0  ;;  %v5572_v52 = vpop.f32.mrf.mxu1  ;;  %5893 = vmatpush.bf16.msra.mxu0 %v8582_v45  ;;  %v9534_v33 = vld [vmem:[#allocation11 + $0x5bc] sm:$0xf] }
 0x62d   :  { %v12115_v38 = vadd.f32 %v5533_v18, %v5485_v53  ;;  %v12118_v48 = vadd.f32 %v5572_v52, %v12074_v35  ;;  %v8927_v18 = vld [vmem:[#allocation11 + $0x5c4] sm:$0xf0]  ;;  %v9486_v52 = vld [vmem:[#allocation11 + $0x43c] sm:$0xf]  ;;  %5986 = vmatpush.bf16.msra.mxu2 %v8834_v5  ;;  %v9480_v5 = vld [vmem:[#allocation11 + $0x40c] sm:$0xf] }
 0x62f   :  { %5728 = vmatmul.bf16.gmra.mxu0 %v12983_v22  ;;  %5767 = vmatmul.bf16.gmra.mxu1 %v12984_v14 }
 0x630   :  { %5806 = vmatmul.bf16.gmra.mxu2 %v12985_v29  ;;  %v5491_v25 = vpop.f32.mrf.mxu3 }
 0x631   :  { %v5492_v17 = vadd.f32 %v5491_v25, %v12072_v12  ;;  %v8930_v12 = vor.u32 %v9534_v33, %v8927_v18  ;;  %v8735_v25 = vld [vmem:[#allocation11 + $0x444] sm:$0xf0]  ;;  %v8711_v18 = vld [vmem:[#allocation11 + $0x414] sm:$0xf0] }
 0x633   :  { %v5611_v41 = vpop.f32.mrf.mxu2  ;;  %6035 = vmatpush.bf16.msrb.mxu3 %v8930_v12  ;;  %v8714_v12 = vor.u32 %v9480_v5, %v8711_v18 }
 0x634   :  { %v12125_v46 = vadd.f32 %v5611_v41, %v12076_v36  ;;  %v5535_v37 = vpop.f32.mrf.mxu0  ;;  %v5574_v53 = vpop.f32.mrf.mxu1  ;;  %v8738_v36 = vor.u32 %v9486_v52, %v8735_v25  ;;  %v12987_v52 = vld [vmem:[#allocation31_spill] sm:$0xff]  ;;  %v12989_v25 = vld [vmem:[#allocation42_spill] sm:$0xff] }
 0x635   :  { %v12127_v35 = vadd.f32 %v5535_v37, %v5487_v50  ;;  %v12130_v45 = vadd.f32 %v5574_v53, %v12084_v32  ;;  %5845 = vmatmul.bf16.vlgmr.msra.gmra.mxu3 %v12986_v51  ;;  %v9483_v50 = vld [vmem:[#allocation11 + $0x424] sm:$0xf]  ;;  %v8723_v37 = vld [vmem:[#allocation11 + $0x42c] sm:$0xf0] }
 0x636   :  { %5937 = vmatpush.bf16.msra.mxu1 %v8738_v36  ;;  %v8726_v32 = vor.u32 %v9483_v50, %v8723_v37 }
 0x638   :  { %v5650_v41 = vpop.f32.mrf.mxu3 }
 0x639   :  { %v5651_v29 = vadd.f32 %v5650_v41, %v12082_v34  ;;  %v12988_v34 = vld [vmem:[#allocation36_spill] sm:$0xff] }
 0x63a   :  { %5938 = vmatpush.bf16.msra.mxu1 %v8726_v32 }
 0x63b   :  { %v5613_v14 = vpop.f32.mrf.mxu2  ;;  %v6474_v41 = vmax.f32 %v5651_v29, 0.0 }
 0x63c   :  { %v12135_v53 = vadd.f32 %v5613_v14, %v12086_v7  ;;  %v5538_v39 = vpop.f32.mrf.mxu0  ;;  %v5577_v42 = vpop.f32.mrf.mxu1  ;;  %v9477_v14 = vld [vmem:[#allocation11 + $0x3f4] sm:$0xf] }
 0x63d   :  { %v12137_v51 = vadd.f32 %v5538_v39, %v5490_v55  ;;  %v12140_v33 = vadd.f32 %v5577_v42, %v12093_v9  ;;  %v8699_v55 = vld [vmem:[#allocation11 + $0x3fc] sm:$0xf0] }
 0x63e   :  { %5939 = vmatpush.bf16.msra.mxu1 %v8714_v12  ;;  %v8702_v37 = vor.u32 %v9477_v14, %v8699_v55  ;;  %v12991_v12 = vld [vmem:[#allocation48_spill] sm:$0xff]  ;;  %v8687_v55 = vld [vmem:[#allocation11 + $0x3e4] sm:$0xf0] }
 0x63f   :  { %5733 = vmatmul.bf16.gmra.mxu0 %v12987_v52  ;;  %5772 = vmatmul.bf16.gmra.mxu1 %v12988_v34  ;;  %v9507_v52 = vld [vmem:[#allocation11 + $0x4e4] sm:$0xf]  ;;  %v8819_v34 = vld [vmem:[#allocation11 + $0x4ec] sm:$0xf0] }
 0x640   :  { %5811 = vmatmul.bf16.gmra.mxu2 %v12989_v25  ;;  %v5652_v36 = vpop.f32.mrf.mxu3  ;;  %v8822_v29 = vor.u32 %v9507_v52, %v8819_v34 }
 0x641   :  { %v5653_v7 = vadd.f32 %v5652_v36, %v12091_v23  ;;  %v9531_v36 = vld [vmem:[#allocation11 + $0x5a4] sm:$0xf] }
 0x642   :  { %5940 = vmatpush.bf16.msra.mxu1 %v8702_v37  ;;  %5987 = vmatpush.bf16.msra.mxu2 %v8822_v29  ;;  %v12992_v29 = vld [vmem:[#allocation37_spill] sm:$0xff] }
 0x643   :  { %v6477_v50 = vmax.f32 %v5653_v7, 0.0  ;;  %v5616_v9 = vpop.f32.mrf.mxu2  ;;  %v8915_v7 = vld [vmem:[#allocation11 + $0x5ac] sm:$0xf0] }
 0x644   :  { %v12147_v32 = vadd.f32 %v5616_v9, %v12096_v4  ;;  %v5540_v39 = vpop.f32.mrf.mxu0  ;;  %v5579_v42 = vpop.f32.mrf.mxu1  ;;  %v8918_v14 = vor.u32 %v9531_v36, %v8915_v7  ;;  %v9474_v4 = vld [vmem:[#allocation11 + $0x3dc] sm:$0xf] }
 0x645   :  { %v12149_v5 = vpack.c.bf16 %v6477_v50, %v6474_v41  ;;  %v12151_v18 = vadd.f32 %v5540_v39, %v5492_v17  ;;  %v12154_v23 = vadd.f32 %v5579_v42, %v12105_v56  ;;  %5850 = vmatmul.bf16.gmra.mxu3 %v12991_v12  ;;  %v8690_v9 = vor.u32 %v9474_v4, %v8687_v55  ;;  %v9471_v17 = vld [vmem:[#allocation11 + $0x3c4] sm:$0xf]  ;;  %v8675_v50 = vld [vmem:[#allocation11 + $0x3cc] sm:$0xf0]  ;;  %v12993_v36 = vld [vmem:[#allocation55_spill] sm:$0xff] }
 0x646   :  { %6036 = vmatpush.bf16.msrb.mxu3 %v8918_v14  ;;  %v8678_v39 = vor.u32 %v9471_v17, %v8675_v50  ;;  %v8807_v50 = vld [vmem:[#allocation11 + $0x4d4] sm:$0xf0] }
 0x647   :  { %12990 = vst [vmem:[#allocation23_spill] sm:$0xff] %v12149_v5  ;;  %5941 = vmatpush.bf16.msra.mxu1 %v8690_v9  ;;  %v9528_v5 = vld [vmem:[#allocation11 + $0x58c] sm:$0xf] }
 0x648   :  { %v5655_v25 = vpop.f32.mrf.mxu3 }
 0x649   :  { %v5656_v41 = vadd.f32 %v5655_v25, %v12103_v40  ;;  %v12994_v40 = vld [vmem:[#allocation43_spill] sm:$0xff] }
 0x64b   :  { %v5618_v56 = vpop.f32.mrf.mxu2  ;;  %5942 = vmatpush.bf16.msra.mxu1 %v8678_v39  ;;  %v6480_v14 = vmax.f32 %v5656_v41, 0.0  ;;  %v12995_v39 = vld [vmem:[#allocation49_spill] sm:$0xff] }
 0x64c   :  { %v12159_v42 = vadd.f32 %v5618_v56, %v12108_v6  ;;  %v5582_v52 = vpop.f32.mrf.mxu1  ;;  %v12161_v34 = vpop.f32.mrf.mxu0 }
 0x64d   :  { %v12164_v37 = vadd.f32 %v5582_v52, %v12115_v38  ;;  %v9504_v38 = vld [vmem:[#allocation11 + $0x4cc] sm:$0xf] }
 0x64e   :  { %v8810_v52 = vor.u32 %v9504_v38, %v8807_v50  ;;  %v12997_v38 = vld [vmem:[#allocation38_spill] sm:$0xff]  ;;  %v8795_v50 = vld [vmem:[#allocation11 + $0x4bc] sm:$0xf0] }
 0x64f   :  { %5777 = vmatmul.bf16.gmra.mxu1 %v12992_v29  ;;  %5894 = vmatmul.bf16.vlgmr.msra.gmra.mxu0 %v12993_v36 }
 0x650   :  { %5816 = vmatmul.bf16.gmra.mxu2 %v12994_v40  ;;  %v5657_v25 = vpop.f32.mrf.mxu3  ;;  %v8903_v40 = vld [vmem:[#allocation11 + $0x594] sm:$0xf0] }
 0x651   :  { %v5658_v7 = vadd.f32 %v5657_v25, %v12113_v24  ;;  %v8906_v41 = vor.u32 %v9528_v5, %v8903_v40  ;;  %5988 = vmatpush.bf16.msra.mxu2 %v8810_v52  ;;  %v12999_v5 = vld [vmem:[#allocation44_spill] sm:$0xff] }
 0x653   :  { %v6483_v4 = vmax.f32 %v5658_v7, 0.0  ;;  %v5621_v6 = vpop.f32.mrf.mxu2  ;;  %6037 = vmatpush.bf16.msrb.mxu3 %v8906_v41 }
 0x654   :  { %v12171_v55 = vadd.f32 %v5621_v6, %v12118_v48  ;;  %v5584_v9 = vpop.f32.mrf.mxu1  ;;  %v12173_v17 = vpop.f32.mrf.mxu0 }
 0x655   :  { %v12176_v56 = vadd.f32 %v5584_v9, %v12127_v35  ;;  %5855 = vmatmul.bf16.gmra.mxu3 %v12995_v39  ;;  %v12179_v24 = vpack.c.bf16 %v6483_v4, %v6480_v14  ;;  %v12998_v14 = vld [vmem:[#allocation56_spill] sm:$0xff]  ;;  %v9374_v39 = vld [vmem:[#allocation11 + $0xb8] sm:$0xf0] }
 0x657   :  { %12996 = vst [vmem:[#allocation27_spill] sm:$0xff] %v12179_v24 }
 0x658   :  { %v5660_v25 = vpop.f32.mrf.mxu3 }
 0x659   :  { %v5661_v48 = vadd.f32 %v5660_v25, %v12125_v46  ;;  %v9501_v46 = vld [vmem:[#allocation11 + $0x4b4] sm:$0xf] }
 0x65a   :  { %v8798_v25 = vor.u32 %v9501_v46, %v8795_v50 }
 0x65b   :  { %v5623_v7 = vpop.f32.mrf.mxu2  ;;  %v6486_v52 = vmax.f32 %v5661_v48, 0.0  ;;  %v9498_v48 = vld [vmem:[#allocation11 + $0x49c] sm:$0xf] }
 0x65c   :  { %v12183_v6 = vadd.f32 %v5623_v7, %v12130_v45  ;;  %v5587_v36 = vpop.f32.mrf.mxu1  ;;  %v12185_v35 = vpop.f32.mrf.mxu0  ;;  %5989 = vmatpush.bf16.msra.mxu2 %v8798_v25  ;;  %v9495_v25 = vld [vmem:[#allocation11 + $0x484] sm:$0xf] }
 0x65d   :  { %v12188_v9 = vadd.f32 %v5587_v36, %v12137_v51 }
 0x65f   :  { %5782 = vmatmul.bf16.gmra.mxu1 %v12997_v38  ;;  %5899 = vmatmul.bf16.gmra.mxu0 %v12998_v14  ;;  %v13000_v14 = vld [vmem:[#allocation50_spill] sm:$0xff]  ;;  %v8891_v38 = vld [vmem:[#allocation11 + $0x57c] sm:$0xf0] }
 0x660   :  { %5821 = vmatmul.bf16.gmra.mxu2 %v12999_v5  ;;  %v5662_v40 = vpop.f32.mrf.mxu3  ;;  %v9525_v5 = vld [vmem:[#allocation11 + $0x574] sm:$0xf] }
 0x661   :  { %v5663_v4 = vadd.f32 %v5662_v40, %v12135_v53  ;;  %v8894_v40 = vor.u32 %v9525_v5, %v8891_v38 }
 0x663   :  { %v6489_v45 = vmax.f32 %v5663_v4, 0.0  ;;  %v5626_v41 = vpop.f32.mrf.mxu2  ;;  %v8783_v4 = vld [vmem:[#allocation11 + $0x4a4] sm:$0xf0]  ;;  %6038 = vmatpush.bf16.msrb.mxu3 %v8894_v40 }
 0x664   :  { %v12195_v7 = vadd.f32 %v5626_v41, %v12140_v33  ;;  %v5589_v51 = vpop.f32.mrf.mxu1  ;;  %v5706_v36 = vpop.f32.mrf.mxu0  ;;  %v9677_v33 = vld [vmem:[%s12808_s6] sm:$0x7]  ;;  %v8786_v50 = vor.u32 %v9498_v48, %v8783_v4  ;;  %v13002_v48 = vld [vmem:[#allocation57_spill] sm:$0xff] }
 0x665   :  { %v12198_v24 = vadd.f32 %v5589_v51, %v12151_v18  ;;  %5860 = vmatmul.bf16.gmra.mxu3 %v13000_v14  ;;  %v12201_v53 = vpack.c.bf16 %v6489_v45, %v6486_v52  ;;  %v12206_v46 = vperm.slane %v9677_v33, 1  ;;  %v8771_v51 = vld [vmem:[#allocation11 + $0x48c] sm:$0xf0]  ;;  %v13003_v40 = vld [vmem:[#allocation61_spill] sm:$0xff] }
 0x666   :  { %5990 = vmatpush.bf16.msra.mxu2 %v8786_v50  ;;  %v8774_v5 = vor.u32 %v9495_v25, %v8771_v51 }
 0x667   :  { %13001 = vst [vmem:[#allocation32_spill] sm:$0xff] %v12201_v53  ;;  %v5700_v52 = vadd.f32 %v12161_v34, %v12206_v46  ;;  %v5702_v34 = vadd.f32 %v12173_v17, %v12206_v46 }
 0x668   :  { %v5665_v41 = vpop.f32.mrf.mxu3 }
 0x669   :  { %v5666_v18 = vadd.f32 %v5665_v41, %v12147_v32  ;;  %v13004_v32 = vld [vmem:[#allocation45_spill] sm:$0xff] }
 0x66a   :  { %5991 = vmatpush.bf16.msra.mxu2 %v8774_v5  ;;  %v13005_v5 = vld [vmem:[#allocation51_spill] sm:$0xff] }
 0x66b   :  { %v5628_v38 = vpop.f32.mrf.mxu2  ;;  %v6492_v41 = vmax.f32 %v5666_v18, 0.0  ;;  %v5705_v18 = vadd.f32 %v12185_v35, %v12206_v46  ;;  %v5707_v35 = vadd.f32 %v5706_v36, %v12206_v46 }
 0x66c   :  { %v12212_v45 = vadd.f32 %v5628_v38, %v12154_v23  ;;  %v5709_v53 = vpop.f32.mrf.mxu0  ;;  %v5748_v14 = vpop.f32.mrf.mxu1 }
 0x66d   :  { %v12214_v33 = vadd.f32 %v5748_v14, %v5700_v52 }
 0x66f   :  { %5904 = vmatmul.bf16.gmra.mxu0 %v13002_v48  ;;  %5943 = vmatmul.bf16.vlgmr.msra.gmra.mxu1 %v13003_v40  ;;  %v9522_v40 = vld [vmem:[#allocation11 + $0x55c] sm:$0xf] }
 0x670   :  { %5826 = vmatmul.bf16.gmra.mxu2 %v13004_v32  ;;  %v5667_v4 = vpop.f32.mrf.mxu3  ;;  %v8879_v32 = vld [vmem:[#allocation11 + $0x564] sm:$0xf0] }
 0x671   :  { %v5668_v50 = vadd.f32 %v5667_v4, %v12159_v42  ;;  %v8882_v42 = vor.u32 %v9522_v40, %v8879_v32  ;;  %v13009_v40 = vld [vmem:[#allocation46_spill] sm:$0xff] }
 0x673   :  { %v6495_v23 = vmax.f32 %v5668_v50, 0.0  ;;  %v5631_v25 = vpop.f32.mrf.mxu2  ;;  %6039 = vmatpush.bf16.msrb.mxu3 %v8882_v42 }
 0x674   :  { %v12223_v51 = vadd.f32 %v5631_v25, %v12164_v37  ;;  %v5711_v14 = vpop.f32.mrf.mxu0  ;;  %v5750_v52 = vpop.f32.mrf.mxu1 }
 0x675   :  { %v12225_v38 = vadd.f32 %v5750_v52, %v5702_v34  ;;  %5865 = vmatmul.bf16.gmra.mxu3 %v13005_v5  ;;  %v12228_v48 = vpack.c.bf16 %v6495_v23, %v6492_v41  ;;  %v13007_v5 = vld [vmem:[#allocation58_spill] sm:$0xff] }
 0x676   :  { %v13008_v41 = vld [vmem:[#allocation62_spill] sm:$0xff] }
 0x677   :  { %13006 = vst [vmem:[#allocation28_spill] sm:$0xff] %v12228_v48  ;;  %v13010_v48 = vld [vmem:[#allocation52_spill] sm:$0xff] }
 0x678   :  { %v5670_v4 = vpop.f32.mrf.mxu3 }
 0x679   :  { %v5671_v17 = vadd.f32 %v5670_v4, %v12171_v55 }
 0x67b   :  { %v5633_v37 = vpop.f32.mrf.mxu2  ;;  %v6498_v23 = vmax.f32 %v5671_v17, 0.0  ;;  %v5710_v17 = vadd.f32 %v5709_v53, %v12206_v46 }
 0x67c   :  { %v12234_v50 = vadd.f32 %v5633_v37, %v12176_v56  ;;  %v12236_v34 = vpop.f32.mrf.mxu0  ;;  %v5753_v25 = vpop.f32.mrf.mxu1 }
 0x67d   :  { %v12238_v52 = vadd.f32 %v5753_v25, %v5705_v18 }
 0x67f   :  { %5909 = vmatmul.bf16.gmra.mxu0 %v13007_v5  ;;  %5948 = vmatmul.bf16.gmra.mxu1 %v13008_v41  ;;  %v9519_v41 = vld [vmem:[#allocation11 + $0x544] sm:$0xf] }
 0x680   :  { %5831 = vmatmul.bf16.gmra.mxu2 %v13009_v40  ;;  %v5672_v32 = vpop.f32.mrf.mxu3  ;;  %v8867_v40 = vld [vmem:[#allocation11 + $0x54c] sm:$0xf0] }
 0x681   :  { %v5673_v55 = vadd.f32 %v5672_v32, %v12183_v6  ;;  %v8870_v6 = vor.u32 %v9519_v41, %v8867_v40  ;;  %v13013_v41 = vld [vmem:[#allocation63_spill] sm:$0xff] }
 0x683   :  { %v6501_v42 = vmax.f32 %v5673_v55, 0.0  ;;  %v5636_v56 = vpop.f32.mrf.mxu2  ;;  %6040 = vmatpush.bf16.msrb.mxu3 %v8870_v6  ;;  %v9371_v6 = vld [vmem:[#allocation11 + $0xa0] sm:$0xf0] }
 0x684   :  { %v12246_v4 = vadd.f32 %v5636_v56, %v12188_v9  ;;  %v12248_v37 = vpop.f32.mrf.mxu0  ;;  %v5755_v18 = vpop.f32.mrf.mxu1 }
 0x685   :  { %v12250_v25 = vadd.f32 %v5755_v18, %v5707_v35  ;;  %5870 = vmatmul.bf16.gmra.mxu3 %v13010_v48  ;;  %v12253_v5 = vpack.c.bf16 %v6501_v42, %v6498_v23  ;;  %v8285_v48 = vld [vmem:[#allocation11 + $0xb0] sm:$0xf]  ;;  %v13012_v23 = vld [vmem:[#allocation59_spill] sm:$0xff] }
 0x686   :  { %v8286_v40 = vor.u32 %v9374_v39, %v8285_v48  ;;  %v13014_v42 = vld [vmem:[#allocation22_spill] sm:$0xff] }
 0x687   :  { %13011 = vst [vmem:[#allocation33_spill] sm:$0xff] %v12253_v5  ;;  %v8477_v48 = vld [vmem:[#allocation11 + $0x230] sm:$0xf] }
 0x688   :  { %v5675_v32 = vpop.f32.mrf.mxu3  ;;  %6082 = vmatpush.bf16.msrb.mxu0 %v8286_v40  ;;  %v8573_v40 = vld [vmem:[#allocation11 + $0x2f0] sm:$0xf] }
 0x689   :  { %v5676_v36 = vadd.f32 %v5675_v32, %v12195_v7  ;;  %v5712_v32 = vadd.f32 %v5711_v14, %v12206_v46  ;;  %v9446_v14 = vld [vmem:[#allocation11 + $0x2f8] sm:$0xf0] }
 0x68b   :  { %v5638_v9 = vpop.f32.mrf.mxu2  ;;  %v6504_v5 = vmax.f32 %v5676_v36, 0.0  ;;  %v8261_v36 = vld [vmem:[#allocation11 + $0x80] sm:$0xf] }
 0x68c   :  { %v12258_v55 = vadd.f32 %v5638_v9, %v12198_v24  ;;  %v12260_v56 = vpop.f32.mrf.mxu0  ;;  %v5758_v35 = vpop.f32.mrf.mxu1  ;;  %v8273_v24 = vld [vmem:[#allocation11 + $0x98] sm:$0xf] }
 0x68d   :  { %v12262_v18 = vadd.f32 %v5758_v35, %v5710_v17  ;;  %v8274_v35 = vor.u32 %v9371_v6, %v8273_v24  ;;  %v9398_v24 = vld [vmem:[#allocation11 + $0x178] sm:$0xf0]  ;;  %v9368_v6 = vld [vmem:[#allocation11 + $0x88] sm:$0xf0] }
 0x68e   :  { %v8262_v12 = vor.u32 %v9368_v6, %v8261_v36  ;;  %v9359_v6 = vld [vmem:[#allocation11 + $0x40] sm:$0xf0] }
 0x68f   :  { %5914 = vmatmul.bf16.gmra.mxu0 %v13012_v23  ;;  %5953 = vmatmul.bf16.gmra.mxu1 %v13013_v41 }
 0x690   :  { %5992 = vmatmul.bf16.vlgmr.msra.gmra.mxu2 %v13014_v42  ;;  %v5677_v7 = vpop.f32.mrf.mxu3  ;;  %v9422_v42 = vld [vmem:[#allocation11 + $0x238] sm:$0xf0]  ;;  %6083 = vmatpush.bf16.msrb.mxu0 %v8274_v35  ;;  %v9365_v35 = vld [vmem:[#allocation11 + $0x70] sm:$0xf0] }
 0x691   :  { %v5678_v53 = vadd.f32 %v5677_v7, %v12212_v45  ;;  %v8478_v45 = vor.u32 %v9422_v42, %v8477_v48  ;;  %v8381_v7 = vld [vmem:[#allocation11 + $0x170] sm:$0xf]  ;;  %v8249_v42 = vld [vmem:[#allocation11 + $0x68] sm:$0xf] }
 0x693   :  { %v6507_v9 = vmax.f32 %v5678_v53, 0.0  ;;  %v5797_v17 = vpop.f32.mrf.mxu2  ;;  %v8574_v53 = vor.u32 %v9446_v14, %v8573_v40  ;;  %6180 = vmatpush.bf16.msrb.mxu2 %v8478_v45  ;;  %v8250_v40 = vor.u32 %v9365_v35, %v8249_v42 }
 0x694   :  { %v12270_v29 = vadd.f32 %v5797_v17, %v12214_v33  ;;  %v12272_v23 = vpop.f32.mrf.mxu0  ;;  %v5760_v39 = vpop.f32.mrf.mxu1  ;;  %v8382_v17 = vor.u32 %v9398_v24, %v8381_v7  ;;  %6084 = vmatpush.bf16.msrb.mxu0 %v8262_v12  ;;  %v8237_v7 = vld [vmem:[#allocation11 + $0x50] sm:$0xf]  ;;  %v13017_v12 = vld [vmem:[#allocation64_spill] sm:$0xff] }
 0x695   :  { %v12274_v41 = vadd.f32 %v5760_v39, %v5712_v32  ;;  %5875 = vmatmul.bf16.gmra.mxu3 %v12977_v57  ;;  %v12277_v33 = vpack.c.bf16 %v6507_v9, %v6504_v5  ;;  %v5715_v39 = vadd.f32 %v12236_v34, %v12206_v46  ;;  %v13018_v24 = vld [vmem:[#allocation24_spill] sm:$0xff] }
 0x696   :  { %6229 = vmatpush.bf16.msra.mxu3 %v8574_v53  ;;  %6131 = vmatpush.bf16.msrb.mxu1 %v8382_v17  ;;  %v5717_v17 = vadd.f32 %v12248_v37, %v12206_v46  ;;  %v9443_v37 = vld [vmem:[#allocation11 + $0x2e0] sm:$0xf0] }
 0x697   :  { %13015 = vst [vmem:[#allocation29_spill] sm:$0xff] %v12277_v33  ;;  %v9419_v33 = vld [vmem:[#allocation11 + $0x220] sm:$0xf0] }
 0x698   :  { %v5680_v22 = vpop.f32.mrf.mxu3  ;;  %6085 = vmatpush.bf16.msrb.mxu0 %v8250_v40 }
 0x699   :  { %v5681_v32 = vadd.f32 %v5680_v22, %v12223_v51  ;;  %v9362_v22 = vld [vmem:[#allocation11 + $0x58] sm:$0xf0]  ;;  %v13016_v51 = vld [vmem:[#allocation21_spill] sm:$0xff] }
 0x69a   :  { %v8238_v53 = vor.u32 %v9362_v22, %v8237_v7  ;;  %v8465_v22 = vld [vmem:[#allocation11 + $0x218] sm:$0xf] }
 0x69b   :  { %v5799_v48 = vpop.f32.mrf.mxu2 }
 0x69c   :  { %v12283_v14 = vadd.f32 %v5799_v48, %v12225_v38  ;;  %v12285_v5 = vpop.f32.mrf.mxu0  ;;  %v5763_v9 = vpop.f32.mrf.mxu1  ;;  %6086 = vmatpush.bf16.msrb.mxu0 %v8238_v53  ;;  %v8225_v38 = vld [vmem:[#allocation11 + $0x38] sm:$0xf]  ;;  %v6510_v48 = vmax.f32 %v5681_v32, 0.0  ;;  %v8213_v32 = vld [vmem:[#allocation11 + $0x20] sm:$0xf] }
 0x69d   :  { %v12287_v45 = vadd.f32 %v5763_v9, %v5715_v39  ;;  %v8226_v39 = vor.u32 %v9359_v6, %v8225_v38  ;;  %v8561_v53 = vld [vmem:[#allocation11 + $0x2d8] sm:$0xf]  ;;  %v9395_v38 = vld [vmem:[#allocation11 + $0x160] sm:$0xf0]  ;;  %v9356_v6 = vld [vmem:[#allocation11 + $0x28] sm:$0xf0] }
 0x69f   :  { %5919 = vmatmul.bf16.gmra.mxu0 %v13016_v51  ;;  %5958 = vmatmul.bf16.gmra.mxu1 %v13017_v12  ;;  %v8214_v12 = vor.u32 %v9356_v6, %v8213_v32  ;;  %v8453_v6 = vld [vmem:[#allocation11 + $0x200] sm:$0xf] }
 0x6a0   :  { %5997 = vmatmul.bf16.gmra.mxu2 %v13018_v24  ;;  %v5682_v34 = vpop.f32.mrf.mxu3  ;;  %6087 = vmatpush.bf16.msrb.mxu0 %v8226_v39  ;;  %v9353_v39 = vld [vmem:[#allocation11 + $0x10] sm:$0xf0] }
 0x6a1   :  { %v5683_v36 = vadd.f32 %v5682_v34, %v12234_v50  ;;  %v8466_v50 = vor.u32 %v9419_v33, %v8465_v22  ;;  %v8369_v34 = vld [vmem:[#allocation11 + $0x158] sm:$0xf]  ;;  %v8201_v33 = vld [vmem:[#allocation11 + $0x8] sm:$0xf] }
 0x6a3   :  { %v6513_v42 = vmax.f32 %v5683_v36, 0.0  ;;  %v5802_v35 = vpop.f32.mrf.mxu2  ;;  %v8562_v36 = vor.u32 %v9443_v37, %v8561_v53  ;;  %6181 = vmatpush.bf16.msrb.mxu2 %v8466_v50  ;;  %v8202_v53 = vor.u32 %v9353_v39, %v8201_v33 }
 0x6a4   :  { %v12296_v40 = vadd.f32 %v5802_v35, %v12238_v52  ;;  %v12298_v9 = vpop.f32.mrf.mxu0  ;;  %v5765_v7 = vpop.f32.mrf.mxu1  ;;  %v8370_v35 = vor.u32 %v9395_v38, %v8369_v34  ;;  %6088 = vmatpush.bf16.msrb.mxu0 %v8214_v12 }
 0x6a5   :  { %v12300_v24 = vadd.f32 %v5765_v7, %v5717_v17  ;;  %5880 = vmatmul.bf16.gmra.mxu3 %v12979_v2  ;;  %v12303_v52 = vpack.c.bf16 %v6513_v42, %v6510_v48  ;;  %v5720_v7 = vadd.f32 %v12260_v56, %v12206_v46 }
 0x6a6   :  { %6230 = vmatpush.bf16.msra.mxu3 %v8562_v36  ;;  %6132 = vmatpush.bf16.msrb.mxu1 %v8370_v35  ;;  %v9416_v35 = vld [vmem:[#allocation11 + $0x208] sm:$0xf0] }
 0x6a7   :  { %13019 = vst [vmem:[#allocation34_spill] sm:$0xff] %v12303_v52  ;;  %v8454_v39 = vor.u32 %v9416_v35, %v8453_v6  ;;  %v9380_v52 = vld [vmem:[#allocation11 + $0xe8] sm:$0xf0] }
 0x6a8   :  { %v5685_v51 = vpop.f32.mrf.mxu3  ;;  %6089 = vmatpush.bf16.msrb.mxu0 %v8202_v53  ;;  %v9392_v53 = vld [vmem:[#allocation11 + $0x148] sm:$0xf0] }
 0x6a9   :  { %v5686_v17 = vadd.f32 %v5685_v51, %v12246_v4  ;;  %v5722_v51 = vadd.f32 %v12272_v23, %v12206_v46  ;;  %6182 = vmatpush.bf16.msrb.mxu2 %v8454_v39 }
 0x6ab   :  { %v5804_v22 = vpop.f32.mrf.mxu2 }
 0x6ac   :  { %v12309_v37 = vadd.f32 %v5804_v22, %v12250_v25  ;;  %v12311_v42 = vpop.f32.mrf.mxu0  ;;  %v5768_v48 = vpop.f32.mrf.mxu1  ;;  %v6516_v25 = vmax.f32 %v5686_v17, 0.0  ;;  %v8357_v22 = vld [vmem:[#allocation11 + $0x140] sm:$0xf] }
 0x6ad   :  { %v12313_v50 = vadd.f32 %v5768_v48, %v5720_v7  ;;  %v9440_v7 = vld [vmem:[#allocation11 + $0x2c8] sm:$0xf0] }
 0x6af   :  { %5924 = vmatmul.bf16.gmra.mxu0 %v11328_v31  ;;  %5963 = vmatmul.bf16.gmra.mxu1 %v11482_v10 }
 0x6b0   :  { %6002 = vmatmul.bf16.gmra.mxu2 %v11634_v28  ;;  %v5687_v4 = vpop.f32.mrf.mxu3 }
 0x6b1   :  { %v5688_v56 = vadd.f32 %v5687_v4, %v12258_v55  ;;  %v8549_v55 = vld [vmem:[#allocation11 + $0x2c0] sm:$0xf] }
 0x6b2   :  { %v8550_v17 = vor.u32 %v9440_v7, %v8549_v55  ;;  %v8333_v55 = vld [vmem:[#allocation11 + $0x110] sm:$0xf]  ;;  %v9386_v7 = vld [vmem:[#allocation11 + $0x118] sm:$0xf0] }
 0x6b3   :  { %v6519_v12 = vmax.f32 %v5688_v56, 0.0  ;;  %v5807_v34 = vpop.f32.mrf.mxu2  ;;  %v8345_v56 = vld [vmem:[#allocation11 + $0x128] sm:$0xf] }
 0x6b4   :  { %v12322_v36 = vadd.f32 %v5807_v34, %v12262_v18  ;;  %v12324_v38 = vpop.f32.mrf.mxu0  ;;  %v5770_v32 = vpop.f32.mrf.mxu1  ;;  %v8358_v18 = vor.u32 %v9392_v53, %v8357_v22  ;;  %6231 = vmatpush.bf16.msra.mxu3 %v8550_v17  ;;  %v5725_v34 = vadd.f32 %v12285_v5, %v12206_v46  ;;  %v8334_v22 = vor.u32 %v9386_v7, %v8333_v55  ;;  %v13022_v17 = vld [vmem:[#allocation25_spill] sm:$0xff]  ;;  %v9413_v55 = vld [vmem:[#allocation11 + $0x1f0] sm:$0xf0] }
 0x6b5   :  { %v12326_v33 = vadd.f32 %v5770_v32, %v5722_v51  ;;  %6041 = vmatmul.bf16.vlgmr.msrb.gmra.mxu3 %v11783_v44  ;;  %v12329_v23 = vpack.c.bf16 %v6519_v12, %v6516_v25  ;;  %v9389_v51 = vld [vmem:[#allocation11 + $0x130] sm:$0xf0] }
 0x6b6   :  { %6133 = vmatpush.bf16.msrb.mxu1 %v8358_v18  ;;  %v8346_v6 = vor.u32 %v9389_v51, %v8345_v56  ;;  %v9383_v18 = vld [vmem:[#allocation11 + $0x100] sm:$0xf0] }
 0x6b7   :  { %13020 = vst [vmem:[#allocation53_spill] sm:$0xff] %v12329_v23 }
 0x6b8   :  { %v5846_v48 = vpop.f32.mrf.mxu3 }
 0x6b9   :  { %v5847_v4 = vadd.f32 %v5846_v48, %v12270_v29  ;;  %v13021_v29 = vld [vmem:[#allocation20_spill] sm:$0xff]  ;;  %v5727_v48 = vadd.f32 %v12298_v9, %v12206_v46 }
 0x6ba   :  { %6134 = vmatpush.bf16.msrb.mxu1 %v8346_v6  ;;  %v8309_v9 = vld [vmem:[#allocation11 + $0xe0] sm:$0xf] }
 0x6bb   :  { %v5809_v32 = vpop.f32.mrf.mxu2 }
 0x6bc   :  { %v12335_v35 = vadd.f32 %v5809_v32, %v12274_v41  ;;  %v12337_v25 = vpop.f32.mrf.mxu0  ;;  %v5773_v12 = vpop.f32.mrf.mxu1  ;;  %v8321_v41 = vld [vmem:[#allocation11 + $0xf8] sm:$0xf] }
 0x6bd   :  { %v12339_v39 = vadd.f32 %v5773_v12, %v5725_v34  ;;  %v8322_v51 = vor.u32 %v9383_v18, %v8321_v41  ;;  %v8441_v12 = vld [vmem:[#allocation11 + $0x1e8] sm:$0xf]  ;;  %v8310_v41 = vor.u32 %v9380_v52, %v8309_v9  ;;  %v8429_v9 = vld [vmem:[#allocation11 + $0x1d0] sm:$0xf] }
 0x6be   :  { %6135 = vmatpush.bf16.msrb.mxu1 %v8334_v22  ;;  %v8537_v22 = vld [vmem:[#allocation11 + $0x2a8] sm:$0xf] }
 0x6bf   :  { %5929 = vmatmul.bf16.gmra.mxu0 %v12981_v20  ;;  %5968 = vmatmul.bf16.gmra.mxu1 %v13021_v29 }
 0x6c0   :  { %6007 = vmatmul.bf16.gmra.mxu2 %v13022_v17  ;;  %v5848_v5 = vpop.f32.mrf.mxu3  ;;  %v9377_v17 = vld [vmem:[#allocation11 + $0xd0] sm:$0xf0] }
 0x6c1   :  { %v5849_v53 = vadd.f32 %v5848_v5, %v12283_v14  ;;  %v8442_v14 = vor.u32 %v9413_v55, %v8441_v12  ;;  %v9437_v5 = vld [vmem:[#allocation11 + $0x2b0] sm:$0xf0] }
 0x6c2   :  { %6136 = vmatpush.bf16.msrb.mxu1 %v8322_v51  ;;  %v8538_v23 = vor.u32 %v9437_v5, %v8537_v22 }
 0x6c3   :  { %v5812_v56 = vpop.f32.mrf.mxu2  ;;  %6183 = vmatpush.bf16.msrb.mxu2 %v8442_v14 }
 0x6c4   :  { %v12348_v34 = vadd.f32 %v5812_v56, %v12287_v45  ;;  %v12350_v32 = vpop.f32.mrf.mxu0  ;;  %v5775_v6 = vpop.f32.mrf.mxu1  ;;  %6232 = vmatpush.bf16.msra.mxu3 %v8538_v23  ;;  %v8297_v56 = vld [vmem:[#allocation11 + $0xc8] sm:$0xf] }
 0x6c5   :  { %v12352_v7 = vadd.f32 %v5775_v6, %v5727_v48  ;;  %6046 = vmatmul.bf16.gmra.mxu3 %v11812_v63  ;;  %v5730_v48 = vadd.f32 %v12311_v42, %v12206_v46  ;;  %v8298_v12 = vor.u32 %v9377_v17, %v8297_v56 }
 0x6c6   :  { %6137 = vmatpush.bf16.msrb.mxu1 %v8310_v41  ;;  %v9410_v41 = vld [vmem:[#allocation11 + $0x1d8] sm:$0xf0] }
 0x6c8   :  { %v5851_v45 = vpop.f32.mrf.mxu3 }
 0x6c9   :  { %v5852_v18 = vadd.f32 %v5851_v45, %v12296_v40 }
 0x6ca   :  { %6138 = vmatpush.bf16.msrb.mxu1 %v8298_v12  ;;  %v5735_v12 = vadd.f32 %v12337_v25, %v12206_v46  ;;  %v9407_v25 = vld [vmem:[#allocation11 + $0x1c0] sm:$0xf0] }
 0x6cb   :  { %v5814_v6 = vpop.f32.mrf.mxu2 }
 0x6cc   :  { %v12359_v51 = vadd.f32 %v5814_v6, %v12300_v24  ;;  %v5778_v55 = vpop.f32.mrf.mxu1  ;;  %v5895_v22 = vpop.f32.mrf.mxu0  ;;  %v5732_v24 = vadd.f32 %v12324_v38, %v12206_v46 }
 0x6cd   :  { %v12361_v5 = vadd.f32 %v5778_v55, %v5730_v48  ;;  %v12363_v52 = vadd.f32 %v5895_v22, %v5847_v4  ;;  %v8525_v48 = vld [vmem:[#allocation11 + $0x290] sm:$0xf] }
 0x6cf   :  { %5973 = vmatmul.bf16.gmra.mxu1 %v11532_v60  ;;  %6090 = vmatmul.bf16.vlgmr.msrb.gmra.mxu0 %v12940_v21  ;;  %v8430_v21 = vor.u32 %v9410_v41, %v8429_v9 }
 0x6d0   :  { %6012 = vmatmul.bf16.gmra.mxu2 %v11684_v1  ;;  %v5853_v40 = vpop.f32.mrf.mxu3 }
 0x6d1   :  { %v5854_v42 = vadd.f32 %v5853_v40, %v12309_v37  ;;  %v9434_v37 = vld [vmem:[#allocation11 + $0x298] sm:$0xf0]  ;;  %6184 = vmatpush.bf16.msrb.mxu2 %v8430_v21 }
 0x6d2   :  { %v8526_v6 = vor.u32 %v9434_v37, %v8525_v48 }
 0x6d3   :  { %v5817_v23 = vpop.f32.mrf.mxu2 }
 0x6d4   :  { %v12372_v17 = vadd.f32 %v5817_v23, %v12313_v50  ;;  %v5780_v14 = vpop.f32.mrf.mxu1  ;;  %v5897_v4 = vpop.f32.mrf.mxu0  ;;  %6233 = vmatpush.bf16.msra.mxu3 %v8526_v6  ;;  %v8513_v6 = vld [vmem:[#allocation11 + $0x278] sm:$0xf] }
 0x6d5   :  { %v12374_v45 = vadd.f32 %v5780_v14, %v5732_v24  ;;  %v12376_v56 = vadd.f32 %v5897_v4, %v5849_v53  ;;  %6051 = vmatmul.bf16.gmra.mxu3 %v11839_v0  ;;  %v8417_v4 = vld [vmem:[#allocation11 + $0x1b8] sm:$0xf] }
 0x6d6   :  { %v8418_v41 = vor.u32 %v9407_v25, %v8417_v4 }
 0x6d8   :  { %v5856_v38 = vpop.f32.mrf.mxu3  ;;  %6185 = vmatpush.bf16.msrb.mxu2 %v8418_v41 }
 0x6d9   :  { %v5857_v50 = vadd.f32 %v5856_v38, %v12322_v36 }
 0x6db   :  { %v5819_v55 = vpop.f32.mrf.mxu2 }
 0x6dc   :  { %v12383_v22 = vadd.f32 %v5819_v55, %v12326_v33  ;;  %v5783_v53 = vpop.f32.mrf.mxu1  ;;  %v5900_v40 = vpop.f32.mrf.mxu0  ;;  %v5737_v33 = vadd.f32 %v12350_v32, %v12206_v46  ;;  %v9404_v55 = vld [vmem:[#allocation11 + $0x1a8] sm:$0xf0] }
 0x6dd   :  { %v12385_v24 = vadd.f32 %v5783_v53, %v5735_v12  ;;  %v5901_v23 = vadd.f32 %v5900_v40, %v5852_v18  ;;  %v8405_v12 = vld [vmem:[#allocation11 + $0x1a0] sm:$0xf]  ;;  %v9401_v40 = vld [vmem:[#allocation11 + $0x190] sm:$0xf0] }
 0x6de   :  { %v8406_v53 = vor.u32 %v9404_v55, %v8405_v12 }
 0x6df   :  { %5978 = vmatmul.bf16.gmra.mxu1 %v11558_v11  ;;  %6095 = vmatmul.bf16.gmra.mxu0 %v12942_v47 }
 0x6e0   :  { %6017 = vmatmul.bf16.gmra.mxu2 %v11708_v54  ;;  %v5858_v14 = vpop.f32.mrf.mxu3 }
 0x6e1   :  { %v5859_v36 = vadd.f32 %v5858_v14, %v12335_v35  ;;  %v9431_v35 = vld [vmem:[#allocation11 + $0x280] sm:$0xf0]  ;;  %6186 = vmatpush.bf16.msrb.mxu2 %v8406_v53 }
 0x6e2   :  { %v8514_v38 = vor.u32 %v9431_v35, %v8513_v6 }
 0x6e3   :  { %v5822_v9 = vpop.f32.mrf.mxu2 }
 0x6e4   :  { %v12394_v21 = vadd.f32 %v5822_v9, %v12339_v39  ;;  %v5785_v18 = vpop.f32.mrf.mxu1  ;;  %v5902_v48 = vpop.f32.mrf.mxu0  ;;  %6234 = vmatpush.bf16.msra.mxu3 %v8514_v38  ;;  %v8393_v39 = vld [vmem:[#allocation11 + $0x188] sm:$0xf]  ;;  %v9428_v38 = vld [vmem:[#allocation11 + $0x268] sm:$0xf0] }
 0x6e5   :  { %v12396_v37 = vadd.f32 %v5785_v18, %v5737_v33  ;;  %v5903_v47 = vadd.f32 %v5902_v48, %v5854_v42  ;;  %6056 = vmatmul.bf16.gmra.mxu3 %v11863_v8  ;;  %v8394_v4 = vor.u32 %v9401_v40, %v8393_v39 }
 0x6e7   :  { %6187 = vmatpush.bf16.msrb.mxu2 %v8394_v4 }
 0x6e8   :  { %v5861_v46 = vpop.f32.mrf.mxu3 }
 0x6e9   :  { %v5862_v32 = vadd.f32 %v5861_v46, %v12348_v34 }
 0x6eb   :  { %v5824_v14 = vpop.f32.mrf.mxu2 }
 0x6ec   :  { %v5825_v42 = vadd.f32 %v5824_v14, %v12352_v7  ;;  %v5905_v25 = vpop.f32.mrf.mxu0  ;;  %v5944_v33 = vpop.f32.mrf.mxu1 }
 0x6ed   :  { %v5906_v9 = vadd.f32 %v5905_v25, %v5857_v50  ;;  %v12402_v41 = vadd.f32 %v5944_v33, %v12363_v52 }
 0x6ef   :  { %6100 = vmatmul.bf16.gmra.mxu0 %v12943_v27  ;;  %6139 = vmatmul.bf16.vlgmr.msrb.gmra.mxu1 %v12944_v16  ;;  %v8501_v27 = vld [vmem:[#allocation11 + $0x260] sm:$0xf] }
 0x6f0   :  { %6022 = vmatmul.bf16.gmra.mxu2 %v11734_v15  ;;  %v5863_v34 = vpop.f32.mrf.mxu3  ;;  %v8502_v16 = vor.u32 %v9428_v38, %v8501_v27  ;;  %v9470_v27 = vld [vmem:[#allocation11 + $0x3b8] sm:$0xf0] }
 0x6f1   :  { %v5864_v18 = vadd.f32 %v5863_v34, %v12359_v51 }
 0x6f2   :  { %6235 = vmatpush.bf16.msra.mxu3 %v8502_v16  ;;  %v13023_v16 = vld [vmem:[#allocation39_spill] sm:$0xff] }
 0x6f3   :  { %v5827_v48 = vpop.f32.mrf.mxu2 }
 0x6f4   :  { %v12409_v6 = vadd.f32 %v5827_v48, %v12361_v5  ;;  %v5907_v7 = vpop.f32.mrf.mxu0  ;;  %v5946_v35 = vpop.f32.mrf.mxu1 }
 0x6f5   :  { %v5908_v50 = vadd.f32 %v5907_v7, %v5859_v36  ;;  %v12412_v52 = vadd.f32 %v5946_v35, %v12376_v56  ;;  %6061 = vmatmul.bf16.gmra.mxu3 %v11888_v13 }
 0x6f8   :  { %v5866_v12 = vpop.f32.mrf.mxu3 }
 0x6f9   :  { %v5867_v55 = vadd.f32 %v5866_v12, %v12372_v17 }
 0x6fb   :  { %v5829_v51 = vpop.f32.mrf.mxu2 }
 0x6fc   :  { %v12417_v53 = vadd.f32 %v5829_v51, %v12374_v45  ;;  %v5910_v5 = vpop.f32.mrf.mxu0  ;;  %v5949_v46 = vpop.f32.mrf.mxu1  ;;  %v9467_v51 = vld [vmem:[#allocation11 + $0x3a0] sm:$0xf0] }
 0x6fd   :  { %v12419_v39 = vadd.f32 %v5910_v5, %v5862_v32  ;;  %v12421_v36 = vadd.f32 %v5949_v46, %v5901_v23  ;;  %v9425_v23 = vld [vmem:[#allocation11 + $0x250] sm:$0xf0] }
 0x6ff   :  { %6105 = vmatmul.bf16.gmra.mxu0 %v12946_v62  ;;  %6144 = vmatmul.bf16.gmra.mxu1 %v12947_v59  ;;  %v8489_v62 = vld [vmem:[#allocation11 + $0x248] sm:$0xf] }
 0x700   :  { %6027 = vmatmul.bf16.gmra.mxu2 %v11760_v61  ;;  %v5868_v56 = vpop.f32.mrf.mxu3  ;;  %v8490_v59 = vor.u32 %v9425_v23, %v8489_v62  ;;  %v9542_v62 = vld [vmem:[#allocation11 + $0x5f8] sm:$0xf0]  ;;  %v8765_v23 = vld [vmem:[#allocation11 + $0x470] sm:$0xf] }
 0x701   :  { %v5869_v40 = vadd.f32 %v5868_v56, %v12383_v22 }
 0x702   :  { %6236 = vmatpush.bf16.msra.mxu3 %v8490_v59 }
 0x703   :  { %v5832_v17 = vpop.f32.mrf.mxu2 }
 0x704   :  { %v12428_v14 = vadd.f32 %v5832_v17, %v12385_v24  ;;  %v5912_v45 = vpop.f32.mrf.mxu0  ;;  %v5951_v4 = vpop.f32.mrf.mxu1  ;;  %v8861_v17 = vld [vmem:[#allocation11 + $0x530] sm:$0xf] }
 0x705   :  { %v12430_v25 = vadd.f32 %v5912_v45, %v5864_v18  ;;  %v12432_v32 = vadd.f32 %v5951_v4, %v5903_v47  ;;  %6066 = vmatmul.bf16.gmra.mxu3 %v11912_v30  ;;  %v8669_v47 = vld [vmem:[#allocation11 + $0x3b0] sm:$0xf]  ;;  %v9518_v45 = vld [vmem:[#allocation11 + $0x538] sm:$0xf0] }
 0x706   :  { %v8670_v38 = vor.u32 %v9470_v27, %v8669_v47  ;;  %v8862_v4 = vor.u32 %v9518_v45, %v8861_v17  ;;  %v9461_v27 = vld [vmem:[#allocation11 + $0x370] sm:$0xf0]  ;;  %v8609_v45 = vld [vmem:[#allocation11 + $0x338] sm:$0xf] }
 0x708   :  { %v5871_v33 = vpop.f32.mrf.mxu3  ;;  %6278 = vmatpush.bf16.msra.mxu0 %v8670_v38  ;;  %6376 = vmatpush.bf16.msra.mxu2 %v8862_v4 }
 0x709   :  { %v5872_v34 = vadd.f32 %v5871_v33, %v12394_v21  ;;  %v9494_v33 = vld [vmem:[#allocation11 + $0x478] sm:$0xf0] }
 0x70b   :  { %v5834_v22 = vpop.f32.mrf.mxu2 }
 0x70c   :  { %v12437_v48 = vadd.f32 %v5834_v22, %v12396_v37  ;;  %v5915_v24 = vpop.f32.mrf.mxu0  ;;  %v5954_v7 = vpop.f32.mrf.mxu1  ;;  %v8657_v37 = vld [vmem:[#allocation11 + $0x398] sm:$0xf]  ;;  %v8645_v22 = vld [vmem:[#allocation11 + $0x380] sm:$0xf] }
 0x70d   :  { %v12439_v35 = vadd.f32 %v5915_v24, %v5867_v55  ;;  %v12441_v18 = vadd.f32 %v5954_v7, %v5906_v9  ;;  %v8658_v46 = vor.u32 %v9467_v51, %v8657_v37  ;;  %v8766_v24 = vor.u32 %v9494_v33, %v8765_v23  ;;  %v9515_v33 = vld [vmem:[#allocation11 + $0x520] sm:$0xf0] }
 0x70f   :  { %6110 = vmatmul.bf16.gmra.mxu0 %v12948_v43  ;;  %6149 = vmatmul.bf16.gmra.mxu1 %v12949_v3 }
 0x710   :  { %6188 = vmatmul.bf16.vlgmr.msrb.gmra.mxu2 %v13023_v16  ;;  %v5873_v21 = vpop.f32.mrf.mxu3  ;;  %6279 = vmatpush.bf16.msra.mxu0 %v8658_v46 }
 0x711   :  { %v5874_v12 = vadd.f32 %v5873_v21, %v5825_v42  ;;  %v8957_v42 = vld [vmem:[#allocation11 + $0x5f0] sm:$0xf]  ;;  %6327 = vmatpush.bf16.msra.mxu1 %v8766_v24  ;;  %v8753_v24 = vld [vmem:[#allocation11 + $0x458] sm:$0xf] }
 0x712   :  { %v8958_v59 = vor.u32 %v9542_v62, %v8957_v42 }
 0x713   :  { %v5993_v5 = vpop.f32.mrf.mxu2 }
 0x714   :  { %v12447_v55 = vadd.f32 %v5993_v5, %v12402_v41  ;;  %v5917_v9 = vpop.f32.mrf.mxu0  ;;  %v5956_v56 = vpop.f32.mrf.mxu1  ;;  %v9464_v41 = vld [vmem:[#allocation11 + $0x388] sm:$0xf0]  ;;  %6425 = vmatpush.bf16.msrb.mxu3 %v8958_v59 }
 0x715   :  { %v12449_v43 = vadd.f32 %v5917_v9, %v5869_v40  ;;  %v12451_v3 = vadd.f32 %v5956_v56, %v5908_v50  ;;  %6071 = vmatmul.bf16.gmra.mxu3 %v11938_v26  ;;  %v8646_v7 = vor.u32 %v9464_v41, %v8645_v22  ;;  %v8633_v50 = vld [vmem:[#allocation11 + $0x368] sm:$0xf]  ;;  %v8621_v9 = vld [vmem:[#allocation11 + $0x350] sm:$0xf]  ;;  %v9458_v56 = vld [vmem:[#allocation11 + $0x358] sm:$0xf0] }
 0x716   :  { %v8634_v16 = vor.u32 %v9461_v27, %v8633_v50  ;;  %v9539_v41 = vld [vmem:[#allocation11 + $0x5e0] sm:$0xf0]  ;;  %v8597_v50 = vld [vmem:[#allocation11 + $0x320] sm:$0xf]  ;;  %v9452_v27 = vld [vmem:[#allocation11 + $0x328] sm:$0xf0] }
 0x717   :  { %6280 = vmatpush.bf16.msra.mxu0 %v8646_v7  ;;  %v9491_v7 = vld [vmem:[#allocation11 + $0x460] sm:$0xf0] }
 0x718   :  { %v5876_v47 = vpop.f32.mrf.mxu3 }
 0x719   :  { %v5877_v40 = vadd.f32 %v5876_v47, %v12409_v6  ;;  %v8622_v6 = vor.u32 %v9458_v56, %v8621_v9 }
 0x71b   :  { %v5995_v38 = vpop.f32.mrf.mxu2  ;;  %6281 = vmatpush.bf16.msra.mxu0 %v8634_v16  ;;  %v8585_v16 = vld [vmem:[#allocation11 + $0x308] sm:$0xf] }
 0x71c   :  { %v12456_v21 = vadd.f32 %v5995_v38, %v12412_v52  ;;  %v5920_v37 = vpop.f32.mrf.mxu0  ;;  %v5959_v51 = vpop.f32.mrf.mxu1 }
 0x71d   :  { %v12458_v5 = vadd.f32 %v5920_v37, %v5872_v34  ;;  %v12461_v46 = vadd.f32 %v5959_v51, %v12419_v39  ;;  %v9455_v34 = vld [vmem:[#allocation11 + $0x340] sm:$0xf0]  ;;  %v9449_v37 = vld [vmem:[#allocation11 + $0x310] sm:$0xf0] }
 0x71e   :  { %v8610_v42 = vor.u32 %v9455_v34, %v8609_v45  ;;  %v8586_v9 = vor.u32 %v9449_v37, %v8585_v16  ;;  %v9485_v16 = vld [vmem:[#allocation11 + $0x430] sm:$0xf0] }
 0x71f   :  { %6115 = vmatmul.bf16.gmra.mxu0 %v12951_v19  ;;  %6154 = vmatmul.bf16.gmra.mxu1 %v12952_v49  ;;  %v13024_v49 = vld [vmem:[#allocation26_spill] sm:$0xff] }
 0x720   :  { %6193 = vmatmul.bf16.gmra.mxu2 %v12982_v58  ;;  %v5878_v17 = vpop.f32.mrf.mxu3  ;;  %6282 = vmatpush.bf16.msra.mxu0 %v8622_v6  ;;  %v8849_v58 = vld [vmem:[#allocation11 + $0x518] sm:$0xf] }
 0x721   :  { %v5879_v52 = vadd.f32 %v5878_v17, %v12417_v53  ;;  %v8945_v53 = vld [vmem:[#allocation11 + $0x5d8] sm:$0xf]  ;;  %v8850_v22 = vor.u32 %v9515_v33, %v8849_v58 }
 0x722   :  { %v8946_v47 = vor.u32 %v9539_v41, %v8945_v53  ;;  %v8837_v53 = vld [vmem:[#allocation11 + $0x500] sm:$0xf] }
 0x723   :  { %v5998_v4 = vpop.f32.mrf.mxu2  ;;  %6377 = vmatpush.bf16.msra.mxu2 %v8850_v22  ;;  %v9512_v22 = vld [vmem:[#allocation11 + $0x508] sm:$0xf0] }
 0x724   :  { %v12468_v39 = vadd.f32 %v5998_v4, %v12421_v36  ;;  %v5922_v62 = vpop.f32.mrf.mxu0  ;;  %v5961_v23 = vpop.f32.mrf.mxu1  ;;  %6283 = vmatpush.bf16.msra.mxu0 %v8610_v42  ;;  %v8754_v36 = vor.u32 %v9491_v7, %v8753_v24  ;;  %6426 = vmatpush.bf16.msrb.mxu3 %v8946_v47  ;;  %v13025_v4 = vld [vmem:[#allocation30_spill] sm:$0xff]  ;;  %v13027_v42 = vld [vmem:[#allocation41_spill] sm:$0xff]  ;;  %v13028_v24 = vld [vmem:[#allocation47_spill] sm:$0xff]  ;;  %v8838_v7 = vor.u32 %v9512_v22, %v8837_v53 }
 0x725   :  { %v12470_v59 = vadd.f32 %v5922_v62, %v5874_v12  ;;  %v12473_v19 = vadd.f32 %v5961_v23, %v12430_v25  ;;  %6076 = vmatmul.bf16.gmra.mxu3 %v13024_v49  ;;  %v8598_v12 = vor.u32 %v9452_v27, %v8597_v50  ;;  %v8933_v47 = vld [vmem:[#allocation11 + $0x5c0] sm:$0xf]  ;;  %v9488_v27 = vld [vmem:[#allocation11 + $0x448] sm:$0xf0]  ;;  %v8705_v53 = vld [vmem:[#allocation11 + $0x3f8] sm:$0xf] }
 0x726   :  { %6328 = vmatpush.bf16.msra.mxu1 %v8754_v36  ;;  %v9536_v36 = vld [vmem:[#allocation11 + $0x5c8] sm:$0xf0]  ;;  %v8741_v50 = vld [vmem:[#allocation11 + $0x440] sm:$0xf] }
 0x727   :  { %6378 = vmatpush.bf16.msra.mxu2 %v8838_v7 }
 0x728   :  { %v5881_v38 = vpop.f32.mrf.mxu3  ;;  %6284 = vmatpush.bf16.msra.mxu0 %v8598_v12 }
 0x729   :  { %v5882_v25 = vadd.f32 %v5881_v38, %v12428_v14  ;;  %v13026_v14 = vld [vmem:[#allocation35_spill] sm:$0xff] }
 0x72b   :  { %v6000_v51 = vpop.f32.mrf.mxu2 }
 0x72c   :  { %v12478_v56 = vadd.f32 %v6000_v51, %v12432_v32  ;;  %v5925_v6 = vpop.f32.mrf.mxu0  ;;  %v5964_v17 = vpop.f32.mrf.mxu1  ;;  %6285 = vmatpush.bf16.msra.mxu0 %v8586_v9 }
 0x72d   :  { %v12480_v45 = vadd.f32 %v5925_v6, %v5877_v40  ;;  %v12483_v34 = vadd.f32 %v5964_v17, %v12439_v35 }
 0x72f   :  { %6120 = vmatmul.bf16.gmra.mxu0 %v13025_v4  ;;  %6159 = vmatmul.bf16.gmra.mxu1 %v13026_v14  ;;  %v8717_v14 = vld [vmem:[#allocation11 + $0x410] sm:$0xf] }
 0x730   :  { %6198 = vmatmul.bf16.gmra.mxu2 %v13027_v42  ;;  %v5883_v62 = vpop.f32.mrf.mxu3  ;;  %v9482_v42 = vld [vmem:[#allocation11 + $0x418] sm:$0xf0] }
 0x731   :  { %v5884_v23 = vadd.f32 %v5883_v62, %v12437_v48  ;;  %v8934_v48 = vor.u32 %v9536_v36, %v8933_v47  ;;  %v13029_v62 = vld [vmem:[#allocation31_spill] sm:$0xff] }
 0x733   :  { %v6003_v58 = vpop.f32.mrf.mxu2  ;;  %6427 = vmatpush.bf16.msrb.mxu3 %v8934_v48  ;;  %v8825_v48 = vld [vmem:[#allocation11 + $0x4e8] sm:$0xf] }
 0x734   :  { %v12490_v32 = vadd.f32 %v6003_v58, %v12441_v18  ;;  %v5927_v33 = vpop.f32.mrf.mxu0  ;;  %v5966_v40 = vpop.f32.mrf.mxu1  ;;  %v8742_v18 = vor.u32 %v9488_v27, %v8741_v50  ;;  %v8718_v58 = vor.u32 %v9482_v42, %v8717_v14  ;;  %v9509_v27 = vld [vmem:[#allocation11 + $0x4f0] sm:$0xf0] }
 0x735   :  { %v12492_v35 = vadd.f32 %v5927_v33, %v5879_v52  ;;  %v12495_v41 = vadd.f32 %v5966_v40, %v12449_v43  ;;  %6237 = vmatmul.bf16.vlgmr.msra.gmra.mxu3 %v13028_v24  ;;  %v8729_v52 = vld [vmem:[#allocation11 + $0x428] sm:$0xf]  ;;  %v13031_v33 = vld [vmem:[#allocation42_spill] sm:$0xff] }
 0x736   :  { %6329 = vmatpush.bf16.msra.mxu1 %v8742_v18  ;;  %v8730_v43 = vor.u32 %v9485_v16, %v8729_v52  ;;  %v13032_v52 = vld [vmem:[#allocation48_spill] sm:$0xff]  ;;  %v8921_v16 = vld [vmem:[#allocation11 + $0x5a8] sm:$0xf] }
 0x738   :  { %v6042_v38 = vpop.f32.mrf.mxu3 }
 0x739   :  { %v6043_v12 = vadd.f32 %v6042_v38, %v12447_v55  ;;  %v13030_v55 = vld [vmem:[#allocation36_spill] sm:$0xff] }
 0x73a   :  { %6330 = vmatpush.bf16.msra.mxu1 %v8730_v43 }
 0x73b   :  { %v6005_v37 = vpop.f32.mrf.mxu2  ;;  %v6475_v22 = vmax.f32 %v6043_v12, 0.0  ;;  %v8826_v12 = vor.u32 %v9509_v27, %v8825_v48  ;;  %v9506_v27 = vld [vmem:[#allocation11 + $0x4d8] sm:$0xf0] }
 0x73c   :  { %v12500_v51 = vadd.f32 %v6005_v37, %v12451_v3  ;;  %v5930_v9 = vpop.f32.mrf.mxu0  ;;  %v5969_v6 = vpop.f32.mrf.mxu1  ;;  %v9533_v37 = vld [vmem:[#allocation11 + $0x5b0] sm:$0xf0] }
 0x73d   :  { %v12502_v17 = vadd.f32 %v5930_v9, %v5882_v25  ;;  %v12505_v4 = vadd.f32 %v5969_v6, %v12458_v5  ;;  %v9479_v25 = vld [vmem:[#allocation11 + $0x400] sm:$0xf0]  ;;  %v8922_v43 = vor.u32 %v9533_v37, %v8921_v16  ;;  %v9476_v9 = vld [vmem:[#allocation11 + $0x3e8] sm:$0xf0]  ;;  %6379 = vmatpush.bf16.msra.mxu2 %v8826_v12  ;;  %v8909_v37 = vld [vmem:[#allocation11 + $0x590] sm:$0xf] }
 0x73e   :  { %6331 = vmatpush.bf16.msra.mxu1 %v8718_v58  ;;  %v8706_v7 = vor.u32 %v9479_v25, %v8705_v53  ;;  %v13033_v53 = vld [vmem:[#allocation37_spill] sm:$0xff]  ;;  %v13034_v25 = vld [vmem:[#allocation55_spill] sm:$0xff] }
 0x73f   :  { %6125 = vmatmul.bf16.gmra.mxu0 %v13029_v62  ;;  %6164 = vmatmul.bf16.gmra.mxu1 %v13030_v55  ;;  %v9473_v62 = vld [vmem:[#allocation11 + $0x3d0] sm:$0xf0]  ;;  %v13036_v12 = vld [vmem:[#allocation49_spill] sm:$0xff] }
 0x740   :  { %6203 = vmatmul.bf16.gmra.mxu2 %v13031_v33  ;;  %v6044_v40 = vpop.f32.mrf.mxu3  ;;  %6428 = vmatpush.bf16.msrb.mxu3 %v8922_v43  ;;  %v9530_v43 = vld [vmem:[#allocation11 + $0x598] sm:$0xf0] }
 0x741   :  { %v6045_v3 = vadd.f32 %v6044_v40, %v12456_v21 }
 0x742   :  { %6332 = vmatpush.bf16.msra.mxu1 %v8706_v7 }
 0x743   :  { %v6478_v24 = vmax.f32 %v6045_v3, 0.0  ;;  %v6008_v5 = vpop.f32.mrf.mxu2 }
 0x744   :  { %v12512_v47 = vadd.f32 %v6008_v5, %v12461_v46  ;;  %v5932_v36 = vpop.f32.mrf.mxu0  ;;  %v5971_v50 = vpop.f32.mrf.mxu1  ;;  %v8693_v46 = vld [vmem:[#allocation11 + $0x3e0] sm:$0xf] }
 0x745   :  { %v12514_v18 = vpack.c.bf16 %v6478_v24, %v6475_v22  ;;  %v12516_v38 = vadd.f32 %v5932_v36, %v5884_v23  ;;  %v12519_v21 = vadd.f32 %v5971_v50, %v12470_v59  ;;  %6242 = vmatmul.bf16.gmra.mxu3 %v13032_v52  ;;  %v8694_v6 = vor.u32 %v9476_v9, %v8693_v46  ;;  %v8681_v23 = vld [vmem:[#allocation11 + $0x3c8] sm:$0xf] }
 0x746   :  { %v8682_v55 = vor.u32 %v9473_v62, %v8681_v23  ;;  %v8910_v46 = vor.u32 %v9530_v43, %v8909_v37  ;;  %v13037_v62 = vld [vmem:[#allocation38_spill] sm:$0xff] }
 0x747   :  { %6333 = vmatpush.bf16.msra.mxu1 %v8694_v6  ;;  %v9678_v37 = vld [vmem:[%s12808_s6] sm:$0x7] }
 0x748   :  { %v6047_v14 = vpop.f32.mrf.mxu3  ;;  %6429 = vmatpush.bf16.msrb.mxu3 %v8910_v46 }
 0x749   :  { %v6048_v42 = vadd.f32 %v6047_v14, %v12468_v39  ;;  %v13035_v39 = vld [vmem:[#allocation43_spill] sm:$0xff] }
 0x74b   :  { %v6010_v59 = vpop.f32.mrf.mxu2  ;;  %6334 = vmatpush.bf16.msra.mxu1 %v8682_v55  ;;  %v6481_v5 = vmax.f32 %v6048_v42, 0.0  ;;  %v13039_v55 = vld [vmem:[#allocation44_spill] sm:$0xff] }
 0x74c   :  { %v12524_v58 = vadd.f32 %v6010_v59, %v12473_v19  ;;  %v5974_v33 = vpop.f32.mrf.mxu1  ;;  %v12526_v40 = vpop.f32.mrf.mxu0  ;;  %v13038_v59 = vld [vmem:[#allocation56_spill] sm:$0xff] }
 0x74d   :  { %v12529_v3 = vadd.f32 %v5974_v33, %v12480_v45  ;;  %v8813_v45 = vld [vmem:[#allocation11 + $0x4d0] sm:$0xf] }
 0x74e   :  { %v8814_v16 = vor.u32 %v9506_v27, %v8813_v45  ;;  %v9527_v45 = vld [vmem:[#allocation11 + $0x580] sm:$0xf0] }
 0x74f   :  { %6169 = vmatmul.bf16.gmra.mxu1 %v13033_v53  ;;  %6286 = vmatmul.bf16.vlgmr.msra.gmra.mxu0 %v13034_v25  ;;  %v8801_v25 = vld [vmem:[#allocation11 + $0x4b8] sm:$0xf] }
 0x750   :  { %6208 = vmatmul.bf16.gmra.mxu2 %v13035_v39  ;;  %v6049_v22 = vpop.f32.mrf.mxu3 }
 0x751   :  { %v6050_v24 = vadd.f32 %v6049_v22, %v12478_v56  ;;  %6380 = vmatpush.bf16.msra.mxu2 %v8814_v16  ;;  %v9500_v16 = vld [vmem:[#allocation11 + $0x4a8] sm:$0xf0] }
 0x753   :  { %v6484_v7 = vmax.f32 %v6050_v24, 0.0  ;;  %v6013_v19 = vpop.f32.mrf.mxu2 }
 0x754   :  { %v12536_v36 = vadd.f32 %v6013_v19, %v12483_v34  ;;  %v5976_v50 = vpop.f32.mrf.mxu1  ;;  %v12538_v48 = vpop.f32.mrf.mxu0  ;;  %v13040_v19 = vld [vmem:[#allocation50_spill] sm:$0xff] }
 0x755   :  { %v12541_v52 = vadd.f32 %v5976_v50, %v12492_v35  ;;  %6247 = vmatmul.bf16.gmra.mxu3 %v13036_v12  ;;  %v12544_v56 = vpack.c.bf16 %v6484_v7, %v6481_v5  ;;  %v8897_v50 = vld [vmem:[#allocation11 + $0x578] sm:$0xf]  ;;  %v8789_v12 = vld [vmem:[#allocation11 + $0x4a0] sm:$0xf] }
 0x756   :  { %v8790_v43 = vor.u32 %v9500_v16, %v8789_v12  ;;  %v8885_v12 = vld [vmem:[#allocation11 + $0x560] sm:$0xf]  ;;  %v9524_v16 = vld [vmem:[#allocation11 + $0x568] sm:$0xf0] }
 0x758   :  { %v6052_v9 = vpop.f32.mrf.mxu3 }
 0x759   :  { %v6053_v34 = vadd.f32 %v6052_v9, %v12490_v32  ;;  %v9503_v32 = vld [vmem:[#allocation11 + $0x4c0] sm:$0xf0] }
 0x75a   :  { %v8802_v24 = vor.u32 %v9503_v32, %v8801_v25  ;;  %v13041_v25 = vld [vmem:[#allocation57_spill] sm:$0xff] }
 0x75b   :  { %v6015_v6 = vpop.f32.mrf.mxu2  ;;  %v6487_v39 = vmax.f32 %v6053_v34, 0.0  ;;  %v8777_v34 = vld [vmem:[#allocation11 + $0x488] sm:$0xf] }
 0x75c   :  { %v12548_v14 = vadd.f32 %v6015_v6, %v12495_v41  ;;  %v5979_v42 = vpop.f32.mrf.mxu1  ;;  %v6096_v23 = vpop.f32.mrf.mxu0  ;;  %6381 = vmatpush.bf16.msra.mxu2 %v8802_v24  ;;  %v9497_v6 = vld [vmem:[#allocation11 + $0x490] sm:$0xf0]  ;;  %v13042_v32 = vld [vmem:[#allocation61_spill] sm:$0xff] }
 0x75d   :  { %v12551_v35 = vadd.f32 %v5979_v42, %v12502_v17 }
 0x75f   :  { %6174 = vmatmul.bf16.gmra.mxu1 %v13037_v62  ;;  %6291 = vmatmul.bf16.gmra.mxu0 %v13038_v59  ;;  %v8778_v59 = vor.u32 %v9497_v6, %v8777_v34 }
 0x760   :  { %6213 = vmatmul.bf16.gmra.mxu2 %v13039_v55  ;;  %v6054_v33 = vpop.f32.mrf.mxu3 }
 0x761   :  { %v6055_v53 = vadd.f32 %v6054_v33, %v12500_v51  ;;  %v8898_v51 = vor.u32 %v9527_v45, %v8897_v50  ;;  %6382 = vmatpush.bf16.msra.mxu2 %v8790_v43 }
 0x763   :  { %v6490_v22 = vmax.f32 %v6055_v53, 0.0  ;;  %v6018_v41 = vpop.f32.mrf.mxu2  ;;  %6430 = vmatpush.bf16.msrb.mxu3 %v8898_v51  ;;  %v13044_v51 = vld [vmem:[#allocation51_spill] sm:$0xff] }
 0x764   :  { %v12558_v5 = vadd.f32 %v6018_v41, %v12505_v4  ;;  %v5981_v17 = vpop.f32.mrf.mxu1  ;;  %v12569_v4 = vperm.slane %v9678_v37, 2  ;;  %v6098_v46 = vpop.f32.mrf.mxu0 }
 0x765   :  { %v12561_v7 = vadd.f32 %v5981_v17, %v12516_v38  ;;  %6252 = vmatmul.bf16.gmra.mxu3 %v13040_v19  ;;  %v12564_v27 = vpack.c.bf16 %v6490_v22, %v6487_v39  ;;  %6383 = vmatpush.bf16.msra.mxu2 %v8778_v59  ;;  %v13046_v59 = vld [vmem:[#allocation62_spill] sm:$0xff] }
 0x766   :  { %v6092_v42 = vadd.f32 %v12526_v40, %v12569_v4  ;;  %v6094_v40 = vadd.f32 %v12538_v48, %v12569_v4 }
 0x768   :  { %v6057_v38 = vpop.f32.mrf.mxu3 }
 0x769   :  { %v6058_v9 = vadd.f32 %v6057_v38, %v12512_v47  ;;  %v13043_v47 = vld [vmem:[#allocation45_spill] sm:$0xff]  ;;  %v6097_v38 = vadd.f32 %v6096_v23, %v12569_v4 }
 0x76b   :  { %v6020_v62 = vpop.f32.mrf.mxu2  ;;  %v6493_v24 = vmax.f32 %v6058_v9, 0.0 }
 0x76c   :  { %v12575_v55 = vadd.f32 %v6020_v62, %v12519_v21  ;;  %v6140_v33 = vpop.f32.mrf.mxu1  ;;  %v6101_v41 = vpop.f32.mrf.mxu0  ;;  %v13045_v62 = vld [vmem:[#allocation58_spill] sm:$0xff] }
 0x76d   :  { %v12577_v53 = vadd.f32 %v6140_v33, %v6092_v42  ;;  %v13047_v33 = vld [vmem:[#allocation46_spill] sm:$0xff] }
 0x76f   :  { %6296 = vmatmul.bf16.gmra.mxu0 %v13041_v25  ;;  %6335 = vmatmul.bf16.vlgmr.msra.gmra.mxu1 %v13042_v32 }
 0x770   :  { %6218 = vmatmul.bf16.gmra.mxu2 %v13043_v47  ;;  %v6059_v39 = vpop.f32.mrf.mxu3 }
 0x771   :  { %v6060_v22 = vadd.f32 %v6059_v39, %v12524_v58  ;;  %v8886_v58 = vor.u32 %v9524_v16, %v8885_v12  ;;  %v6102_v16 = vadd.f32 %v6101_v41, %v12569_v4 }
 0x773   :  { %v6496_v21 = vmax.f32 %v6060_v22, 0.0  ;;  %v6023_v17 = vpop.f32.mrf.mxu2  ;;  %6431 = vmatpush.bf16.msrb.mxu3 %v8886_v58 }
 0x774   :  { %v12586_v19 = vadd.f32 %v6023_v17, %v12529_v3  ;;  %v6142_v50 = vpop.f32.mrf.mxu1  ;;  %v6103_v34 = vpop.f32.mrf.mxu0  ;;  %v9521_v17 = vld [vmem:[#allocation11 + $0x550] sm:$0xf0] }
 0x775   :  { %v12588_v45 = vadd.f32 %v6142_v50, %v6094_v40  ;;  %6257 = vmatmul.bf16.gmra.mxu3 %v13044_v51  ;;  %v12591_v37 = vpack.c.bf16 %v6496_v21, %v6493_v24  ;;  %v13048_v24 = vld [vmem:[#allocation52_spill] sm:$0xff]  ;;  %v8873_v21 = vld [vmem:[#allocation11 + $0x548] sm:$0xf]  ;;  %v6104_v41 = vadd.f32 %v6103_v34, %v12569_v4 }
 0x776   :  { %v8874_v12 = vor.u32 %v9521_v17, %v8873_v21 }
 0x778   :  { %v6062_v43 = vpop.f32.mrf.mxu3  ;;  %6432 = vmatpush.bf16.msrb.mxu3 %v8874_v12 }
 0x779   :  { %v6063_v48 = vadd.f32 %v6062_v43, %v12536_v36  ;;  %v6099_v36 = vadd.f32 %v6098_v46, %v12569_v4 }
 0x77b   :  { %v6025_v9 = vpop.f32.mrf.mxu2  ;;  %v6499_v23 = vmax.f32 %v6063_v48, 0.0 }
 0x77c   :  { %v12596_v3 = vadd.f32 %v6025_v9, %v12541_v52  ;;  %v6145_v6 = vpop.f32.mrf.mxu1  ;;  %v6106_v51 = vpop.f32.mrf.mxu0  ;;  %v13050_v9 = vld [vmem:[#allocation63_spill] sm:$0xff] }
 0x77d   :  { %v12598_v42 = vadd.f32 %v6145_v6, %v6097_v38  ;;  %v13049_v38 = vld [vmem:[#allocation59_spill] sm:$0xff]  ;;  %v6107_v17 = vadd.f32 %v6106_v51, %v12569_v4 }
 0x77e   :  { %v9550_v6 = vld [vmem:[#allocation13 + $0x38] sm:$0xff] }
 0x77f   :  { %6301 = vmatmul.bf16.gmra.mxu0 %v13045_v62  ;;  %6340 = vmatmul.bf16.gmra.mxu1 %v13046_v59  ;;  %v13051_v59 = vld [vmem:[#allocation22_spill] sm:$0xff] }
 0x780   :  { %6223 = vmatmul.bf16.gmra.mxu2 %v13047_v33  ;;  %v6064_v25 = vpop.f32.mrf.mxu3  ;;  %6742 = vmatpush.bf16.msrb.mxu0 %v9550_v6 }
 0x781   :  { %v6065_v32 = vadd.f32 %v6064_v25, %v12548_v14 }
 0x783   :  { %v6502_v47 = vmax.f32 %v6065_v32, 0.0  ;;  %v6028_v39 = vpop.f32.mrf.mxu2 }
 0x784   :  { %v12606_v52 = vadd.f32 %v6028_v39, %v12551_v35  ;;  %v6147_v22 = vpop.f32.mrf.mxu1  ;;  %v6108_v62 = vpop.f32.mrf.mxu0 }
 0x785   :  { %v12608_v40 = vadd.f32 %v6147_v22, %v6099_v36  ;;  %6262 = vmatmul.bf16.gmra.mxu3 %v13048_v24  ;;  %v12611_v50 = vpack.c.bf16 %v6502_v47, %v6499_v23  ;;  %v9549_v36 = vld [vmem:[#allocation13 + $0x30] sm:$0xff]  ;;  %v9548_v24 = vld [vmem:[#allocation13 + $0x28] sm:$0xff]  ;;  %v6109_v51 = vadd.f32 %v6108_v62, %v12569_v4 }
 0x786   :  { %6743 = vmatpush.bf16.msrb.mxu0 %v9549_v36 }
 0x788   :  { %v6067_v14 = vpop.f32.mrf.mxu3 }
 0x789   :  { %v6068_v46 = vadd.f32 %v6067_v14, %v12558_v5  ;;  %v9547_v14 = vld [vmem:[#allocation13 + $0x20] sm:$0xff] }
 0x78a   :  { %6744 = vmatpush.bf16.msrb.mxu0 %v9548_v24 }
 0x78b   :  { %v6030_v58 = vpop.f32.mrf.mxu2  ;;  %v6505_v25 = vmax.f32 %v6068_v46, 0.0 }
 0x78c   :  { %v12616_v35 = vadd.f32 %v6030_v58, %v12561_v7  ;;  %v6150_v43 = vpop.f32.mrf.mxu1  ;;  %v6111_v34 = vpop.f32.mrf.mxu0  ;;  %v13053_v58 = vld [vmem:[#allocation64_spill] sm:$0xff] }
 0x78d   :  { %v12618_v48 = vadd.f32 %v6150_v43, %v6102_v16  ;;  %v9546_v43 = vld [vmem:[#allocation13 + $0x18] sm:$0xff]  ;;  %v6112_v24 = vadd.f32 %v6111_v34, %v12569_v4 }
 0x78e   :  { %6745 = vmatpush.bf16.msrb.mxu0 %v9547_v14 }
 0x78f   :  { %6306 = vmatmul.bf16.gmra.mxu0 %v13049_v38  ;;  %6345 = vmatmul.bf16.gmra.mxu1 %v13050_v9  ;;  %v13054_v38 = vld [vmem:[#allocation24_spill] sm:$0xff] }
 0x790   :  { %6384 = vmatmul.bf16.vlgmr.msra.gmra.mxu2 %v13051_v59  ;;  %v6069_v33 = vpop.f32.mrf.mxu3 }
 0x791   :  { %v6070_v5 = vadd.f32 %v6069_v33, %v12575_v55  ;;  %v9545_v33 = vld [vmem:[#allocation13 + $0x10] sm:$0xff] }
 0x792   :  { %6746 = vmatpush.bf16.msrb.mxu0 %v9546_v43  ;;  %v9557_v43 = vld [vmem:[#allocation13 + $0x70] sm:$0xff] }
 0x793   :  { %v6508_v7 = vmax.f32 %v6070_v5, 0.0  ;;  %v6189_v32 = vpop.f32.mrf.mxu2 }
 0x794   :  { %v12626_v23 = vadd.f32 %v6189_v32, %v12577_v53  ;;  %v6152_v47 = vpop.f32.mrf.mxu1  ;;  %v6113_v5 = vpop.f32.mrf.mxu0  ;;  %v9566_v32 = vld [vmem:[#allocation13 + $0xb8] sm:$0xff] }
 0x795   :  { %v12628_v39 = vadd.f32 %v6152_v47, %v6104_v41  ;;  %6267 = vmatmul.bf16.gmra.mxu3 %v12977_v57  ;;  %v12631_v22 = vpack.c.bf16 %v6508_v7, %v6505_v25  ;;  %v13052_v57 = vld [vmem:[#allocation21_spill] sm:$0xff]  ;;  %6840 = vmatpush.bf16.msrb.mxu2 %v9566_v32 }
 0x796   :  { %6747 = vmatpush.bf16.msrb.mxu0 %v9545_v33  ;;  %v13055_v32 = vld [vmem:[#allocation25_spill] sm:$0xff] }
 0x798   :  { %v6072_v55 = vpop.f32.mrf.mxu3 }
 0x799   :  { %v6073_v21 = vadd.f32 %v6072_v55, %v12586_v19 }
 0x79b   :  { %v6191_v12 = vpop.f32.mrf.mxu2  ;;  %v6511_v6 = vmax.f32 %v6073_v21, 0.0 }
 0x79c   :  { %v12636_v53 = vadd.f32 %v6191_v12, %v12588_v45  ;;  %v6155_v46 = vpop.f32.mrf.mxu1  ;;  %v9558_v12 = vld [vmem:[#allocation13 + $0x78] sm:$0xff]  ;;  %v6116_v14 = vpop.f32.mrf.mxu0 }
 0x79d   :  { %v12638_v16 = vadd.f32 %v6155_v46, %v6107_v17  ;;  %6791 = vmatpush.bf16.msrb.mxu1 %v9558_v12  ;;  %v6114_v46 = vadd.f32 %v6113_v5, %v12569_v4 }
 0x79f   :  { %6311 = vmatmul.bf16.gmra.mxu0 %v13052_v57  ;;  %6350 = vmatmul.bf16.gmra.mxu1 %v13053_v58 }
 0x7a0   :  { %6389 = vmatmul.bf16.gmra.mxu2 %v13054_v38  ;;  %v6074_v19 = vpop.f32.mrf.mxu3 }
 0x7a1   :  { %v6075_v9 = vadd.f32 %v6074_v19, %v12596_v3  ;;  %v9544_v3 = vld [vmem:[#allocation13 + $0x8] sm:$0xff]  ;;  %6792 = vmatpush.bf16.msrb.mxu1 %v9557_v43 }
 0x7a2   :  { %6748 = vmatpush.bf16.msrb.mxu0 %v9544_v3 }
 0x7a3   :  { %v6514_v45 = vmax.f32 %v6075_v9, 0.0  ;;  %v6194_v59 = vpop.f32.mrf.mxu2 }
 0x7a4   :  { %v12646_v41 = vadd.f32 %v6194_v59, %v12598_v42  ;;  %v6157_v25 = vpop.f32.mrf.mxu1  ;;  %v9543_v42 = vld [vmem:[#allocation13] sm:$0xff] }
 0x7a5   :  { %v12648_v7 = vadd.f32 %v6157_v25, %v6109_v51  ;;  %6272 = vmatmul.bf16.gmra.mxu3 %v12979_v2  ;;  %v12651_v36 = vpack.c.bf16 %v6514_v45, %v6511_v6  ;;  %v9555_v59 = vld [vmem:[#allocation13 + $0x60] sm:$0xff]  ;;  %v9554_v25 = vld [vmem:[#allocation13 + $0x58] sm:$0xff] }
 0x7a6   :  { %6749 = vmatpush.bf16.msrb.mxu0 %v9543_v42 }
 0x7a8   :  { %v6077_v62 = vpop.f32.mrf.mxu3 }
 0x7a9   :  { %v6078_v47 = vadd.f32 %v6077_v62, %v12606_v52 }
 0x7ab   :  { %v6196_v55 = vpop.f32.mrf.mxu2 }
 0x7ac   :  { %v12656_v21 = vadd.f32 %v6196_v55, %v12608_v40  ;;  %v6160_v17 = vpop.f32.mrf.mxu1  ;;  %v6517_v40 = vmax.f32 %v6078_v47, 0.0 }
 0x7ad   :  { %v12658_v2 = vadd.f32 %v6160_v17, %v6112_v24 }
 0x7af   :  { %6316 = vmatmul.bf16.gmra.mxu0 %v11328_v31  ;;  %6355 = vmatmul.bf16.gmra.mxu1 %v11482_v10  ;;  %v9565_v31 = vld [vmem:[#allocation13 + $0xb0] sm:$0xff] }
 0x7b0   :  { %6394 = vmatmul.bf16.gmra.mxu2 %v11634_v28  ;;  %v6079_v52 = vpop.f32.mrf.mxu3  ;;  %v9556_v28 = vld [vmem:[#allocation13 + $0x68] sm:$0xff] }
 0x7b1   :  { %v6080_v34 = vadd.f32 %v6079_v52, %v12616_v35  ;;  %6841 = vmatpush.bf16.msrb.mxu2 %v9565_v31  ;;  %v6118_v35 = vpop.f32.mrf.mxu0  ;;  %6793 = vmatpush.bf16.msrb.mxu1 %v9556_v28 }
 0x7b2   :  { %v6119_v47 = vadd.f32 %v6118_v35, %v12569_v4  ;;  %v9563_v35 = vld [vmem:[#allocation13 + $0xa0] sm:$0xff] }
 0x7b3   :  { %v6520_v57 = vmax.f32 %v6080_v34, 0.0  ;;  %v6199_v58 = vpop.f32.mrf.mxu2  ;;  %v9551_v34 = vld [vmem:[#allocation13 + $0x40] sm:$0xff] }
 0x7b4   :  { %v12666_v38 = vadd.f32 %v6199_v58, %v12618_v48  ;;  %v6162_v19 = vpop.f32.mrf.mxu1  ;;  %v6117_v48 = vadd.f32 %v6116_v14, %v12569_v4 }
 0x7b5   :  { %v12668_v9 = vadd.f32 %v6162_v19, %v6114_v46  ;;  %6433 = vmatmul.bf16.vlgmr.msrb.gmra.mxu3 %v11783_v44  ;;  %v12671_v10 = vpack.c.bf16 %v6520_v57, %v6517_v40  ;;  %6794 = vmatpush.bf16.msrb.mxu1 %v9555_v59 }
 0x7b8   :  { %v6238_v51 = vpop.f32.mrf.mxu3 }
 0x7b9   :  { %v12674_v6 = vadd.f32 %v6238_v51, %v12626_v23  ;;  %6795 = vmatpush.bf16.msrb.mxu1 %v9554_v25  ;;  %v6121_v62 = vpop.f32.mrf.mxu0 }
 0x7ba   :  { %v6122_v14 = vadd.f32 %v6121_v62, %v12569_v4 }
 0x7bb   :  { %v6201_v45 = vpop.f32.mrf.mxu2 }
 0x7bc   :  { %v6202_v33 = vadd.f32 %v6201_v45, %v12628_v39  ;;  %v6165_v5 = vpop.f32.mrf.mxu1  ;;  %v9553_v39 = vld [vmem:[#allocation13 + $0x50] sm:$0xff] }
 0x7bd   :  { %v6166_v44 = vadd.f32 %v6165_v5, %v6117_v48  ;;  %6796 = vmatpush.bf16.msrb.mxu1 %v9553_v39 }
 0x7bf   :  { %6321 = vmatmul.bf16.gmra.mxu0 %v12981_v20  ;;  %6360 = vmatmul.bf16.gmra.mxu1 %v13021_v29  ;;  %v9564_v20 = vld [vmem:[#allocation13 + $0xa8] sm:$0xff] }
 0x7c0   :  { %6399 = vmatmul.bf16.gmra.mxu2 %v13055_v32  ;;  %v6240_v3 = vpop.f32.mrf.mxu3  ;;  %v9552_v29 = vld [vmem:[#allocation13 + $0x48] sm:$0xff] }
 0x7c1   :  { %v12682_v23 = vadd.f32 %v6240_v3, %v12636_v53  ;;  %6842 = vmatpush.bf16.msrb.mxu2 %v9564_v20  ;;  %6797 = vmatpush.bf16.msrb.mxu1 %v9552_v29  ;;  %v6123_v46 = vpop.f32.mrf.mxu0  ;;  %v13058_v20 = vld [vmem:[#allocation32_spill] sm:$0xff] }
 0x7c2   :  { %v6124_v43 = vadd.f32 %v6123_v46, %v12569_v4 }
 0x7c3   :  { %v6204_v24 = vpop.f32.mrf.mxu2 }
 0x7c4   :  { %v6205_v55 = vadd.f32 %v6204_v24, %v12638_v16  ;;  %v6167_v42 = vpop.f32.mrf.mxu1  ;;  %v9562_v24 = vld [vmem:[#allocation13 + $0x98] sm:$0xff] }
 0x7c5   :  { %v12686_v17 = vadd.f32 %v6167_v42, %v6119_v47  ;;  %6438 = vmatmul.bf16.gmra.mxu3 %v11812_v63  ;;  %6798 = vmatpush.bf16.msrb.mxu1 %v9551_v34  ;;  %v13056_v63 = vld [vmem:[#allocation23_spill] sm:$0xff]  ;;  %v13059_v34 = vld [vmem:[#allocation28_spill] sm:$0xff] }
 0x7c6   :  { %6843 = vmatpush.bf16.msrb.mxu2 %v9563_v35 }
 0x7c8   :  { %v6243_v12 = vpop.f32.mrf.mxu3 }
 0x7c9   :  { %v12690_v53 = vadd.f32 %v6243_v12, %v12646_v41 }
 0x7ca   :  { %6844 = vmatpush.bf16.msrb.mxu2 %v9562_v24 }
 0x7cb   :  { %v6206_v52 = vpop.f32.mrf.mxu2 }
 0x7cc   :  { %v6207_v16 = vadd.f32 %v6206_v52, %v12648_v7  ;;  %v6170_v40 = vpop.f32.mrf.mxu1 }
 0x7cd   :  { %v6171_v57 = vadd.f32 %v6170_v40, %v6122_v14  ;;  %v9560_v40 = vld [vmem:[#allocation13 + $0x88] sm:$0xff] }
 0x7cf   :  { %6365 = vmatmul.bf16.gmra.mxu1 %v11532_v60  ;;  %6750 = vmatmul.bf16.vlgmr.msrb.gmra.mxu0 %v13056_v63  ;;  %v6126_v60 = vpop.f32.mrf.mxu0 }
 0x7d0   :  { %6404 = vmatmul.bf16.gmra.mxu2 %v11684_v1  ;;  %v6245_v58 = vpop.f32.mrf.mxu3 }
 0x7d1   :  { %v12698_v41 = vadd.f32 %v6245_v58, %v12656_v21  ;;  %v6127_v21 = vadd.f32 %v6126_v60, %v12569_v4 }
 0x7d3   :  { %v6209_v19 = vpop.f32.mrf.mxu2 }
 0x7d4   :  { %v6210_v31 = vadd.f32 %v6209_v19, %v12658_v2  ;;  %v6172_v28 = vpop.f32.mrf.mxu1  ;;  %v13057_v2 = vld [vmem:[#allocation27_spill] sm:$0xff]  ;;  %v13060_v19 = vld [vmem:[#allocation33_spill] sm:$0xff] }
 0x7d5   :  { %v12702_v7 = vadd.f32 %v6172_v28, %v6124_v43  ;;  %6443 = vmatmul.bf16.gmra.mxu3 %v11839_v0 }
 0x7d7   :  { %v6128_v5 = vpop.f32.mrf.mxu0 }
 0x7d8   :  { %v6248_v51 = vpop.f32.mrf.mxu3  ;;  %v6129_v32 = vadd.f32 %v6128_v5, %v12569_v4 }
 0x7d9   :  { %v12706_v1 = vadd.f32 %v6248_v51, %v12666_v38 }
 0x7db   :  { %v6211_v48 = vpop.f32.mrf.mxu2 }
 0x7dc   :  { %v6175_v45 = vpop.f32.mrf.mxu1  ;;  %v6212_v52 = vadd.f32 %v6211_v48, %v12668_v9 }
 0x7dd   :  { %v6176_v59 = vadd.f32 %v6175_v45, %v6127_v21  ;;  %v13061_v45 = vld [vmem:[#allocation29_spill] sm:$0xff] }
 0x7df   :  { %6370 = vmatmul.bf16.gmra.mxu1 %v11558_v11  ;;  %6755 = vmatmul.bf16.gmra.mxu0 %v13057_v2  ;;  %v6287_v12 = vpop.f32.mrf.mxu0 }
 0x7e0   :  { %6409 = vmatmul.bf16.gmra.mxu2 %v11708_v54  ;;  %v6250_v0 = vpop.f32.mrf.mxu3 }
 0x7e1   :  { %v12712_v25 = vadd.f32 %v6250_v0, %v6202_v33 }
 0x7e3   :  { %v6214_v3 = vpop.f32.mrf.mxu2 }
 0x7e4   :  { %v6215_v38 = vadd.f32 %v6214_v3, %v6166_v44  ;;  %v6177_v62 = vpop.f32.mrf.mxu1 }
 0x7e5   :  { %v12715_v47 = vadd.f32 %v6177_v62, %v6129_v32  ;;  %6448 = vmatmul.bf16.gmra.mxu3 %v11863_v8  ;;  %v9561_v8 = vld [vmem:[#allocation13 + $0x90] sm:$0xff] }
 0x7e6   :  { %6845 = vmatpush.bf16.msrb.mxu2 %v9561_v8 }
 0x7e7   :  { %v6289_v46 = vpop.f32.mrf.mxu0 }
 0x7e8   :  { %v6253_v11 = vpop.f32.mrf.mxu3 }
 0x7e9   :  { %v12718_v39 = vadd.f32 %v6253_v11, %v6205_v55 }
 0x7ea   :  { %6846 = vmatpush.bf16.msrb.mxu2 %v9560_v40 }
 0x7eb   :  { %v6216_v42 = vpop.f32.mrf.mxu2 }
 0x7ef   :  { %6760 = vmatmul.bf16.gmra.mxu0 %v13058_v20  ;;  %6799 = vmatmul.bf16.vlgmr.msrb.gmra.mxu1 %v12514_v18  ;;  %v6292_v43 = vpop.f32.mrf.mxu0 }
 0x7f0   :  { %6414 = vmatmul.bf16.gmra.mxu2 %v11734_v15  ;;  %v6255_v54 = vpop.f32.mrf.mxu3 }
 0x7f1   :  { %v12723_v4 = vadd.f32 %v6255_v54, %v6207_v16 }
 0x7f3   :  { %v6219_v33 = vpop.f32.mrf.mxu2 }
 0x7f4   :  { %v6220_v44 = vadd.f32 %v6219_v33, %v6171_v57  ;;  %v6336_v57 = vpop.f32.mrf.mxu1 }
 0x7f5   :  { %6453 = vmatmul.bf16.gmra.mxu3 %v11888_v13 }
 0x7f7   :  { %v6294_v60 = vpop.f32.mrf.mxu0 }
 0x7f8   :  { %v6258_v29 = vpop.f32.mrf.mxu3 }
 0x7f9   :  { %v12726_v55 = vadd.f32 %v6258_v29, %v6210_v31 }
 0x7fb   :  { %v6221_v14 = vpop.f32.mrf.mxu2 }
 0x7fc   :  { %v6338_v28 = vpop.f32.mrf.mxu1 }
 0x7ff   :  { %6765 = vmatmul.bf16.gmra.mxu0 %v13059_v34  ;;  %6804 = vmatmul.bf16.gmra.mxu1 %v12544_v56  ;;  %v6217_v56 = vadd.f32 %v6216_v42, %v12686_v17  ;;  %v6222_v17 = vadd.f32 %v6221_v14, %v12702_v7  ;;  %v6297_v2 = vpop.f32.mrf.mxu0  ;;  %v13062_v7 = vld [vmem:[#allocation34_spill] sm:$0xff] }
 0x800   :  { %6419 = vmatmul.bf16.gmra.mxu2 %v11760_v61  ;;  %v6260_v15 = vpop.f32.mrf.mxu3 }
 0x801   :  { %v12732_v18 = vadd.f32 %v6260_v15, %v6212_v52 }
 0x803   :  { %v6224_v13 = vpop.f32.mrf.mxu2 }
 0x804   :  { %v6225_v16 = vadd.f32 %v6224_v13, %v6176_v59  ;;  %v6341_v48 = vpop.f32.mrf.mxu1 }
 0x805   :  { %6458 = vmatmul.bf16.gmra.mxu3 %v11912_v30  ;;  %v9559_v30 = vld [vmem:[#allocation13 + $0x80] sm:$0xff] }
 0x806   :  { %6847 = vmatpush.bf16.msrb.mxu2 %v9559_v30 }
 0x808   :  { %v6263_v63 = vpop.f32.mrf.mxu3 }
 0x809   :  { %v12735_v58 = vadd.f32 %v6263_v63, %v6215_v38  ;;  %v6299_v38 = vpop.f32.mrf.mxu0 }
 0x80b   :  { %v6226_v9 = vpop.f32.mrf.mxu2 }
 0x80c   :  { %v6227_v62 = vadd.f32 %v6226_v9, %v12715_v47 }
 0x80f   :  { %6770 = vmatmul.bf16.gmra.mxu0 %v13060_v19  ;;  %6809 = vmatmul.bf16.gmra.mxu1 %v12564_v27 }
 0x810   :  { %v6265_v61 = vpop.f32.mrf.mxu3 }
 0x811   :  { %v12740_v31 = vadd.f32 %v6265_v61, %v6217_v56  ;;  %v6302_v20 = vpop.f32.mrf.mxu0 }
 0x813   :  { %v6385_v35 = vpop.f32.mrf.mxu2 }
 0x815   :  { %6463 = vmatmul.bf16.gmra.mxu3 %v11938_v26  ;;  %v6343_v26 = vpop.f32.mrf.mxu1 }
 0x818   :  { %v6268_v51 = vpop.f32.mrf.mxu3 }
 0x819   :  { %v12743_v21 = vadd.f32 %v6268_v51, %v6220_v44  ;;  %v6290_v44 = vadd.f32 %v6289_v46, %v12682_v23  ;;  %v6304_v52 = vpop.f32.mrf.mxu0  ;;  %v6293_v46 = vadd.f32 %v6292_v43, %v12690_v53  ;;  %v6300_v43 = vadd.f32 %v6299_v38, %v12712_v25 }
 0x81a   :  { %v6303_v25 = vadd.f32 %v6302_v20, %v12718_v39  ;;  %v6305_v38 = vadd.f32 %v6304_v52, %v12723_v4 }
 0x81b   :  { %v6387_v27 = vpop.f32.mrf.mxu2  ;;  %v6339_v29 = vadd.f32 %v6338_v28, %v6290_v44  ;;  %v6342_v56 = vadd.f32 %v6341_v48, %v6293_v46 }
 0x81d   :  { %v6388_v34 = vadd.f32 %v6387_v27, %v6339_v29 }
 0x81f   :  { %6775 = vmatmul.bf16.gmra.mxu0 %v13061_v45  ;;  %6814 = vmatmul.bf16.gmra.mxu1 %v12591_v37  ;;  %v6346_v37 = vpop.f32.mrf.mxu1 }
 0x820   :  { %v6270_v59 = vpop.f32.mrf.mxu3 }
 0x821   :  { %v12748_v5 = vadd.f32 %v6270_v59, %v6222_v17 }
 0x823   :  { %v6390_v3 = vpop.f32.mrf.mxu2 }
 0x824   :  { %v6391_v61 = vadd.f32 %v6390_v3, %v6342_v56 }
 0x825   :  { %6468 = vmatmul.bf16.gmra.mxu3 %v13024_v49  ;;  %v6288_v49 = vadd.f32 %v6287_v12, %v12674_v6 }
 0x827   :  { %v6348_v33 = vpop.f32.mrf.mxu1  ;;  %v6337_v8 = vadd.f32 %v6336_v57, %v6288_v49  ;;  %v6295_v57 = vadd.f32 %v6294_v60, %v12698_v41  ;;  %v6298_v41 = vadd.f32 %v6297_v2, %v12706_v1 }
 0x828   :  { %v6273_v0 = vpop.f32.mrf.mxu3 }
 0x829   :  { %v12751_v32 = vadd.f32 %v6273_v0, %v6225_v16  ;;  %v6386_v14 = vadd.f32 %v6385_v35, %v6337_v8  ;;  %v6344_v19 = vadd.f32 %v6343_v26, %v6295_v57  ;;  %v6307_v0 = vpop.f32.mrf.mxu0  ;;  %v6347_v60 = vadd.f32 %v6346_v37, %v6298_v41 }
 0x82a   :  { %v6349_v26 = vadd.f32 %v6348_v33, %v6300_v43  ;;  %v6308_v39 = vadd.f32 %v6307_v0, %v12726_v55 }
 0x82b   :  { %v6392_v42 = vpop.f32.mrf.mxu2 }
 0x82c   :  { %v6393_v30 = vadd.f32 %v6392_v42, %v6344_v19 }
 0x82f   :  { %6780 = vmatmul.bf16.gmra.mxu0 %v13062_v7  ;;  %6819 = vmatmul.bf16.gmra.mxu1 %v12611_v50  ;;  %v13063_v50 = vld [vmem:[#allocation53_spill] sm:$0xff]  ;;  %v6351_v9 = vpop.f32.mrf.mxu1 }
 0x830   :  { %v6275_v24 = vpop.f32.mrf.mxu3  ;;  %v6352_v37 = vadd.f32 %v6351_v9, %v6303_v25 }
 0x831   :  { %v12756_v11 = vadd.f32 %v6275_v24, %v6227_v62  ;;  %v6309_v24 = vpop.f32.mrf.mxu0 }
 0x832   :  { %v6310_v4 = vadd.f32 %v6309_v24, %v12732_v18 }
 0x833   :  { %v6395_v47 = vpop.f32.mrf.mxu2 }
 0x834   :  { %v6396_v3 = vadd.f32 %v6395_v47, %v6347_v60 }
 0x837   :  { %v6353_v28 = vpop.f32.mrf.mxu1 }
 0x838   :  { %v6434_v54 = vpop.f32.mrf.mxu3  ;;  %v6354_v47 = vadd.f32 %v6353_v28, %v6305_v38 }
 0x839   :  { %v6435_v15 = vadd.f32 %v6434_v54, %v6386_v14  ;;  %v6312_v2 = vpop.f32.mrf.mxu0 }
 0x83a   :  { %v6313_v55 = vadd.f32 %v6312_v2, %v12735_v58 }
 0x83b   :  { %v6476_v40 = vmax.f32 %v6435_v15, 0.0  ;;  %v6397_v12 = vpop.f32.mrf.mxu2 }
 0x83c   :  { %v6398_v7 = vadd.f32 %v6397_v12, %v6349_v26 }
 0x83f   :  { %6785 = vmatmul.bf16.gmra.mxu0 %v13063_v50  ;;  %6824 = vmatmul.bf16.gmra.mxu1 %v12631_v22  ;;  %v6356_v62 = vpop.f32.mrf.mxu1 }
 0x840   :  { %v6436_v13 = vpop.f32.mrf.mxu3  ;;  %v6357_v52 = vadd.f32 %v6356_v62, %v6308_v39 }
 0x841   :  { %v6437_v16 = vadd.f32 %v6436_v13, %v6388_v34 }
 0x843   :  { %v6479_v63 = vmax.f32 %v6437_v16, 0.0  ;;  %v6400_v17 = vpop.f32.mrf.mxu2 }
 0x844   :  { %v6401_v34 = vadd.f32 %v6400_v17, %v6352_v37 }
 0x845   :  { %v6524_v6 = vpack.c.bf16 %v6479_v63, %v6476_v40 }
 0x847   :  { %6848 = vmatmul.bf16.vlgmr.msrb.gmra.mxu2 %v6524_v6  ;;  %v6358_v49 = vpop.f32.mrf.mxu1  ;;  %v6314_v6 = vpop.f32.mrf.mxu0 }
 0x848   :  { %v6439_v23 = vpop.f32.mrf.mxu3  ;;  %v6359_v9 = vadd.f32 %v6358_v49, %v6310_v4  ;;  %v6315_v18 = vadd.f32 %v6314_v6, %v12740_v31 }
 0x849   :  { %v6440_v35 = vadd.f32 %v6439_v23, %v6391_v61 }
 0x84b   :  { %v6482_v45 = vmax.f32 %v6440_v35, 0.0  ;;  %v6402_v48 = vpop.f32.mrf.mxu2 }
 0x84f   :  { %6829 = vmatmul.bf16.gmra.mxu1 %v12651_v36  ;;  %v6361_v33 = vpop.f32.mrf.mxu1  ;;  %v6317_v56 = vpop.f32.mrf.mxu0 }
 0x850   :  { %v6441_v22 = vpop.f32.mrf.mxu3  ;;  %v6362_v62 = vadd.f32 %v6361_v33, %v6313_v55  ;;  %v6318_v58 = vadd.f32 %v6317_v56, %v12743_v21 }
 0x851   :  { %v6442_v51 = vadd.f32 %v6441_v22, %v6393_v30 }
 0x853   :  { %v6485_v27 = vmax.f32 %v6442_v51, 0.0  ;;  %v6405_v14 = vpop.f32.mrf.mxu2 }
 0x854   :  { %v6406_v57 = vadd.f32 %v6405_v14, %v6357_v52 }
 0x855   :  { %v6527_v59 = vpack.c.bf16 %v6485_v27, %v6482_v45 }
 0x857   :  { %6853 = vmatmul.bf16.gmra.mxu2 %v6527_v59  ;;  %v6363_v23 = vpop.f32.mrf.mxu1  ;;  %v6319_v27 = vpop.f32.mrf.mxu0 }
 0x858   :  { %v6444_v53 = vpop.f32.mrf.mxu3  ;;  %v6320_v31 = vadd.f32 %v6319_v27, %v12748_v5 }
 0x859   :  { %v6445_v36 = vadd.f32 %v6444_v53, %v6396_v3  ;;  %v6364_v53 = vadd.f32 %v6363_v23, %v6315_v18 }
 0x85b   :  { %v6488_v44 = vmax.f32 %v6445_v36, 0.0  ;;  %v6407_v50 = vpop.f32.mrf.mxu2 }
 0x85c   :  { %v6408_v19 = vadd.f32 %v6407_v50, %v6359_v9 }
 0x85f   :  { %6834 = vmatmul.bf16.gmra.mxu1 %v12671_v10  ;;  %v6403_v10 = vadd.f32 %v6402_v48, %v6354_v47  ;;  %v6366_v28 = vpop.f32.mrf.mxu1 }
 0x860   :  { %v6446_v42 = vpop.f32.mrf.mxu3 }
 0x861   :  { %v6447_v54 = vadd.f32 %v6446_v42, %v6398_v7  ;;  %v6322_v7 = vpop.f32.mrf.mxu0 }
 0x862   :  { %v6323_v21 = vadd.f32 %v6322_v7, %v12751_v32  ;;  %v12781_v32 = vld [vmem:[%s12810_s8] ss:$0 sm:$0xff]  ;;  %s9896_s8 = smov [#allocation14]  }
 0x863   :  { %v6491_v8 = vmax.f32 %v6447_v54, 0.0  ;;  %v6410_v20 = vpop.f32.mrf.mxu2  ;;  %s6989_s29 = sshll.u32 %s9896_s8, 4  ;;  %s6990_s29 = int_to_ptr.vmem [resolvable:$true] %s6989_s29 }
 0x864   :  { %v6411_v41 = vadd.f32 %v6410_v20, %v6362_v62 }
 0x865   :  { %v6530_v29 = vpack.c.bf16 %v6491_v8, %v6488_v44  ;;  %v6367_v8 = vadd.f32 %v6366_v28, %v6318_v58 }
 0x867   :  { %6858 = vmatmul.bf16.gmra.mxu2 %v6530_v29  ;;  %v6368_v0 = vpop.f32.mrf.mxu1 }
 0x868   :  { %v6449_v1 = vpop.f32.mrf.mxu3  ;;  %v6369_v14 = vadd.f32 %v6368_v0, %v6320_v31 }
 0x869   :  { %v6450_v15 = vadd.f32 %v6449_v1, %v6401_v34  ;;  %v6324_v29 = vpop.f32.mrf.mxu0 }
 0x86a   :  { %v6325_v5 = vadd.f32 %v6324_v29, %v12756_v11 }
 0x86b   :  { %v6494_v40 = vmax.f32 %v6450_v15, 0.0  ;;  %v6412_v17 = vpop.f32.mrf.mxu2 }
 0x86c   :  { %v6413_v60 = vadd.f32 %v6412_v17, %v6364_v53 }
 0x86f   :  { %v6371_v42 = vpop.f32.mrf.mxu1 }
 0x870   :  { %v6451_v13 = vpop.f32.mrf.mxu3 }
 0x871   :  { %v6452_v16 = vadd.f32 %v6451_v13, %v6403_v10  ;;  %v6751_v50 = vpop.f32.mrf.mxu0 }
 0x873   :  { %v6497_v63 = vmax.f32 %v6452_v16, 0.0  ;;  %v6415_v43 = vpop.f32.mrf.mxu2 }
 0x874   :  { %v6416_v1 = vadd.f32 %v6415_v43, %v6367_v8 }
 0x875   :  { %v6533_v12 = vpack.c.bf16 %v6497_v63, %v6494_v40  ;;  %v6372_v40 = vadd.f32 %v6371_v42, %v6323_v21 }
 0x877   :  { %6863 = vmatmul.bf16.gmra.mxu2 %v6533_v12  ;;  %v6373_v25 = vpop.f32.mrf.mxu1 }
 0x878   :  { %v6454_v46 = vpop.f32.mrf.mxu3  ;;  %v6374_v6 = vadd.f32 %v6373_v25, %v6325_v5 }
 0x879   :  { %v6455_v61 = vadd.f32 %v6454_v46, %v6406_v57  ;;  %v6753_v39 = vpop.f32.mrf.mxu0 }
 0x87a   :  { %v6754_v27 = vadd.f32 %v12781_v32, %v6753_v39 }
 0x87b   :  { %v6500_v22 = vmax.f32 %v6455_v61, 0.0  ;;  %v6417_v49 = vpop.f32.mrf.mxu2 }
 0x87c   :  { %v6418_v2 = vadd.f32 %v6417_v49, %v6369_v14 }
 0x87f   :  { %v6800_v13 = vpop.f32.mrf.mxu1 }
 0x880   :  { %v6456_v30 = vpop.f32.mrf.mxu3 }
 0x881   :  { %v6457_v35 = vadd.f32 %v6456_v30, %v6408_v19  ;;  %v6756_v19 = vpop.f32.mrf.mxu0  ;;  %v6752_v30 = vadd.f32 %v12781_v32, %v6751_v50 }
 0x882   :  { %v6757_v43 = vadd.f32 %v12781_v32, %v6756_v19 }
 0x883   :  { %v6503_v51 = vmax.f32 %v6457_v35, 0.0  ;;  %v6420_v47 = vpop.f32.mrf.mxu2  ;;  %v6801_v35 = vadd.f32 %v6800_v13, %v6752_v30 }
 0x884   :  { %v6421_v12 = vadd.f32 %v6420_v47, %v6372_v40 }
 0x885   :  { %v6536_v45 = vpack.c.bf16 %v6503_v51, %v6500_v22 }
 0x887   :  { %6868 = vmatmul.bf16.gmra.mxu2 %v6536_v45  ;;  %v6802_v52 = vpop.f32.mrf.mxu1 }
 0x888   :  { %v6459_v59 = vpop.f32.mrf.mxu3  ;;  %v6803_v0 = vadd.f32 %v6802_v52, %v6754_v27 }
 0x889   :  { %v6460_v48 = vadd.f32 %v6459_v59, %v6411_v41  ;;  %v6758_v11 = vpop.f32.mrf.mxu0 }
 0x88a   :  { %v6759_v49 = vadd.f32 %v12781_v32, %v6758_v11 }
 0x88b   :  { %v6506_v36 = vmax.f32 %v6460_v48, 0.0  ;;  %v6422_v63 = vpop.f32.mrf.mxu2 }
 0x88c   :  { %v6423_v23 = vadd.f32 %v6422_v63, %v6374_v6 }
 0x88f   :  { %v6805_v61 = vpop.f32.mrf.mxu1 }
 0x890   :  { %v6461_v26 = vpop.f32.mrf.mxu3 }
 0x891   :  { %v6462_v3 = vadd.f32 %v6461_v26, %v6413_v60  ;;  %v6761_v45 = vpop.f32.mrf.mxu0 }
 0x893   :  { %v6509_v24 = vmax.f32 %v6462_v3, 0.0  ;;  %v6806_v3 = vadd.f32 %v6805_v61, %v6757_v43 }
 0x895   :  { %v6539_v54 = vpack.c.bf16 %v6509_v24, %v6506_v36 }
 0x897   :  { %6873 = vmatmul.bf16.gmra.mxu2 %v6539_v54  ;;  %v6807_v28 = vpop.f32.mrf.mxu1 }
 0x898   :  { %v6464_v44 = vpop.f32.mrf.mxu3  ;;  %v6808_v8 = vadd.f32 %v6807_v28, %v6759_v49 }
 0x899   :  { %v6465_v38 = vadd.f32 %v6464_v44, %v6416_v1  ;;  %v6763_v48 = vpop.f32.mrf.mxu0 }
 0x89a   :  { %v6764_v40 = vadd.f32 %v12781_v32, %v6763_v48 }
 0x89b   :  { %v6512_v34 = vmax.f32 %v6465_v38, 0.0 }
 0x89f   :  { %v6810_v55 = vpop.f32.mrf.mxu1 }
 0x8a0   :  { %v6466_v37 = vpop.f32.mrf.mxu3 }
 0x8a1   :  { %v6467_v33 = vadd.f32 %v6466_v37, %v6418_v2  ;;  %v6766_v29 = vpop.f32.mrf.mxu0  ;;  %v6762_v37 = vadd.f32 %v12781_v32, %v6761_v45 }
 0x8a3   :  { %v6515_v10 = vmax.f32 %v6467_v33, 0.0 }
 0x8a5   :  { %v6542_v15 = vpack.c.bf16 %v6515_v10, %v6512_v34  ;;  %v6811_v10 = vadd.f32 %v6810_v55, %v6762_v37 }
 0x8a7   :  { %6878 = vmatmul.bf16.gmra.mxu2 %v6542_v15  ;;  %v6812_v7 = vpop.f32.mrf.mxu1 }
 0x8a8   :  { %v6469_v16 = vpop.f32.mrf.mxu3 }
 0x8a9   :  { %v6470_v46 = vadd.f32 %v6469_v16, %v6421_v12  ;;  %v6768_v13 = vpop.f32.mrf.mxu0 }
 0x8ab   :  { %v6518_v9 = vmax.f32 %v6470_v46, 0.0 }
 0x8af   :  { %v6815_v25 = vpop.f32.mrf.mxu1 }
 0x8b0   :  { %v6471_v20 = vpop.f32.mrf.mxu3 }
 0x8b1   :  { %v6472_v4 = vadd.f32 %v6471_v20, %v6423_v23  ;;  %v6813_v23 = vadd.f32 %v6812_v7, %v6764_v40 }
 0x8b3   :  { %v6521_v57 = vmax.f32 %v6472_v4, 0.0  ;;  %v6771_v4 = vpop.f32.mrf.mxu0 }
 0x8b4   :  { %v6772_v43 = vadd.f32 %v12781_v32, %v6771_v4 }
 0x8b5   :  { %v6545_v56 = vpack.c.bf16 %v6521_v57, %v6518_v9  ;;  %v6767_v9 = vadd.f32 %v12781_v32, %v6766_v29 }
 0x8b7   :  { %6883 = vmatmul.bf16.gmra.mxu2 %v6545_v56  ;;  %v6817_v21 = vpop.f32.mrf.mxu1  ;;  %v6816_v11 = vadd.f32 %v6815_v25, %v6767_v9 }
 0x8bb   :  { %v6773_v27 = vpop.f32.mrf.mxu0 }
 0x8bf   :  { %v6820_v19 = vpop.f32.mrf.mxu1 }
 0x8c3   :  { %v6776_v7 = vpop.f32.mrf.mxu0 }
 0x8ca   :  { %v6849_v22 = vpop.f32.mrf.mxu2 }
 0x8cb   :  { %v6850_v51 = vadd.f32 %v6849_v22, %v6801_v35  ;;  %v6778_v25 = vpop.f32.mrf.mxu0 }
 0x8cc   :  { %v6779_v40 = vadd.f32 %v12781_v32, %v6778_v25 }
 0x8cd   :  { %v6889_v17 = vsub.f32 0.0, %v6850_v51  ;;  %v6769_v51 = vadd.f32 %v12781_v32, %v6768_v13 }
 0x8cf   :  { %v6905_v59 = vmul.f32 1.442695, %v6889_v17  ;;  %v6818_v55 = vadd.f32 %v6817_v21, %v6769_v51 }
 0x8d1   :  { %9610 = vpow2.f32 %v6905_v59 }
 0x8d2   :  { %v6851_v18 = vpop.f32.mrf.mxu2 }
 0x8d3   :  { %v6852_v62 = vadd.f32 %v6851_v18, %v6803_v0  ;;  %v6822_v0 = vpop.f32.mrf.mxu1  ;;  %v6781_v21 = vpop.f32.mrf.mxu0 }
 0x8d4   :  { %v6782_v9 = vadd.f32 %v12781_v32, %v6781_v21 }
 0x8d5   :  { %v6890_v53 = vsub.f32 0.0, %v6852_v62 }
 0x8d7   :  { %v9611_v41 = vpop.eup %9610  ;;  %v6907_v60 = vmul.f32 1.442695, %v6890_v53 }
 0x8d8   :  { %v6937_v26 = vadd.f32 1.0, %v9611_v41 }
 0x8d9   :  { %9612 = vpow2.f32 %v6907_v60 }
 0x8da   :  { %9614 = vrcp.f32 %v6937_v26  ;;  %v6854_v36 = vpop.f32.mrf.mxu2 }
 0x8db   :  { %v6855_v24 = vadd.f32 %v6854_v36, %v6806_v3  ;;  %v6821_v3 = vadd.f32 %v6820_v19, %v6772_v43  ;;  %v6783_v19 = vpop.f32.mrf.mxu0 }
 0x8dd   :  { %v6891_v42 = vsub.f32 0.0, %v6855_v24 }
 0x8df   :  { %v9613_v54 = vpop.eup %9612  ;;  %v6909_v44 = vmul.f32 1.442695, %v6891_v42  ;;  %v6825_v42 = vpop.f32.mrf.mxu1 }
 0x8e0   :  { %v9615_v58 = vpop.eup %9614  ;;  %v6938_v31 = vadd.f32 1.0, %v9613_v54 }
 0x8e1   :  { %6969 = vst [vmem:[#allocation14] sm:$0xff] %v9615_v58  ;;  %9616 = vpow2.f32 %v6909_v44  ;;  %v6774_v44 = vadd.f32 %v12781_v32, %v6773_v27 }
 0x8e2   :  { %9618 = vrcp.f32 %v6938_v31  ;;  %v6856_v14 = vpop.f32.mrf.mxu2 }
 0x8e3   :  { %v6857_v1 = vadd.f32 %v6856_v14, %v6808_v8  ;;  %v6823_v29 = vadd.f32 %v6822_v0, %v6774_v44  ;;  %v6786_v0 = vpop.f32.mrf.mxu0 }
 0x8e5   :  { %v6892_v2 = vsub.f32 0.0, %v6857_v1 }
 0x8e7   :  { %v9617_v38 = vpop.eup %9616  ;;  %v6911_v33 = vmul.f32 1.442695, %v6892_v2 }
 0x8e8   :  { %v9619_v47 = vpop.eup %9618  ;;  %v6939_v34 = vadd.f32 1.0, %v9617_v38  ;;  %v6827_v38 = vpop.f32.mrf.mxu1 }
 0x8e9   :  { %6970 = vst [vmem:[#allocation14 + $0x8] sm:$0xff] %v9619_v47  ;;  %9620 = vpow2.f32 %v6911_v33  ;;  %v6777_v33 = vadd.f32 %v12781_v32, %v6776_v7 }
 0x8ea   :  { %9622 = vrcp.f32 %v6939_v34  ;;  %v6859_v15 = vpop.f32.mrf.mxu2 }
 0x8eb   :  { %v6860_v50 = vadd.f32 %v6859_v15, %v6811_v10  ;;  %v6826_v15 = vadd.f32 %v6825_v42, %v6777_v33  ;;  %v6788_v42 = vpop.f32.mrf.mxu0 }
 0x8ed   :  { %v6893_v16 = vsub.f32 0.0, %v6860_v50 }
 0x8ef   :  { %v9621_v5 = vpop.eup %9620  ;;  %v6913_v63 = vmul.f32 1.442695, %v6893_v16 }
 0x8f0   :  { %v9623_v6 = vpop.eup %9622  ;;  %v6940_v12 = vadd.f32 1.0, %v9621_v5 }
 0x8f1   :  { %6971 = vst [vmem:[#allocation14 + $0x10] sm:$0xff] %v9623_v6  ;;  %9624 = vpow2.f32 %v6913_v63 }
 0x8f2   :  { %9626 = vrcp.f32 %v6940_v12  ;;  %v6861_v46 = vpop.f32.mrf.mxu2  ;;  %v6830_v12 = vpop.f32.mrf.mxu1 }
 0x8f3   :  { %v6862_v39 = vadd.f32 %v6861_v46, %v6813_v23  ;;  %v6828_v46 = vadd.f32 %v6827_v38, %v6779_v40 }
 0x8f5   :  { %v6894_v20 = vsub.f32 0.0, %v6862_v39 }
 0x8f7   :  { %v9625_v52 = vpop.eup %9624  ;;  %v6915_v57 = vmul.f32 1.442695, %v6894_v20 }
 0x8f8   :  { %v9627_v56 = vpop.eup %9626  ;;  %v6941_v61 = vadd.f32 1.0, %v9625_v52 }
 0x8f9   :  { %6972 = vst [vmem:[#allocation14 + $0x18] sm:$0xff] %v9627_v56  ;;  %9628 = vpow2.f32 %v6915_v57 }
 0x8fa   :  { %9630 = vrcp.f32 %v6941_v61  ;;  %v6864_v28 = vpop.f32.mrf.mxu2 }
 0x8fb   :  { %v6865_v30 = vadd.f32 %v6864_v28, %v6816_v11  ;;  %v6831_v11 = vadd.f32 %v6830_v12, %v6782_v9  ;;  %v6832_v28 = vpop.f32.mrf.mxu1 }
 0x8fd   :  { %v6895_v35 = vsub.f32 0.0, %v6865_v30 }
 0x8ff   :  { %v9629_v22 = vpop.eup %9628  ;;  %v6917_v17 = vmul.f32 1.442695, %v6895_v35 }
 0x900   :  { %v9631_v45 = vpop.eup %9630  ;;  %v6942_v59 = vadd.f32 1.0, %v9629_v22 }
 0x901   :  { %6973 = vst [vmem:[#allocation14 + $0x20] sm:$0xff] %v9631_v45  ;;  %9632 = vpow2.f32 %v6917_v17  ;;  %v6784_v17 = vadd.f32 %v12781_v32, %v6783_v19 }
 0x902   :  { %9634 = vrcp.f32 %v6942_v59  ;;  %v6866_v18 = vpop.f32.mrf.mxu2 }
 0x903   :  { %v6867_v62 = vadd.f32 %v6866_v18, %v6818_v55  ;;  %v6833_v55 = vadd.f32 %v6832_v28, %v6784_v17 }
 0x905   :  { %v6896_v53 = vsub.f32 0.0, %v6867_v62 }
 0x907   :  { %v9633_v41 = vpop.eup %9632  ;;  %v6919_v60 = vmul.f32 1.442695, %v6896_v53  ;;  %v6835_v53 = vpop.f32.mrf.mxu1 }
 0x908   :  { %v9635_v48 = vpop.eup %9634  ;;  %v6943_v26 = vadd.f32 1.0, %v9633_v41 }
 0x909   :  { %6974 = vst [vmem:[#allocation14 + $0x28] sm:$0xff] %v9635_v48  ;;  %9636 = vpow2.f32 %v6919_v60  ;;  %v6787_v60 = vadd.f32 %v12781_v32, %v6786_v0 }
 0x90a   :  { %9638 = vrcp.f32 %v6943_v26  ;;  %v6869_v36 = vpop.f32.mrf.mxu2 }
 0x90b   :  { %v6870_v24 = vadd.f32 %v6869_v36, %v6821_v3  ;;  %v6836_v7 = vadd.f32 %v6835_v53, %v6787_v60 }
 0x90d   :  { %v6897_v54 = vsub.f32 0.0, %v6870_v24 }
 0x90f   :  { %v9637_v49 = vpop.eup %9636  ;;  %v6921_v58 = vmul.f32 1.442695, %v6897_v54 }
 0x910   :  { %v9639_v31 = vpop.eup %9638  ;;  %v6944_v8 = vadd.f32 1.0, %v9637_v49  ;;  %v6837_v49 = vpop.f32.mrf.mxu1 }
 0x911   :  { %6975 = vst [vmem:[#allocation14 + $0x30] sm:$0xff] %v9639_v31  ;;  %9640 = vpow2.f32 %v6921_v58  ;;  %v6789_v58 = vadd.f32 %v12781_v32, %v6788_v42 }
 0x912   :  { %9642 = vrcp.f32 %v6944_v8  ;;  %v6871_v14 = vpop.f32.mrf.mxu2 }
 0x913   :  { %v6872_v1 = vadd.f32 %v6871_v14, %v6823_v29  ;;  %v6838_v14 = vadd.f32 %v6837_v49, %v6789_v58 }
 0x915   :  { %v6898_v2 = vsub.f32 0.0, %v6872_v1 }
 0x917   :  { %v9641_v37 = vpop.eup %9640  ;;  %v6923_v47 = vmul.f32 1.442695, %v6898_v2 }
 0x918   :  { %v9643_v34 = vpop.eup %9642  ;;  %v6945_v10 = vadd.f32 1.0, %v9641_v37 }
 0x919   :  { %6976 = vst [vmem:[#allocation14 + $0x38] sm:$0xff] %v9643_v34  ;;  %9644 = vpow2.f32 %v6923_v47 }
 0x91a   :  { %9646 = vrcp.f32 %v6945_v10  ;;  %v6874_v50 = vpop.f32.mrf.mxu2 }
 0x91b   :  { %v6875_v13 = vadd.f32 %v6874_v50, %v6826_v15 }
 0x91d   :  { %v6899_v16 = vsub.f32 0.0, %v6875_v13 }
 0x91f   :  { %v9645_v5 = vpop.eup %9644  ;;  %v6925_v63 = vmul.f32 1.442695, %v6899_v16 }
 0x920   :  { %v9647_v6 = vpop.eup %9646  ;;  %v6946_v23 = vadd.f32 1.0, %v9645_v5 }
 0x921   :  { %6977 = vst [vmem:[#allocation14 + $0x40] sm:$0xff] %v9647_v6  ;;  %9648 = vpow2.f32 %v6925_v63 }
 0x922   :  { %9650 = vrcp.f32 %v6946_v23  ;;  %v6876_v39 = vpop.f32.mrf.mxu2 }
 0x923   :  { %v6877_v20 = vadd.f32 %v6876_v39, %v6828_v46 }
 0x925   :  { %v6900_v4 = vsub.f32 0.0, %v6877_v20 }
 0x927   :  { %v9649_v52 = vpop.eup %9648  ;;  %v6927_v57 = vmul.f32 1.442695, %v6900_v4 }
 0x928   :  { %v9651_v56 = vpop.eup %9650  ;;  %v6947_v61 = vadd.f32 1.0, %v9649_v52 }
 0x929   :  { %6978 = vst [vmem:[#allocation14 + $0x48] sm:$0xff] %v9651_v56  ;;  %9652 = vpow2.f32 %v6927_v57 }
 0x92a   :  { %9654 = vrcp.f32 %v6947_v61  ;;  %v6879_v30 = vpop.f32.mrf.mxu2 }
 0x92b   :  { %v6880_v35 = vadd.f32 %v6879_v30, %v6831_v11 }
 0x92d   :  { %v6901_v22 = vsub.f32 0.0, %v6880_v35 }
 0x92f   :  { %v9653_v51 = vpop.eup %9652  ;;  %v6929_v45 = vmul.f32 1.442695, %v6901_v22 }
 0x930   :  { %v9655_v27 = vpop.eup %9654  ;;  %v6948_v59 = vadd.f32 1.0, %v9653_v51 }
 0x931   :  { %6979 = vst [vmem:[#allocation14 + $0x50] sm:$0xff] %v9655_v27  ;;  %9656 = vpow2.f32 %v6929_v45 }
 0x932   :  { %9658 = vrcp.f32 %v6948_v59  ;;  %v6881_v18 = vpop.f32.mrf.mxu2 }
 0x933   :  { %v6882_v62 = vadd.f32 %v6881_v18, %v6833_v55 }
 0x935   :  { %v6902_v41 = vsub.f32 0.0, %v6882_v62 }
 0x937   :  { %v9657_v43 = vpop.eup %9656  ;;  %v6931_v48 = vmul.f32 1.442695, %v6902_v41 }
 0x938   :  { %v9659_v26 = vpop.eup %9658  ;;  %v6949_v3 = vadd.f32 1.0, %v9657_v43 }
 0x939   :  { %6980 = vst [vmem:[#allocation14 + $0x58] sm:$0xff] %v9659_v26  ;;  %9660 = vpow2.f32 %v6931_v48 }
 0x93a   :  { %9662 = vrcp.f32 %v6949_v3  ;;  %v6884_v36 = vpop.f32.mrf.mxu2 }
 0x93b   :  { %v6885_v24 = vadd.f32 %v6884_v36, %v6836_v7 }
 0x93d   :  { %v6903_v54 = vsub.f32 0.0, %v6885_v24 }
 0x93f   :  { %v9661_v44 = vpop.eup %9660  ;;  %v6933_v31 = vmul.f32 1.442695, %v6903_v54 }
 0x940   :  { %v9663_v8 = vpop.eup %9662  ;;  %v6950_v29 = vadd.f32 1.0, %v9661_v44 }
 0x941   :  { %6981 = vst [vmem:[#allocation14 + $0x60] sm:$0xff] %v9663_v8  ;;  %9664 = vpow2.f32 %v6933_v31 }
 0x942   :  { %9666 = vrcp.f32 %v6950_v29  ;;  %v6886_v1 = vpop.f32.mrf.mxu2 }
 0x943   :  { %v6887_v25 = vadd.f32 %v6886_v1, %v6838_v14 }
 0x945   :  { %v6904_v2 = vsub.f32 0.0, %v6887_v25 }
 0x947   :  { %v9665_v38 = vpop.eup %9664  ;;  %v6935_v37 = vmul.f32 1.442695, %v6904_v2 }
 0x948   :  { %v9667_v33 = vpop.eup %9666  ;;  %v6951_v47 = vadd.f32 1.0, %v9665_v38 }
 0x949   :  { %6982 = vst [vmem:[#allocation14 + $0x68] sm:$0xff] %v9667_v33  ;;  %9668 = vpow2.f32 %v6935_v37 }
 0x94a   :  { %9670 = vrcp.f32 %v6951_v47 }
 0x94f   :  { %v9669_v34 = vpop.eup %9668 }
 0x950   :  { %v9671_v10 = vpop.eup %9670  ;;  %v6952_v32 = vadd.f32 1.0, %v9669_v34 }
 0x951   :  { %6983 = vst [vmem:[#allocation14 + $0x70] sm:$0xff] %v9671_v10 }
 0x952   :  { %9672 = vrcp.f32 %v6952_v32 }
 0x958   :  { %v9673_v15 = vpop.eup %9672 }
 0x959   :  { %6984 = vst [vmem:[#allocation14 + $0x78] sm:$0xff] %v9673_v15 }
 0x95a   :  { %6997 = dma.vmem_to_hbm [thread:$0]  %s6990_s29, 2048, %s6992_s11, [#allocation4], %s9897_s12, %s9897_s12, %s9898_s13  }
 0x95b   :  { %9879 = dma.done.wait [#allocation4], 2048  }
 0x95c   :  { %9880 = vsyncadd [#allocation4], 4294965248 }
 0x95d   :  { %7002 = vsyncpa [#allocation3], 1 }
 0x95e   :  { %7003 = vsyncpa [#allocation6], 1 }
 0x95f   :  { %7004 = vsyncpa [#allocation9], 1 }
 0x960   :  { %7005 = vsyncpa [#allocation12], 1 }
 0x961   :  { %7006 = vsyncpa [#allocation4], 1 }

</bundles_post_ra>
